<compile_context>
chip_gen: v5e
topology: v5e:2x2
jax: 0.10.0
libtpu: 0.0.40
codegen_flags: <defaults>
</compile_context>

<pallas_src>
import functools

import jax
import jax.numpy as jnp
from jax.experimental import pallas as pl
from jax.experimental.pallas import tpu as pltpu

_VMEM_LIMIT = 32 * 1024 * 1024  # safe on v5e/v6e (128 MiB) and v7x (64 MiB)


# ---------------------------------------------------------------------------
# helpers
# ---------------------------------------------------------------------------
def _round_up(x, m):
    return (x + m - 1) // m * m


def _pick_tk(kp):
    """Largest multiple of 128 that divides kp, capped at 1024 (kp % 128 == 0)."""
    best = 128
    t = 128
    while t <= min(1024, kp):
        if kp % t == 0:
            best = t
        t += 128
    return best


def _elem_rows(mp, base, np_, budget_bytes=2 * 1024 * 1024):
    """Row-tile for the memory-bound elementwise pass: largest power-of-two
    multiple of `base` that divides mp and keeps a bf16 block <= budget."""
    rows = base
    while (rows * 2 <= mp and mp % (rows * 2) == 0
           and rows * 2 * np_ * 2 <= budget_bytes):
        rows *= 2
    return rows


# ---------------------------------------------------------------------------
# Pallas kernels
# ---------------------------------------------------------------------------
def _matmul_bn_stats_kernel(x_ref, w_ref, y_ref, st_ref, acc_ref):
    """Tiled matmul (bf16 in, f32 acc) with fused per-M-tile BatchNorm partial
    sums.  No bias, no row mask: padded patch rows are all-zero, so they
    contribute nothing to the sums."""
    # Read grid position ONLY at the top level (never inside pl.when bodies).
    k = pl.program_id(2)
    nk = pl.num_programs(2)

    @pl.when(k == 0)
    def _():
        acc_ref[...] = jnp.zeros_like(acc_ref)

    acc_ref[...] += jnp.dot(x_ref[...], w_ref[...],
                            preferred_element_type=jnp.float32)

    @pl.when(k == nk - 1)
    def _():
        y = acc_ref[...]                                     # f32 [tm, tn]
        y_ref[...] = y.astype(y_ref.dtype)                   # bf16 writeback
        s = jnp.sum(y, axis=0, keepdims=True)                # [1, tn]
        ss = jnp.sum(y * y, axis=0, keepdims=True)           # [1, tn]
        st_ref[0] = jnp.concatenate([s, ss], axis=0)         # [2, tn]


def _scale_shift_lrelu_kernel(y_ref, sc_ref, sh_ref, o_ref, *, slope):
    """y*scale + shift (folded BatchNorm) followed by LeakyReLU, cast to bf16."""
    a = y_ref[...].astype(jnp.float32) * sc_ref[...] + sh_ref[...]
    o_ref[...] = jnp.where(a >= 0, a, slope * a).astype(o_ref.dtype)


def _bn_lrelu_head_kernel(y_ref, sc_ref, sh_ref, w_ref, o_ref, *, slope):
    """Last layer: folded BN + LeakyReLU + fused 1x1 conv (row reduction).
    Output written lane-dense: the per-row scalar broadcast across 128 lanes."""
    a = y_ref[...].astype(jnp.float32) * sc_ref[...] + sh_ref[...]
    a = jnp.where(a >= 0, a, slope * a)
    r = jnp.sum(a * w_ref[...], axis=1, keepdims=True)       # [rows, 1]
    o_ref[...] = jnp.broadcast_to(r, o_ref.shape)            # [rows, 128]


# ---------------------------------------------------------------------------
# Pallas wrappers
# ---------------------------------------------------------------------------
def matmul_bn_stats(x_bf16, w_bf16, *, tm, tn, tk):
    """x:[Mp,Kp] bf16, w:[Kp,Np] bf16 ->
       y:[Mp,Np] bf16, s:[Np] f32, ss:[Np] f32 (padded rows are zero)."""
    Mp, Kp = x_bf16.shape
    _, Np = w_bf16.shape
    gm, gn, gk = Mp // tm, Np // tn, Kp // tk

    y, stats = pl.pallas_call(
        _matmul_bn_stats_kernel,
        out_shape=(
            jax.ShapeDtypeStruct((Mp, Np), jnp.bfloat16),
            jax.ShapeDtypeStruct((gm, 2, Np), jnp.float32),
        ),
        grid_spec=pltpu.PrefetchScalarGridSpec(
            num_scalar_prefetch=0,
            grid=(gm, gn, gk),
            in_specs=[
                pl.BlockSpec((tm, tk), lambda i, j, k: (i, k)),
                pl.BlockSpec((tk, tn), lambda i, j, k: (k, j)),
            ],
            out_specs=[
                pl.BlockSpec((tm, tn), lambda i, j, k: (i, j)),
                pl.BlockSpec((1, 2, tn), lambda i, j, k: (i, 0, j)),
            ],
            scratch_shapes=[pltpu.VMEM((tm, tn), jnp.float32)],
        ),
        compiler_params=pltpu.CompilerParams(
            dimension_semantics=("parallel", "parallel", "arbitrary"),
            vmem_limit_bytes=_VMEM_LIMIT,
        ),
    )(x_bf16, w_bf16)

    s = jnp.sum(stats[:, 0, :], axis=0)
    ss = jnp.sum(stats[:, 1, :], axis=0)
    return y, s, ss


def bn_lrelu_apply(y_pad, scale_row, shift_row, *, rows, slope=0.2):
    """Lane-dense tiled normalize + LeakyReLU; bf16 in, bf16 out."""
    Mp, Np = y_pad.shape
    kern = functools.partial(_scale_shift_lrelu_kernel, slope=slope)
    return pl.pallas_call(
        kern,
        out_shape=jax.ShapeDtypeStruct((Mp, Np), jnp.bfloat16),
        grid_spec=pltpu.PrefetchScalarGridSpec(
            num_scalar_prefetch=0,
            grid=(Mp // rows,),
            in_specs=[
                pl.BlockSpec((rows, Np), lambda i: (i, 0)),
                pl.BlockSpec((1, Np), lambda i: (0, 0)),
                pl.BlockSpec((1, Np), lambda i: (0, 0)),
            ],
            out_specs=pl.BlockSpec((rows, Np), lambda i: (i, 0)),
        ),
        compiler_params=pltpu.CompilerParams(
            dimension_semantics=("parallel",),
            vmem_limit_bytes=_VMEM_LIMIT,
        ),
    )(y_pad, scale_row, shift_row)


def bn_lrelu_head(y_pad, scale_row, shift_row, w_row, *, rows, slope=0.2):
    """Last layer: normalize + LeakyReLU + fused 1x1 conv -> [Mp, 128] f32
    (lane-dense; column 0 holds the value, sliced out in XLA)."""
    Mp, Np = y_pad.shape
    kern = functools.partial(_bn_lrelu_head_kernel, slope=slope)
    return pl.pallas_call(
        kern,
        out_shape=jax.ShapeDtypeStruct((Mp, 128), jnp.float32),
        grid_spec=pltpu.PrefetchScalarGridSpec(
            num_scalar_prefetch=0,
            grid=(Mp // rows,),
            in_specs=[
                pl.BlockSpec((rows, Np), lambda i: (i, 0)),
                pl.BlockSpec((1, Np), lambda i: (0, 0)),
                pl.BlockSpec((1, Np), lambda i: (0, 0)),
                pl.BlockSpec((1, Np), lambda i: (0, 0)),
            ],
            out_specs=pl.BlockSpec((rows, 128), lambda i: (i, 0)),
        ),
        compiler_params=pltpu.CompilerParams(
            dimension_semantics=("parallel",),
            vmem_limit_bytes=_VMEM_LIMIT,
        ),
    )(y_pad, scale_row, shift_row, w_row)


# ---------------------------------------------------------------------------
# XLA glue: im2col, per-layer driver
# ---------------------------------------------------------------------------
def extract_patches(x_nhwc, k=3, stride=2, pad=1):
    """im2col for NHWC input -> ([M, k*k*C], OH, OW), column order (kh, kw, c)."""
    N, H, W, C = x_nhwc.shape
    OH = (H + 2 * pad - k) // stride + 1
    OW = (W + 2 * pad - k) // stride + 1
    xp = jnp.pad(x_nhwc, ((0, 0), (pad, pad), (pad, pad), (0, 0)))
    cols = []
    for kh in range(k):
        for kw in range(k):
            sl = xp[:,
                    kh: kh + stride * (OH - 1) + 1: stride,
                    kw: kw + stride * (OW - 1) + 1: stride,
                    :]
            cols.append(sl)
    patches = jnp.stack(cols, axis=3)                 # [N, OH, OW, k*k, C]
    return patches.reshape(N * OH * OW, k * k * C), OH, OW


def conv3x3_s2(x_nhwc_bf16, w):
    """3x3 / stride-2 / pad-1 conv (no bias) via Pallas matmul + BN sums."""
    nb = x_nhwc_bf16.shape[0]
    cout = w.shape[0]
    patches, OH, OW = extract_patches(x_nhwc_bf16)
    M, K = patches.shape

    tm = min(1024, _round_up(M, 16))          # bf16 sublane packing => mult of 16
    Mp = _round_up(M, tm)
    Np = _round_up(cout, 128)
    tn = min(512, Np)                         # no forced N split; Np is 128-mult
    if K % 128 == 0:
        Kp, tk = K, _pick_tk(K)
    elif K <= 2048:
        Kp, tk = K, K                         # small / odd K: one full-K block
    else:
        Kp = _round_up(K, 128)
        tk = _pick_tk(Kp)

    xp = patches
    if Mp != M or Kp != K:
        xp = jnp.pad(xp, ((0, Mp - M), (0, Kp - K)))
    xp = xp.astype(jnp.bfloat16)

    wmat = jnp.transpose(w, (2, 3, 1, 0)).reshape(K, cout)   # [(kh,kw,cin), Cout]
    wp = wmat
    if Kp != K or Np != cout:
        wp = jnp.pad(wp, ((0, Kp - K), (0, Np - cout)))
    wp = wp.astype(jnp.bfloat16)

    y, s, ss = matmul_bn_stats(xp, wp, tm=tm, tn=tn, tk=tk)
    meta = dict(N=nb, M=M, Mp=Mp, OH=OH, OW=OW, cout=cout, Np=Np, tm=tm)
    return y, s, ss, meta


def bn_scale_shift(s, ss, gamma, beta, m_real, Np, eps=1e-5):
    """Fold batch-norm (batch stats, biased var) into scale/shift rows."""
    cout = gamma.shape[0]
    gp = jnp.pad(gamma.astype(jnp.float32), (0, Np - cout))
    bp = jnp.pad(beta.astype(jnp.float32), (0, Np - cout))
    mean = s / m_real
    var = jnp.maximum(ss / m_real - mean * mean, 0.0)  # clamp cancellation noise
    inv = jax.lax.rsqrt(var + eps)
    scale = gp * inv
    shift = bp - mean * scale
    return scale.reshape(1, Np), shift.reshape(1, Np)


# ---------------------------------------------------------------------------
# DiscriminatorD parameters + forward
# ---------------------------------------------------------------------------
def init_params(key, input_channels=1):
    chans = [input_channels, 64, 128, 256, 512, 1024, 2048]
    params = []
    for i in range(6):
        cin, cout = chans[i], chans[i + 1]
        key, kw_, kb_ = jax.random.split(key, 3)
        scale = 1.0 / jnp.sqrt(float(cin * 9))
        params.append(dict(
            # conv bias is kept for parameter parity with nn.Conv2d but is not
            # used: BatchNorm over batch statistics cancels it exactly.
            w=jax.random.normal(kw_, (cout, cin, 3, 3), jnp.float32) * scale,
            b=jax.random.normal(kb_, (cout,), jnp.float32) * scale,
            gamma=jnp.ones((cout,), jnp.float32),
            beta=jnp.zeros((cout,), jnp.float32),
        ))
    key, kw_, kb_ = jax.random.split(key, 3)
    scale = 1.0 / jnp.sqrt(2048.0)
    params.append(dict(
        w=jax.random.normal(kw_, (1, 2048, 1, 1), jnp.float32) * scale,
        b=jax.random.normal(kb_, (1,), jnp.float32) * scale,
    ))
    return params


def discriminator_d_forward(x_nchw, params, eps=1e-5, slope=0.2):
    """x_nchw: [N, Cin, H, W] -> [N, 1, OH*OW] (matches out.view(N, 1, -1))."""
    x = jnp.transpose(x_nchw, (0, 2, 3, 1)).astype(jnp.bfloat16)  # NHWC, bf16
    nb = x.shape[0]
    out = None

    for li in range(6):
        layer = params[li]
        y, s, ss, m = conv3x3_s2(x, layer["w"])
        scale, shift = bn_scale_shift(s, ss, layer["gamma"], layer["beta"],
                                      m["M"], m["Np"], eps=eps)
        if li < 5:
            rows = _elem_rows(m["Mp"], m["tm"], m["Np"])
            act = bn_lrelu_apply(y, scale, shift, rows=rows, slope=slope)
            x = act[:m["M"], :m["cout"]].reshape(nb, m["OH"], m["OW"], m["cout"])
        else:
            # last conv block: fuse BN + LeakyReLU + final 1x1 conv (2048 -> 1)
            w7 = params[6]["w"].reshape(1, -1).astype(jnp.float32)   # [1, 2048]
            if m["Np"] != w7.shape[1]:
                w7 = jnp.pad(w7, ((0, 0), (0, m["Np"] - w7.shape[1])))
            yc = bn_lrelu_head(y, scale, shift, w7, rows=m["tm"], slope=slope)
            out = yc[:m["M"], 0] + params[6]["b"][0]
            out = out.reshape(nb, m["OH"], m["OW"])

    # NCHW view(N, 1, -1): with C==1 the (OH, OW) row-major flattening matches.
    return out.reshape(nb, 1, -1)


# ---------------------------------------------------------------------------
if __name__ == "__main__":
    key = jax.random.PRNGKey(0)
    kx, kp = jax.random.split(key)

    # small input consistent with the module: [N=2, Cin=1, H=16, W=16]
    x = jax.random.normal(kx, (2, 1, 16, 16), jnp.float32)
    params = init_params(kp, input_channels=1)

    fwd = jax.jit(lambda xin: discriminator_d_forward(xin, params))
    out = fwd(x)
    out = jax.block_until_ready(out)

    assert out.shape == (2, 1, 1), out.shape
    assert bool(jnp.all(jnp.isfinite(out))), "non-finite output"
    print("KERNEL_OK")
</pallas_src>

<mosaic_0001>
module attributes {stable_mosaic.version = 11 : i64} {
  func.func @_scale_shift_lrelu_kernel(%arg0: i32, %arg1: memref<128x128xbf16, #tpu.memory_space<vmem>>, %arg2: memref<1x128xf32, #tpu.memory_space<vmem>>, %arg3: memref<1x128xf32, #tpu.memory_space<vmem>>, %arg4: memref<128x128xbf16, #tpu.memory_space<vmem>>) attributes {dimension_semantics = [#tpu.dimension_semantics<parallel>], iteration_bounds = array<i64: 1>, scalar_prefetch = 0 : i64, scratch_operands = 0 : i64, tpu.core_type = #tpu.core_type<tc>, window_params = [{transform_indices = @transform_0, window_bounds = array<i64: 128, 128>}, {pipeline_mode = #tpu.pipeline_mode<synchronous>, transform_indices = @transform_1, window_bounds = array<i64: 1, 128>}, {pipeline_mode = #tpu.pipeline_mode<synchronous>, transform_indices = @transform_2, window_bounds = array<i64: 1, 128>}, {transform_indices = @transform_3, window_bounds = array<i64: 128, 128>}]} {
    %c0 = arith.constant 0 : index
    %c0_0 = arith.constant 0 : index
    %0 = vector.load %arg1[%c0, %c0_0] : memref<128x128xbf16, #tpu.memory_space<vmem>>, vector<128x128xbf16>
    %1 = arith.extf %0 : vector<128x128xbf16> to vector<128x128xf32>
    %c0_1 = arith.constant 0 : index
    %c0_2 = arith.constant 0 : index
    %2 = vector.load %arg2[%c0_1, %c0_2] : memref<1x128xf32, #tpu.memory_space<vmem>>, vector<1x128xf32>
    %3 = vector.broadcast %2 : vector<1x128xf32> to vector<128x128xf32>
    %4 = arith.mulf %1, %3 : vector<128x128xf32>
    %c0_3 = arith.constant 0 : index
    %c0_4 = arith.constant 0 : index
    %5 = vector.load %arg3[%c0_3, %c0_4] : memref<1x128xf32, #tpu.memory_space<vmem>>, vector<1x128xf32>
    %6 = vector.broadcast %5 : vector<1x128xf32> to vector<128x128xf32>
    %7 = arith.addf %4, %6 : vector<128x128xf32>
    %cst = arith.constant 0.000000e+00 : f32
    %8 = vector.broadcast %cst : f32 to vector<128x128xf32>
    %9 = arith.cmpf oge, %7, %8 : vector<128x128xf32>
    %cst_5 = arith.constant 2.000000e-01 : f32
    %10 = vector.broadcast %cst_5 : f32 to vector<128x128xf32>
    %11 = arith.mulf %10, %7 : vector<128x128xf32>
    %12 = arith.select %9, %7, %11 : vector<128x128xi1>, vector<128x128xf32>
    %13 = arith.truncf %12 : vector<128x128xf32> to vector<128x128xbf16>
    %c0_6 = arith.constant 0 : index
    %c0_7 = arith.constant 0 : index
    %14 = vector.load %arg4[%c0_6, %c0_7] : memref<128x128xbf16, #tpu.memory_space<vmem>>, vector<128x128xbf16>
    tpu.vector_store %arg4[%c0_6, %c0_7], %13 {strides = array<i32>} : memref<128x128xbf16, #tpu.memory_space<vmem>>, vector<128x128xbf16>,
    return
  }
  func.func @transform_0(%arg0: i32) -> (i32, i32) {
    %c0_i32 = arith.constant 0 : i32
    %c0_i32_0 = arith.constant 0 : i32
    return %arg0, %c0_i32 : i32, i32
  }
  func.func @transform_1(%arg0: i32) -> (i32, i32) {
    %c0_i32 = arith.constant 0 : i32
    %c0_i32_0 = arith.constant 0 : i32
    %c0_i32_1 = arith.constant 0 : i32
    return %c0_i32, %c0_i32_0 : i32, i32
  }
  func.func @transform_2(%arg0: i32) -> (i32, i32) {
    %c0_i32 = arith.constant 0 : i32
    %c0_i32_0 = arith.constant 0 : i32
    %c0_i32_1 = arith.constant 0 : i32
    return %c0_i32, %c0_i32_0 : i32, i32
  }
  func.func @transform_3(%arg0: i32) -> (i32, i32) {
    %c0_i32 = arith.constant 0 : i32
    %c0_i32_0 = arith.constant 0 : i32
    return %arg0, %c0_i32 : i32, i32
  }
}

module attributes {stable_mosaic.version = 11 : i64} {
  func.func @_matmul_bn_stats_kernel(%arg0: i32, %arg1: i32, %arg2: i32, %arg3: memref<128x9xbf16, #tpu.memory_space<vmem>>, %arg4: memref<9x128xbf16, #tpu.memory_space<vmem>>, %arg5: memref<128x128xbf16, #tpu.memory_space<vmem>>, %arg6: memref<1x2x128xf32, #tpu.memory_space<vmem>>, %arg7: memref<128x128xf32, #tpu.memory_space<vmem>>) attributes {dimension_semantics = [#tpu.dimension_semantics<parallel>, #tpu.dimension_semantics<parallel>, #tpu.dimension_semantics<arbitrary>], iteration_bounds = array<i64: 1, 1, 1>, scalar_prefetch = 0 : i64, scratch_operands = 1 : i64, tpu.core_type = #tpu.core_type<tc>, window_params = [{transform_indices = @transform_0, window_bounds = array<i64: 128, 9>}, {transform_indices = @transform_1, window_bounds = array<i64: 9, 128>}, {transform_indices = @transform_2, window_bounds = array<i64: 128, 128>}, {transform_indices = @transform_3, window_bounds = array<i64: 1, 2, 128>}]} {
    %c0_i32 = arith.constant 0 : i32
    %0 = arith.cmpi eq, %arg2, %c0_i32 : i32
    %1 = arith.extui %0 : i1 to i32
    %c0_i32_0 = arith.constant 0 : i32
    %2 = arith.cmpi ne, %1, %c0_i32_0 : i32
    scf.if %2 {
      %cst_10 = arith.constant 0.000000e+00 : f32
      %12 = vector.broadcast %cst_10 : f32 to vector<128x128xf32>
      %c0_11 = arith.constant 0 : index
      %c0_12 = arith.constant 0 : index
      %13 = vector.load %arg7[%c0_11, %c0_12] : memref<128x128xf32, #tpu.memory_space<vmem>>, vector<128x128xf32>
      tpu.vector_store %arg7[%c0_11, %c0_12], %12 {strides = array<i32>} : memref<128x128xf32, #tpu.memory_space<vmem>>, vector<128x128xf32>,
    } else {
    }
    %c0 = arith.constant 0 : index
    %c0_1 = arith.constant 0 : index
    %3 = vector.load %arg7[%c0, %c0_1] : memref<128x128xf32, #tpu.memory_space<vmem>>, vector<128x128xf32>
    %c0_2 = arith.constant 0 : index
    %c0_3 = arith.constant 0 : index
    %4 = vector.load %arg3[%c0_2, %c0_3] : memref<128x9xbf16, #tpu.memory_space<vmem>>, vector<128x9xbf16>
    %c0_4 = arith.constant 0 : index
    %c0_5 = arith.constant 0 : index
    %5 = vector.load %arg4[%c0_4, %c0_5] : memref<9x128xbf16, #tpu.memory_space<vmem>>, vector<9x128xbf16>
    %cst = arith.constant dense<0.000000e+00> : vector<128x128xf32>
    %6 = tpu.matmul %4, %5, %cst {dimension_numbers = #tpu.dot_dimension_numbers<[1], [0], [0], [1], [0, 0, 1, 1], [], []>} : vector<128x9xbf16>, vector<9x128xbf16>, vector<128x128xf32> -> vector<128x128xf32>
    %7 = arith.addf %3, %6 : vector<128x128xf32>
    %c0_6 = arith.constant 0 : index
    %c0_7 = arith.constant 0 : index
    %8 = vector.load %arg7[%c0_6, %c0_7] : memref<128x128xf32, #tpu.memory_space<vmem>>, vector<128x128xf32>
    tpu.vector_store %arg7[%c0_6, %c0_7], %7 {strides = array<i32>} : memref<128x128xf32, #tpu.memory_space<vmem>>, vector<128x128xf32>,
    %c0_i32_8 = arith.constant 0 : i32
    %9 = arith.cmpi eq, %arg2, %c0_i32_8 : i32
    %10 = arith.extui %9 : i1 to i32
    %c0_i32_9 = arith.constant 0 : i32
    %11 = arith.cmpi ne, %10, %c0_i32_9 : i32
    scf.if %11 {
      %c0_10 = arith.constant 0 : index
      %c0_11 = arith.constant 0 : index
      %12 = vector.load %arg7[%c0_10, %c0_11] : memref<128x128xf32, #tpu.memory_space<vmem>>, vector<128x128xf32>
      %13 = arith.truncf %12 : vector<128x128xf32> to vector<128x128xbf16>
      %c0_12 = arith.constant 0 : index
      %c0_13 = arith.constant 0 : index
      %14 = vector.load %arg5[%c0_12, %c0_13] : memref<128x128xbf16, #tpu.memory_space<vmem>>, vector<128x128xbf16>
      tpu.vector_store %arg5[%c0_12, %c0_13], %13 {strides = array<i32>} : memref<128x128xbf16, #tpu.memory_space<vmem>>, vector<128x128xbf16>,
      %cst_14 = arith.constant dense<0.000000e+00> : vector<128xf32>
      %15 = vector.multi_reduction <add>, %12, %cst_14 [0] : vector<128x128xf32> to vector<128xf32>
      %16 = vector.shape_cast %15 : vector<128xf32> to vector<1x128xf32>
      %17 = arith.mulf %12, %12 : vector<128x128xf32>
      %cst_15 = arith.constant dense<0.000000e+00> : vector<128xf32>
      %18 = vector.multi_reduction <add>, %17, %cst_15 [0] : vector<128x128xf32> to vector<128xf32>
      %19 = vector.shape_cast %18 : vector<128xf32> to vector<1x128xf32>
      %20 = tpu.concatenate %16, %19 in 0 : vector<1x128xf32>, vector<1x128xf32> -> vector<2x128xf32>
      %c0_16 = arith.constant 0 : index
      %c0_17 = arith.constant 0 : index
      %c0_18 = arith.constant 0 : index
      %21 = vector.load %arg6[%c0_16, %c0_17, %c0_18] : memref<1x2x128xf32, #tpu.memory_space<vmem>>, vector<1x2x128xf32>
      %22 = vector.shape_cast %21 : vector<1x2x128xf32> to vector<2x128xf32>
      %23 = vector.shape_cast %20 : vector<2x128xf32> to vector<1x2x128xf32>
      tpu.vector_store %arg6[%c0_16, %c0_17, %c0_18], %23 {strides = array<i32>} : memref<1x2x128xf32, #tpu.memory_space<vmem>>, vector<1x2x128xf32>,
    } else {
    }
    return
  }
  func.func @transform_0(%arg0: i32, %arg1: i32, %arg2: i32) -> (i32, i32) {
    %c0_i32 = arith.constant 0 : i32
    return %arg0, %arg2 : i32, i32
  }
  func.func @transform_1(%arg0: i32, %arg1: i32, %arg2: i32) -> (i32, i32) {
    %c0_i32 = arith.constant 0 : i32
    return %arg2, %arg1 : i32, i32
  }
  func.func @transform_2(%arg0: i32, %arg1: i32, %arg2: i32) -> (i32, i32) {
    %c0_i32 = arith.constant 0 : i32
    return %arg0, %arg1 : i32, i32
  }
  func.func @transform_3(%arg0: i32, %arg1: i32, %arg2: i32) -> (i32, i32, i32) {
    %c0_i32 = arith.constant 0 : i32
    %c0_i32_0 = arith.constant 0 : i32
    return %arg0, %c0_i32, %arg1 : i32, i32, i32
  }
}

module attributes {stable_mosaic.version = 11 : i64} {
  func.func @_matmul_bn_stats_kernel(%arg0: i32, %arg1: i32, %arg2: i32, %arg3: memref<32x576xbf16, #tpu.memory_space<vmem>>, %arg4: memref<576x128xbf16, #tpu.memory_space<vmem>>, %arg5: memref<32x128xbf16, #tpu.memory_space<vmem>>, %arg6: memref<1x2x128xf32, #tpu.memory_space<vmem>>, %arg7: memref<32x128xf32, #tpu.memory_space<vmem>>) attributes {dimension_semantics = [#tpu.dimension_semantics<parallel>, #tpu.dimension_semantics<parallel>, #tpu.dimension_semantics<arbitrary>], iteration_bounds = array<i64: 1, 1, 1>, scalar_prefetch = 0 : i64, scratch_operands = 1 : i64, tpu.core_type = #tpu.core_type<tc>, window_params = [{transform_indices = @transform_0, window_bounds = array<i64: 32, 576>}, {transform_indices = @transform_1, window_bounds = array<i64: 576, 128>}, {transform_indices = @transform_2, window_bounds = array<i64: 32, 128>}, {transform_indices = @transform_3, window_bounds = array<i64: 1, 2, 128>}]} {
    %c0_i32 = arith.constant 0 : i32
    %0 = arith.cmpi eq, %arg2, %c0_i32 : i32
    %1 = arith.extui %0 : i1 to i32
    %c0_i32_0 = arith.constant 0 : i32
    %2 = arith.cmpi ne, %1, %c0_i32_0 : i32
    scf.if %2 {
      %cst_10 = arith.constant 0.000000e+00 : f32
      %12 = vector.broadcast %cst_10 : f32 to vector<32x128xf32>
      %c0_11 = arith.constant 0 : index
      %c0_12 = arith.constant 0 : index
      %13 = vector.load %arg7[%c0_11, %c0_12] : memref<32x128xf32, #tpu.memory_space<vmem>>, vector<32x128xf32>
      tpu.vector_store %arg7[%c0_11, %c0_12], %12 {strides = array<i32>} : memref<32x128xf32, #tpu.memory_space<vmem>>, vector<32x128xf32>,
    } else {
    }
    %c0 = arith.constant 0 : index
    %c0_1 = arith.constant 0 : index
    %3 = vector.load %arg7[%c0, %c0_1] : memref<32x128xf32, #tpu.memory_space<vmem>>, vector<32x128xf32>
    %c0_2 = arith.constant 0 : index
    %c0_3 = arith.constant 0 : index
    %4 = vector.load %arg3[%c0_2, %c0_3] : memref<32x576xbf16, #tpu.memory_space<vmem>>, vector<32x576xbf16>
    %c0_4 = arith.constant 0 : index
    %c0_5 = arith.constant 0 : index
    %5 = vector.load %arg4[%c0_4, %c0_5] : memref<576x128xbf16, #tpu.memory_space<vmem>>, vector<576x128xbf16>
    %cst = arith.constant dense<0.000000e+00> : vector<32x128xf32>
    %6 = tpu.matmul %4, %5, %cst {dimension_numbers = #tpu.dot_dimension_numbers<[1], [0], [0], [1], [0, 0, 1, 1], [], []>} : vector<32x576xbf16>, vector<576x128xbf16>, vector<32x128xf32> -> vector<32x128xf32>
    %7 = arith.addf %3, %6 : vector<32x128xf32>
    %c0_6 = arith.constant 0 : index
    %c0_7 = arith.constant 0 : index
    %8 = vector.load %arg7[%c0_6, %c0_7] : memref<32x128xf32, #tpu.memory_space<vmem>>, vector<32x128xf32>
    tpu.vector_store %arg7[%c0_6, %c0_7], %7 {strides = array<i32>} : memref<32x128xf32, #tpu.memory_space<vmem>>, vector<32x128xf32>,
    %c0_i32_8 = arith.constant 0 : i32
    %9 = arith.cmpi eq, %arg2, %c0_i32_8 : i32
    %10 = arith.extui %9 : i1 to i32
    %c0_i32_9 = arith.constant 0 : i32
    %11 = arith.cmpi ne, %10, %c0_i32_9 : i32
    scf.if %11 {
      %c0_10 = arith.constant 0 : index
      %c0_11 = arith.constant 0 : index
      %12 = vector.load %arg7[%c0_10, %c0_11] : memref<32x128xf32, #tpu.memory_space<vmem>>, vector<32x128xf32>
      %13 = arith.truncf %12 : vector<32x128xf32> to vector<32x128xbf16>
      %c0_12 = arith.constant 0 : index
      %c0_13 = arith.constant 0 : index
      %14 = vector.load %arg5[%c0_12, %c0_13] : memref<32x128xbf16, #tpu.memory_space<vmem>>, vector<32x128xbf16>
      tpu.vector_store %arg5[%c0_12, %c0_13], %13 {strides = array<i32>} : memref<32x128xbf16, #tpu.memory_space<vmem>>, vector<32x128xbf16>,
      %cst_14 = arith.constant dense<0.000000e+00> : vector<128xf32>
      %15 = vector.multi_reduction <add>, %12, %cst_14 [0] : vector<32x128xf32> to vector<128xf32>
      %16 = vector.shape_cast %15 : vector<128xf32> to vector<1x128xf32>
      %17 = arith.mulf %12, %12 : vector<32x128xf32>
      %cst_15 = arith.constant dense<0.000000e+00> : vector<128xf32>
      %18 = vector.multi_reduction <add>, %17, %cst_15 [0] : vector<32x128xf32> to vector<128xf32>
      %19 = vector.shape_cast %18 : vector<128xf32> to vector<1x128xf32>
      %20 = tpu.concatenate %16, %19 in 0 : vector<1x128xf32>, vector<1x128xf32> -> vector<2x128xf32>
      %c0_16 = arith.constant 0 : index
      %c0_17 = arith.constant 0 : index
      %c0_18 = arith.constant 0 : index
      %21 = vector.load %arg6[%c0_16, %c0_17, %c0_18] : memref<1x2x128xf32, #tpu.memory_space<vmem>>, vector<1x2x128xf32>
      %22 = vector.shape_cast %21 : vector<1x2x128xf32> to vector<2x128xf32>
      %23 = vector.shape_cast %20 : vector<2x128xf32> to vector<1x2x128xf32>
      tpu.vector_store %arg6[%c0_16, %c0_17, %c0_18], %23 {strides = array<i32>} : memref<1x2x128xf32, #tpu.memory_space<vmem>>, vector<1x2x128xf32>,
    } else {
    }
    return
  }
  func.func @transform_0(%arg0: i32, %arg1: i32, %arg2: i32) -> (i32, i32) {
    %c0_i32 = arith.constant 0 : i32
    return %arg0, %arg2 : i32, i32
  }
  func.func @transform_1(%arg0: i32, %arg1: i32, %arg2: i32) -> (i32, i32) {
    %c0_i32 = arith.constant 0 : i32
    return %arg2, %arg1 : i32, i32
  }
  func.func @transform_2(%arg0: i32, %arg1: i32, %arg2: i32) -> (i32, i32) {
    %c0_i32 = arith.constant 0 : i32
    return %arg0, %arg1 : i32, i32
  }
  func.func @transform_3(%arg0: i32, %arg1: i32, %arg2: i32) -> (i32, i32, i32) {
    %c0_i32 = arith.constant 0 : i32
    %c0_i32_0 = arith.constant 0 : i32
    return %arg0, %c0_i32, %arg1 : i32, i32, i32
  }
}

module attributes {stable_mosaic.version = 11 : i64} {
  func.func @_scale_shift_lrelu_kernel(%arg0: i32, %arg1: memref<32x128xbf16, #tpu.memory_space<vmem>>, %arg2: memref<1x128xf32, #tpu.memory_space<vmem>>, %arg3: memref<1x128xf32, #tpu.memory_space<vmem>>, %arg4: memref<32x128xbf16, #tpu.memory_space<vmem>>) attributes {dimension_semantics = [#tpu.dimension_semantics<parallel>], iteration_bounds = array<i64: 1>, scalar_prefetch = 0 : i64, scratch_operands = 0 : i64, tpu.core_type = #tpu.core_type<tc>, window_params = [{transform_indices = @transform_0, window_bounds = array<i64: 32, 128>}, {pipeline_mode = #tpu.pipeline_mode<synchronous>, transform_indices = @transform_1, window_bounds = array<i64: 1, 128>}, {pipeline_mode = #tpu.pipeline_mode<synchronous>, transform_indices = @transform_2, window_bounds = array<i64: 1, 128>}, {transform_indices = @transform_3, window_bounds = array<i64: 32, 128>}]} {
    %c0 = arith.constant 0 : index
    %c0_0 = arith.constant 0 : index
    %0 = vector.load %arg1[%c0, %c0_0] : memref<32x128xbf16, #tpu.memory_space<vmem>>, vector<32x128xbf16>
    %1 = arith.extf %0 : vector<32x128xbf16> to vector<32x128xf32>
    %c0_1 = arith.constant 0 : index
    %c0_2 = arith.constant 0 : index
    %2 = vector.load %arg2[%c0_1, %c0_2] : memref<1x128xf32, #tpu.memory_space<vmem>>, vector<1x128xf32>
    %3 = vector.broadcast %2 : vector<1x128xf32> to vector<32x128xf32>
    %4 = arith.mulf %1, %3 : vector<32x128xf32>
    %c0_3 = arith.constant 0 : index
    %c0_4 = arith.constant 0 : index
    %5 = vector.load %arg3[%c0_3, %c0_4] : memref<1x128xf32, #tpu.memory_space<vmem>>, vector<1x128xf32>
    %6 = vector.broadcast %5 : vector<1x128xf32> to vector<32x128xf32>
    %7 = arith.addf %4, %6 : vector<32x128xf32>
    %cst = arith.constant 0.000000e+00 : f32
    %8 = vector.broadcast %cst : f32 to vector<32x128xf32>
    %9 = arith.cmpf oge, %7, %8 : vector<32x128xf32>
    %cst_5 = arith.constant 2.000000e-01 : f32
    %10 = vector.broadcast %cst_5 : f32 to vector<32x128xf32>
    %11 = arith.mulf %10, %7 : vector<32x128xf32>
    %12 = arith.select %9, %7, %11 : vector<32x128xi1>, vector<32x128xf32>
    %13 = arith.truncf %12 : vector<32x128xf32> to vector<32x128xbf16>
    %c0_6 = arith.constant 0 : index
    %c0_7 = arith.constant 0 : index
    %14 = vector.load %arg4[%c0_6, %c0_7] : memref<32x128xbf16, #tpu.memory_space<vmem>>, vector<32x128xbf16>
    tpu.vector_store %arg4[%c0_6, %c0_7], %13 {strides = array<i32>} : memref<32x128xbf16, #tpu.memory_space<vmem>>, vector<32x128xbf16>,
    return
  }
  func.func @transform_0(%arg0: i32) -> (i32, i32) {
    %c0_i32 = arith.constant 0 : i32
    %c0_i32_0 = arith.constant 0 : i32
    return %arg0, %c0_i32 : i32, i32
  }
  func.func @transform_1(%arg0: i32) -> (i32, i32) {
    %c0_i32 = arith.constant 0 : i32
    %c0_i32_0 = arith.constant 0 : i32
    %c0_i32_1 = arith.constant 0 : i32
    return %c0_i32, %c0_i32_0 : i32, i32
  }
  func.func @transform_2(%arg0: i32) -> (i32, i32) {
    %c0_i32 = arith.constant 0 : i32
    %c0_i32_0 = arith.constant 0 : i32
    %c0_i32_1 = arith.constant 0 : i32
    return %c0_i32, %c0_i32_0 : i32, i32
  }
  func.func @transform_3(%arg0: i32) -> (i32, i32) {
    %c0_i32 = arith.constant 0 : i32
    %c0_i32_0 = arith.constant 0 : i32
    return %arg0, %c0_i32 : i32, i32
  }
}

module attributes {stable_mosaic.version = 11 : i64} {
  func.func @_matmul_bn_stats_kernel(%arg0: i32, %arg1: i32, %arg2: i32, %arg3: memref<16x384xbf16, #tpu.memory_space<vmem>>, %arg4: memref<384x256xbf16, #tpu.memory_space<vmem>>, %arg5: memref<16x256xbf16, #tpu.memory_space<vmem>>, %arg6: memref<1x2x256xf32, #tpu.memory_space<vmem>>, %arg7: memref<16x256xf32, #tpu.memory_space<vmem>>) attributes {dimension_semantics = [#tpu.dimension_semantics<parallel>, #tpu.dimension_semantics<parallel>, #tpu.dimension_semantics<arbitrary>], iteration_bounds = array<i64: 1, 1, 3>, scalar_prefetch = 0 : i64, scratch_operands = 1 : i64, tpu.core_type = #tpu.core_type<tc>, window_params = [{transform_indices = @transform_0, window_bounds = array<i64: 16, 384>}, {transform_indices = @transform_1, window_bounds = array<i64: 384, 256>}, {transform_indices = @transform_2, window_bounds = array<i64: 16, 256>}, {transform_indices = @transform_3, window_bounds = array<i64: 1, 2, 256>}]} {
    %c0_i32 = arith.constant 0 : i32
    %0 = arith.cmpi eq, %arg2, %c0_i32 : i32
    %1 = arith.extui %0 : i1 to i32
    %c0_i32_0 = arith.constant 0 : i32
    %2 = arith.cmpi ne, %1, %c0_i32_0 : i32
    scf.if %2 {
      %cst_9 = arith.constant 0.000000e+00 : f32
      %12 = vector.broadcast %cst_9 : f32 to vector<16x256xf32>
      %c0_10 = arith.constant 0 : index
      %c0_11 = arith.constant 0 : index
      %13 = vector.load %arg7[%c0_10, %c0_11] : memref<16x256xf32, #tpu.memory_space<vmem>>, vector<16x256xf32>
      tpu.vector_store %arg7[%c0_10, %c0_11], %12 {strides = array<i32>} : memref<16x256xf32, #tpu.memory_space<vmem>>, vector<16x256xf32>,
    } else {
    }
    %c0 = arith.constant 0 : index
    %c0_1 = arith.constant 0 : index
    %3 = vector.load %arg7[%c0, %c0_1] : memref<16x256xf32, #tpu.memory_space<vmem>>, vector<16x256xf32>
    %c0_2 = arith.constant 0 : index
    %c0_3 = arith.constant 0 : index
    %4 = vector.load %arg3[%c0_2, %c0_3] : memref<16x384xbf16, #tpu.memory_space<vmem>>, vector<16x384xbf16>
    %c0_4 = arith.constant 0 : index
    %c0_5 = arith.constant 0 : index
    %5 = vector.load %arg4[%c0_4, %c0_5] : memref<384x256xbf16, #tpu.memory_space<vmem>>, vector<384x256xbf16>
    %cst = arith.constant dense<0.000000e+00> : vector<16x256xf32>
    %6 = tpu.matmul %4, %5, %cst {dimension_numbers = #tpu.dot_dimension_numbers<[1], [0], [0], [1], [0, 0, 1, 1], [], []>} : vector<16x384xbf16>, vector<384x256xbf16>, vector<16x256xf32> -> vector<16x256xf32>
    %7 = arith.addf %3, %6 : vector<16x256xf32>
    %c0_6 = arith.constant 0 : index
    %c0_7 = arith.constant 0 : index
    %8 = vector.load %arg7[%c0_6, %c0_7] : memref<16x256xf32, #tpu.memory_space<vmem>>, vector<16x256xf32>
    tpu.vector_store %arg7[%c0_6, %c0_7], %7 {strides = array<i32>} : memref<16x256xf32, #tpu.memory_space<vmem>>, vector<16x256xf32>,
    %c2_i32 = arith.constant 2 : i32
    %9 = arith.cmpi eq, %arg2, %c2_i32 : i32
    %10 = arith.extui %9 : i1 to i32
    %c0_i32_8 = arith.constant 0 : i32
    %11 = arith.cmpi ne, %10, %c0_i32_8 : i32
    scf.if %11 {
      %c0_9 = arith.constant 0 : index
      %c0_10 = arith.constant 0 : index
      %12 = vector.load %arg7[%c0_9, %c0_10] : memref<16x256xf32, #tpu.memory_space<vmem>>, vector<16x256xf32>
      %13 = arith.truncf %12 : vector<16x256xf32> to vector<16x256xbf16>
      %c0_11 = arith.constant 0 : index
      %c0_12 = arith.constant 0 : index
      %14 = vector.load %arg5[%c0_11, %c0_12] : memref<16x256xbf16, #tpu.memory_space<vmem>>, vector<16x256xbf16>
      tpu.vector_store %arg5[%c0_11, %c0_12], %13 {strides = array<i32>} : memref<16x256xbf16, #tpu.memory_space<vmem>>, vector<16x256xbf16>,
      %cst_13 = arith.constant dense<0.000000e+00> : vector<256xf32>
      %15 = vector.multi_reduction <add>, %12, %cst_13 [0] : vector<16x256xf32> to vector<256xf32>
      %16 = vector.shape_cast %15 : vector<256xf32> to vector<1x256xf32>
      %17 = arith.mulf %12, %12 : vector<16x256xf32>
      %cst_14 = arith.constant dense<0.000000e+00> : vector<256xf32>
      %18 = vector.multi_reduction <add>, %17, %cst_14 [0] : vector<16x256xf32> to vector<256xf32>
      %19 = vector.shape_cast %18 : vector<256xf32> to vector<1x256xf32>
      %20 = tpu.concatenate %16, %19 in 0 : vector<1x256xf32>, vector<1x256xf32> -> vector<2x256xf32>
      %c0_15 = arith.constant 0 : index
      %c0_16 = arith.constant 0 : index
      %c0_17 = arith.constant 0 : index
      %21 = vector.load %arg6[%c0_15, %c0_16, %c0_17] : memref<1x2x256xf32, #tpu.memory_space<vmem>>, vector<1x2x256xf32>
      %22 = vector.shape_cast %21 : vector<1x2x256xf32> to vector<2x256xf32>
      %23 = vector.shape_cast %20 : vector<2x256xf32> to vector<1x2x256xf32>
      tpu.vector_store %arg6[%c0_15, %c0_16, %c0_17], %23 {strides = array<i32>} : memref<1x2x256xf32, #tpu.memory_space<vmem>>, vector<1x2x256xf32>,
    } else {
    }
    return
  }
  func.func @transform_0(%arg0: i32, %arg1: i32, %arg2: i32) -> (i32, i32) {
    %c0_i32 = arith.constant 0 : i32
    return %arg0, %arg2 : i32, i32
  }
  func.func @transform_1(%arg0: i32, %arg1: i32, %arg2: i32) -> (i32, i32) {
    %c0_i32 = arith.constant 0 : i32
    return %arg2, %arg1 : i32, i32
  }
  func.func @transform_2(%arg0: i32, %arg1: i32, %arg2: i32) -> (i32, i32) {
    %c0_i32 = arith.constant 0 : i32
    return %arg0, %arg1 : i32, i32
  }
  func.func @transform_3(%arg0: i32, %arg1: i32, %arg2: i32) -> (i32, i32, i32) {
    %c0_i32 = arith.constant 0 : i32
    %c0_i32_0 = arith.constant 0 : i32
    return %arg0, %c0_i32, %arg1 : i32, i32, i32
  }
}

module attributes {stable_mosaic.version = 11 : i64} {
  func.func @_scale_shift_lrelu_kernel(%arg0: i32, %arg1: memref<16x256xbf16, #tpu.memory_space<vmem>>, %arg2: memref<1x256xf32, #tpu.memory_space<vmem>>, %arg3: memref<1x256xf32, #tpu.memory_space<vmem>>, %arg4: memref<16x256xbf16, #tpu.memory_space<vmem>>) attributes {dimension_semantics = [#tpu.dimension_semantics<parallel>], iteration_bounds = array<i64: 1>, scalar_prefetch = 0 : i64, scratch_operands = 0 : i64, tpu.core_type = #tpu.core_type<tc>, window_params = [{transform_indices = @transform_0, window_bounds = array<i64: 16, 256>}, {pipeline_mode = #tpu.pipeline_mode<synchronous>, transform_indices = @transform_1, window_bounds = array<i64: 1, 256>}, {pipeline_mode = #tpu.pipeline_mode<synchronous>, transform_indices = @transform_2, window_bounds = array<i64: 1, 256>}, {transform_indices = @transform_3, window_bounds = array<i64: 16, 256>}]} {
    %c0 = arith.constant 0 : index
    %c0_0 = arith.constant 0 : index
    %0 = vector.load %arg1[%c0, %c0_0] : memref<16x256xbf16, #tpu.memory_space<vmem>>, vector<16x256xbf16>
    %1 = arith.extf %0 : vector<16x256xbf16> to vector<16x256xf32>
    %c0_1 = arith.constant 0 : index
    %c0_2 = arith.constant 0 : index
    %2 = vector.load %arg2[%c0_1, %c0_2] : memref<1x256xf32, #tpu.memory_space<vmem>>, vector<1x256xf32>
    %3 = vector.broadcast %2 : vector<1x256xf32> to vector<16x256xf32>
    %4 = arith.mulf %1, %3 : vector<16x256xf32>
    %c0_3 = arith.constant 0 : index
    %c0_4 = arith.constant 0 : index
    %5 = vector.load %arg3[%c0_3, %c0_4] : memref<1x256xf32, #tpu.memory_space<vmem>>, vector<1x256xf32>
    %6 = vector.broadcast %5 : vector<1x256xf32> to vector<16x256xf32>
    %7 = arith.addf %4, %6 : vector<16x256xf32>
    %cst = arith.constant 0.000000e+00 : f32
    %8 = vector.broadcast %cst : f32 to vector<16x256xf32>
    %9 = arith.cmpf oge, %7, %8 : vector<16x256xf32>
    %cst_5 = arith.constant 2.000000e-01 : f32
    %10 = vector.broadcast %cst_5 : f32 to vector<16x256xf32>
    %11 = arith.mulf %10, %7 : vector<16x256xf32>
    %12 = arith.select %9, %7, %11 : vector<16x256xi1>, vector<16x256xf32>
    %13 = arith.truncf %12 : vector<16x256xf32> to vector<16x256xbf16>
    %c0_6 = arith.constant 0 : index
    %c0_7 = arith.constant 0 : index
    %14 = vector.load %arg4[%c0_6, %c0_7] : memref<16x256xbf16, #tpu.memory_space<vmem>>, vector<16x256xbf16>
    tpu.vector_store %arg4[%c0_6, %c0_7], %13 {strides = array<i32>} : memref<16x256xbf16, #tpu.memory_space<vmem>>, vector<16x256xbf16>,
    return
  }
  func.func @transform_0(%arg0: i32) -> (i32, i32) {
    %c0_i32 = arith.constant 0 : i32
    %c0_i32_0 = arith.constant 0 : i32
    return %arg0, %c0_i32 : i32, i32
  }
  func.func @transform_1(%arg0: i32) -> (i32, i32) {
    %c0_i32 = arith.constant 0 : i32
    %c0_i32_0 = arith.constant 0 : i32
    %c0_i32_1 = arith.constant 0 : i32
    return %c0_i32, %c0_i32_0 : i32, i32
  }
  func.func @transform_2(%arg0: i32) -> (i32, i32) {
    %c0_i32 = arith.constant 0 : i32
    %c0_i32_0 = arith.constant 0 : i32
    %c0_i32_1 = arith.constant 0 : i32
    return %c0_i32, %c0_i32_0 : i32, i32
  }
  func.func @transform_3(%arg0: i32) -> (i32, i32) {
    %c0_i32 = arith.constant 0 : i32
    %c0_i32_0 = arith.constant 0 : i32
    return %arg0, %c0_i32 : i32, i32
  }
}

module attributes {stable_mosaic.version = 11 : i64} {
  func.func @_matmul_bn_stats_kernel(%arg0: i32, %arg1: i32, %arg2: i32, %arg3: memref<16x768xbf16, #tpu.memory_space<vmem>>, %arg4: memref<768x512xbf16, #tpu.memory_space<vmem>>, %arg5: memref<16x512xbf16, #tpu.memory_space<vmem>>, %arg6: memref<1x2x512xf32, #tpu.memory_space<vmem>>, %arg7: memref<16x512xf32, #tpu.memory_space<vmem>>) attributes {dimension_semantics = [#tpu.dimension_semantics<parallel>, #tpu.dimension_semantics<parallel>, #tpu.dimension_semantics<arbitrary>], iteration_bounds = array<i64: 1, 1, 3>, scalar_prefetch = 0 : i64, scratch_operands = 1 : i64, tpu.core_type = #tpu.core_type<tc>, window_params = [{transform_indices = @transform_0, window_bounds = array<i64: 16, 768>}, {transform_indices = @transform_1, window_bounds = array<i64: 768, 512>}, {transform_indices = @transform_2, window_bounds = array<i64: 16, 512>}, {transform_indices = @transform_3, window_bounds = array<i64: 1, 2, 512>}]} {
    %c0_i32 = arith.constant 0 : i32
    %0 = arith.cmpi eq, %arg2, %c0_i32 : i32
    %1 = arith.extui %0 : i1 to i32
    %c0_i32_0 = arith.constant 0 : i32
    %2 = arith.cmpi ne, %1, %c0_i32_0 : i32
    scf.if %2 {
      %cst_9 = arith.constant 0.000000e+00 : f32
      %12 = vector.broadcast %cst_9 : f32 to vector<16x512xf32>
      %c0_10 = arith.constant 0 : index
      %c0_11 = arith.constant 0 : index
      %13 = vector.load %arg7[%c0_10, %c0_11] : memref<16x512xf32, #tpu.memory_space<vmem>>, vector<16x512xf32>
      tpu.vector_store %arg7[%c0_10, %c0_11], %12 {strides = array<i32>} : memref<16x512xf32, #tpu.memory_space<vmem>>, vector<16x512xf32>,
    } else {
    }
    %c0 = arith.constant 0 : index
    %c0_1 = arith.constant 0 : index
    %3 = vector.load %arg7[%c0, %c0_1] : memref<16x512xf32, #tpu.memory_space<vmem>>, vector<16x512xf32>
    %c0_2 = arith.constant 0 : index
    %c0_3 = arith.constant 0 : index
    %4 = vector.load %arg3[%c0_2, %c0_3] : memref<16x768xbf16, #tpu.memory_space<vmem>>, vector<16x768xbf16>
    %c0_4 = arith.constant 0 : index
    %c0_5 = arith.constant 0 : index
    %5 = vector.load %arg4[%c0_4, %c0_5] : memref<768x512xbf16, #tpu.memory_space<vmem>>, vector<768x512xbf16>
    %cst = arith.constant dense<0.000000e+00> : vector<16x512xf32>
    %6 = tpu.matmul %4, %5, %cst {dimension_numbers = #tpu.dot_dimension_numbers<[1], [0], [0], [1], [0, 0, 1, 1], [], []>} : vector<16x768xbf16>, vector<768x512xbf16>, vector<16x512xf32> -> vector<16x512xf32>
    %7 = arith.addf %3, %6 : vector<16x512xf32>
    %c0_6 = arith.constant 0 : index
    %c0_7 = arith.constant 0 : index
    %8 = vector.load %arg7[%c0_6, %c0_7] : memref<16x512xf32, #tpu.memory_space<vmem>>, vector<16x512xf32>
    tpu.vector_store %arg7[%c0_6, %c0_7], %7 {strides = array<i32>} : memref<16x512xf32, #tpu.memory_space<vmem>>, vector<16x512xf32>,
    %c2_i32 = arith.constant 2 : i32
    %9 = arith.cmpi eq, %arg2, %c2_i32 : i32
    %10 = arith.extui %9 : i1 to i32
    %c0_i32_8 = arith.constant 0 : i32
    %11 = arith.cmpi ne, %10, %c0_i32_8 : i32
    scf.if %11 {
      %c0_9 = arith.constant 0 : index
      %c0_10 = arith.constant 0 : index
      %12 = vector.load %arg7[%c0_9, %c0_10] : memref<16x512xf32, #tpu.memory_space<vmem>>, vector<16x512xf32>
      %13 = arith.truncf %12 : vector<16x512xf32> to vector<16x512xbf16>
      %c0_11 = arith.constant 0 : index
      %c0_12 = arith.constant 0 : index
      %14 = vector.load %arg5[%c0_11, %c0_12] : memref<16x512xbf16, #tpu.memory_space<vmem>>, vector<16x512xbf16>
      tpu.vector_store %arg5[%c0_11, %c0_12], %13 {strides = array<i32>} : memref<16x512xbf16, #tpu.memory_space<vmem>>, vector<16x512xbf16>,
      %cst_13 = arith.constant dense<0.000000e+00> : vector<512xf32>
      %15 = vector.multi_reduction <add>, %12, %cst_13 [0] : vector<16x512xf32> to vector<512xf32>
      %16 = vector.shape_cast %15 : vector<512xf32> to vector<1x512xf32>
      %17 = arith.mulf %12, %12 : vector<16x512xf32>
      %cst_14 = arith.constant dense<0.000000e+00> : vector<512xf32>
      %18 = vector.multi_reduction <add>, %17, %cst_14 [0] : vector<16x512xf32> to vector<512xf32>
      %19 = vector.shape_cast %18 : vector<512xf32> to vector<1x512xf32>
      %20 = tpu.concatenate %16, %19 in 0 : vector<1x512xf32>, vector<1x512xf32> -> vector<2x512xf32>
      %c0_15 = arith.constant 0 : index
      %c0_16 = arith.constant 0 : index
      %c0_17 = arith.constant 0 : index
      %21 = vector.load %arg6[%c0_15, %c0_16, %c0_17] : memref<1x2x512xf32, #tpu.memory_space<vmem>>, vector<1x2x512xf32>
      %22 = vector.shape_cast %21 : vector<1x2x512xf32> to vector<2x512xf32>
      %23 = vector.shape_cast %20 : vector<2x512xf32> to vector<1x2x512xf32>
      tpu.vector_store %arg6[%c0_15, %c0_16, %c0_17], %23 {strides = array<i32>} : memref<1x2x512xf32, #tpu.memory_space<vmem>>, vector<1x2x512xf32>,
    } else {
    }
    return
  }
  func.func @transform_0(%arg0: i32, %arg1: i32, %arg2: i32) -> (i32, i32) {
    %c0_i32 = arith.constant 0 : i32
    return %arg0, %arg2 : i32, i32
  }
  func.func @transform_1(%arg0: i32, %arg1: i32, %arg2: i32) -> (i32, i32) {
    %c0_i32 = arith.constant 0 : i32
    return %arg2, %arg1 : i32, i32
  }
  func.func @transform_2(%arg0: i32, %arg1: i32, %arg2: i32) -> (i32, i32) {
    %c0_i32 = arith.constant 0 : i32
    return %arg0, %arg1 : i32, i32
  }
  func.func @transform_3(%arg0: i32, %arg1: i32, %arg2: i32) -> (i32, i32, i32) {
    %c0_i32 = arith.constant 0 : i32
    %c0_i32_0 = arith.constant 0 : i32
    return %arg0, %c0_i32, %arg1 : i32, i32, i32
  }
}

module attributes {stable_mosaic.version = 11 : i64} {
  func.func @_scale_shift_lrelu_kernel(%arg0: i32, %arg1: memref<16x512xbf16, #tpu.memory_space<vmem>>, %arg2: memref<1x512xf32, #tpu.memory_space<vmem>>, %arg3: memref<1x512xf32, #tpu.memory_space<vmem>>, %arg4: memref<16x512xbf16, #tpu.memory_space<vmem>>) attributes {dimension_semantics = [#tpu.dimension_semantics<parallel>], iteration_bounds = array<i64: 1>, scalar_prefetch = 0 : i64, scratch_operands = 0 : i64, tpu.core_type = #tpu.core_type<tc>, window_params = [{transform_indices = @transform_0, window_bounds = array<i64: 16, 512>}, {pipeline_mode = #tpu.pipeline_mode<synchronous>, transform_indices = @transform_1, window_bounds = array<i64: 1, 512>}, {pipeline_mode = #tpu.pipeline_mode<synchronous>, transform_indices = @transform_2, window_bounds = array<i64: 1, 512>}, {transform_indices = @transform_3, window_bounds = array<i64: 16, 512>}]} {
    %c0 = arith.constant 0 : index
    %c0_0 = arith.constant 0 : index
    %0 = vector.load %arg1[%c0, %c0_0] : memref<16x512xbf16, #tpu.memory_space<vmem>>, vector<16x512xbf16>
    %1 = arith.extf %0 : vector<16x512xbf16> to vector<16x512xf32>
    %c0_1 = arith.constant 0 : index
    %c0_2 = arith.constant 0 : index
    %2 = vector.load %arg2[%c0_1, %c0_2] : memref<1x512xf32, #tpu.memory_space<vmem>>, vector<1x512xf32>
    %3 = vector.broadcast %2 : vector<1x512xf32> to vector<16x512xf32>
    %4 = arith.mulf %1, %3 : vector<16x512xf32>
    %c0_3 = arith.constant 0 : index
    %c0_4 = arith.constant 0 : index
    %5 = vector.load %arg3[%c0_3, %c0_4] : memref<1x512xf32, #tpu.memory_space<vmem>>, vector<1x512xf32>
    %6 = vector.broadcast %5 : vector<1x512xf32> to vector<16x512xf32>
    %7 = arith.addf %4, %6 : vector<16x512xf32>
    %cst = arith.constant 0.000000e+00 : f32
    %8 = vector.broadcast %cst : f32 to vector<16x512xf32>
    %9 = arith.cmpf oge, %7, %8 : vector<16x512xf32>
    %cst_5 = arith.constant 2.000000e-01 : f32
    %10 = vector.broadcast %cst_5 : f32 to vector<16x512xf32>
    %11 = arith.mulf %10, %7 : vector<16x512xf32>
    %12 = arith.select %9, %7, %11 : vector<16x512xi1>, vector<16x512xf32>
    %13 = arith.truncf %12 : vector<16x512xf32> to vector<16x512xbf16>
    %c0_6 = arith.constant 0 : index
    %c0_7 = arith.constant 0 : index
    %14 = vector.load %arg4[%c0_6, %c0_7] : memref<16x512xbf16, #tpu.memory_space<vmem>>, vector<16x512xbf16>
    tpu.vector_store %arg4[%c0_6, %c0_7], %13 {strides = array<i32>} : memref<16x512xbf16, #tpu.memory_space<vmem>>, vector<16x512xbf16>,
    return
  }
  func.func @transform_0(%arg0: i32) -> (i32, i32) {
    %c0_i32 = arith.constant 0 : i32
    %c0_i32_0 = arith.constant 0 : i32
    return %arg0, %c0_i32 : i32, i32
  }
  func.func @transform_1(%arg0: i32) -> (i32, i32) {
    %c0_i32 = arith.constant 0 : i32
    %c0_i32_0 = arith.constant 0 : i32
    %c0_i32_1 = arith.constant 0 : i32
    return %c0_i32, %c0_i32_0 : i32, i32
  }
  func.func @transform_2(%arg0: i32) -> (i32, i32) {
    %c0_i32 = arith.constant 0 : i32
    %c0_i32_0 = arith.constant 0 : i32
    %c0_i32_1 = arith.constant 0 : i32
    return %c0_i32, %c0_i32_0 : i32, i32
  }
  func.func @transform_3(%arg0: i32) -> (i32, i32) {
    %c0_i32 = arith.constant 0 : i32
    %c0_i32_0 = arith.constant 0 : i32
    return %arg0, %c0_i32 : i32, i32
  }
}

module attributes {stable_mosaic.version = 11 : i64} {
  func.func @_matmul_bn_stats_kernel(%arg0: i32, %arg1: i32, %arg2: i32, %arg3: memref<16x768xbf16, #tpu.memory_space<vmem>>, %arg4: memref<768x512xbf16, #tpu.memory_space<vmem>>, %arg5: memref<16x512xbf16, #tpu.memory_space<vmem>>, %arg6: memref<1x2x512xf32, #tpu.memory_space<vmem>>, %arg7: memref<16x512xf32, #tpu.memory_space<vmem>>) attributes {dimension_semantics = [#tpu.dimension_semantics<parallel>, #tpu.dimension_semantics<parallel>, #tpu.dimension_semantics<arbitrary>], iteration_bounds = array<i64: 1, 2, 6>, scalar_prefetch = 0 : i64, scratch_operands = 1 : i64, tpu.core_type = #tpu.core_type<tc>, window_params = [{transform_indices = @transform_0, window_bounds = array<i64: 16, 768>}, {transform_indices = @transform_1, window_bounds = array<i64: 768, 512>}, {transform_indices = @transform_2, window_bounds = array<i64: 16, 512>}, {transform_indices = @transform_3, window_bounds = array<i64: 1, 2, 512>}]} {
    %c0_i32 = arith.constant 0 : i32
    %0 = arith.cmpi eq, %arg2, %c0_i32 : i32
    %1 = arith.extui %0 : i1 to i32
    %c0_i32_0 = arith.constant 0 : i32
    %2 = arith.cmpi ne, %1, %c0_i32_0 : i32
    scf.if %2 {
      %cst_9 = arith.constant 0.000000e+00 : f32
      %12 = vector.broadcast %cst_9 : f32 to vector<16x512xf32>
      %c0_10 = arith.constant 0 : index
      %c0_11 = arith.constant 0 : index
      %13 = vector.load %arg7[%c0_10, %c0_11] : memref<16x512xf32, #tpu.memory_space<vmem>>, vector<16x512xf32>
      tpu.vector_store %arg7[%c0_10, %c0_11], %12 {strides = array<i32>} : memref<16x512xf32, #tpu.memory_space<vmem>>, vector<16x512xf32>,
    } else {
    }
    %c0 = arith.constant 0 : index
    %c0_1 = arith.constant 0 : index
    %3 = vector.load %arg7[%c0, %c0_1] : memref<16x512xf32, #tpu.memory_space<vmem>>, vector<16x512xf32>
    %c0_2 = arith.constant 0 : index
    %c0_3 = arith.constant 0 : index
    %4 = vector.load %arg3[%c0_2, %c0_3] : memref<16x768xbf16, #tpu.memory_space<vmem>>, vector<16x768xbf16>
    %c0_4 = arith.constant 0 : index
    %c0_5 = arith.constant 0 : index
    %5 = vector.load %arg4[%c0_4, %c0_5] : memref<768x512xbf16, #tpu.memory_space<vmem>>, vector<768x512xbf16>
    %cst = arith.constant dense<0.000000e+00> : vector<16x512xf32>
    %6 = tpu.matmul %4, %5, %cst {dimension_numbers = #tpu.dot_dimension_numbers<[1], [0], [0], [1], [0, 0, 1, 1], [], []>} : vector<16x768xbf16>, vector<768x512xbf16>, vector<16x512xf32> -> vector<16x512xf32>
    %7 = arith.addf %3, %6 : vector<16x512xf32>
    %c0_6 = arith.constant 0 : index
    %c0_7 = arith.constant 0 : index
    %8 = vector.load %arg7[%c0_6, %c0_7] : memref<16x512xf32, #tpu.memory_space<vmem>>, vector<16x512xf32>
    tpu.vector_store %arg7[%c0_6, %c0_7], %7 {strides = array<i32>} : memref<16x512xf32, #tpu.memory_space<vmem>>, vector<16x512xf32>,
    %c5_i32 = arith.constant 5 : i32
    %9 = arith.cmpi eq, %arg2, %c5_i32 : i32
    %10 = arith.extui %9 : i1 to i32
    %c0_i32_8 = arith.constant 0 : i32
    %11 = arith.cmpi ne, %10, %c0_i32_8 : i32
    scf.if %11 {
      %c0_9 = arith.constant 0 : index
      %c0_10 = arith.constant 0 : index
      %12 = vector.load %arg7[%c0_9, %c0_10] : memref<16x512xf32, #tpu.memory_space<vmem>>, vector<16x512xf32>
      %13 = arith.truncf %12 : vector<16x512xf32> to vector<16x512xbf16>
      %c0_11 = arith.constant 0 : index
      %c0_12 = arith.constant 0 : index
      %14 = vector.load %arg5[%c0_11, %c0_12] : memref<16x512xbf16, #tpu.memory_space<vmem>>, vector<16x512xbf16>
      tpu.vector_store %arg5[%c0_11, %c0_12], %13 {strides = array<i32>} : memref<16x512xbf16, #tpu.memory_space<vmem>>, vector<16x512xbf16>,
      %cst_13 = arith.constant dense<0.000000e+00> : vector<512xf32>
      %15 = vector.multi_reduction <add>, %12, %cst_13 [0] : vector<16x512xf32> to vector<512xf32>
      %16 = vector.shape_cast %15 : vector<512xf32> to vector<1x512xf32>
      %17 = arith.mulf %12, %12 : vector<16x512xf32>
      %cst_14 = arith.constant dense<0.000000e+00> : vector<512xf32>
      %18 = vector.multi_reduction <add>, %17, %cst_14 [0] : vector<16x512xf32> to vector<512xf32>
      %19 = vector.shape_cast %18 : vector<512xf32> to vector<1x512xf32>
      %20 = tpu.concatenate %16, %19 in 0 : vector<1x512xf32>, vector<1x512xf32> -> vector<2x512xf32>
      %c0_15 = arith.constant 0 : index
      %c0_16 = arith.constant 0 : index
      %c0_17 = arith.constant 0 : index
      %21 = vector.load %arg6[%c0_15, %c0_16, %c0_17] : memref<1x2x512xf32, #tpu.memory_space<vmem>>, vector<1x2x512xf32>
      %22 = vector.shape_cast %21 : vector<1x2x512xf32> to vector<2x512xf32>
      %23 = vector.shape_cast %20 : vector<2x512xf32> to vector<1x2x512xf32>
      tpu.vector_store %arg6[%c0_15, %c0_16, %c0_17], %23 {strides = array<i32>} : memref<1x2x512xf32, #tpu.memory_space<vmem>>, vector<1x2x512xf32>,
    } else {
    }
    return
  }
  func.func @transform_0(%arg0: i32, %arg1: i32, %arg2: i32) -> (i32, i32) {
    %c0_i32 = arith.constant 0 : i32
    return %arg0, %arg2 : i32, i32
  }
  func.func @transform_1(%arg0: i32, %arg1: i32, %arg2: i32) -> (i32, i32) {
    %c0_i32 = arith.constant 0 : i32
    return %arg2, %arg1 : i32, i32
  }
  func.func @transform_2(%arg0: i32, %arg1: i32, %arg2: i32) -> (i32, i32) {
    %c0_i32 = arith.constant 0 : i32
    return %arg0, %arg1 : i32, i32
  }
  func.func @transform_3(%arg0: i32, %arg1: i32, %arg2: i32) -> (i32, i32, i32) {
    %c0_i32 = arith.constant 0 : i32
    %c0_i32_0 = arith.constant 0 : i32
    return %arg0, %c0_i32, %arg1 : i32, i32, i32
  }
}

module attributes {stable_mosaic.version = 11 : i64} {
  func.func @_scale_shift_lrelu_kernel(%arg0: i32, %arg1: memref<16x1024xbf16, #tpu.memory_space<vmem>>, %arg2: memref<1x1024xf32, #tpu.memory_space<vmem>>, %arg3: memref<1x1024xf32, #tpu.memory_space<vmem>>, %arg4: memref<16x1024xbf16, #tpu.memory_space<vmem>>) attributes {dimension_semantics = [#tpu.dimension_semantics<parallel>], iteration_bounds = array<i64: 1>, scalar_prefetch = 0 : i64, scratch_operands = 0 : i64, tpu.core_type = #tpu.core_type<tc>, window_params = [{transform_indices = @transform_0, window_bounds = array<i64: 16, 1024>}, {pipeline_mode = #tpu.pipeline_mode<synchronous>, transform_indices = @transform_1, window_bounds = array<i64: 1, 1024>}, {pipeline_mode = #tpu.pipeline_mode<synchronous>, transform_indices = @transform_2, window_bounds = array<i64: 1, 1024>}, {transform_indices = @transform_3, window_bounds = array<i64: 16, 1024>}]} {
    %c0 = arith.constant 0 : index
    %c0_0 = arith.constant 0 : index
    %0 = vector.load %arg1[%c0, %c0_0] : memref<16x1024xbf16, #tpu.memory_space<vmem>>, vector<16x1024xbf16>
    %1 = arith.extf %0 : vector<16x1024xbf16> to vector<16x1024xf32>
    %c0_1 = arith.constant 0 : index
    %c0_2 = arith.constant 0 : index
    %2 = vector.load %arg2[%c0_1, %c0_2] : memref<1x1024xf32, #tpu.memory_space<vmem>>, vector<1x1024xf32>
    %3 = vector.broadcast %2 : vector<1x1024xf32> to vector<16x1024xf32>
    %4 = arith.mulf %1, %3 : vector<16x1024xf32>
    %c0_3 = arith.constant 0 : index
    %c0_4 = arith.constant 0 : index
    %5 = vector.load %arg3[%c0_3, %c0_4] : memref<1x1024xf32, #tpu.memory_space<vmem>>, vector<1x1024xf32>
    %6 = vector.broadcast %5 : vector<1x1024xf32> to vector<16x1024xf32>
    %7 = arith.addf %4, %6 : vector<16x1024xf32>
    %cst = arith.constant 0.000000e+00 : f32
    %8 = vector.broadcast %cst : f32 to vector<16x1024xf32>
    %9 = arith.cmpf oge, %7, %8 : vector<16x1024xf32>
    %cst_5 = arith.constant 2.000000e-01 : f32
    %10 = vector.broadcast %cst_5 : f32 to vector<16x1024xf32>
    %11 = arith.mulf %10, %7 : vector<16x1024xf32>
    %12 = arith.select %9, %7, %11 : vector<16x1024xi1>, vector<16x1024xf32>
    %13 = arith.truncf %12 : vector<16x1024xf32> to vector<16x1024xbf16>
    %c0_6 = arith.constant 0 : index
    %c0_7 = arith.constant 0 : index
    %14 = vector.load %arg4[%c0_6, %c0_7] : memref<16x1024xbf16, #tpu.memory_space<vmem>>, vector<16x1024xbf16>
    tpu.vector_store %arg4[%c0_6, %c0_7], %13 {strides = array<i32>} : memref<16x1024xbf16, #tpu.memory_space<vmem>>, vector<16x1024xbf16>,
    return
  }
  func.func @transform_0(%arg0: i32) -> (i32, i32) {
    %c0_i32 = arith.constant 0 : i32
    %c0_i32_0 = arith.constant 0 : i32
    return %arg0, %c0_i32 : i32, i32
  }
  func.func @transform_1(%arg0: i32) -> (i32, i32) {
    %c0_i32 = arith.constant 0 : i32
    %c0_i32_0 = arith.constant 0 : i32
    %c0_i32_1 = arith.constant 0 : i32
    return %c0_i32, %c0_i32_0 : i32, i32
  }
  func.func @transform_2(%arg0: i32) -> (i32, i32) {
    %c0_i32 = arith.constant 0 : i32
    %c0_i32_0 = arith.constant 0 : i32
    %c0_i32_1 = arith.constant 0 : i32
    return %c0_i32, %c0_i32_0 : i32, i32
  }
  func.func @transform_3(%arg0: i32) -> (i32, i32) {
    %c0_i32 = arith.constant 0 : i32
    %c0_i32_0 = arith.constant 0 : i32
    return %arg0, %c0_i32 : i32, i32
  }
}

module attributes {stable_mosaic.version = 11 : i64} {
  func.func @_matmul_bn_stats_kernel(%arg0: i32, %arg1: i32, %arg2: i32, %arg3: memref<16x1024xbf16, #tpu.memory_space<vmem>>, %arg4: memref<1024x512xbf16, #tpu.memory_space<vmem>>, %arg5: memref<16x512xbf16, #tpu.memory_space<vmem>>, %arg6: memref<1x2x512xf32, #tpu.memory_space<vmem>>, %arg7: memref<16x512xf32, #tpu.memory_space<vmem>>) attributes {dimension_semantics = [#tpu.dimension_semantics<parallel>, #tpu.dimension_semantics<parallel>, #tpu.dimension_semantics<arbitrary>], iteration_bounds = array<i64: 1, 4, 9>, scalar_prefetch = 0 : i64, scratch_operands = 1 : i64, tpu.core_type = #tpu.core_type<tc>, window_params = [{transform_indices = @transform_0, window_bounds = array<i64: 16, 1024>}, {transform_indices = @transform_1, window_bounds = array<i64: 1024, 512>}, {transform_indices = @transform_2, window_bounds = array<i64: 16, 512>}, {transform_indices = @transform_3, window_bounds = array<i64: 1, 2, 512>}]} {
    %c0_i32 = arith.constant 0 : i32
    %0 = arith.cmpi eq, %arg2, %c0_i32 : i32
    %1 = arith.extui %0 : i1 to i32
    %c0_i32_0 = arith.constant 0 : i32
    %2 = arith.cmpi ne, %1, %c0_i32_0 : i32
    scf.if %2 {
      %cst_9 = arith.constant 0.000000e+00 : f32
      %12 = vector.broadcast %cst_9 : f32 to vector<16x512xf32>
      %c0_10 = arith.constant 0 : index
      %c0_11 = arith.constant 0 : index
      %13 = vector.load %arg7[%c0_10, %c0_11] : memref<16x512xf32, #tpu.memory_space<vmem>>, vector<16x512xf32>
      tpu.vector_store %arg7[%c0_10, %c0_11], %12 {strides = array<i32>} : memref<16x512xf32, #tpu.memory_space<vmem>>, vector<16x512xf32>,
    } else {
    }
    %c0 = arith.constant 0 : index
    %c0_1 = arith.constant 0 : index
    %3 = vector.load %arg7[%c0, %c0_1] : memref<16x512xf32, #tpu.memory_space<vmem>>, vector<16x512xf32>
    %c0_2 = arith.constant 0 : index
    %c0_3 = arith.constant 0 : index
    %4 = vector.load %arg3[%c0_2, %c0_3] : memref<16x1024xbf16, #tpu.memory_space<vmem>>, vector<16x1024xbf16>
    %c0_4 = arith.constant 0 : index
    %c0_5 = arith.constant 0 : index
    %5 = vector.load %arg4[%c0_4, %c0_5] : memref<1024x512xbf16, #tpu.memory_space<vmem>>, vector<1024x512xbf16>
    %cst = arith.constant dense<0.000000e+00> : vector<16x512xf32>
    %6 = tpu.matmul %4, %5, %cst {dimension_numbers = #tpu.dot_dimension_numbers<[1], [0], [0], [1], [0, 0, 1, 1], [], []>} : vector<16x1024xbf16>, vector<1024x512xbf16>, vector<16x512xf32> -> vector<16x512xf32>
    %7 = arith.addf %3, %6 : vector<16x512xf32>
    %c0_6 = arith.constant 0 : index
    %c0_7 = arith.constant 0 : index
    %8 = vector.load %arg7[%c0_6, %c0_7] : memref<16x512xf32, #tpu.memory_space<vmem>>, vector<16x512xf32>
    tpu.vector_store %arg7[%c0_6, %c0_7], %7 {strides = array<i32>} : memref<16x512xf32, #tpu.memory_space<vmem>>, vector<16x512xf32>,
    %c8_i32 = arith.constant 8 : i32
    %9 = arith.cmpi eq, %arg2, %c8_i32 : i32
    %10 = arith.extui %9 : i1 to i32
    %c0_i32_8 = arith.constant 0 : i32
    %11 = arith.cmpi ne, %10, %c0_i32_8 : i32
    scf.if %11 {
      %c0_9 = arith.constant 0 : index
      %c0_10 = arith.constant 0 : index
      %12 = vector.load %arg7[%c0_9, %c0_10] : memref<16x512xf32, #tpu.memory_space<vmem>>, vector<16x512xf32>
      %13 = arith.truncf %12 : vector<16x512xf32> to vector<16x512xbf16>
      %c0_11 = arith.constant 0 : index
      %c0_12 = arith.constant 0 : index
      %14 = vector.load %arg5[%c0_11, %c0_12] : memref<16x512xbf16, #tpu.memory_space<vmem>>, vector<16x512xbf16>
      tpu.vector_store %arg5[%c0_11, %c0_12], %13 {strides = array<i32>} : memref<16x512xbf16, #tpu.memory_space<vmem>>, vector<16x512xbf16>,
      %cst_13 = arith.constant dense<0.000000e+00> : vector<512xf32>
      %15 = vector.multi_reduction <add>, %12, %cst_13 [0] : vector<16x512xf32> to vector<512xf32>
      %16 = vector.shape_cast %15 : vector<512xf32> to vector<1x512xf32>
      %17 = arith.mulf %12, %12 : vector<16x512xf32>
      %cst_14 = arith.constant dense<0.000000e+00> : vector<512xf32>
      %18 = vector.multi_reduction <add>, %17, %cst_14 [0] : vector<16x512xf32> to vector<512xf32>
      %19 = vector.shape_cast %18 : vector<512xf32> to vector<1x512xf32>
      %20 = tpu.concatenate %16, %19 in 0 : vector<1x512xf32>, vector<1x512xf32> -> vector<2x512xf32>
      %c0_15 = arith.constant 0 : index
      %c0_16 = arith.constant 0 : index
      %c0_17 = arith.constant 0 : index
      %21 = vector.load %arg6[%c0_15, %c0_16, %c0_17] : memref<1x2x512xf32, #tpu.memory_space<vmem>>, vector<1x2x512xf32>
      %22 = vector.shape_cast %21 : vector<1x2x512xf32> to vector<2x512xf32>
      %23 = vector.shape_cast %20 : vector<2x512xf32> to vector<1x2x512xf32>
      tpu.vector_store %arg6[%c0_15, %c0_16, %c0_17], %23 {strides = array<i32>} : memref<1x2x512xf32, #tpu.memory_space<vmem>>, vector<1x2x512xf32>,
    } else {
    }
    return
  }
  func.func @transform_0(%arg0: i32, %arg1: i32, %arg2: i32) -> (i32, i32) {
    %c0_i32 = arith.constant 0 : i32
    return %arg0, %arg2 : i32, i32
  }
  func.func @transform_1(%arg0: i32, %arg1: i32, %arg2: i32) -> (i32, i32) {
    %c0_i32 = arith.constant 0 : i32
    return %arg2, %arg1 : i32, i32
  }
  func.func @transform_2(%arg0: i32, %arg1: i32, %arg2: i32) -> (i32, i32) {
    %c0_i32 = arith.constant 0 : i32
    return %arg0, %arg1 : i32, i32
  }
  func.func @transform_3(%arg0: i32, %arg1: i32, %arg2: i32) -> (i32, i32, i32) {
    %c0_i32 = arith.constant 0 : i32
    %c0_i32_0 = arith.constant 0 : i32
    return %arg0, %c0_i32, %arg1 : i32, i32, i32
  }
}

module attributes {stable_mosaic.version = 11 : i64} {
  func.func @_bn_lrelu_head_kernel(%arg0: i32, %arg1: memref<16x2048xbf16, #tpu.memory_space<vmem>>, %arg2: memref<1x2048xf32, #tpu.memory_space<vmem>>, %arg3: memref<1x2048xf32, #tpu.memory_space<vmem>>, %arg4: memref<1x2048xf32, #tpu.memory_space<vmem>>, %arg5: memref<16x128xf32, #tpu.memory_space<vmem>>) attributes {dimension_semantics = [#tpu.dimension_semantics<parallel>], iteration_bounds = array<i64: 1>, scalar_prefetch = 0 : i64, scratch_operands = 0 : i64, tpu.core_type = #tpu.core_type<tc>, window_params = [{transform_indices = @transform_0, window_bounds = array<i64: 16, 2048>}, {pipeline_mode = #tpu.pipeline_mode<synchronous>, transform_indices = @transform_1, window_bounds = array<i64: 1, 2048>}, {pipeline_mode = #tpu.pipeline_mode<synchronous>, transform_indices = @transform_2, window_bounds = array<i64: 1, 2048>}, {pipeline_mode = #tpu.pipeline_mode<synchronous>, transform_indices = @transform_3, window_bounds = array<i64: 1, 2048>}, {transform_indices = @transform_4, window_bounds = array<i64: 16, 128>}]} {
    %c0 = arith.constant 0 : index
    %c0_0 = arith.constant 0 : index
    %0 = vector.load %arg1[%c0, %c0_0] : memref<16x2048xbf16, #tpu.memory_space<vmem>>, vector<16x2048xbf16>
    %1 = arith.extf %0 : vector<16x2048xbf16> to vector<16x2048xf32>
    %c0_1 = arith.constant 0 : index
    %c0_2 = arith.constant 0 : index
    %2 = vector.load %arg2[%c0_1, %c0_2] : memref<1x2048xf32, #tpu.memory_space<vmem>>, vector<1x2048xf32>
    %3 = vector.broadcast %2 : vector<1x2048xf32> to vector<16x2048xf32>
    %4 = arith.mulf %1, %3 : vector<16x2048xf32>
    %c0_3 = arith.constant 0 : index
    %c0_4 = arith.constant 0 : index
    %5 = vector.load %arg3[%c0_3, %c0_4] : memref<1x2048xf32, #tpu.memory_space<vmem>>, vector<1x2048xf32>
    %6 = vector.broadcast %5 : vector<1x2048xf32> to vector<16x2048xf32>
    %7 = arith.addf %4, %6 : vector<16x2048xf32>
    %cst = arith.constant 0.000000e+00 : f32
    %8 = vector.broadcast %cst : f32 to vector<16x2048xf32>
    %9 = arith.cmpf oge, %7, %8 : vector<16x2048xf32>
    %cst_5 = arith.constant 2.000000e-01 : f32
    %10 = vector.broadcast %cst_5 : f32 to vector<16x2048xf32>
    %11 = arith.mulf %10, %7 : vector<16x2048xf32>
    %12 = arith.select %9, %7, %11 : vector<16x2048xi1>, vector<16x2048xf32>
    %c0_6 = arith.constant 0 : index
    %c0_7 = arith.constant 0 : index
    %13 = vector.load %arg4[%c0_6, %c0_7] : memref<1x2048xf32, #tpu.memory_space<vmem>>, vector<1x2048xf32>
    %14 = vector.broadcast %13 : vector<1x2048xf32> to vector<16x2048xf32>
    %15 = arith.mulf %12, %14 : vector<16x2048xf32>
    %cst_8 = arith.constant dense<0.000000e+00> : vector<16xf32>
    %16 = vector.multi_reduction <add>, %15, %cst_8 [1] : vector<16x2048xf32> to vector<16xf32>
    %17 = vector.shape_cast %16 : vector<16xf32> to vector<16x1xf32>
    %18 = vector.shape_cast %17 : vector<16x1xf32> to vector<16x1xf32>
    %19 = vector.broadcast %18 : vector<16x1xf32> to vector<16x128xf32>
    %c0_9 = arith.constant 0 : index
    %c0_10 = arith.constant 0 : index
    %20 = vector.load %arg5[%c0_9, %c0_10] : memref<16x128xf32, #tpu.memory_space<vmem>>, vector<16x128xf32>
    tpu.vector_store %arg5[%c0_9, %c0_10], %19 {strides = array<i32>} : memref<16x128xf32, #tpu.memory_space<vmem>>, vector<16x128xf32>,
    return
  }
  func.func @transform_0(%arg0: i32) -> (i32, i32) {
    %c0_i32 = arith.constant 0 : i32
    %c0_i32_0 = arith.constant 0 : i32
    return %arg0, %c0_i32 : i32, i32
  }
  func.func @transform_1(%arg0: i32) -> (i32, i32) {
    %c0_i32 = arith.constant 0 : i32
    %c0_i32_0 = arith.constant 0 : i32
    %c0_i32_1 = arith.constant 0 : i32
    return %c0_i32, %c0_i32_0 : i32, i32
  }
  func.func @transform_2(%arg0: i32) -> (i32, i32) {
    %c0_i32 = arith.constant 0 : i32
    %c0_i32_0 = arith.constant 0 : i32
    %c0_i32_1 = arith.constant 0 : i32
    return %c0_i32, %c0_i32_0 : i32, i32
  }
  func.func @transform_3(%arg0: i32) -> (i32, i32) {
    %c0_i32 = arith.constant 0 : i32
    %c0_i32_0 = arith.constant 0 : i32
    %c0_i32_1 = arith.constant 0 : i32
    return %c0_i32, %c0_i32_0 : i32, i32
  }
  func.func @transform_4(%arg0: i32) -> (i32, i32) {
    %c0_i32 = arith.constant 0 : i32
    %c0_i32_0 = arith.constant 0 : i32
    return %arg0, %c0_i32 : i32, i32
  }
}

</mosaic_0001>

<bundles_post_ra>
// kernel: _lambda_.13
= control target key start
LH: loop header
LB: loop body
LE: loop exit
PB: predicated region body
PF: predicated region fallthrough
CT: control target
= control target key end

     0   :  { %s368_s0 = inlined_call_operand.vmem [shape: bf16[128,128], index: 0, kind: input, shape index: {}]   ;;  %s369_s1 = inlined_call_operand.vmem [shape: f32[1,128], index: 1, kind: input, shape index: {}]   ;;  %s370_s2 = inlined_call_operand.vmem [shape: f32[1,128], index: 2, kind: input, shape index: {}]   ;;  %s371_s3 = inlined_call_operand.vmem [shape: bf16[128,128], index: 3, kind: output, shape index: {}]  }
   0x1   :  { %v171_v0 = vld [vmem:[%s368_s0] sm:$0xff]   ;;  %v242_v5 = vld [vmem:[%s368_s0 + $0x8] sm:$0xff]   ;;  %v243_v8 = vld [vmem:[%s368_s0 + $0x10] sm:$0xff]  }
   0x2   :  { %v284_v1 = vld [vmem:[%s369_s1] ss:$0 sm:$0xff]  ;;  %v172_v2 = vunpack.c.l.bf16 %v171_v0  ;;  %v173_v3 = vunpack.c.h.bf16 %v171_v0  ;;  %v176_v6 = vunpack.c.l.bf16 %v242_v5  ;;  %v177_v7 = vunpack.c.h.bf16 %v242_v5  ;;  %v244_v9 = vld [vmem:[%s368_s0 + $0x18] sm:$0xff]   ;;  %v246_v39 = vld [vmem:[%s368_s0 + $0x28] sm:$0xff]  }
   0x3   :  { %v289_v4 = vld [vmem:[%s370_s2] ss:$0 sm:$0xff]  ;;  %v180_v12 = vunpack.c.l.bf16 %v243_v8  ;;  %v181_v13 = vunpack.c.h.bf16 %v243_v8  ;;  %v184_v16 = vunpack.c.l.bf16 %v244_v9  ;;  %v185_v17 = vunpack.c.h.bf16 %v244_v9  ;;  %v247_v49 = vld [vmem:[%s368_s0 + $0x30] sm:$0xff]   ;;  %v248_v57 = vld [vmem:[%s368_s0 + $0x38] sm:$0xff]  }
   0x4   :  { %v50_v10 = vmul.f32 %v284_v1, %v172_v2  ;;  %v51_v11 = vmul.f32 %v284_v1, %v173_v3  ;;  %v52_v14 = vmul.f32 %v284_v1, %v176_v6  ;;  %v53_v15 = vmul.f32 %v284_v1, %v177_v7  ;;  %v245_v38 = vld [vmem:[%s368_s0 + $0x20] sm:$0xff]  }
   0x5   :  { %v54_v20 = vmul.f32 %v284_v1, %v180_v12  ;;  %v55_v21 = vmul.f32 %v284_v1, %v181_v13  ;;  %v56_v24 = vmul.f32 %v284_v1, %v184_v16  ;;  %v57_v25 = vmul.f32 %v284_v1, %v185_v17 }
   0x6   :  { %v70_v18 = vadd.f32 %v289_v4, %v50_v10  ;;  %v71_v19 = vadd.f32 %v289_v4, %v51_v11  ;;  %v72_v22 = vadd.f32 %v289_v4, %v52_v14  ;;  %v73_v23 = vadd.f32 %v289_v4, %v53_v15 }
   0x7   :  { %v74_v32 = vadd.f32 %v289_v4, %v54_v20  ;;  %v75_v33 = vadd.f32 %v289_v4, %v55_v21  ;;  %v76_v37 = vadd.f32 %v289_v4, %v56_v24  ;;  %v77_v43 = vadd.f32 %v289_v4, %v57_v25 }
   0x8   :  { %vm86_vm0 = vcmp.ge.f32.partialorder %v70_v18, 0.0  ;;  %vm87_vm1 = vcmp.ge.f32.partialorder %v71_v19, 0.0  ;;  %v102_v26 = vmul.f32 0.2, %v70_v18  ;;  %v103_v27 = vmul.f32 0.2, %v71_v19 }
   0x9   :  { %vm88_vm2 = vcmp.ge.f32.partialorder %v72_v22, 0.0  ;;  %vm89_vm3 = vcmp.ge.f32.partialorder %v73_v23, 0.0  ;;  %v104_v28 = vmul.f32 0.2, %v72_v22  ;;  %v105_v29 = vmul.f32 0.2, %v73_v23 }
   0xa   :  { %v118_v30 = vsel %vm86_vm0, %v70_v18, %v102_v26  ;;  %v119_v31 = vsel %vm87_vm1, %v71_v19, %v103_v27  ;;  %vm90_vm4 = vcmp.ge.f32.partialorder %v74_v32, 0.0  ;;  %vm91_vm5 = vcmp.ge.f32.partialorder %v75_v33, 0.0 }
   0xb   :  { %v205_v34 = vpack.c.bf16 %v119_v31, %v118_v30  ;;  %v120_v35 = vsel %vm88_vm2, %v72_v22, %v104_v28  ;;  %v121_v36 = vsel %vm89_vm3, %v73_v23, %v105_v29  ;;  %v106_v41 = vmul.f32 0.2, %v74_v32 }
   0xc   :  { %v210_v40 = vpack.c.bf16 %v121_v36, %v120_v35  ;;  %v107_v42 = vmul.f32 0.2, %v75_v33  ;;  %vm92_vm6 = vcmp.ge.f32.partialorder %v76_v37, 0.0  ;;  %v108_v44 = vmul.f32 0.2, %v76_v37 }
   0xd   :  { %206 = vst [vmem:[%s371_s3] sm:$0xff] %v205_v34   ;;  %v122_v45 = vsel %vm90_vm4, %v74_v32, %v106_v41  ;;  %v188_v46 = vunpack.c.l.bf16 %v245_v38  ;;  %v189_v47 = vunpack.c.h.bf16 %v245_v38  ;;  %v192_v48 = vunpack.c.l.bf16 %v246_v39 }
   0xe   :  { %249 = vst [vmem:[%s371_s3 + $0x8] sm:$0xff] %v210_v40   ;;  %v123_v50 = vsel %vm91_vm5, %v75_v33, %v107_v42  ;;  %vm93_vm7 = vcmp.ge.f32.partialorder %v77_v43, 0.0  ;;  %v109_v51 = vmul.f32 0.2, %v77_v43  ;;  %v124_v52 = vsel %vm92_vm6, %v76_v37, %v108_v44 }
   0xf   :  { %v215_v53 = vpack.c.bf16 %v123_v50, %v122_v45  ;;  %v58_v54 = vmul.f32 %v284_v1, %v188_v46  ;;  %v59_v55 = vmul.f32 %v284_v1, %v189_v47  ;;  %v193_v56 = vunpack.c.h.bf16 %v246_v39 }
  0x10   :  { %v125_v58 = vsel %vm93_vm7, %v77_v43, %v109_v51  ;;  %v60_v59 = vmul.f32 %v284_v1, %v192_v48  ;;  %v196_v60 = vunpack.c.l.bf16 %v247_v49  ;;  %v197_v61 = vunpack.c.h.bf16 %v247_v49 }
  0x11   :  { %250 = vst [vmem:[%s371_s3 + $0x10] sm:$0xff] %v215_v53   ;;  %v220_v62 = vpack.c.bf16 %v125_v58, %v124_v52  ;;  %v78_v63 = vadd.f32 %v289_v4, %v58_v54  ;;  %v79_v0 = vadd.f32 %v289_v4, %v59_v55  ;;  %v61_v2 = vmul.f32 %v284_v1, %v193_v56 }
  0x12   :  { %v80_v3 = vadd.f32 %v289_v4, %v60_v59  ;;  %v62_v5 = vmul.f32 %v284_v1, %v196_v60  ;;  %v63_v6 = vmul.f32 %v284_v1, %v197_v61  ;;  %v200_v7 = vunpack.c.l.bf16 %v248_v57 }
  0x13   :  { %251 = vst [vmem:[%s371_s3 + $0x18] sm:$0xff] %v220_v62   ;;  %vm94_vm8 = vcmp.ge.f32.partialorder %v78_v63, 0.0  ;;  %vm95_vm9 = vcmp.ge.f32.partialorder %v79_v0, 0.0  ;;  %v110_v8 = vmul.f32 0.2, %v78_v63  ;;  %v81_v9 = vadd.f32 %v289_v4, %v61_v2 }
  0x14   :  { %v111_v10 = vmul.f32 0.2, %v79_v0  ;;  %vm96_vm10 = vcmp.ge.f32.partialorder %v80_v3, 0.0  ;;  %v112_v11 = vmul.f32 0.2, %v80_v3  ;;  %v82_v12 = vadd.f32 %v289_v4, %v62_v5 }
  0x15   :  { %v126_v13 = vsel %vm94_vm8, %v78_v63, %v110_v8  ;;  %vm97_vm11 = vcmp.ge.f32.partialorder %v81_v9, 0.0  ;;  %v113_v14 = vmul.f32 0.2, %v81_v9  ;;  %v83_v15 = vadd.f32 %v289_v4, %v63_v6 }
  0x16   :  { %v127_v16 = vsel %vm95_vm9, %v79_v0, %v111_v10  ;;  %v128_v17 = vsel %vm96_vm10, %v80_v3, %v112_v11  ;;  %vm98_vm12 = vcmp.ge.f32.partialorder %v82_v12, 0.0  ;;  %v114_v18 = vmul.f32 0.2, %v82_v12 }
  0x17   :  { %v225_v19 = vpack.c.bf16 %v127_v16, %v126_v13  ;;  %v129_v20 = vsel %vm97_vm11, %v81_v9, %v113_v14  ;;  %vm99_vm13 = vcmp.ge.f32.partialorder %v83_v15, 0.0  ;;  %v115_v21 = vmul.f32 0.2, %v83_v15 }
  0x18   :  { %v230_v22 = vpack.c.bf16 %v129_v20, %v128_v17  ;;  %v130_v23 = vsel %vm98_vm12, %v82_v12, %v114_v18  ;;  %v201_v24 = vunpack.c.h.bf16 %v248_v57  ;;  %v64_v25 = vmul.f32 %v284_v1, %v200_v7 }
  0x19   :  { %252 = vst [vmem:[%s371_s3 + $0x20] sm:$0xff] %v225_v19   ;;  %v131_v26 = vsel %vm99_vm13, %v83_v15, %v115_v21 }
  0x1a   :  { %253 = vst [vmem:[%s371_s3 + $0x28] sm:$0xff] %v230_v22   ;;  %v235_v27 = vpack.c.bf16 %v131_v26, %v130_v23  ;;  %v65_v28 = vmul.f32 %v284_v1, %v201_v24  ;;  %v84_v29 = vadd.f32 %v289_v4, %v64_v25 }
  0x1c   :  { %254 = vst [vmem:[%s371_s3 + $0x30] sm:$0xff] %v235_v27   ;;  %v85_v30 = vadd.f32 %v289_v4, %v65_v28  ;;  %vm100_vm14 = vcmp.ge.f32.partialorder %v84_v29, 0.0  ;;  %v116_v31 = vmul.f32 0.2, %v84_v29 }
  0x1e   :  { %vm101_vm15 = vcmp.ge.f32.partialorder %v85_v30, 0.0  ;;  %v117_v32 = vmul.f32 0.2, %v85_v30  ;;  %v132_v33 = vsel %vm100_vm14, %v84_v29, %v116_v31 }
  0x20   :  { %v133_v34 = vsel %vm101_vm15, %v85_v30, %v117_v32 }
  0x21   :  { %v240_v35 = vpack.c.bf16 %v133_v34, %v132_v33 }
  0x23   :  { %255 = vst [vmem:[%s371_s3 + $0x38] sm:$0xff] %v240_v35  }

// kernel: _lambda_.12
= control target key start
LH: loop header
LB: loop body
LE: loop exit
PB: predicated region body
PF: predicated region fallthrough
CT: control target
= control target key end

     0   :  { %9 = vsyncpa [#allocation4], 0  ;;  %s496_s15 = smov [#allocation3]   ;;  %s497_s17 = smov 64   ;;  %s588_s0 = inlined_call_operand.vmem [shape: bf16[128,9], index: 0, kind: input, shape index: {}]   ;;  %s589_s1 = inlined_call_operand.hbm [shape: bf16[9,128], index: 1, kind: input, shape index: {}]   ;;  %s590_s2 = inlined_call_operand.vmem [shape: bf16[128,128], index: 2, kind: output, shape index: {0}]   ;;  %s591_s3 = inlined_call_operand.vmem [shape: f32[1,2,128], index: 3, kind: output, shape index: {1}]  }
   0x1   :  { %s16_s14 = sshll.u32 %s589_s1, 4  ;;  %s18_s16 = sshll.u32 %s496_s15, 4  ;;  %s17_s14 = int_to_ptr.hbm [resolvable:$true] %s16_s14  ;;  %s19_s16 = int_to_ptr.vmem [resolvable:$true] %s18_s16 }
   0x2   :  { %s498_s18 = smov 4  }
   0x3   :  { %24 = dma.hbm_to_vmem [thread:$0]  %s17_s14, 128, %s19_s16, [#allocation4], %s497_s17, %s497_s17, %s498_s18  }
   0x4   :  { %494 = dma.done.wait [#allocation4], 128  }
   0x5   :  { %495 = vsyncadd [#allocation4], 4294967168  ;;  %vm154_vm0 = vcmask 1043456   ;;  %vm155_vm1 = vcmask 1044480   ;;  %v499_v0 = vmov 65535   ;;  %v407_v7 = vld [vmem:[%s588_s0] sm:$0xff] }
   0x6   :  { %v156_v1 = vsel %vm154_vm0, 4294967295, %v499_v0  ;;  %v397_v2 = vld [vmem:[#allocation3] sm:$0xf]  ;;  %v415_v3 = vld [vmem:[#allocation3] sm:$0x10]  ;;  %vm129_vm2 = vcmask 72704  }
   0x7   :  { %v157_v4 = vsel %vm155_vm1, %v156_v1, 0  ;;  %v398_v5 = vor.u32 %v415_v3, %v397_v2  ;;  %v409_v8 = vld [vmem:[%s588_s0 + $0x10] sm:$0xff]  ;;  %v411_v9 = vld [vmem:[%s588_s0 + $0x20] sm:$0xff]  ;;  %v408_v11 = vld [vmem:[%s588_s0 + $0x8] sm:$0xff]  ;;  %vm351_vm3 = vcmask 1040384  }
   0x8   :  { %v413_v10 = vld [vmem:[%s588_s0 + $0x30] sm:$0xff]  ;;  %v410_v12 = vld [vmem:[%s588_s0 + $0x18] sm:$0xff]  ;;  %v412_v13 = vld [vmem:[%s588_s0 + $0x28] sm:$0xff] }
   0x9   :  { %v159_v6 = vand.u32 %v398_v5, %v157_v4  ;;  %v414_v14 = vld [vmem:[%s588_s0 + $0x38] sm:$0xff] }
   0xb   :  { %168 = vmatpush.bf16.msra.mxu0 %v159_v6  ;;  %463 = vmatpush.bf16.msra.mxu1 %v159_v6 }
   0xc   :  { %464 = vmatpush.bf16.msra.mxu2 %v159_v6  ;;  %465 = vmatpush.bf16.msra.mxu3 %v159_v6 }
   0xe   :  { %399 = vmatmul.msk.bf16.vlgmr.msra.gmra.mxu0 %vm129_vm2, %v407_v7  ;;  %401 = vmatmul.msk.bf16.vlgmr.msra.gmra.mxu1 %vm129_vm2, %v409_v8 }
   0xf   :  { %403 = vmatmul.msk.bf16.vlgmr.msra.gmra.mxu2 %vm129_vm2, %v411_v9  ;;  %405 = vmatmul.msk.bf16.vlgmr.msra.gmra.mxu3 %vm129_vm2, %v413_v10 }
  0x1e   :  { %400 = vmatmul.msk.bf16.gmra.mxu0 %vm129_vm2, %v408_v11  ;;  %402 = vmatmul.msk.bf16.gmra.mxu1 %vm129_vm2, %v410_v12 }
  0x1f   :  { %404 = vmatmul.msk.bf16.gmra.mxu2 %vm129_vm2, %v412_v13  ;;  %406 = vmatmul.msk.bf16.gmra.mxu3 %vm129_vm2, %v414_v14 }
  0x8b   :  { %v170_v15 = vpop.f32.mrf.mxu0  ;;  %v180_v16 = vpop.f32.mrf.mxu1 }
  0x8c   :  { %v314_v30 = vmul.f32 %v170_v15, %v170_v15  ;;  %v318_v44 = vmul.f32 %v180_v16, %v180_v16 }
  0x92   :  { %v190_v17 = vpop.f32.mrf.mxu2  ;;  %v555_v18 = vpop.f32.mrf.mxu3 }
  0x93   :  { %v172_v19 = vpop.f32.mrf.mxu0  ;;  %v182_v20 = vpop.f32.mrf.mxu1  ;;  %v322_v60 = vmul.f32 %v190_v17, %v190_v17  ;;  %v326_v8 = vmul.f32 %v555_v18, %v555_v18 }
  0x94   :  { %v419_v21 = vpack.c.bf16 %v172_v19, %v170_v15  ;;  %v429_v22 = vpack.c.bf16 %v182_v20, %v180_v16  ;;  %v315_v29 = vmul.f32 %v172_v19, %v172_v19  ;;  %v293_v32 = vadd.f32 %v172_v19, %v170_v15 }
  0x95   :  { %v319_v47 = vmul.f32 %v182_v20, %v182_v20 }
  0x96   :  { %420 = vst [vmem:[%s590_s2] sm:$0xff] %v419_v21   ;;  %v330_v33 = vadd.f32 %v315_v29, %v314_v30 }
  0x97   :  { %457 = vst [vmem:[%s590_s2 + $0x10] sm:$0xff] %v429_v22  }
  0x9a   :  { %v192_v23 = vpop.f32.mrf.mxu2  ;;  %v202_v24 = vpop.f32.mrf.mxu3 }
  0x9b   :  { %v175_v25 = vpop.f32.mrf.mxu0  ;;  %v185_v26 = vpop.f32.mrf.mxu1  ;;  %v439_v27 = vpack.c.bf16 %v192_v23, %v190_v17  ;;  %v449_v28 = vpack.c.bf16 %v202_v24, %v555_v18  ;;  %v323_v63 = vmul.f32 %v192_v23, %v192_v23  ;;  %v327_v11 = vmul.f32 %v202_v24, %v202_v24 }
  0x9c   :  { %v316_v31 = vmul.f32 %v175_v25, %v175_v25  ;;  %v294_v34 = vadd.f32 %v293_v32, %v175_v25  ;;  %v320_v50 = vmul.f32 %v185_v26, %v185_v26 }
  0x9d   :  { %459 = vst [vmem:[%s590_s2 + $0x20] sm:$0xff] %v439_v27  }
  0x9e   :  { %461 = vst [vmem:[%s590_s2 + $0x30] sm:$0xff] %v449_v28   ;;  %v331_v37 = vadd.f32 %v330_v33, %v316_v31 }
  0xa2   :  { %v195_v35 = vpop.f32.mrf.mxu2  ;;  %v205_v36 = vpop.f32.mrf.mxu3 }
  0xa3   :  { %v177_v38 = vpop.f32.mrf.mxu0  ;;  %v187_v39 = vpop.f32.mrf.mxu1  ;;  %v324_v3 = vmul.f32 %v195_v35, %v195_v35  ;;  %v328_v15 = vmul.f32 %v205_v36, %v205_v36 }
  0xa4   :  { %v424_v40 = vpack.c.bf16 %v177_v38, %v175_v25  ;;  %v295_v41 = vadd.f32 %v294_v34, %v177_v38  ;;  %v317_v42 = vmul.f32 %v177_v38, %v177_v38  ;;  %v434_v43 = vpack.c.bf16 %v187_v39, %v185_v26 }
  0xa5   :  { %v321_v58 = vmul.f32 %v187_v39, %v187_v39 }
  0xa6   :  { %456 = vst [vmem:[%s590_s2 + $0x8] sm:$0xff] %v424_v40   ;;  %v296_v45 = vadd.f32 %v295_v41, %v180_v16  ;;  %v332_v46 = vadd.f32 %v331_v37, %v317_v42 }
  0xa7   :  { %458 = vst [vmem:[%s590_s2 + $0x18] sm:$0xff] %v434_v43  }
  0xa8   :  { %v333_v48 = vadd.f32 %v332_v46, %v318_v44  ;;  %v297_v49 = vadd.f32 %v296_v45, %v182_v20 }
  0xaa   :  { %v298_v51 = vadd.f32 %v297_v49, %v185_v26  ;;  %v334_v52 = vadd.f32 %v333_v48, %v319_v47  ;;  %v197_v53 = vpop.f32.mrf.mxu2  ;;  %v207_v54 = vpop.f32.mrf.mxu3 }
  0xab   :  { %v444_v55 = vpack.c.bf16 %v197_v53, %v195_v35  ;;  %v454_v56 = vpack.c.bf16 %v207_v54, %v205_v36  ;;  %v325_v7 = vmul.f32 %v197_v53, %v197_v53  ;;  %v329_v20 = vmul.f32 %v207_v54, %v207_v54 }
  0xac   :  { %v299_v57 = vadd.f32 %v298_v51, %v187_v39  ;;  %v335_v59 = vadd.f32 %v334_v52, %v320_v50 }
  0xad   :  { %460 = vst [vmem:[%s590_s2 + $0x28] sm:$0xff] %v444_v55  }
  0xae   :  { %v300_v61 = vadd.f32 %v299_v57, %v190_v17  ;;  %v336_v62 = vadd.f32 %v335_v59, %v321_v58  ;;  %462 = vst [vmem:[%s590_s2 + $0x38] sm:$0xff] %v454_v56  }
  0xb0   :  { %v337_v0 = vadd.f32 %v336_v62, %v322_v60  ;;  %v301_v1 = vadd.f32 %v300_v61, %v192_v23 }
  0xb2   :  { %v302_v2 = vadd.f32 %v301_v1, %v195_v35  ;;  %v338_v4 = vadd.f32 %v337_v0, %v323_v63 }
  0xb4   :  { %v339_v5 = vadd.f32 %v338_v4, %v324_v3  ;;  %v303_v6 = vadd.f32 %v302_v2, %v197_v53 }
  0xb6   :  { %v304_v9 = vadd.f32 %v303_v6, %v555_v18  ;;  %v340_v10 = vadd.f32 %v339_v5, %v325_v7 }
  0xb8   :  { %v341_v12 = vadd.f32 %v340_v10, %v326_v8  ;;  %v305_v13 = vadd.f32 %v304_v9, %v202_v24 }
  0xba   :  { %v306_v14 = vadd.f32 %v305_v13, %v205_v36  ;;  %v342_v16 = vadd.f32 %v341_v12, %v327_v11 }
  0xbc   :  { %v343_v17 = vadd.f32 %v342_v16, %v328_v15  ;;  %v307_v19 = vadd.f32 %v306_v14, %v207_v54 }
  0xbe   :  { %v308_v21 = vrot.slane %v307_v19, 4  ;;  %v344_v22 = vadd.f32 %v343_v17, %v329_v20 }
  0xc0   :  { %v309_v23 = vadd.f32 %v308_v21, %v307_v19  ;;  %v345_v25 = vrot.slane %v344_v22, 4 }
  0xc2   :  { %v310_v26 = vrot.slane %v309_v23, 2  ;;  %v346_v27 = vadd.f32 %v345_v25, %v344_v22 }
  0xc4   :  { %v311_v28 = vadd.f32 %v310_v26, %v309_v23  ;;  %v347_v29 = vrot.slane %v346_v27, 2 }
  0xc6   :  { %v312_v30 = vrot.slane %v311_v28, 1  ;;  %v348_v18 = vadd.f32 %v347_v29, %v346_v27 }
  0xc8   :  { %v349_v31 = vrot.slane %v348_v18, 1  ;;  %v313_v32 = vadd.f32 %v312_v30, %v311_v28 }
  0xca   :  { %v350_v24 = vadd.f32 %v349_v31, %v348_v18 }
  0xcc   :  { %v352_v33 = vsel %vm351_vm3, %v313_v32, %v350_v24 }
  0xcd   :  { %353 = vst [vmem:[%s591_s3] sm:$0x3] %v352_v33 }
  0xce   :  { %362 = vsyncpa [#allocation4], 1 }

// kernel: _lambda_.15
= control target key start
LH: loop header
LB: loop body
LE: loop exit
PB: predicated region body
PF: predicated region fallthrough
CT: control target
= control target key end

     0   :  { %s122_s0 = inlined_call_operand.vmem [shape: bf16[32,128], index: 0, kind: input, shape index: {}]   ;;  %s123_s1 = inlined_call_operand.vmem [shape: f32[1,128], index: 1, kind: input, shape index: {}]   ;;  %s124_s2 = inlined_call_operand.vmem [shape: f32[1,128], index: 2, kind: input, shape index: {}]   ;;  %s125_s3 = inlined_call_operand.vmem [shape: bf16[32,128], index: 3, kind: output, shape index: {}]  }
   0x1   :  { %v63_v0 = vld [vmem:[%s122_s0] sm:$0xff]   ;;  %v80_v5 = vld [vmem:[%s122_s0 + $0x8] sm:$0xff]  }
   0x2   :  { %v82_v1 = vld [vmem:[%s123_s1] ss:$0 sm:$0xff]  ;;  %v64_v2 = vunpack.c.l.bf16 %v63_v0  ;;  %v65_v3 = vunpack.c.h.bf16 %v63_v0  ;;  %v68_v6 = vunpack.c.l.bf16 %v80_v5  ;;  %v69_v7 = vunpack.c.h.bf16 %v80_v5 }
   0x3   :  { %v83_v4 = vld [vmem:[%s124_s2] ss:$0 sm:$0xff] }
   0x4   :  { %v26_v8 = vmul.f32 %v82_v1, %v64_v2  ;;  %v27_v9 = vmul.f32 %v82_v1, %v65_v3  ;;  %v28_v10 = vmul.f32 %v82_v1, %v68_v6  ;;  %v29_v11 = vmul.f32 %v82_v1, %v69_v7 }
   0x6   :  { %v34_v12 = vadd.f32 %v83_v4, %v26_v8  ;;  %v35_v13 = vadd.f32 %v83_v4, %v27_v9  ;;  %v36_v14 = vadd.f32 %v83_v4, %v28_v10  ;;  %v37_v15 = vadd.f32 %v83_v4, %v29_v11 }
   0x8   :  { %vm38_vm0 = vcmp.ge.f32.partialorder %v34_v12, 0.0  ;;  %vm39_vm1 = vcmp.ge.f32.partialorder %v35_v13, 0.0  ;;  %v42_v16 = vmul.f32 0.2, %v34_v12  ;;  %v43_v17 = vmul.f32 0.2, %v35_v13 }
   0x9   :  { %vm40_vm2 = vcmp.ge.f32.partialorder %v36_v14, 0.0  ;;  %vm41_vm3 = vcmp.ge.f32.partialorder %v37_v15, 0.0  ;;  %v44_v18 = vmul.f32 0.2, %v36_v14  ;;  %v45_v19 = vmul.f32 0.2, %v37_v15 }
   0xa   :  { %v46_v20 = vsel %vm38_vm0, %v34_v12, %v42_v16  ;;  %v47_v21 = vsel %vm39_vm1, %v35_v13, %v43_v17 }
   0xb   :  { %v73_v22 = vpack.c.bf16 %v47_v21, %v46_v20  ;;  %v48_v23 = vsel %vm40_vm2, %v36_v14, %v44_v18  ;;  %v49_v24 = vsel %vm41_vm3, %v37_v15, %v45_v19 }
   0xc   :  { %v78_v25 = vpack.c.bf16 %v49_v24, %v48_v23 }
   0xd   :  { %74 = vst [vmem:[%s125_s3] sm:$0xff] %v73_v22  }
   0xe   :  { %81 = vst [vmem:[%s125_s3 + $0x8] sm:$0xff] %v78_v25  }

// kernel: _lambda_.14
= control target key start
LH: loop header
LB: loop body
LE: loop exit
PB: predicated region body
PF: predicated region fallthrough
CT: control target
= control target key end

     0   :  { %9 = vsyncpa [#allocation4], 0  ;;  %s827_s15 = smov [#allocation3]   ;;  %s828_s17 = smov 64   ;;  %s922_s0 = inlined_call_operand.vmem [shape: bf16[32,576], index: 0, kind: input, shape index: {}]   ;;  %s923_s1 = inlined_call_operand.hbm [shape: bf16[576,128], index: 1, kind: input, shape index: {}]   ;;  %s924_s2 = inlined_call_operand.vmem [shape: bf16[32,128], index: 2, kind: output, shape index: {0}]   ;;  %s925_s3 = inlined_call_operand.vmem [shape: f32[1,2,128], index: 3, kind: output, shape index: {1}]  }
   0x1   :  { %s16_s14 = sshll.u32 %s923_s1, 4  ;;  %s18_s16 = sshll.u32 %s827_s15, 4  ;;  %s17_s14 = int_to_ptr.hbm [resolvable:$true] %s16_s14  ;;  %s19_s16 = int_to_ptr.vmem [resolvable:$true] %s18_s16 }
   0x2   :  { %s829_s18 = smov 4  }
   0x3   :  { %24 = dma.hbm_to_vmem [thread:$0]  %s17_s14, 4608, %s19_s16, [#allocation4], %s828_s17, %s828_s17, %s829_s18  }
   0x4   :  { %825 = dma.done.wait [#allocation4], 4608  }
   0x5   :  { %826 = vsyncadd [#allocation4], 4294962688  ;;  %v754_v0 = vld [vmem:[#allocation3 + $0x38] sm:$0xff]  ;;  %v753_v4 = vld [vmem:[#allocation3 + $0x30] sm:$0xff]  ;;  %vm392_vm0 = vcmask 523264   ;;  %vm539_vm1 = vcmask 1040384  }
   0x6   :  { %v762_v1 = vld [vmem:[#allocation3 + $0x78] sm:$0xff]  ;;  %399 = vmatpush.bf16.msra.mxu0 %v754_v0  ;;  %v761_v5 = vld [vmem:[#allocation3 + $0x70] sm:$0xff]  ;;  %v752_v8 = vld [vmem:[#allocation3 + $0x28] sm:$0xff] }
   0x7   :  { %v770_v2 = vld [vmem:[#allocation3 + $0xb8] sm:$0xff]  ;;  %418 = vmatpush.bf16.msra.mxu1 %v762_v1  ;;  %v769_v6 = vld [vmem:[#allocation3 + $0xb0] sm:$0xff]  ;;  %v760_v9 = vld [vmem:[#allocation3 + $0x68] sm:$0xff] }
   0x8   :  { %v778_v3 = vld [vmem:[#allocation3 + $0xf8] sm:$0xff]  ;;  %437 = vmatpush.bf16.msra.mxu2 %v770_v2  ;;  %v777_v7 = vld [vmem:[#allocation3 + $0xf0] sm:$0xff]  ;;  %v768_v10 = vld [vmem:[#allocation3 + $0xa8] sm:$0xff] }
   0x9   :  { %456 = vmatpush.bf16.msra.mxu3 %v778_v3  ;;  %v776_v11 = vld [vmem:[#allocation3 + $0xe8] sm:$0xff]  ;;  %v751_v12 = vld [vmem:[#allocation3 + $0x20] sm:$0xff]  ;;  %v750_v16 = vld [vmem:[#allocation3 + $0x18] sm:$0xff] }
   0xa   :  { %400 = vmatpush.bf16.msra.mxu0 %v753_v4  ;;  %v759_v13 = vld [vmem:[#allocation3 + $0x60] sm:$0xff]  ;;  %v758_v17 = vld [vmem:[#allocation3 + $0x58] sm:$0xff]  ;;  %v749_v20 = vld [vmem:[#allocation3 + $0x10] sm:$0xff] }
   0xb   :  { %419 = vmatpush.bf16.msra.mxu1 %v761_v5  ;;  %v767_v14 = vld [vmem:[#allocation3 + $0xa0] sm:$0xff]  ;;  %v766_v18 = vld [vmem:[#allocation3 + $0x98] sm:$0xff]  ;;  %v757_v21 = vld [vmem:[#allocation3 + $0x50] sm:$0xff] }
   0xc   :  { %438 = vmatpush.bf16.msra.mxu2 %v769_v6  ;;  %v775_v15 = vld [vmem:[#allocation3 + $0xe0] sm:$0xff]  ;;  %v774_v19 = vld [vmem:[#allocation3 + $0xd8] sm:$0xff]  ;;  %v765_v22 = vld [vmem:[#allocation3 + $0x90] sm:$0xff] }
   0xd   :  { %457 = vmatpush.bf16.msra.mxu3 %v777_v7  ;;  %v773_v23 = vld [vmem:[#allocation3 + $0xd0] sm:$0xff]  ;;  %v748_v24 = vld [vmem:[#allocation3 + $0x8] sm:$0xff]  ;;  %v747_v28 = vld [vmem:[#allocation3] sm:$0xff] }
   0xe   :  { %401 = vmatpush.bf16.msra.mxu0 %v752_v8  ;;  %v756_v25 = vld [vmem:[#allocation3 + $0x48] sm:$0xff]  ;;  %v755_v29 = vld [vmem:[#allocation3 + $0x40] sm:$0xff]  ;;  %v553_v32 = vld [vmem:[%s922_s0] sm:$0xf] }
   0xf   :  { %420 = vmatpush.bf16.msra.mxu1 %v760_v9  ;;  %v764_v26 = vld [vmem:[#allocation3 + $0x88] sm:$0xff]  ;;  %v763_v30 = vld [vmem:[#allocation3 + $0x80] sm:$0xff]  ;;  %v737_v34 = vld [vmem:[%s922_s0 + $0x4] sm:$0xf] }
  0x10   :  { %439 = vmatpush.bf16.msra.mxu2 %v768_v10  ;;  %v772_v27 = vld [vmem:[#allocation3 + $0xc8] sm:$0xff]  ;;  %v771_v31 = vld [vmem:[#allocation3 + $0xc0] sm:$0xff]  ;;  %v561_v36 = vld [vmem:[%s922_s0 + $0x8] sm:$0xf] }
  0x11   :  { %458 = vmatpush.bf16.msra.mxu3 %v776_v11  ;;  %v739_v33 = vld [vmem:[%s922_s0 + $0x10] sm:$0xf0]  ;;  %v555_v35 = vld [vmem:[%s922_s0 + $0x14] sm:$0xf0]  ;;  %v740_v37 = vld [vmem:[%s922_s0 + $0x18] sm:$0xf0] }
  0x12   :  { %402 = vmatpush.bf16.msra.mxu0 %v751_v12  ;;  %v738_v38 = vld [vmem:[%s922_s0 + $0xc] sm:$0xf]  ;;  %v563_v39 = vld [vmem:[%s922_s0 + $0x1c] sm:$0xf0]  ;;  %v554_v41 = vor.u32 %v739_v33, %v553_v32  ;;  %v558_v42 = vor.u32 %v737_v34, %v555_v35  ;;  %v562_v43 = vor.u32 %v740_v37, %v561_v36  ;;  %v780_v46 = vld [vmem:[#allocation3 + $0x108] sm:$0xff] }
  0x13   :  { %421 = vmatpush.bf16.msra.mxu1 %v759_v13  ;;  %v782_v40 = vld [vmem:[#allocation3 + $0x118] sm:$0xff]  ;;  %v566_v44 = vor.u32 %v738_v38, %v563_v39  ;;  %v781_v45 = vld [vmem:[#allocation3 + $0x110] sm:$0xff]  ;;  %v779_v47 = vld [vmem:[#allocation3 + $0x100] sm:$0xff] }
  0x14   :  { %440 = vmatpush.bf16.msra.mxu2 %v767_v14  ;;  %v573_v48 = vld [vmem:[%s922_s0 + $0x28] sm:$0xf]  ;;  %v744_v49 = vld [vmem:[%s922_s0 + $0x38] sm:$0xf0]  ;;  %v742_v50 = vld [vmem:[%s922_s0 + $0x2c] sm:$0xf] }
  0x15   :  { %459 = vmatpush.bf16.msra.mxu3 %v775_v15  ;;  %v575_v51 = vld [vmem:[%s922_s0 + $0x3c] sm:$0xf0]  ;;  %v581_v52 = vld [vmem:[%s922_s0 + $0x30] sm:$0xf]  ;;  %v745_v53 = vld [vmem:[%s922_s0 + $0x40] sm:$0xf0]  ;;  %v574_v56 = vor.u32 %v744_v49, %v573_v48 }
  0x16   :  { %403 = vmatpush.bf16.msra.mxu0 %v750_v16  ;;  %v743_v54 = vld [vmem:[%s922_s0 + $0x34] sm:$0xf]  ;;  %v583_v55 = vld [vmem:[%s922_s0 + $0x44] sm:$0xf0]  ;;  %v578_v57 = vor.u32 %v742_v50, %v575_v51  ;;  %v582_v58 = vor.u32 %v745_v53, %v581_v52  ;;  %v569_v60 = vld [vmem:[%s922_s0 + $0x10] sm:$0xf] }
  0x17   :  { %422 = vmatpush.bf16.msra.mxu1 %v758_v17  ;;  %v586_v59 = vor.u32 %v743_v54, %v583_v55  ;;  %v741_v61 = vld [vmem:[%s922_s0 + $0x20] sm:$0xf0]  ;;  %v589_v62 = vld [vmem:[%s922_s0 + $0x38] sm:$0xf]  ;;  %v746_v63 = vld [vmem:[%s922_s0 + $0x48] sm:$0xf0] }
  0x18   :  { %441 = vmatpush.bf16.msra.mxu2 %v766_v18  ;;  %v570_v0 = vor.u32 %v741_v61, %v569_v60  ;;  %v590_v1 = vor.u32 %v746_v63, %v589_v62 }
  0x19   :  { %460 = vmatpush.bf16.msra.mxu3 %v774_v19 }
  0x1a   :  { %404 = vmatpush.bf16.msra.mxu0 %v749_v20 }
  0x1b   :  { %423 = vmatpush.bf16.msra.mxu1 %v757_v21 }
  0x1c   :  { %442 = vmatpush.bf16.msra.mxu2 %v765_v22 }
  0x1d   :  { %461 = vmatpush.bf16.msra.mxu3 %v773_v23 }
  0x1e   :  { %405 = vmatpush.bf16.msra.mxu0 %v748_v24 }
  0x1f   :  { %424 = vmatpush.bf16.msra.mxu1 %v756_v25 }
  0x20   :  { %443 = vmatpush.bf16.msra.mxu2 %v764_v26 }
  0x21   :  { %462 = vmatpush.bf16.msra.mxu3 %v772_v27 }
  0x22   :  { %406 = vmatpush.bf16.msra.mxu0 %v747_v28 }
  0x23   :  { %425 = vmatpush.bf16.msra.mxu1 %v755_v29 }
  0x24   :  { %444 = vmatpush.bf16.msra.mxu2 %v763_v30 }
  0x25   :  { %463 = vmatpush.bf16.msra.mxu3 %v771_v31  ;;  %407 = vmatmul.bf16.vlgmr.msra.gmra.mxu0 %v554_v41 }
  0x26   :  { %479 = vmatpush.bf16.msrb.mxu0 %v782_v40  ;;  %426 = vmatmul.bf16.vlgmr.msra.gmra.mxu1 %v558_v42 }
  0x27   :  { %794 = vmatpush.bf16.msrb.mxu1 %v782_v40  ;;  %445 = vmatmul.bf16.vlgmr.msra.gmra.mxu2 %v562_v43 }
  0x28   :  { %464 = vmatmul.bf16.vlgmr.msra.gmra.mxu3 %v566_v44 }
  0x2a   :  { %480 = vmatpush.bf16.msrb.mxu0 %v781_v45 }
  0x2b   :  { %795 = vmatpush.bf16.msrb.mxu1 %v781_v45 }
  0x2e   :  { %481 = vmatpush.bf16.msrb.mxu0 %v780_v46 }
  0x2f   :  { %796 = vmatpush.bf16.msrb.mxu1 %v780_v46 }
  0x32   :  { %482 = vmatpush.bf16.msrb.mxu0 %v779_v47 }
  0x33   :  { %797 = vmatpush.bf16.msrb.mxu1 %v779_v47 }
  0x35   :  { %412 = vmatmul.bf16.gmra.mxu0 %v574_v56 }
  0x36   :  { %431 = vmatmul.bf16.gmra.mxu1 %v578_v57 }
  0x37   :  { %450 = vmatmul.bf16.gmra.mxu2 %v582_v58 }
  0x38   :  { %469 = vmatmul.bf16.gmra.mxu3 %v586_v59 }
  0x45   :  { %735 = vmatmul.msk.bf16.vlgmr.msrb.gmra.mxu0 %vm392_vm0, %v570_v0 }
  0x46   :  { %736 = vmatmul.msk.bf16.vlgmr.msrb.gmra.mxu1 %vm392_vm0, %v590_v1 }
  0xa2   :  { %v408_v2 = vpop.f32.mrf.mxu0 }
  0xa3   :  { %v427_v3 = vpop.f32.mrf.mxu1 }
  0xa4   :  { %v428_v16 = vadd.f32 %v427_v3, %v408_v2 }
  0xaa   :  { %v446_v4 = vpop.f32.mrf.mxu2  ;;  %v410_v6 = vpop.f32.mrf.mxu0 }
  0xab   :  { %v465_v5 = vpop.f32.mrf.mxu3  ;;  %v429_v7 = vpop.f32.mrf.mxu1  ;;  %v447_v18 = vadd.f32 %v446_v4, %v428_v16 }
  0xac   :  { %v430_v21 = vadd.f32 %v429_v7, %v410_v6 }
  0xad   :  { %v466_v27 = vadd.f32 %v465_v5, %v447_v18 }
  0xb2   :  { %v448_v8 = vpop.f32.mrf.mxu2  ;;  %v413_v10 = vpop.f32.mrf.mxu0 }
  0xb3   :  { %v467_v9 = vpop.f32.mrf.mxu3  ;;  %v432_v11 = vpop.f32.mrf.mxu1  ;;  %v449_v24 = vadd.f32 %v448_v8, %v430_v21 }
  0xb4   :  { %v433_v22 = vadd.f32 %v432_v11, %v413_v10 }
  0xb5   :  { %v468_v30 = vadd.f32 %v467_v9, %v449_v24 }
  0xba   :  { %v451_v12 = vpop.f32.mrf.mxu2  ;;  %v415_v13 = vpop.f32.mrf.mxu0 }
  0xbb   :  { %v434_v14 = vpop.f32.mrf.mxu1  ;;  %v470_v15 = vpop.f32.mrf.mxu3  ;;  %v452_v25 = vadd.f32 %v451_v12, %v433_v22 }
  0xbc   :  { %v435_v23 = vadd.f32 %v434_v14, %v415_v13 }
  0xbd   :  { %v471_v31 = vadd.f32 %v470_v15, %v452_v25 }
  0xc2   :  { %v453_v17 = vpop.f32.mrf.mxu2  ;;  %v484_v19 = vpop.f32.mrf.mxu0 }
  0xc3   :  { %v489_v20 = vpop.f32.mrf.mxu1  ;;  %v454_v26 = vadd.f32 %v453_v17, %v435_v23  ;;  %v472_v28 = vpop.f32.mrf.mxu3  ;;  %v485_v29 = vadd.f32 %v484_v19, %v466_v27 }
  0xc4   :  { %v490_v35 = vadd.f32 %v489_v20, %v471_v31 }
  0xc5   :  { %v473_v32 = vadd.f32 %v472_v28, %v454_v26  ;;  %v526_v38 = vmul.f32 %v485_v29, %v485_v29 }
  0xc6   :  { %v528_v43 = vmul.f32 %v490_v35, %v490_v35 }
  0xca   :  { %v486_v33 = vpop.f32.mrf.mxu0 }
  0xcb   :  { %v491_v34 = vpop.f32.mrf.mxu1  ;;  %v487_v36 = vadd.f32 %v486_v33, %v468_v30 }
  0xcc   :  { %v492_v37 = vadd.f32 %v491_v34, %v473_v32 }
  0xcd   :  { %v786_v39 = vpack.c.bf16 %v487_v36, %v485_v29  ;;  %v517_v40 = vadd.f32 %v487_v36, %v485_v29  ;;  %v527_v41 = vmul.f32 %v487_v36, %v487_v36 }
  0xce   :  { %v791_v42 = vpack.c.bf16 %v492_v37, %v490_v35  ;;  %v529_v47 = vmul.f32 %v492_v37, %v492_v37 }
  0xcf   :  { %787 = vst [vmem:[%s924_s2] sm:$0xff] %v786_v39   ;;  %v530_v44 = vadd.f32 %v527_v41, %v526_v38  ;;  %v518_v45 = vadd.f32 %v517_v40, %v490_v35 }
  0xd0   :  { %793 = vst [vmem:[%s924_s2 + $0x8] sm:$0xff] %v791_v42  }
  0xd1   :  { %v519_v46 = vadd.f32 %v518_v45, %v492_v37  ;;  %v531_v48 = vadd.f32 %v530_v44, %v528_v43 }
  0xd3   :  { %v520_v49 = vrot.slane %v519_v46, 4  ;;  %v532_v50 = vadd.f32 %v531_v48, %v529_v47 }
  0xd5   :  { %v521_v51 = vadd.f32 %v520_v49, %v519_v46  ;;  %v533_v52 = vrot.slane %v532_v50, 4 }
  0xd7   :  { %v522_v53 = vrot.slane %v521_v51, 2  ;;  %v534_v54 = vadd.f32 %v533_v52, %v532_v50 }
  0xd9   :  { %v523_v55 = vadd.f32 %v522_v53, %v521_v51  ;;  %v535_v56 = vrot.slane %v534_v54, 2 }
  0xdb   :  { %v524_v57 = vrot.slane %v523_v55, 1  ;;  %v536_v58 = vadd.f32 %v535_v56, %v534_v54 }
  0xdd   :  { %v537_v59 = vrot.slane %v536_v58, 1  ;;  %v525_v60 = vadd.f32 %v524_v57, %v523_v55 }
  0xdf   :  { %v538_v61 = vadd.f32 %v537_v59, %v536_v58 }
  0xe1   :  { %v540_v62 = vsel %vm539_vm1, %v525_v60, %v538_v61 }
  0xe2   :  { %541 = vst [vmem:[%s925_s3] sm:$0x3] %v540_v62 }
  0xe3   :  { %550 = vsyncpa [#allocation4], 1 }

// kernel: _lambda_.16
= control target key start
LH: loop header
LB: loop body
LE: loop exit
PB: predicated region body
PF: predicated region fallthrough
CT: control target
= control target key end

     0   :  { %9 = vsyncpa [#allocation5], 0  ;;  %s1609_s0 = inlined_call_operand.vmem [shape: bf16[16,1152], index: 0, kind: input, shape index: {}]   ;;  %s1610_s1 = inlined_call_operand.hbm [shape: bf16[1152,256], index: 1, kind: input, shape index: {}]   ;;  %s1611_s2 = inlined_call_operand.vmem [shape: bf16[16,256], index: 2, kind: output, shape index: {0}]   ;;  %s1612_s3 = inlined_call_operand.vmem [shape: f32[1,2,256], index: 3, kind: output, shape index: {1}]  }
   0x1   :  { %11 = vsyncpa [#allocation5 + $0x1], 0  ;;  %s1394_s12 = smov 0   ;;  %s1396_s13 = smov 0  }
   0x2   :  { %s1398_s14 = smov 0   ;;  %s1400_s15 = smov 0  }
   0x3   :  { %s1402_s16 = smov 0   ;;  %s1404_s17 = smov 0  }
   0x4 LB: > { %s956_s18 = sadd.s32 4294967295, %s1369_s17   ;;  %s29_s19 = sadd.s32 1, %s1365_s16  ;;  %s1369_s17 = sphi %s1404_s17, %s17_s17   ;;  %s1365_s16 = sphi %s1402_s16, %s1619_s16   ;;  %s1361_s15 = sphi %s1400_s15, %s1618_s15   ;;  %s1357_s14 = sphi %s1398_s14, %s1617_s14   ;;  %s1353_s13 = sphi %s1396_s13, %s1616_s13   ;;  %s1349_s12 = sphi %s1394_s12, %s1615_s12  }
   0x5   : > { %p30_p0 = scmp.ge.s32.totalorder %s29_s19, 3  ;;  %s45_s20 = sadd.s32 1, %s1357_s14 }
   0x6   : > { %p52_p1 = scmp.ne.s32.totalorder %s1357_s14, %s1353_s13  ;;  %p53_p2 = scmp.eq.s32.totalorder %s1369_s17, 0 }
   0x7   : > { %s1621_s19 = smov (%p30_p0, %s29_s19), 0  ;;  %p86_p4 = scmp.ne.s32.totalorder %s1353_s13, %s1349_s12 }
   0x8   : > { %p1430_p3 = por %p53_p2, %p52_p1  ;;  %s41_s22 = ssub.s32 %s1365_s16, %s1621_s19 }
   0x9   : > { %p87_p5 = scmp.eq.s32.totalorder %s956_s18, 0  ;;  %p43_p6 = scmp.eq.s32.totalorder %s41_s22, 0 }
   0xa   : > { %p958_p8 = scmp.ge.s32.totalorder %s1369_s17, 3 }
   0xb   : > { %p1437_p7 = por %p87_p5, %p86_p4 }
   0xc   : > { %s1442_s24 = scalar_select %p43_p6, %s1357_s14, %s45_s20  }
   0xd   : > { %162 = sbr.rel (%p958_p8) target bundleno = 33 (0x21), region = 16 }
  0x12   : > { %165 = sbr.rel (!%p1430_p3) target bundleno = 27 (0x1b), region = 20  ;;  %s167_s25 = sand.u32 (%p1430_p3), 1, %s1357_s14  }
  0x13   : > { %s1179_s26 = smul.u32 (%p1430_p3), 12, %s1365_s16 }
  0x14   : > { %s1234_s27 = smul.u32 (%p1430_p3), 24, %s167_s25 }
  0x15   : > { %s175_s30 = scalar_lea.vmem (%p1430_p3), %s1609_s0, %s1179_s26 }
  0x16   : > { %v190_v0 = vld [vmem:[%s175_s30] sm:$0xff] (%p1430_p3)  ;;  %v960_v2 = vld [vmem:[%s175_s30 + $0x8] sm:$0xf] (%p1430_p3)  ;;  %s169_s4 = scalar_lea.vmem (%p1430_p3), [#allocation3], %s1234_s27  ;;  %v962_v3 = vld [vmem:[%s175_s30 + $0x2c] sm:$0xf] (%p1430_p3) }
  0x17   : > { %v192_v1 = vld [vmem:[%s175_s30 + $0x24] sm:$0xff]  ;;  %191 = vst [vmem:[%s169_s4] sm:$0xff] %v190_v0 }
  0x18   : > { %193 = vst [vmem:[%s169_s4 + $0xc] sm:$0xff] %v192_v1 }
  0x19   : > { %961 = vst [vmem:[%s169_s4 + $0x8] sm:$0xf] %v960_v2 }
  0x1a   : > { %963 = vst [vmem:[%s169_s4 + $0x14] sm:$0xf] %v962_v3 }
  0x1b PF: > { %s212_s5 = sand.u32 1, %s1357_s14   ;;  %s1233_s6 = smul.u32 384, %s1365_s16 }
  0x1c   : > { %s1235_s7 = smul.u32 384, %s212_s5  ;;  %s213_s20 = scalar_lea.sflag [#allocation5], %s212_s5 }
  0x1d   : > { %s224_s10 = scalar_lea.hbm %s1610_s1, %s1233_s6  ;;  %s1371_s22 = smov 128  }
  0x1e   : > { %s225_s11 = sshll.u32 %s224_s10, 4  ;;  %s216_s12 = scalar_lea.vmem [#allocation4], %s1235_s7  ;;  %s226_s11 = int_to_ptr.hbm [resolvable:$true] %s225_s11 }
  0x1f   : > { %s227_s18 = sshll.u32 %s216_s12, 4  ;;  %s1372_s25 = smov 8   ;;  %s228_s18 = int_to_ptr.vmem [resolvable:$true] %s227_s18 }
  0x20   : > { %1238 = dma.hbm_to_vmem [thread:$0]  (%p1430_p3), %s226_s11, 6144, %s228_s18, %s213_s20, %s1371_s22, %s1371_s22, %s1372_s25  }
  0x21 PF: > { %p966_p9 = scmp.ge.s32.totalorder %s1369_s17, 1  ;;  %p235_p10 = scmp.lt.s32.totalorder %s1369_s17, 4 }
  0x23   : > { %p236_p11 = pnand %p966_p9, %p235_p10 }
  0x24   : > { %s242_s26 = sand.u32 (!%p236_p11), 1, %s1353_s13  }
  0x25   : > { %239 = sbr.rel (%p236_p11) target bundleno = 290 (0x122), region = 50  ;;  %s249_s30 = scalar_lea.sflag (!%p236_p11), [#allocation5], %s242_s26 }
  0x26   : > { %s1236_s27 = smul.u32 (!%p236_p11), 24, %s242_s26 }
  0x27   : > { %s1237_s28 = smul.u32 (!%p236_p11), 384, %s242_s26 }
  0x28   : > { %s1462_s29 = scalar_lea.vmem (!%p236_p11), [#allocation3], %s1236_s27 }
  0x29   : > { %s1464_s4 = scalar_lea.vmem (!%p236_p11), [#allocation4], %s1237_s28 }
  0x2a   : > { %1344 = dma.done.wait (%p1437_p7), %s249_s30, 6144  }
  0x2b   : > { %1346 = vsyncadd (%p1437_p7), %s249_s30, 4294961152  ;;  %p967_p12 = scmp.ne.s32.totalorder %s1361_s15, 0 }
  0x2d   : > { %323 = sbr.rel (%p967_p12) target bundleno = 55 (0x37), region = 62 }
  0x32   : > { %v1373_v4 = vmov 0.0  }
  0x33   : > { %324 = vst [vmem:[#allocation2 + $0x10] sm:$0xff] %v1373_v4 }
  0x34   : > { %325 = vst [vmem:[#allocation2] sm:$0xff] %v1373_v4 }
  0x35   : > { %326 = vst [vmem:[#allocation2 + $0x18] sm:$0xff] %v1373_v4 }
  0x36   : > { %327 = vst [vmem:[#allocation2 + $0x8] sm:$0xff] %v1373_v4 }
  0x37 PF: > { %v1038_v5 = vld [vmem:[%s1464_s4 + $0x70] sm:$0xf]  ;;  %v1200_v6 = vld [vmem:[%s1464_s4 + $0x74] sm:$0xf0]  ;;  %v1030_v14 = vld [vmem:[%s1464_s4 + $0x60] sm:$0xf] }
  0x38   : > { %v1102_v7 = vld [vmem:[%s1464_s4 + $0xf0] sm:$0xf]  ;;  %v1039_v8 = vor.u32 %v1200_v6, %v1038_v5  ;;  %v1216_v9 = vld [vmem:[%s1464_s4 + $0xf4] sm:$0xf0]  ;;  %v1198_v15 = vld [vmem:[%s1464_s4 + $0x64] sm:$0xf0] }
  0x39   : > { %v1166_v10 = vld [vmem:[%s1464_s4 + $0x170] sm:$0xf]  ;;  %v1232_v11 = vld [vmem:[%s1464_s4 + $0x174] sm:$0xf0]  ;;  %v1103_v12 = vor.u32 %v1216_v9, %v1102_v7  ;;  %v1094_v16 = vld [vmem:[%s1464_s4 + $0xe0] sm:$0xf]  ;;  %v1031_v17 = vor.u32 %v1198_v15, %v1030_v14 }
  0x3a   : > { %v1167_v13 = vor.u32 %v1232_v11, %v1166_v10  ;;  %640 = vmatpush.bf16.msra.mxu0 %v1039_v8  ;;  %v1214_v18 = vld [vmem:[%s1464_s4 + $0xe4] sm:$0xf0]  ;;  %v1158_v19 = vld [vmem:[%s1464_s4 + $0x160] sm:$0xf]  ;;  %v1022_v23 = vld [vmem:[%s1464_s4 + $0x50] sm:$0xf] }
  0x3b   : > { %v1230_v20 = vld [vmem:[%s1464_s4 + $0x164] sm:$0xf0]  ;;  %654 = vmatpush.bf16.msra.mxu1 %v1103_v12  ;;  %v1095_v21 = vor.u32 %v1214_v18, %v1094_v16  ;;  %v1196_v24 = vld [vmem:[%s1464_s4 + $0x54] sm:$0xf0]  ;;  %v1086_v25 = vld [vmem:[%s1464_s4 + $0xd0] sm:$0xf] }
  0x3c   : > { %668 = vmatpush.bf16.msra.mxu2 %v1167_v13  ;;  %v1159_v22 = vor.u32 %v1230_v20, %v1158_v19  ;;  %v1212_v26 = vld [vmem:[%s1464_s4 + $0xd4] sm:$0xf0]  ;;  %v1150_v27 = vld [vmem:[%s1464_s4 + $0x150] sm:$0xf]  ;;  %v1023_v29 = vor.u32 %v1196_v24, %v1022_v23  ;;  %v1014_v30 = vld [vmem:[%s1464_s4 + $0x40] sm:$0xf] }
  0x3d   : > { %v1228_v28 = vld [vmem:[%s1464_s4 + $0x154] sm:$0xf0]  ;;  %v1194_v31 = vld [vmem:[%s1464_s4 + $0x44] sm:$0xf0]  ;;  %v1087_v32 = vor.u32 %v1212_v26, %v1086_v25  ;;  %v1078_v34 = vld [vmem:[%s1464_s4 + $0xc0] sm:$0xf] }
  0x3e   : > { %641 = vmatpush.bf16.msra.mxu0 %v1031_v17  ;;  %v1151_v33 = vor.u32 %v1228_v28, %v1150_v27  ;;  %v1199_v35 = vld [vmem:[%s1464_s4 + $0x74] sm:$0xf]  ;;  %v1040_v36 = vld [vmem:[%s1464_s4 + $0x78] sm:$0xf0]  ;;  %v1210_v37 = vld [vmem:[%s1464_s4 + $0xc4] sm:$0xf0]  ;;  %v1015_v42 = vor.u32 %v1194_v31, %v1014_v30 }
  0x3f   : > { %655 = vmatpush.bf16.msra.mxu1 %v1095_v21  ;;  %v1142_v38 = vld [vmem:[%s1464_s4 + $0x140] sm:$0xf]  ;;  %v1226_v39 = vld [vmem:[%s1464_s4 + $0x144] sm:$0xf0]  ;;  %v1043_v40 = vor.u32 %v1199_v35, %v1040_v36  ;;  %v1197_v41 = vld [vmem:[%s1464_s4 + $0x64] sm:$0xf]  ;;  %v1079_v46 = vor.u32 %v1210_v37, %v1078_v34 }
  0x40   : > { %669 = vmatpush.bf16.msra.mxu2 %v1159_v22  ;;  %v1006_v43 = vld [vmem:[%s1464_s4 + $0x30] sm:$0xf]  ;;  %v1192_v44 = vld [vmem:[%s1464_s4 + $0x34] sm:$0xf0]  ;;  %v1032_v45 = vld [vmem:[%s1464_s4 + $0x68] sm:$0xf0]  ;;  %v1143_v47 = vor.u32 %v1226_v39, %v1142_v38 }
  0x41   : > { %682 = vmatpush.bf16.msra.mxu3 %v1043_v40  ;;  %v1070_v48 = vld [vmem:[%s1464_s4 + $0xb0] sm:$0xf]  ;;  %v1208_v49 = vld [vmem:[%s1464_s4 + $0xb4] sm:$0xf0]  ;;  %v1035_v51 = vor.u32 %v1197_v41, %v1032_v45  ;;  %v1195_v53 = vld [vmem:[%s1464_s4 + $0x54] sm:$0xf]  ;;  %v1007_v55 = vor.u32 %v1192_v44, %v1006_v43 }
  0x42   : > { %642 = vmatpush.bf16.msra.mxu0 %v1023_v29  ;;  %v1134_v50 = vld [vmem:[%s1464_s4 + $0x130] sm:$0xf]  ;;  %v1224_v52 = vld [vmem:[%s1464_s4 + $0x134] sm:$0xf0]  ;;  %v1024_v54 = vld [vmem:[%s1464_s4 + $0x58] sm:$0xf0]  ;;  %v1071_v59 = vor.u32 %v1208_v49, %v1070_v48 }
  0x43   : > { %656 = vmatpush.bf16.msra.mxu1 %v1087_v32  ;;  %v998_v56 = vld [vmem:[%s1464_s4 + $0x20] sm:$0xf]  ;;  %v1190_v57 = vld [vmem:[%s1464_s4 + $0x24] sm:$0xf0]  ;;  %v1027_v58 = vor.u32 %v1195_v53, %v1024_v54  ;;  %v1135_v60 = vor.u32 %v1224_v52, %v1134_v50  ;;  %v1193_v62 = vld [vmem:[%s1464_s4 + $0x44] sm:$0xf] }
  0x44   : > { %670 = vmatpush.bf16.msra.mxu2 %v1151_v33  ;;  %v1062_v61 = vld [vmem:[%s1464_s4 + $0xa0] sm:$0xf]  ;;  %v1016_v63 = vld [vmem:[%s1464_s4 + $0x48] sm:$0xf0]  ;;  %v1206_v0 = vld [vmem:[%s1464_s4 + $0xa4] sm:$0xf0]  ;;  %v999_v3 = vor.u32 %v1190_v57, %v998_v56 }
  0x45   : > { %683 = vmatpush.bf16.msra.mxu3 %v1035_v51  ;;  %v1126_v1 = vld [vmem:[%s1464_s4 + $0x120] sm:$0xf]  ;;  %v1222_v2 = vld [vmem:[%s1464_s4 + $0x124] sm:$0xf0]  ;;  %v990_v4 = vld [vmem:[%s1464_s4 + $0x10] sm:$0xf]  ;;  %v1019_v6 = vor.u32 %v1193_v62, %v1016_v63  ;;  %v1063_v7 = vor.u32 %v1206_v0, %v1062_v61 }
  0x46   : > { %643 = vmatpush.bf16.msra.mxu0 %v1015_v42  ;;  %v1188_v5 = vld [vmem:[%s1464_s4 + $0x14] sm:$0xf0]  ;;  %v1127_v8 = vor.u32 %v1222_v2, %v1126_v1  ;;  %v1054_v9 = vld [vmem:[%s1464_s4 + $0x90] sm:$0xf]  ;;  %v1191_v10 = vld [vmem:[%s1464_s4 + $0x34] sm:$0xf] }
  0x47   : > { %657 = vmatpush.bf16.msra.mxu1 %v1079_v46  ;;  %v1008_v11 = vld [vmem:[%s1464_s4 + $0x38] sm:$0xf0]  ;;  %v1204_v12 = vld [vmem:[%s1464_s4 + $0x94] sm:$0xf0]  ;;  %v1118_v13 = vld [vmem:[%s1464_s4 + $0x110] sm:$0xf]  ;;  %v991_v15 = vor.u32 %v1188_v5, %v990_v4 }
  0x48   : > { %671 = vmatpush.bf16.msra.mxu2 %v1143_v47  ;;  %v1220_v14 = vld [vmem:[%s1464_s4 + $0x114] sm:$0xf0]  ;;  %v982_v16 = vld [vmem:[%s1464_s4] sm:$0xf]  ;;  %v1186_v17 = vld [vmem:[%s1464_s4 + $0x4] sm:$0xf0]  ;;  %v1011_v19 = vor.u32 %v1191_v10, %v1008_v11  ;;  %v1055_v20 = vor.u32 %v1204_v12, %v1054_v9 }
  0x49   : > { %684 = vmatpush.bf16.msra.mxu3 %v1027_v58  ;;  %v1046_v18 = vld [vmem:[%s1464_s4 + $0x80] sm:$0xf]  ;;  %v1119_v21 = vor.u32 %v1220_v14, %v1118_v13  ;;  %v1202_v22 = vld [vmem:[%s1464_s4 + $0x84] sm:$0xf0]  ;;  %v1189_v23 = vld [vmem:[%s1464_s4 + $0x24] sm:$0xf]  ;;  %v983_v31 = vor.u32 %v1186_v17, %v982_v16 }
  0x4a   : > { %644 = vmatpush.bf16.msra.mxu0 %v1007_v55  ;;  %v1000_v24 = vld [vmem:[%s1464_s4 + $0x28] sm:$0xf0]  ;;  %v1110_v25 = vld [vmem:[%s1464_s4 + $0x100] sm:$0xf]  ;;  %v1218_v26 = vld [vmem:[%s1464_s4 + $0x104] sm:$0xf0]  ;;  %v1047_v36 = vor.u32 %v1202_v22, %v1046_v18 }
  0x4b   : > { %658 = vmatpush.bf16.msra.mxu1 %v1071_v59  ;;  %v1215_v27 = vld [vmem:[%s1464_s4 + $0xf4] sm:$0xf]  ;;  %v1104_v28 = vld [vmem:[%s1464_s4 + $0xf8] sm:$0xf0]  ;;  %v978_v32 = vld [vmem:[%s1462_s29 + $0x8] sm:$0xf]  ;;  %v1003_v33 = vor.u32 %v1189_v23, %v1000_v24  ;;  %v1111_v37 = vor.u32 %v1218_v26, %v1110_v25 }
  0x4c   : > { %672 = vmatpush.bf16.msra.mxu2 %v1135_v60  ;;  %v1231_v29 = vld [vmem:[%s1464_s4 + $0x174] sm:$0xf]  ;;  %v1168_v30 = vld [vmem:[%s1464_s4 + $0x178] sm:$0xf0]  ;;  %v970_v34 = vld [vmem:[%s1462_s29] sm:$0xf]  ;;  %v1107_v41 = vor.u32 %v1215_v27, %v1104_v28 }
  0x4d   : > { %685 = vmatpush.bf16.msra.mxu3 %v1019_v6  ;;  %v1183_v35 = vld [vmem:[%s1462_s29 + $0x8] sm:$0xf0]  ;;  %v1184_v38 = vld [vmem:[%s1462_s29 + $0x10] sm:$0xf0]  ;;  %v1182_v39 = vld [vmem:[%s1462_s29 + $0x4] sm:$0xf]  ;;  %v1171_v42 = vor.u32 %v1231_v29, %v1168_v30 }
  0x4e   : > { %645 = vmatpush.bf16.msra.mxu0 %v999_v3  ;;  %v972_v40 = vld [vmem:[%s1462_s29 + $0xc] sm:$0xf0]  ;;  %v1213_v43 = vld [vmem:[%s1464_s4 + $0xe4] sm:$0xf]  ;;  %v1187_v44 = vld [vmem:[%s1464_s4 + $0x14] sm:$0xf]  ;;  %v971_v49 = vor.u32 %v1183_v35, %v970_v34  ;;  %v1547_v50 = vor.u32 %v1184_v38, %v978_v32 }
  0x4f   : > { %659 = vmatpush.bf16.msra.mxu1 %v1063_v7  ;;  %v992_v45 = vld [vmem:[%s1464_s4 + $0x18] sm:$0xf0]  ;;  %v1096_v46 = vld [vmem:[%s1464_s4 + $0xe8] sm:$0xf0]  ;;  %v1229_v47 = vld [vmem:[%s1464_s4 + $0x164] sm:$0xf]  ;;  %v1549_v51 = vor.u32 %v1182_v39, %v972_v40 }
  0x50   : > { %673 = vmatpush.bf16.msra.mxu2 %v1127_v8  ;;  %v1160_v48 = vld [vmem:[%s1464_s4 + $0x168] sm:$0xf0]  ;;  %v995_v52 = vor.u32 %v1187_v44, %v992_v45  ;;  %v1099_v53 = vor.u32 %v1213_v43, %v1096_v46  ;;  %v1211_v55 = vld [vmem:[%s1464_s4 + $0xd4] sm:$0xf]  ;;  %v1185_v56 = vld [vmem:[%s1464_s4 + $0x4] sm:$0xf] }
  0x51   : > { %686 = vmatpush.bf16.msra.mxu3 %v1011_v19  ;;  %v1163_v54 = vor.u32 %v1229_v47, %v1160_v48  ;;  %v984_v57 = vld [vmem:[%s1464_s4 + $0x8] sm:$0xf0]  ;;  %v1088_v58 = vld [vmem:[%s1464_s4 + $0xd8] sm:$0xf0]  ;;  %v1227_v59 = vld [vmem:[%s1464_s4 + $0x154] sm:$0xf] }
  0x52   : > { %646 = vmatpush.bf16.msra.mxu0 %v991_v15  ;;  %v1152_v60 = vld [vmem:[%s1464_s4 + $0x158] sm:$0xf0]  ;;  %v987_v61 = vor.u32 %v1185_v56, %v984_v57  ;;  %v1091_v62 = vor.u32 %v1211_v55, %v1088_v58  ;;  %v1209_v0 = vld [vmem:[%s1464_s4 + $0xc4] sm:$0xf]  ;;  %v1080_v1 = vld [vmem:[%s1464_s4 + $0xc8] sm:$0xf0] }
  0x53   : > { %660 = vmatpush.bf16.msra.mxu1 %v1055_v20  ;;  %v1155_v63 = vor.u32 %v1227_v59, %v1152_v60  ;;  %v1225_v2 = vld [vmem:[%s1464_s4 + $0x144] sm:$0xf]  ;;  %v1144_v3 = vld [vmem:[%s1464_s4 + $0x148] sm:$0xf0]  ;;  %v1083_v4 = vor.u32 %v1209_v0, %v1080_v1  ;;  %v1207_v6 = vld [vmem:[%s1464_s4 + $0xb4] sm:$0xf] }
  0x54   : > { %674 = vmatpush.bf16.msra.mxu2 %v1119_v21  ;;  %v1147_v5 = vor.u32 %v1225_v2, %v1144_v3  ;;  %v1072_v7 = vld [vmem:[%s1464_s4 + $0xb8] sm:$0xf0]  ;;  %v1223_v8 = vld [vmem:[%s1464_s4 + $0x134] sm:$0xf]  ;;  %v1205_v12 = vld [vmem:[%s1464_s4 + $0xa4] sm:$0xf] }
  0x55   : > { %687 = vmatpush.bf16.msra.mxu3 %v1003_v33  ;;  %v1136_v9 = vld [vmem:[%s1464_s4 + $0x138] sm:$0xf0]  ;;  %v1075_v10 = vor.u32 %v1207_v6, %v1072_v7  ;;  %v1064_v13 = vld [vmem:[%s1464_s4 + $0xa8] sm:$0xf0]  ;;  %v1221_v14 = vld [vmem:[%s1464_s4 + $0x124] sm:$0xf] }
  0x56   : > { %647 = vmatpush.bf16.msra.mxu0 %v983_v31  ;;  %v1139_v11 = vor.u32 %v1223_v8, %v1136_v9  ;;  %v1128_v15 = vld [vmem:[%s1464_s4 + $0x128] sm:$0xf0]  ;;  %v1067_v16 = vor.u32 %v1205_v12, %v1064_v13  ;;  %v1203_v18 = vld [vmem:[%s1464_s4 + $0x94] sm:$0xf]  ;;  %v1056_v19 = vld [vmem:[%s1464_s4 + $0x98] sm:$0xf0] }
  0x57   : > { %661 = vmatpush.bf16.msra.mxu1 %v1047_v36  ;;  %v1131_v17 = vor.u32 %v1221_v14, %v1128_v15  ;;  %v1219_v20 = vld [vmem:[%s1464_s4 + $0x114] sm:$0xf]  ;;  %v1120_v21 = vld [vmem:[%s1464_s4 + $0x118] sm:$0xf0]  ;;  %v1059_v22 = vor.u32 %v1203_v18, %v1056_v19  ;;  %v1201_v24 = vld [vmem:[%s1464_s4 + $0x84] sm:$0xf] }
  0x58   : > { %675 = vmatpush.bf16.msra.mxu2 %v1111_v37  ;;  %v1123_v23 = vor.u32 %v1219_v20, %v1120_v21  ;;  %v1048_v25 = vld [vmem:[%s1464_s4 + $0x88] sm:$0xf0]  ;;  %v1217_v26 = vld [vmem:[%s1464_s4 + $0x104] sm:$0xf]  ;;  %v329_v48 = vld [vmem:[#allocation2] sm:$0xff]  ;;  %p1172_p13 = scmp.ne.s32.totalorder %s1361_s15, 2 }
  0x59   : > { %648 = vmatmul.bf16.vlgmr.msra.gmra.mxu0 %v971_v49  ;;  %688 = vmatpush.bf16.msra.mxu3 %v995_v52  ;;  %v1112_v27 = vld [vmem:[%s1464_s4 + $0x108] sm:$0xf0]  ;;  %v1051_v28 = vor.u32 %v1201_v24, %v1048_v25  ;;  %v328_v33 = vld [vmem:[#allocation2 + $0x10] sm:$0xff] }
  0x5a   : > { %696 = vmatpush.bf16.msrb.mxu0 %v1107_v41  ;;  %662 = vmatmul.bf16.vlgmr.msra.gmra.mxu1 %v1549_v51  ;;  %v1115_v29 = vor.u32 %v1217_v26, %v1112_v27  ;;  %v330_v40 = vld [vmem:[#allocation2 + $0x18] sm:$0xff] }
  0x5b   : > { %710 = vmatpush.bf16.msrb.mxu1 %v1171_v42  ;;  %676 = vmatmul.bf16.vlgmr.msra.gmra.mxu2 %v1547_v50 }
  0x5d   : > { %689 = vmatpush.bf16.msra.mxu3 %v987_v61 }
  0x5e   : > { %697 = vmatpush.bf16.msrb.mxu0 %v1099_v53 }
  0x5f   : > { %711 = vmatpush.bf16.msrb.mxu1 %v1163_v54  ;;  %v331_v54 = vld [vmem:[#allocation2 + $0x8] sm:$0xff] }
  0x60   : > { %690 = vmatmul.bf16.vlgmr.msra.gmra.mxu3 %v971_v49 }
  0x62   : > { %698 = vmatpush.bf16.msrb.mxu0 %v1091_v62 }
  0x63   : > { %712 = vmatpush.bf16.msrb.mxu1 %v1155_v63 }
  0x66   : > { %699 = vmatpush.bf16.msrb.mxu0 %v1083_v4 }
  0x67   : > { %713 = vmatpush.bf16.msrb.mxu1 %v1147_v5 }
  0x6a   : > { %700 = vmatpush.bf16.msrb.mxu0 %v1075_v10 }
  0x6b   : > { %714 = vmatpush.bf16.msrb.mxu1 %v1139_v11 }
  0x6e   : > { %701 = vmatpush.bf16.msrb.mxu0 %v1067_v16 }
  0x6f   : > { %715 = vmatpush.bf16.msrb.mxu1 %v1131_v17 }
  0x72   : > { %702 = vmatpush.bf16.msrb.mxu0 %v1059_v22 }
  0x73   : > { %716 = vmatpush.bf16.msrb.mxu1 %v1123_v23 }
  0x76   : > { %703 = vmatpush.bf16.msrb.mxu0 %v1051_v28 }
  0x77   : > { %717 = vmatpush.bf16.msrb.mxu1 %v1115_v29 }
  0x79   : > { %704 = vmatmul.bf16.vlgmr.msrb.gmra.mxu0 %v1549_v51 }
  0x7a   : > { %718 = vmatmul.bf16.vlgmr.msrb.gmra.mxu1 %v1547_v50 }
  0xd6   : > { %v649_v30 = vpop.f32.mrf.mxu0 }
  0xd7   : > { %v663_v31 = vpop.f32.mrf.mxu1 }
  0xd8   : > { %v664_v32 = vadd.f32 %v663_v31, %v649_v30 }
  0xde   : > { %v677_v34 = vpop.f32.mrf.mxu2  ;;  %v651_v36 = vpop.f32.mrf.mxu0 }
  0xdf   : > { %v678_v35 = vadd.f32 %v677_v34, %v664_v32  ;;  %v665_v37 = vpop.f32.mrf.mxu1 }
  0xe0   : > { %v666_v39 = vadd.f32 %v665_v37, %v651_v36 }
  0xe1   : > { %v724_v38 = vadd.f32 %v678_v35, %v328_v33 }
  0xe3   : > { %728 = vst [vmem:[#allocation2 + $0x10] sm:$0xff] %v724_v38  ;;  %v691_v44 = vpop.f32.mrf.mxu3 }
  0xe6   : > { %v679_v41 = vpop.f32.mrf.mxu2 }
  0xe7   : > { %v680_v42 = vadd.f32 %v679_v41, %v666_v39 }
  0xe9   : > { %v726_v43 = vadd.f32 %v680_v42, %v330_v40 }
  0xeb   : > { %730 = vst [vmem:[#allocation2 + $0x18] sm:$0xff] %v726_v43  ;;  %v693_v51 = vpop.f32.mrf.mxu3 }
  0xf6   : > { %v705_v45 = vpop.f32.mrf.mxu0 }
  0xf7   : > { %v719_v46 = vpop.f32.mrf.mxu1  ;;  %v706_v47 = vadd.f32 %v705_v45, %v691_v44 }
  0xf9   : > { %v720_v49 = vadd.f32 %v719_v46, %v706_v47 }
  0xfb   : > { %v725_v50 = vadd.f32 %v720_v49, %v329_v48 }
  0xfd   : > { %729 = vst [vmem:[#allocation2] sm:$0xff] %v725_v50 }
  0xfe   : > { %v707_v52 = vpop.f32.mrf.mxu0 }
  0xff   : > { %v708_v53 = vadd.f32 %v707_v52, %v693_v51  ;;  %v721_v55 = vpop.f32.mrf.mxu1 }
 0x101   : > { %v722_v56 = vadd.f32 %v721_v55, %v708_v53  ;;  %735 = sbr.rel (%p1172_p13) target bundleno = 290 (0x122), region = 66 }
 0x103   : > { %v727_v57 = vadd.f32 %v722_v56, %v331_v54 }
 0x105   : > { %731 = vst [vmem:[#allocation2 + $0x8] sm:$0xff] %v727_v57 }
 0x106   : > { %v736_v58 = vld [vmem:[#allocation2 + $0x10] sm:$0xff]  ;;  %v737_v59 = vld [vmem:[#allocation2] sm:$0xff]  ;;  %v738_v60 = vld [vmem:[#allocation2 + $0x18] sm:$0xff]  ;;  %vm776_vm0 = vcmask 1040384   ;;  %vm782_vm1 = vcmask 1041408  }
 0x107   : > { %v740_v61 = vpack.c.bf16 %v737_v59, %v736_v58  ;;  %v758_v62 = vmul.f32 %v736_v58, %v736_v58  ;;  %v759_v63 = vmul.f32 %v737_v59, %v737_v59  ;;  %v744_v1 = vadd.f32 %v738_v60, %v736_v58 }
 0x108   : > { %v760_v4 = vmul.f32 %v738_v60, %v738_v60 }
 0x109   : > { %742 = vst [vmem:[%s1611_s2] sm:$0xff] %v740_v61  ;;  %v745_v6 = vrot.slane %v744_v1, 4 }
 0x10a   : > { %v762_v8 = vadd.f32 %v760_v4, %v758_v62 }
 0x10b   : > { %v746_v10 = vadd.f32 %v745_v6, %v744_v1 }
 0x10c   : > { %v739_v0 = vld [vmem:[#allocation2 + $0x8] sm:$0xff]  ;;  %v763_v12 = vrot.slane %v762_v8, 4 }
 0x10d   : > { %v741_v2 = vpack.c.bf16 %v739_v0, %v738_v60  ;;  %v751_v3 = vadd.f32 %v739_v0, %v737_v59  ;;  %v761_v5 = vmul.f32 %v739_v0, %v739_v0  ;;  %v747_v14 = vrot.slane %v746_v10, 2 }
 0x10e   : > { %v764_v16 = vadd.f32 %v763_v12, %v762_v8 }
 0x10f   : > { %743 = vst [vmem:[%s1611_s2 + $0x8] sm:$0xff] %v741_v2  ;;  %v752_v7 = vrot.slane %v751_v3, 4  ;;  %v769_v9 = vadd.f32 %v761_v5, %v759_v63  ;;  %v748_v18 = vadd.f32 %v747_v14, %v746_v10 }
 0x110   : > { %v765_v21 = vrot.slane %v764_v16, 2 }
 0x111   : > { %v753_v11 = vadd.f32 %v752_v7, %v751_v3  ;;  %v770_v13 = vrot.slane %v769_v9, 4  ;;  %v749_v22 = vrot.slane %v748_v18, 1 }
 0x112   : > { %v766_v25 = vadd.f32 %v765_v21, %v764_v16 }
 0x113   : > { %v754_v15 = vrot.slane %v753_v11, 2  ;;  %v771_v17 = vadd.f32 %v770_v13, %v769_v9  ;;  %v750_v26 = vadd.f32 %v749_v22, %v748_v18 }
 0x114   : > { %v767_v28 = vrot.slane %v766_v25, 1 }
 0x115   : > { %v755_v19 = vadd.f32 %v754_v15, %v753_v11  ;;  %v772_v20 = vrot.slane %v771_v17, 2 }
 0x116   : > { %v768_v30 = vadd.f32 %v767_v28, %v766_v25 }
 0x117   : > { %v756_v23 = vrot.slane %v755_v19, 1  ;;  %v773_v24 = vadd.f32 %v772_v20, %v771_v17 }
 0x118   : > { %v777_v32 = vsel %vm776_vm0, %v750_v26, %v768_v30 }
 0x119   : > { %v757_v27 = vadd.f32 %v756_v23, %v755_v19  ;;  %v774_v29 = vrot.slane %v773_v24, 1 }
 0x11b   : > { %v775_v31 = vadd.f32 %v774_v29, %v773_v24 }
 0x11d   : > { %v778_v33 = vsel %vm776_vm0, %v757_v27, %v775_v31 }
 0x11e   : > { %v781_v34 = vrot.slane %v778_v33, 6 }
 0x120   : > { %v783_v35 = vsel %vm782_vm1, %v777_v32, %v781_v34 }
 0x121   : > { %785 = vst [vmem:[%s1612_s3] sm:$0xf] %v783_v35 }
 0x122 PF: > { %s17_s17 = sadd.s32 1, %s1369_s17   ;;  %s1615_s12 = smov %s1353_s13 }
 0x123   : > { %p14_p0 = scmp.ge.s32.totalorder %s17_s17, 5   ;;  %s1616_s13 = smov %s1357_s14 }
 0x124   : > { %s1617_s14 = smov %s1442_s24  ;;  %s1618_s15 = smov %s1365_s16 }
 0x125   : > { %s1619_s16 = smov %s1621_s19  ;;  %16 = sbr.rel (!%p14_p0) target bundleno = 4 (0x4), region = 128 }
 0x12a   :  { %844 = vsyncpa [#allocation5], 1 }
 0x12b   :  { %846 = vsyncpa [#allocation5 + $0x1], 1 }

// kernel: _lambda_.17
= control target key start
LH: loop header
LB: loop body
LE: loop exit
PB: predicated region body
PF: predicated region fallthrough
CT: control target
= control target key end

     0   :  { %s98_s0 = inlined_call_operand.vmem [shape: bf16[16,256], index: 0, kind: input, shape index: {}]   ;;  %s99_s1 = inlined_call_operand.vmem [shape: f32[1,256], index: 1, kind: input, shape index: {}]   ;;  %s100_s2 = inlined_call_operand.vmem [shape: f32[1,256], index: 2, kind: input, shape index: {}]   ;;  %s101_s3 = inlined_call_operand.vmem [shape: bf16[16,256], index: 3, kind: output, shape index: {}]  }
   0x1   :  { %v14_v0 = vld [vmem:[%s98_s0] sm:$0xff]  ;;  %v15_v7 = vld [vmem:[%s98_s0 + $0x8] sm:$0xff] }
   0x2   :  { %v20_v1 = vld [vmem:[%s99_s1] sm:$0x3]  ;;  %v16_v3 = vunpack.c.l.bf16 %v14_v0  ;;  %v17_v4 = vunpack.c.h.bf16 %v14_v0  ;;  %v18_v10 = vunpack.c.l.bf16 %v15_v7  ;;  %v19_v11 = vunpack.c.h.bf16 %v15_v7 }
   0x3   :  { %v30_v2 = vld [vmem:[%s100_s2] sm:$0x3]  ;;  %v22_v5 = vperm.slane %v20_v1, 0  ;;  %v23_v6 = vperm.slane %v20_v1, 1 }
   0x4   :  { %v32_v8 = vperm.slane %v30_v2, 0  ;;  %v33_v9 = vperm.slane %v30_v2, 1 }
   0x5   :  { %v26_v12 = vmul.f32 %v22_v5, %v16_v3  ;;  %v27_v13 = vmul.f32 %v23_v6, %v17_v4  ;;  %v28_v14 = vmul.f32 %v22_v5, %v18_v10  ;;  %v29_v15 = vmul.f32 %v23_v6, %v19_v11 }
   0x7   :  { %v36_v16 = vadd.f32 %v32_v8, %v26_v12  ;;  %v37_v17 = vadd.f32 %v33_v9, %v27_v13  ;;  %v38_v18 = vadd.f32 %v32_v8, %v28_v14  ;;  %v39_v19 = vadd.f32 %v33_v9, %v29_v15 }
   0x9   :  { %vm40_vm0 = vcmp.ge.f32.partialorder %v36_v16, 0.0  ;;  %vm41_vm1 = vcmp.ge.f32.partialorder %v37_v17, 0.0  ;;  %v44_v20 = vmul.f32 0.2, %v36_v16  ;;  %v45_v21 = vmul.f32 0.2, %v37_v17 }
   0xa   :  { %vm42_vm2 = vcmp.ge.f32.partialorder %v38_v18, 0.0  ;;  %vm43_vm3 = vcmp.ge.f32.partialorder %v39_v19, 0.0  ;;  %v46_v22 = vmul.f32 0.2, %v38_v18  ;;  %v47_v23 = vmul.f32 0.2, %v39_v19 }
   0xb   :  { %v48_v24 = vsel %vm40_vm0, %v36_v16, %v44_v20  ;;  %v49_v25 = vsel %vm41_vm1, %v37_v17, %v45_v21 }
   0xc   :  { %v52_v26 = vpack.c.bf16 %v49_v25, %v48_v24  ;;  %v50_v27 = vsel %vm42_vm2, %v38_v18, %v46_v22  ;;  %v51_v28 = vsel %vm43_vm3, %v39_v19, %v47_v23 }
   0xd   :  { %v53_v29 = vpack.c.bf16 %v51_v28, %v50_v27 }
   0xe   :  { %54 = vst [vmem:[%s101_s3] sm:$0xff] %v52_v26 }
   0xf   :  { %55 = vst [vmem:[%s101_s3 + $0x8] sm:$0xff] %v53_v29 }

// kernel: _lambda_.19
= control target key start
LH: loop header
LB: loop body
LE: loop exit
PB: predicated region body
PF: predicated region fallthrough
CT: control target
= control target key end

     0   :  { %s148_s0 = inlined_call_operand.vmem [shape: bf16[16,512], index: 0, kind: input, shape index: {}]   ;;  %s149_s1 = inlined_call_operand.vmem [shape: f32[1,512], index: 1, kind: input, shape index: {}]   ;;  %s150_s2 = inlined_call_operand.vmem [shape: f32[1,512], index: 2, kind: input, shape index: {}]   ;;  %s151_s3 = inlined_call_operand.vmem [shape: bf16[16,512], index: 3, kind: output, shape index: {}]  }
   0x1   :  { %v14_v0 = vld [vmem:[%s148_s0] sm:$0xff]  ;;  %v15_v7 = vld [vmem:[%s148_s0 + $0x8] sm:$0xff]  ;;  %v16_v8 = vld [vmem:[%s148_s0 + $0x10] sm:$0xff] }
   0x2   :  { %v26_v1 = vld [vmem:[%s149_s1] sm:$0xf]  ;;  %v18_v3 = vunpack.c.l.bf16 %v14_v0  ;;  %v19_v4 = vunpack.c.h.bf16 %v14_v0  ;;  %v20_v11 = vunpack.c.l.bf16 %v15_v7  ;;  %v21_v12 = vunpack.c.h.bf16 %v15_v7  ;;  %v17_v17 = vld [vmem:[%s148_s0 + $0x18] sm:$0xff] }
   0x3   :  { %v44_v2 = vld [vmem:[%s150_s2] sm:$0xf]  ;;  %v28_v5 = vperm.slane %v26_v1, 0  ;;  %v29_v6 = vperm.slane %v26_v1, 1  ;;  %v30_v15 = vperm.slane %v26_v1, 2  ;;  %v31_v16 = vperm.slane %v26_v1, 3 }
   0x4   :  { %v46_v9 = vperm.slane %v44_v2, 0  ;;  %v47_v10 = vperm.slane %v44_v2, 1  ;;  %v48_v18 = vperm.slane %v44_v2, 2  ;;  %v49_v19 = vperm.slane %v44_v2, 3 }
   0x5   :  { %v36_v13 = vmul.f32 %v28_v5, %v18_v3  ;;  %v37_v14 = vmul.f32 %v29_v6, %v19_v4  ;;  %v22_v20 = vunpack.c.l.bf16 %v16_v8  ;;  %v23_v21 = vunpack.c.h.bf16 %v16_v8 }
   0x6   :  { %v38_v24 = vmul.f32 %v30_v15, %v20_v11  ;;  %v39_v25 = vmul.f32 %v31_v16, %v21_v12  ;;  %v24_v28 = vunpack.c.l.bf16 %v17_v17  ;;  %v25_v29 = vunpack.c.h.bf16 %v17_v17 }
   0x7   :  { %v54_v22 = vadd.f32 %v46_v9, %v36_v13  ;;  %v55_v23 = vadd.f32 %v47_v10, %v37_v14  ;;  %v40_v26 = vmul.f32 %v28_v5, %v22_v20  ;;  %v41_v27 = vmul.f32 %v29_v6, %v23_v21 }
   0x8   :  { %v56_v32 = vadd.f32 %v48_v18, %v38_v24  ;;  %v57_v33 = vadd.f32 %v49_v19, %v39_v25  ;;  %v42_v38 = vmul.f32 %v30_v15, %v24_v28  ;;  %v43_v39 = vmul.f32 %v31_v16, %v25_v29 }
   0x9   :  { %vm62_vm0 = vcmp.ge.f32.partialorder %v54_v22, 0.0  ;;  %vm63_vm1 = vcmp.ge.f32.partialorder %v55_v23, 0.0  ;;  %v70_v30 = vmul.f32 0.2, %v54_v22  ;;  %v71_v31 = vmul.f32 0.2, %v55_v23 }
   0xa   :  { %v58_v34 = vadd.f32 %v46_v9, %v40_v26  ;;  %v59_v35 = vadd.f32 %v47_v10, %v41_v27  ;;  %vm64_vm2 = vcmp.ge.f32.partialorder %v56_v32, 0.0  ;;  %vm65_vm3 = vcmp.ge.f32.partialorder %v57_v33, 0.0 }
   0xb   :  { %v78_v36 = vsel %vm62_vm0, %v54_v22, %v70_v30  ;;  %v79_v37 = vsel %vm63_vm1, %v55_v23, %v71_v31  ;;  %v72_v41 = vmul.f32 0.2, %v56_v32  ;;  %v73_v42 = vmul.f32 0.2, %v57_v33 }
   0xc   :  { %v86_v40 = vpack.c.bf16 %v79_v37, %v78_v36  ;;  %vm66_vm4 = vcmp.ge.f32.partialorder %v58_v34, 0.0  ;;  %vm67_vm5 = vcmp.ge.f32.partialorder %v59_v35, 0.0  ;;  %v74_v43 = vmul.f32 0.2, %v58_v34 }
   0xd   :  { %v80_v44 = vsel %vm64_vm2, %v56_v32, %v72_v41  ;;  %v75_v45 = vmul.f32 0.2, %v59_v35  ;;  %v60_v46 = vadd.f32 %v48_v18, %v42_v38  ;;  %v61_v47 = vadd.f32 %v49_v19, %v43_v39 }
   0xe   :  { %90 = vst [vmem:[%s151_s3] sm:$0xff] %v86_v40  ;;  %v81_v48 = vsel %vm65_vm3, %v57_v33, %v73_v42  ;;  %v82_v49 = vsel %vm66_vm4, %v58_v34, %v74_v43 }
   0xf   :  { %v87_v50 = vpack.c.bf16 %v81_v48, %v80_v44  ;;  %v83_v51 = vsel %vm67_vm5, %v59_v35, %v75_v45  ;;  %vm68_vm6 = vcmp.ge.f32.partialorder %v60_v46, 0.0  ;;  %vm69_vm7 = vcmp.ge.f32.partialorder %v61_v47, 0.0 }
  0x10   :  { %v88_v52 = vpack.c.bf16 %v83_v51, %v82_v49  ;;  %v76_v53 = vmul.f32 0.2, %v60_v46  ;;  %v77_v54 = vmul.f32 0.2, %v61_v47 }
  0x11   :  { %91 = vst [vmem:[%s151_s3 + $0x8] sm:$0xff] %v87_v50 }
  0x12   :  { %92 = vst [vmem:[%s151_s3 + $0x10] sm:$0xff] %v88_v52  ;;  %v84_v55 = vsel %vm68_vm6, %v60_v46, %v76_v53  ;;  %v85_v56 = vsel %vm69_vm7, %v61_v47, %v77_v54 }
  0x13   :  { %v89_v57 = vpack.c.bf16 %v85_v56, %v84_v55 }
  0x15   :  { %93 = vst [vmem:[%s151_s3 + $0x18] sm:$0xff] %v89_v57 }

// kernel: _lambda_.21
= control target key start
LH: loop header
LB: loop body
LE: loop exit
PB: predicated region body
PF: predicated region fallthrough
CT: control target
= control target key end

     0   :  { %s332_s0 = inlined_call_operand.vmem [shape: bf16[16,1024], index: 0, kind: input, shape index: {}]   ;;  %s333_s1 = inlined_call_operand.vmem [shape: f32[1,1024], index: 1, kind: input, shape index: {}]   ;;  %s334_s2 = inlined_call_operand.vmem [shape: f32[1,1024], index: 2, kind: input, shape index: {}]   ;;  %s335_s3 = inlined_call_operand.vmem [shape: bf16[16,1024], index: 3, kind: output, shape index: {}]  }
   0x1   :  { %v14_v0 = vld [vmem:[%s332_s0] sm:$0xff]  ;;  %v15_v7 = vld [vmem:[%s332_s0 + $0x8] sm:$0xff]  ;;  %v16_v8 = vld [vmem:[%s332_s0 + $0x10] sm:$0xff] }
   0x2   :  { %v200_v1 = vld [vmem:[%s333_s1] sm:$0xff]  ;;  %v22_v3 = vunpack.c.l.bf16 %v14_v0  ;;  %v23_v4 = vunpack.c.h.bf16 %v14_v0  ;;  %v24_v11 = vunpack.c.l.bf16 %v15_v7  ;;  %v25_v12 = vunpack.c.h.bf16 %v15_v7  ;;  %v17_v29 = vld [vmem:[%s332_s0 + $0x18] sm:$0xff]  ;;  %v19_v51 = vld [vmem:[%s332_s0 + $0x28] sm:$0xff] }
   0x3   :  { %v205_v2 = vld [vmem:[%s334_s2] sm:$0xff]  ;;  %v40_v5 = vperm.slane %v200_v1, 0  ;;  %v41_v6 = vperm.slane %v200_v1, 1  ;;  %v42_v15 = vperm.slane %v200_v1, 2  ;;  %v43_v16 = vperm.slane %v200_v1, 3 }
   0x4   :  { %v74_v9 = vperm.slane %v205_v2, 0  ;;  %v75_v10 = vperm.slane %v205_v2, 1  ;;  %v76_v17 = vperm.slane %v205_v2, 2  ;;  %v77_v18 = vperm.slane %v205_v2, 3  ;;  %v18_v50 = vld [vmem:[%s332_s0 + $0x20] sm:$0xff] }
   0x5   :  { %v56_v13 = vmul.f32 %v40_v5, %v22_v3  ;;  %v57_v14 = vmul.f32 %v41_v6, %v23_v4  ;;  %v26_v19 = vunpack.c.l.bf16 %v16_v8  ;;  %v27_v20 = vunpack.c.h.bf16 %v16_v8 }
   0x6   :  { %v58_v23 = vmul.f32 %v42_v15, %v24_v11  ;;  %v59_v24 = vmul.f32 %v43_v16, %v25_v12  ;;  %v44_v25 = vperm.slane %v200_v1, 4  ;;  %v45_v26 = vperm.slane %v200_v1, 5  ;;  %v20_v12 = vld [vmem:[%s332_s0 + $0x30] sm:$0xff] }
   0x7   :  { %v90_v21 = vadd.f32 %v74_v9, %v56_v13  ;;  %v91_v22 = vadd.f32 %v75_v10, %v57_v14  ;;  %v78_v27 = vperm.slane %v205_v2, 4  ;;  %v79_v28 = vperm.slane %v205_v2, 5 }
   0x8   :  { %v92_v32 = vadd.f32 %v76_v17, %v58_v23  ;;  %v93_v33 = vadd.f32 %v77_v18, %v59_v24  ;;  %v60_v34 = vmul.f32 %v44_v25, %v26_v19  ;;  %v61_v35 = vmul.f32 %v45_v26, %v27_v20  ;;  %v21_v24 = vld [vmem:[%s332_s0 + $0x38] sm:$0xff] }
   0x9   :  { %vm106_vm0 = vcmp.ge.f32.partialorder %v90_v21, 0.0  ;;  %vm107_vm1 = vcmp.ge.f32.partialorder %v91_v22, 0.0  ;;  %v122_v30 = vmul.f32 0.2, %v90_v21  ;;  %v123_v31 = vmul.f32 0.2, %v91_v22 }
   0xa   :  { %v28_v38 = vunpack.c.l.bf16 %v17_v29  ;;  %v29_v39 = vunpack.c.h.bf16 %v17_v29  ;;  %vm108_vm2 = vcmp.ge.f32.partialorder %v92_v32, 0.0  ;;  %vm109_vm3 = vcmp.ge.f32.partialorder %v93_v33, 0.0 }
   0xb   :  { %v138_v36 = vsel %vm106_vm0, %v90_v21, %v122_v30  ;;  %v139_v37 = vsel %vm107_vm1, %v91_v22, %v123_v31  ;;  %v124_v41 = vmul.f32 0.2, %v92_v32  ;;  %v125_v42 = vmul.f32 0.2, %v93_v33 }
   0xc   :  { %v154_v40 = vpack.c.bf16 %v139_v37, %v138_v36  ;;  %v94_v43 = vadd.f32 %v78_v27, %v60_v34  ;;  %v95_v44 = vadd.f32 %v79_v28, %v61_v35  ;;  %v46_v45 = vperm.slane %v200_v1, 6 }
   0xd   :  { %v140_v46 = vsel %vm108_vm2, %v92_v32, %v124_v41  ;;  %v47_v47 = vperm.slane %v200_v1, 7  ;;  %v80_v48 = vperm.slane %v205_v2, 6  ;;  %v81_v49 = vperm.slane %v205_v2, 7 }
   0xe   :  { %162 = vst [vmem:[%s335_s3] sm:$0xff] %v154_v40  ;;  %v141_v52 = vsel %vm109_vm3, %v93_v33, %v125_v42  ;;  %vm110_vm4 = vcmp.ge.f32.partialorder %v94_v43, 0.0  ;;  %vm111_vm5 = vcmp.ge.f32.partialorder %v95_v44, 0.0  ;;  %v126_v53 = vmul.f32 0.2, %v94_v43 }
   0xf   :  { %v155_v54 = vpack.c.bf16 %v141_v52, %v140_v46  ;;  %v127_v55 = vmul.f32 0.2, %v95_v44  ;;  %v62_v56 = vmul.f32 %v46_v45, %v28_v38  ;;  %v63_v57 = vmul.f32 %v47_v47, %v29_v39 }
  0x10   :  { %v142_v58 = vsel %vm110_vm4, %v94_v43, %v126_v53  ;;  %v30_v59 = vunpack.c.l.bf16 %v18_v50  ;;  %v31_v60 = vunpack.c.h.bf16 %v18_v50  ;;  %v32_v61 = vunpack.c.l.bf16 %v19_v51 }
  0x11   :  { %163 = vst [vmem:[%s335_s3 + $0x8] sm:$0xff] %v155_v54  ;;  %v143_v62 = vsel %vm111_vm5, %v95_v44, %v127_v55  ;;  %v96_v63 = vadd.f32 %v80_v48, %v62_v56  ;;  %v97_v0 = vadd.f32 %v81_v49, %v63_v57  ;;  %v33_v3 = vunpack.c.h.bf16 %v19_v51 }
  0x12   :  { %v156_v4 = vpack.c.bf16 %v143_v62, %v142_v58  ;;  %v64_v7 = vmul.f32 %v40_v5, %v30_v59  ;;  %v65_v8 = vmul.f32 %v41_v6, %v31_v60  ;;  %v66_v11 = vmul.f32 %v42_v15, %v32_v61 }
  0x13   :  { %vm112_vm6 = vcmp.ge.f32.partialorder %v96_v63, 0.0  ;;  %vm113_vm7 = vcmp.ge.f32.partialorder %v97_v0, 0.0  ;;  %v128_v13 = vmul.f32 0.2, %v96_v63  ;;  %v129_v14 = vmul.f32 0.2, %v97_v0 }
  0x14   :  { %164 = vst [vmem:[%s335_s3 + $0x10] sm:$0xff] %v156_v4  ;;  %v98_v5 = vadd.f32 %v74_v9, %v64_v7  ;;  %v99_v6 = vadd.f32 %v75_v10, %v65_v8  ;;  %v67_v15 = vmul.f32 %v43_v16, %v33_v3  ;;  %v100_v19 = vadd.f32 %v76_v17, %v66_v11 }
  0x15   :  { %v144_v20 = vsel %vm112_vm6, %v96_v63, %v128_v13  ;;  %v145_v21 = vsel %vm113_vm7, %v97_v0, %v129_v14  ;;  %v34_v22 = vunpack.c.l.bf16 %v20_v12  ;;  %v35_v23 = vunpack.c.h.bf16 %v20_v12 }
  0x16   :  { %v157_v29 = vpack.c.bf16 %v145_v21, %v144_v20  ;;  %vm114_vm8 = vcmp.ge.f32.partialorder %v98_v5, 0.0  ;;  %vm115_vm9 = vcmp.ge.f32.partialorder %v99_v6, 0.0  ;;  %v130_v9 = vmul.f32 0.2, %v98_v5 }
  0x17   :  { %v131_v30 = vmul.f32 0.2, %v99_v6  ;;  %v101_v10 = vadd.f32 %v77_v18, %v67_v15  ;;  %vm116_vm10 = vcmp.ge.f32.partialorder %v100_v19, 0.0  ;;  %v132_v16 = vmul.f32 0.2, %v100_v19 }
  0x18   :  { %165 = vst [vmem:[%s335_s3 + $0x18] sm:$0xff] %v157_v29  ;;  %v146_v17 = vsel %vm114_vm8, %v98_v5, %v130_v9  ;;  %v68_v31 = vmul.f32 %v44_v25, %v34_v22  ;;  %v69_v32 = vmul.f32 %v45_v26, %v35_v23  ;;  %v36_v33 = vunpack.c.l.bf16 %v21_v24 }
  0x19   :  { %v147_v34 = vsel %vm115_vm9, %v99_v6, %v131_v30  ;;  %vm117_vm11 = vcmp.ge.f32.partialorder %v101_v10, 0.0  ;;  %v133_v35 = vmul.f32 0.2, %v101_v10  ;;  %v148_v36 = vsel %vm116_vm10, %v100_v19, %v132_v16 }
  0x1a   :  { %v158_v37 = vpack.c.bf16 %v147_v34, %v146_v17  ;;  %v102_v18 = vadd.f32 %v78_v27, %v68_v31  ;;  %v103_v38 = vadd.f32 %v79_v28, %v69_v32  ;;  %v37_v39 = vunpack.c.h.bf16 %v21_v24 }
  0x1b   :  { %v149_v40 = vsel %vm117_vm11, %v101_v10, %v133_v35  ;;  %v70_v25 = vmul.f32 %v46_v45, %v36_v33 }
  0x1c   :  { %166 = vst [vmem:[%s335_s3 + $0x20] sm:$0xff] %v158_v37  ;;  %v159_v26 = vpack.c.bf16 %v149_v40, %v148_v36  ;;  %vm118_vm12 = vcmp.ge.f32.partialorder %v102_v18, 0.0  ;;  %vm119_vm13 = vcmp.ge.f32.partialorder %v103_v38, 0.0  ;;  %v134_v41 = vmul.f32 0.2, %v102_v18 }
  0x1d   :  { %v135_v42 = vmul.f32 0.2, %v103_v38  ;;  %v71_v27 = vmul.f32 %v47_v47, %v37_v39  ;;  %v104_v28 = vadd.f32 %v80_v48, %v70_v25 }
  0x1e   :  { %167 = vst [vmem:[%s335_s3 + $0x28] sm:$0xff] %v159_v26  ;;  %v150_v43 = vsel %vm118_vm12, %v102_v18, %v134_v41 }
  0x1f   :  { %v151_v44 = vsel %vm119_vm13, %v103_v38, %v135_v42  ;;  %v105_v45 = vadd.f32 %v81_v49, %v71_v27  ;;  %vm120_vm14 = vcmp.ge.f32.partialorder %v104_v28, 0.0  ;;  %v136_v46 = vmul.f32 0.2, %v104_v28 }
  0x20   :  { %v160_v50 = vpack.c.bf16 %v151_v44, %v150_v43 }
  0x21   :  { %vm121_vm15 = vcmp.ge.f32.partialorder %v105_v45, 0.0  ;;  %v137_v51 = vmul.f32 0.2, %v105_v45  ;;  %v152_v52 = vsel %vm120_vm14, %v104_v28, %v136_v46 }
  0x22   :  { %168 = vst [vmem:[%s335_s3 + $0x30] sm:$0xff] %v160_v50 }
  0x23   :  { %v153_v1 = vsel %vm121_vm15, %v105_v45, %v137_v51 }
  0x24   :  { %v161_v47 = vpack.c.bf16 %v153_v1, %v152_v52 }
  0x26   :  { %169 = vst [vmem:[%s335_s3 + $0x38] sm:$0xff] %v161_v47 }

// kernel: _lambda_.18
= control target key start
LH: loop header
LB: loop body
LE: loop exit
PB: predicated region body
PF: predicated region fallthrough
CT: control target
= control target key end

     0   :  { %9 = vsyncpa [#allocation5], 0  ;;  %s3856_s0 = inlined_call_operand.vmem [shape: bf16[16,2304], index: 0, kind: input, shape index: {}]   ;;  %s3857_s1 = inlined_call_operand.hbm [shape: bf16[2304,512], index: 1, kind: input, shape index: {}]   ;;  %s3858_s2 = inlined_call_operand.vmem [shape: bf16[16,512], index: 2, kind: output, shape index: {0}]   ;;  %s3859_s3 = inlined_call_operand.vmem [shape: f32[1,2,512], index: 3, kind: output, shape index: {1}]  }
   0x1   :  { %11 = vsyncpa [#allocation5 + $0x1], 0  ;;  %s3313_s12 = smov 0   ;;  %s3315_s13 = smov 0  }
   0x2   :  { %s3317_s14 = smov 0   ;;  %s3319_s15 = smov 0  }
   0x3   :  { %s3321_s16 = smov 0   ;;  %s3323_s17 = smov 0  }
   0x4 LB: > { %s2144_s18 = sadd.s32 4294967295, %s3288_s17   ;;  %s29_s19 = sadd.s32 1, %s3284_s16  ;;  %s3288_s17 = sphi %s3323_s17, %s17_s17   ;;  %s3284_s16 = sphi %s3321_s16, %s3866_s16   ;;  %s3280_s15 = sphi %s3319_s15, %s3865_s15   ;;  %s3276_s14 = sphi %s3317_s14, %s3864_s14   ;;  %s3272_s13 = sphi %s3315_s13, %s3863_s13   ;;  %s3268_s12 = sphi %s3313_s12, %s3862_s12  }
   0x5   : > { %p30_p0 = scmp.ge.s32.totalorder %s29_s19, 3  ;;  %s45_s20 = sadd.s32 1, %s3276_s14 }
   0x6   : > { %p52_p1 = scmp.ne.s32.totalorder %s3276_s14, %s3272_s13  ;;  %p53_p2 = scmp.eq.s32.totalorder %s3288_s17, 0 }
   0x7   : > { %s3868_s19 = smov (%p30_p0, %s29_s19), 0  ;;  %p86_p4 = scmp.ne.s32.totalorder %s3272_s13, %s3268_s12 }
   0x8   : > { %p3349_p3 = por %p53_p2, %p52_p1  ;;  %s41_s22 = ssub.s32 %s3284_s16, %s3868_s19 }
   0x9   : > { %p87_p5 = scmp.eq.s32.totalorder %s2144_s18, 0  ;;  %p43_p6 = scmp.eq.s32.totalorder %s41_s22, 0 }
   0xa   : > { %p2146_p8 = scmp.ge.s32.totalorder %s3288_s17, 3 }
   0xb   : > { %p3356_p7 = por %p87_p5, %p86_p4 }
   0xc   : > { %s3361_s24 = scalar_select %p43_p6, %s3276_s14, %s45_s20  }
   0xd   : > { %162 = sbr.rel (%p2146_p8) target bundleno = 35 (0x23), region = 16 }
  0x12   : > { %165 = sbr.rel (!%p3349_p3) target bundleno = 29 (0x1d), region = 20  ;;  %s167_s25 = sand.u32 (%p3349_p3), 1, %s3276_s14  }
  0x13   : > { %s2951_s26 = smul.u32 (%p3349_p3), 24, %s3284_s16 }
  0x14   : > { %s3153_s27 = smul.u32 (%p3349_p3), 48, %s167_s25 }
  0x15   : > { %s175_s30 = scalar_lea.vmem (%p3349_p3), %s3856_s0, %s2951_s26 }
  0x16   : > { %v188_v0 = vld [vmem:[%s175_s30] sm:$0xff] (%p3349_p3)  ;;  %v190_v1 = vld [vmem:[%s175_s30 + $0x8] sm:$0xff] (%p3349_p3)  ;;  %v192_v2 = vld [vmem:[%s175_s30 + $0x10] sm:$0xff] (%p3349_p3)  ;;  %s169_s4 = scalar_lea.vmem (%p3349_p3), [#allocation3], %s3153_s27 }
  0x17   : > { %189 = vst [vmem:[%s169_s4] sm:$0xff] %v188_v0  ;;  %v194_v3 = vld [vmem:[%s175_s30 + $0x48] sm:$0xff]  ;;  %v196_v4 = vld [vmem:[%s175_s30 + $0x50] sm:$0xff]  ;;  %v198_v5 = vld [vmem:[%s175_s30 + $0x58] sm:$0xff] }
  0x18   : > { %191 = vst [vmem:[%s169_s4 + $0x8] sm:$0xff] %v190_v1 }
  0x19   : > { %193 = vst [vmem:[%s169_s4 + $0x10] sm:$0xff] %v192_v2 }
  0x1a   : > { %195 = vst [vmem:[%s169_s4 + $0x18] sm:$0xff] %v194_v3 }
  0x1b   : > { %197 = vst [vmem:[%s169_s4 + $0x20] sm:$0xff] %v196_v4 }
  0x1c   : > { %199 = vst [vmem:[%s169_s4 + $0x28] sm:$0xff] %v198_v5 }
  0x1d PF: > { %s206_s5 = sand.u32 1, %s3276_s14   ;;  %s3152_s6 = smul.u32 1536, %s3284_s16 }
  0x1e   : > { %s3154_s7 = smul.u32 1536, %s206_s5  ;;  %s207_s20 = scalar_lea.sflag [#allocation5], %s206_s5 }
  0x1f   : > { %s218_s10 = scalar_lea.hbm %s3857_s1, %s3152_s6  ;;  %s3290_s22 = smov 256  }
  0x20   : > { %s219_s11 = sshll.u32 %s218_s10, 4  ;;  %s210_s12 = scalar_lea.vmem [#allocation4], %s3154_s7  ;;  %s220_s11 = int_to_ptr.hbm [resolvable:$true] %s219_s11 }
  0x21   : > { %s221_s18 = sshll.u32 %s210_s12, 4  ;;  %s3291_s25 = smov 16   ;;  %s222_s18 = int_to_ptr.vmem [resolvable:$true] %s221_s18 }
  0x22   : > { %3157 = dma.hbm_to_vmem [thread:$0]  (%p3349_p3), %s220_s11, 24576, %s222_s18, %s207_s20, %s3290_s22, %s3290_s22, %s3291_s25  }
  0x23 PF: > { %p2150_p9 = scmp.ge.s32.totalorder %s3288_s17, 1  ;;  %p229_p10 = scmp.lt.s32.totalorder %s3288_s17, 4 }
  0x25   : > { %p230_p11 = pnand %p2150_p9, %p229_p10 }
  0x26   : > { %s236_s26 = sand.u32 (!%p230_p11), 1, %s3272_s13  }
  0x27   : > { %233 = sbr.rel (%p230_p11) target bundleno = 433 (0x1b1), region = 47  ;;  %s243_s30 = scalar_lea.sflag (!%p230_p11), [#allocation5], %s236_s26 }
  0x28   : > { %s3155_s27 = smul.u32 (!%p230_p11), 48, %s236_s26 }
  0x29   : > { %s3156_s28 = smul.u32 (!%p230_p11), 1536, %s236_s26 }
  0x2a   : > { %s3381_s29 = scalar_lea.vmem (!%p230_p11), [#allocation3], %s3155_s27 }
  0x2b   : > { %s3383_s4 = scalar_lea.vmem (!%p230_p11), [#allocation4], %s3156_s28 }
  0x2c   : > { %3263 = dma.done.wait (%p3356_p7), %s243_s30, 24576  }
  0x2d   : > { %3265 = vsyncadd (%p3356_p7), %s243_s30, 4294942720  ;;  %p2151_p12 = scmp.ne.s32.totalorder %s3280_s15, 0 }
  0x2f   : > { %317 = sbr.rel (%p2151_p12) target bundleno = 61 (0x3d), region = 59 }
  0x34   : > { %v3292_v6 = vmov 0.0  }
  0x35   : > { %318 = vst [vmem:[#allocation2 + $0x30] sm:$0xff] %v3292_v6 }
  0x36   : > { %319 = vst [vmem:[#allocation2] sm:$0xff] %v3292_v6 }
  0x37   : > { %320 = vst [vmem:[#allocation2 + $0x18] sm:$0xff] %v3292_v6 }
  0x38   : > { %321 = vst [vmem:[#allocation2 + $0x10] sm:$0xff] %v3292_v6 }
  0x39   : > { %322 = vst [vmem:[#allocation2 + $0x8] sm:$0xff] %v3292_v6 }
  0x3a   : > { %323 = vst [vmem:[#allocation2 + $0x20] sm:$0xff] %v3292_v6 }
  0x3b   : > { %324 = vst [vmem:[#allocation2 + $0x28] sm:$0xff] %v3292_v6 }
  0x3c   : > { %325 = vst [vmem:[#allocation2 + $0x38] sm:$0xff] %v3292_v6 }
  0x3d PF: > { %v2290_v7 = vld [vmem:[%s3383_s4 + $0xe0] sm:$0xf]  ;;  %v2990_v8 = vld [vmem:[%s3383_s4 + $0xec] sm:$0xf0]  ;;  %p2944_p13 = scmp.ne.s32.totalorder %s3280_s15, 2 }
  0x3e   : > { %v2418_v9 = vld [vmem:[%s3383_s4 + $0x1e0] sm:$0xf]  ;;  %v2291_v10 = vor.u32 %v2990_v8, %v2290_v7  ;;  %v3022_v11 = vld [vmem:[%s3383_s4 + $0x1ec] sm:$0xf0] }
  0x3f   : > { %v2546_v12 = vld [vmem:[%s3383_s4 + $0x2e0] sm:$0xf]  ;;  %v3054_v13 = vld [vmem:[%s3383_s4 + $0x2ec] sm:$0xf0]  ;;  %v2419_v14 = vor.u32 %v3022_v11, %v2418_v9 }
  0x40   : > { %v2547_v15 = vor.u32 %v3054_v13, %v2546_v12  ;;  %v2674_v16 = vld [vmem:[%s3383_s4 + $0x3e0] sm:$0xf]  ;;  %v3086_v17 = vld [vmem:[%s3383_s4 + $0x3ec] sm:$0xf0]  ;;  %1522 = vmatpush.bf16.msra.mxu0 %v2291_v10 }
  0x41   : > { %v2274_v18 = vld [vmem:[%s3383_s4 + $0xc0] sm:$0xf]  ;;  %v2675_v19 = vor.u32 %v3086_v17, %v2674_v16  ;;  %v2986_v20 = vld [vmem:[%s3383_s4 + $0xcc] sm:$0xf0]  ;;  %1536 = vmatpush.bf16.msra.mxu1 %v2419_v14 }
  0x42   : > { %v2402_v21 = vld [vmem:[%s3383_s4 + $0x1c0] sm:$0xf]  ;;  %v3018_v22 = vld [vmem:[%s3383_s4 + $0x1cc] sm:$0xf0]  ;;  %1550 = vmatpush.bf16.msra.mxu2 %v2547_v15  ;;  %v2275_v23 = vor.u32 %v2986_v20, %v2274_v18 }
  0x43   : > { %v2403_v24 = vor.u32 %v3018_v22, %v2402_v21  ;;  %v2530_v25 = vld [vmem:[%s3383_s4 + $0x2c0] sm:$0xf]  ;;  %v3050_v26 = vld [vmem:[%s3383_s4 + $0x2cc] sm:$0xf0]  ;;  %1564 = vmatpush.bf16.msra.mxu3 %v2675_v19 }
  0x44   : > { %v2658_v27 = vld [vmem:[%s3383_s4 + $0x3c0] sm:$0xf]  ;;  %v2531_v28 = vor.u32 %v3050_v26, %v2530_v25  ;;  %v3082_v29 = vld [vmem:[%s3383_s4 + $0x3cc] sm:$0xf0]  ;;  %1523 = vmatpush.bf16.msra.mxu0 %v2275_v23 }
  0x45   : > { %v2258_v30 = vld [vmem:[%s3383_s4 + $0xa0] sm:$0xf]  ;;  %v2982_v31 = vld [vmem:[%s3383_s4 + $0xac] sm:$0xf0]  ;;  %v2659_v32 = vor.u32 %v3082_v29, %v2658_v27  ;;  %1537 = vmatpush.bf16.msra.mxu1 %v2403_v24 }
  0x46   : > { %v2386_v33 = vld [vmem:[%s3383_s4 + $0x1a0] sm:$0xf]  ;;  %v3014_v34 = vld [vmem:[%s3383_s4 + $0x1ac] sm:$0xf0]  ;;  %v2259_v36 = vor.u32 %v2982_v31, %v2258_v30  ;;  %1551 = vmatpush.bf16.msra.mxu2 %v2531_v28 }
  0x47   : > { %v2514_v35 = vld [vmem:[%s3383_s4 + $0x2a0] sm:$0xf]  ;;  %v3046_v37 = vld [vmem:[%s3383_s4 + $0x2ac] sm:$0xf0]  ;;  %v2387_v40 = vor.u32 %v3014_v34, %v2386_v33  ;;  %1565 = vmatpush.bf16.msra.mxu3 %v2659_v32 }
  0x48   : > { %v2642_v38 = vld [vmem:[%s3383_s4 + $0x3a0] sm:$0xf]  ;;  %v3078_v39 = vld [vmem:[%s3383_s4 + $0x3ac] sm:$0xf0]  ;;  %v2515_v41 = vor.u32 %v3046_v37, %v2514_v35  ;;  %1524 = vmatpush.bf16.msra.mxu0 %v2259_v36 }
  0x49   : > { %v2242_v42 = vld [vmem:[%s3383_s4 + $0x80] sm:$0xf]  ;;  %v2978_v43 = vld [vmem:[%s3383_s4 + $0x8c] sm:$0xf0]  ;;  %v2643_v45 = vor.u32 %v3078_v39, %v2642_v38  ;;  %1538 = vmatpush.bf16.msra.mxu1 %v2387_v40  ;;  %v2988_v40 = vld [vmem:[%s3383_s4 + $0xe4] sm:$0xf] }
  0x4a   : > { %v2370_v44 = vld [vmem:[%s3383_s4 + $0x180] sm:$0xf]  ;;  %v3010_v46 = vld [vmem:[%s3383_s4 + $0x18c] sm:$0xf0]  ;;  %v2243_v51 = vor.u32 %v2978_v43, %v2242_v42  ;;  %1552 = vmatpush.bf16.msra.mxu2 %v2515_v41  ;;  %v2292_v41 = vld [vmem:[%s3383_s4 + $0xf0] sm:$0xf0] }
  0x4b   : > { %v2498_v47 = vld [vmem:[%s3383_s4 + $0x280] sm:$0xf]  ;;  %v3042_v48 = vld [vmem:[%s3383_s4 + $0x28c] sm:$0xf0]  ;;  %v2371_v52 = vor.u32 %v3010_v46, %v2370_v44  ;;  %1566 = vmatpush.bf16.msra.mxu3 %v2643_v45  ;;  %v3020_v44 = vld [vmem:[%s3383_s4 + $0x1e4] sm:$0xf] }
  0x4c   : > { %v2626_v49 = vld [vmem:[%s3383_s4 + $0x380] sm:$0xf]  ;;  %v3074_v50 = vld [vmem:[%s3383_s4 + $0x38c] sm:$0xf0]  ;;  %v2499_v53 = vor.u32 %v3042_v48, %v2498_v47  ;;  %1525 = vmatpush.bf16.msra.mxu0 %v2243_v51  ;;  %v2420_v45 = vld [vmem:[%s3383_s4 + $0x1f0] sm:$0xf0] }
  0x4d   : > { %v2226_v54 = vld [vmem:[%s3383_s4 + $0x60] sm:$0xf]  ;;  %v2974_v55 = vld [vmem:[%s3383_s4 + $0x6c] sm:$0xf0]  ;;  %v2627_v57 = vor.u32 %v3074_v50, %v2626_v49  ;;  %1539 = vmatpush.bf16.msra.mxu1 %v2371_v52  ;;  %v2295_v50 = vor.u32 %v2988_v40, %v2292_v41  ;;  %v2228_v40 = vld [vmem:[%s3383_s4 + $0x70] sm:$0xf0] }
  0x4e   : > { %v2354_v56 = vld [vmem:[%s3383_s4 + $0x160] sm:$0xf]  ;;  %v3006_v58 = vld [vmem:[%s3383_s4 + $0x16c] sm:$0xf0]  ;;  %v2227_v63 = vor.u32 %v2974_v55, %v2226_v54  ;;  %1553 = vmatpush.bf16.msra.mxu2 %v2499_v53  ;;  %v2423_v54 = vor.u32 %v3020_v44, %v2420_v45  ;;  %v2984_v55 = vld [vmem:[%s3383_s4 + $0xc4] sm:$0xf] }
  0x4f   : > { %v2482_v59 = vld [vmem:[%s3383_s4 + $0x260] sm:$0xf]  ;;  %v3038_v60 = vld [vmem:[%s3383_s4 + $0x26c] sm:$0xf0]  ;;  %v2355_v0 = vor.u32 %v3006_v58, %v2354_v56  ;;  %1567 = vmatpush.bf16.msra.mxu3 %v2627_v57  ;;  %v2276_v56 = vld [vmem:[%s3383_s4 + $0xd0] sm:$0xf0] }
  0x50   : > { %v2610_v61 = vld [vmem:[%s3383_s4 + $0x360] sm:$0xf]  ;;  %v3070_v62 = vld [vmem:[%s3383_s4 + $0x36c] sm:$0xf0]  ;;  %v2483_v1 = vor.u32 %v3038_v60, %v2482_v59  ;;  %1526 = vmatpush.bf16.msra.mxu0 %v2227_v63  ;;  %v3016_v57 = vld [vmem:[%s3383_s4 + $0x1c4] sm:$0xf] }
  0x51   : > { %v2210_v2 = vld [vmem:[%s3383_s4 + $0x40] sm:$0xf]  ;;  %v2970_v3 = vld [vmem:[%s3383_s4 + $0x4c] sm:$0xf0]  ;;  %v2611_v5 = vor.u32 %v3070_v62, %v2610_v61  ;;  %1540 = vmatpush.bf16.msra.mxu1 %v2355_v0  ;;  %v2404_v58 = vld [vmem:[%s3383_s4 + $0x1d0] sm:$0xf0] }
  0x52   : > { %v2338_v4 = vld [vmem:[%s3383_s4 + $0x140] sm:$0xf]  ;;  %v3002_v6 = vld [vmem:[%s3383_s4 + $0x14c] sm:$0xf0]  ;;  %v2211_v11 = vor.u32 %v2970_v3, %v2210_v2  ;;  %1554 = vmatpush.bf16.msra.mxu2 %v2483_v1  ;;  %v2957_v60 = vld [vmem:[%s3381_s29 + $0x14] sm:$0xf0]  ;;  %v2279_v3 = vor.u32 %v2984_v55, %v2276_v56 }
  0x53   : > { %v2466_v7 = vld [vmem:[%s3383_s4 + $0x240] sm:$0xf]  ;;  %v3034_v8 = vld [vmem:[%s3383_s4 + $0x24c] sm:$0xf0]  ;;  %v2339_v12 = vor.u32 %v3002_v6, %v2338_v4  ;;  %1568 = vmatpush.bf16.msra.mxu3 %v2611_v5  ;;  %v2980_v5 = vld [vmem:[%s3383_s4 + $0xa4] sm:$0xf] }
  0x54   : > { %v2594_v9 = vld [vmem:[%s3383_s4 + $0x340] sm:$0xf]  ;;  %v3066_v10 = vld [vmem:[%s3383_s4 + $0x34c] sm:$0xf0]  ;;  %v2467_v13 = vor.u32 %v3034_v8, %v2466_v7  ;;  %1527 = vmatpush.bf16.msra.mxu0 %v2211_v11  ;;  %v2260_v6 = vld [vmem:[%s3383_s4 + $0xb0] sm:$0xf0]  ;;  %v2407_v7 = vor.u32 %v3016_v57, %v2404_v58 }
  0x55   : > { %v2194_v14 = vld [vmem:[%s3383_s4 + $0x20] sm:$0xf]  ;;  %v2966_v15 = vld [vmem:[%s3383_s4 + $0x2c] sm:$0xf0]  ;;  %v2595_v17 = vor.u32 %v3066_v10, %v2594_v9  ;;  %1541 = vmatpush.bf16.msra.mxu1 %v2339_v12  ;;  %v3012_v8 = vld [vmem:[%s3383_s4 + $0x1a4] sm:$0xf] }
  0x56   : > { %v2322_v16 = vld [vmem:[%s3383_s4 + $0x120] sm:$0xf]  ;;  %v2998_v18 = vld [vmem:[%s3383_s4 + $0x12c] sm:$0xf0]  ;;  %v2195_v23 = vor.u32 %v2966_v15, %v2194_v14  ;;  %1555 = vmatpush.bf16.msra.mxu2 %v2467_v13  ;;  %v2954_v9 = vld [vmem:[%s3381_s29 + $0x4] sm:$0xf] }
  0x57   : > { %v2450_v19 = vld [vmem:[%s3383_s4 + $0x220] sm:$0xf]  ;;  %v3030_v20 = vld [vmem:[%s3383_s4 + $0x22c] sm:$0xf0]  ;;  %v2323_v26 = vor.u32 %v2998_v18, %v2322_v16  ;;  %1569 = vmatpush.bf16.msra.mxu3 %v2595_v17  ;;  %v2156_v10 = vld [vmem:[%s3381_s29 + $0x18] sm:$0xf0] }
  0x58   : > { %v2578_v21 = vld [vmem:[%s3383_s4 + $0x320] sm:$0xf]  ;;  %v3062_v22 = vld [vmem:[%s3383_s4 + $0x32c] sm:$0xf0]  ;;  %v2451_v27 = vor.u32 %v3030_v20, %v2450_v19  ;;  %1528 = vmatpush.bf16.msra.mxu0 %v2195_v23  ;;  %v2388_v11 = vld [vmem:[%s3383_s4 + $0x1b0] sm:$0xf0]  ;;  %v3485_v12 = vor.u32 %v2954_v9, %v2156_v10  ;;  %v2263_v20 = vor.u32 %v2980_v5, %v2260_v6 }
  0x59   : > { %v2178_v24 = vld [vmem:[%s3383_s4] sm:$0xf]  ;;  %v2962_v25 = vld [vmem:[%s3383_s4 + $0xc] sm:$0xf0]  ;;  %v2579_v31 = vor.u32 %v3062_v22, %v2578_v21  ;;  %1542 = vmatpush.bf16.msra.mxu1 %v2323_v26  ;;  %v2162_v13 = vld [vmem:[%s3381_s29 + $0x8] sm:$0xf] }
  0x5a   : > { %v2306_v28 = vld [vmem:[%s3383_s4 + $0x100] sm:$0xf]  ;;  %v2994_v29 = vld [vmem:[%s3383_s4 + $0x10c] sm:$0xf0]  ;;  %v2179_v38 = vor.u32 %v2962_v25, %v2178_v24  ;;  %1556 = vmatpush.bf16.msra.mxu2 %v2451_v27  ;;  %v2976_v23 = vld [vmem:[%s3383_s4 + $0x84] sm:$0xf]  ;;  %v2391_v24 = vor.u32 %v3012_v8, %v2388_v11 }
  0x5b   : > { %v2434_v30 = vld [vmem:[%s3383_s4 + $0x200] sm:$0xf]  ;;  %v3026_v32 = vld [vmem:[%s3383_s4 + $0x20c] sm:$0xf0]  ;;  %v2307_v42 = vor.u32 %v2994_v29, %v2306_v28  ;;  %1570 = vmatpush.bf16.msra.mxu3 %v2579_v31  ;;  %v2244_v25 = vld [vmem:[%s3383_s4 + $0x90] sm:$0xf0] }
  0x5c   : > { %v2562_v33 = vld [vmem:[%s3383_s4 + $0x300] sm:$0xf]  ;;  %v3058_v34 = vld [vmem:[%s3383_s4 + $0x30c] sm:$0xf0]  ;;  %v2435_v43 = vor.u32 %v3026_v32, %v2434_v30  ;;  %1529 = vmatpush.bf16.msra.mxu0 %v2179_v38  ;;  %v2955_v26 = vld [vmem:[%s3381_s29 + $0xc] sm:$0xf] }
  0x5d   : > { %v2802_v35 = vld [vmem:[%s3383_s4 + $0x4e0] sm:$0xf]  ;;  %v3118_v36 = vld [vmem:[%s3383_s4 + $0x4ec] sm:$0xf0]  ;;  %v2563_v46 = vor.u32 %v3058_v34, %v2562_v33  ;;  %1543 = vmatpush.bf16.msra.mxu1 %v2307_v42  ;;  %v2164_v27 = vld [vmem:[%s3381_s29 + $0x20] sm:$0xf0]  ;;  %v2247_v33 = vor.u32 %v2976_v23, %v2244_v25 }
  0x5e   : > { %v2930_v37 = vld [vmem:[%s3383_s4 + $0x5e0] sm:$0xf]  ;;  %v3150_v39 = vld [vmem:[%s3383_s4 + $0x5ec] sm:$0xf0]  ;;  %v2803_v47 = vor.u32 %v3118_v36, %v2802_v35  ;;  %1557 = vmatpush.bf16.msra.mxu2 %v2435_v43  ;;  %v3008_v28 = vld [vmem:[%s3383_s4 + $0x184] sm:$0xf]  ;;  %v3503_v30 = vor.u32 %v2955_v26, %v2164_v27 }
  0x5f   : > { %v2786_v48 = vld [vmem:[%s3383_s4 + $0x4c0] sm:$0xf]  ;;  %v2931_v49 = vor.u32 %v3150_v39, %v2930_v37  ;;  %v3114_v51 = vld [vmem:[%s3383_s4 + $0x4cc] sm:$0xf0]  ;;  %1571 = vmatpush.bf16.msra.mxu3 %v2563_v46  ;;  %v2372_v29 = vld [vmem:[%s3383_s4 + $0x190] sm:$0xf0] }
  0x60   : > { %v2914_v52 = vld [vmem:[%s3383_s4 + $0x5c0] sm:$0xf]  ;;  %v3146_v53 = vld [vmem:[%s3383_s4 + $0x5cc] sm:$0xf0]  ;;  %1578 = vmatpush.bf16.msrb.mxu0 %v2803_v47  ;;  %v2787_v61 = vor.u32 %v3114_v51, %v2786_v48  ;;  %1544 = vmatmul.bf16.vlgmr.msra.gmra.mxu1 %v3485_v12  ;;  %v2375_v37 = vor.u32 %v3008_v28, %v2372_v29  ;;  %v2972_v39 = vld [vmem:[%s3383_s4 + $0x64] sm:$0xf] }
  0x61   : > { %v2154_v59 = vld [vmem:[%s3381_s29] sm:$0xf]  ;;  %1592 = vmatpush.bf16.msrb.mxu1 %v2931_v49  ;;  %v2915_v2 = vor.u32 %v3146_v53, %v2914_v52  ;;  %v3004_v41 = vld [vmem:[%s3383_s4 + $0x164] sm:$0xf]  ;;  %v2356_v42 = vld [vmem:[%s3383_s4 + $0x170] sm:$0xf0]  ;;  %v2231_v45 = vor.u32 %v2972_v39, %v2228_v40 }
  0x62   : > { %v2770_v62 = vld [vmem:[%s3383_s4 + $0x4a0] sm:$0xf]  ;;  %v3110_v63 = vld [vmem:[%s3383_s4 + $0x4ac] sm:$0xf0]  ;;  %v3475_v1 = vor.u32 %v2957_v60, %v2154_v59  ;;  %1606 = vmatpush.bf16.msrb.mxu2 %v2295_v50  ;;  %1572 = vmatmul.bf16.vlgmr.msra.gmra.mxu3 %v3503_v30  ;;  %v2359_v49 = vor.u32 %v3004_v41, %v2356_v42  ;;  %v2968_v51 = vld [vmem:[%s3383_s4 + $0x44] sm:$0xf] }
  0x63   : > { %v2898_v0 = vld [vmem:[%s3383_s4 + $0x5a0] sm:$0xf]  ;;  %v3142_v4 = vld [vmem:[%s3383_s4 + $0x5ac] sm:$0xf0]  ;;  %1620 = vmatpush.bf16.msrb.mxu3 %v2423_v54  ;;  %v2771_v15 = vor.u32 %v3110_v63, %v2770_v62  ;;  %v2212_v52 = vld [vmem:[%s3383_s4 + $0x50] sm:$0xf0] }
  0x64   : > { %1530 = vmatmul.bf16.vlgmr.msra.gmra.mxu0 %v3475_v1  ;;  %v2958_v14 = vld [vmem:[%s3381_s29 + $0x1c] sm:$0xf0]  ;;  %v2899_v19 = vor.u32 %v3142_v4, %v2898_v0  ;;  %v3000_v53 = vld [vmem:[%s3383_s4 + $0x144] sm:$0xf]  ;;  %v2340_v54 = vld [vmem:[%s3383_s4 + $0x150] sm:$0xf0]  ;;  %v2215_v57 = vor.u32 %v2968_v51, %v2212_v52 }
  0x65   : > { %1579 = vmatpush.bf16.msrb.mxu0 %v2787_v61  ;;  %v2754_v16 = vld [vmem:[%s3383_s4 + $0x480] sm:$0xf]  ;;  %v3106_v17 = vld [vmem:[%s3383_s4 + $0x48c] sm:$0xf0]  ;;  %v3491_v18 = vor.u32 %v2958_v14, %v2162_v13  ;;  %1593 = vmatpush.bf16.msrb.mxu1 %v2915_v2  ;;  %v2343_v61 = vor.u32 %v3000_v53, %v2340_v54  ;;  %v2964_v63 = vld [vmem:[%s3383_s4 + $0x24] sm:$0xf] }
  0x66   : > { %1607 = vmatpush.bf16.msrb.mxu2 %v2279_v3  ;;  %v2882_v21 = vld [vmem:[%s3383_s4 + $0x580] sm:$0xf]  ;;  %v3138_v22 = vld [vmem:[%s3383_s4 + $0x58c] sm:$0xf0]  ;;  %v2755_v31 = vor.u32 %v3106_v17, %v2754_v16  ;;  %v2196_v0 = vld [vmem:[%s3383_s4 + $0x30] sm:$0xf0] }
  0x67   : > { %1621 = vmatpush.bf16.msrb.mxu3 %v2407_v7  ;;  %1558 = vmatmul.bf16.vlgmr.msra.gmra.mxu2 %v3491_v18  ;;  %v2883_v32 = vor.u32 %v3138_v22, %v2882_v21  ;;  %v2738_v34 = vld [vmem:[%s3383_s4 + $0x460] sm:$0xf]  ;;  %v3102_v35 = vld [vmem:[%s3383_s4 + $0x46c] sm:$0xf0]  ;;  %v2996_v2 = vld [vmem:[%s3383_s4 + $0x124] sm:$0xf]  ;;  %v2199_v9 = vor.u32 %v2964_v63, %v2196_v0 }
  0x68   : > { %v2866_v36 = vld [vmem:[%s3383_s4 + $0x560] sm:$0xf]  ;;  %v3134_v38 = vld [vmem:[%s3383_s4 + $0x56c] sm:$0xf0]  ;;  %v2739_v43 = vor.u32 %v3102_v35, %v2738_v34  ;;  %v2324_v3 = vld [vmem:[%s3383_s4 + $0x130] sm:$0xf0] }
  0x69   : > { %1580 = vmatpush.bf16.msrb.mxu0 %v2771_v15  ;;  %1594 = vmatpush.bf16.msrb.mxu1 %v2899_v19  ;;  %v2867_v44 = vor.u32 %v3134_v38, %v2866_v36  ;;  %v2722_v46 = vld [vmem:[%s3383_s4 + $0x440] sm:$0xf]  ;;  %v3098_v47 = vld [vmem:[%s3383_s4 + $0x44c] sm:$0xf0]  ;;  %v2960_v11 = vld [vmem:[%s3383_s4 + $0x4] sm:$0xf]  ;;  %v2327_v14 = vor.u32 %v2996_v2, %v2324_v3 }
  0x6a   : > { %1608 = vmatpush.bf16.msrb.mxu2 %v2263_v20  ;;  %v2850_v48 = vld [vmem:[%s3383_s4 + $0x540] sm:$0xf]  ;;  %v3130_v50 = vld [vmem:[%s3383_s4 + $0x54c] sm:$0xf0]  ;;  %v2723_v55 = vor.u32 %v3098_v47, %v2722_v46  ;;  %v2180_v13 = vld [vmem:[%s3383_s4 + $0x10] sm:$0xf0] }
  0x6b   : > { %1622 = vmatpush.bf16.msrb.mxu3 %v2391_v24  ;;  %v2851_v56 = vor.u32 %v3130_v50, %v2850_v48  ;;  %v2706_v58 = vld [vmem:[%s3383_s4 + $0x420] sm:$0xf]  ;;  %v3094_v59 = vld [vmem:[%s3383_s4 + $0x42c] sm:$0xf0]  ;;  %v2992_v15 = vld [vmem:[%s3383_s4 + $0x104] sm:$0xf]  ;;  %v2183_v27 = vor.u32 %v2960_v11, %v2180_v13 }
  0x6c   : > { %v2834_v60 = vld [vmem:[%s3383_s4 + $0x520] sm:$0xf]  ;;  %v3126_v62 = vld [vmem:[%s3383_s4 + $0x52c] sm:$0xf0]  ;;  %v2707_v4 = vor.u32 %v3094_v59, %v2706_v58  ;;  %v2308_v16 = vld [vmem:[%s3383_s4 + $0x110] sm:$0xf0] }
  0x6d   : > { %1581 = vmatpush.bf16.msrb.mxu0 %v2755_v31  ;;  %1595 = vmatpush.bf16.msrb.mxu1 %v2883_v32  ;;  %v2690_v5 = vld [vmem:[%s3383_s4 + $0x400] sm:$0xf]  ;;  %v3090_v6 = vld [vmem:[%s3383_s4 + $0x40c] sm:$0xf0]  ;;  %v2835_v8 = vor.u32 %v3126_v62, %v2834_v60  ;;  %v3052_v17 = vld [vmem:[%s3383_s4 + $0x2e4] sm:$0xf]  ;;  %v2311_v32 = vor.u32 %v2992_v15, %v2308_v16 }
  0x6e   : > { %1609 = vmatpush.bf16.msrb.mxu2 %v2247_v33  ;;  %v2818_v7 = vld [vmem:[%s3383_s4 + $0x500] sm:$0xf]  ;;  %v3122_v10 = vld [vmem:[%s3383_s4 + $0x50c] sm:$0xf0]  ;;  %v2548_v19 = vld [vmem:[%s3383_s4 + $0x2f0] sm:$0xf0]  ;;  %v2691_v22 = vor.u32 %v3090_v6, %v2690_v5 }
  0x6f   : > { %1623 = vmatpush.bf16.msrb.mxu3 %v2375_v37  ;;  %v3084_v20 = vld [vmem:[%s3383_s4 + $0x3e4] sm:$0xf]  ;;  %v2676_v21 = vld [vmem:[%s3383_s4 + $0x3f0] sm:$0xf0]  ;;  %v2819_v26 = vor.u32 %v3122_v10, %v2818_v7  ;;  %v2170_v29 = vld [vmem:[%s3381_s29 + $0x10] sm:$0xf]  ;;  %v2551_v33 = vor.u32 %v3052_v17, %v2548_v19 }
  0x70   : > { %v3116_v23 = vld [vmem:[%s3383_s4 + $0x4e4] sm:$0xf]  ;;  %v2804_v24 = vld [vmem:[%s3383_s4 + $0x4f0] sm:$0xf0]  ;;  %v2959_v31 = vld [vmem:[%s3381_s29 + $0x24] sm:$0xf0]  ;;  %v2679_v36 = vor.u32 %v3084_v20, %v2676_v21 }
  0x71   : > { %1582 = vmatpush.bf16.msrb.mxu0 %v2739_v43  ;;  %1596 = vmatpush.bf16.msrb.mxu1 %v2867_v44  ;;  %v3148_v25 = vld [vmem:[%s3383_s4 + $0x5e4] sm:$0xf]  ;;  %v2932_v28 = vld [vmem:[%s3383_s4 + $0x5f0] sm:$0xf0]  ;;  %v2172_v35 = vld [vmem:[%s3381_s29 + $0x28] sm:$0xf0]  ;;  %v2807_v37 = vor.u32 %v3116_v23, %v2804_v24  ;;  %v3553_v42 = vor.u32 %v2959_v31, %v2170_v29 }
  0x72   : > { %1610 = vmatpush.bf16.msrb.mxu2 %v2231_v45  ;;  %v2956_v34 = vld [vmem:[%s3381_s29 + $0x14] sm:$0xf]  ;;  %v2935_v41 = vor.u32 %v3148_v25, %v2932_v28 }
  0x73   : > { %1624 = vmatpush.bf16.msrb.mxu3 %v2359_v49  ;;  %v3048_v38 = vld [vmem:[%s3383_s4 + $0x2c4] sm:$0xf]  ;;  %v2532_v39 = vld [vmem:[%s3383_s4 + $0x2d0] sm:$0xf0]  ;;  %v3558_v46 = vor.u32 %v2956_v34, %v2172_v35 }
  0x74   : > { %v3080_v40 = vld [vmem:[%s3383_s4 + $0x3c4] sm:$0xf]  ;;  %v2660_v43 = vld [vmem:[%s3383_s4 + $0x3d0] sm:$0xf0]  ;;  %v2535_v49 = vor.u32 %v3048_v38, %v2532_v39 }
  0x75   : > { %1583 = vmatpush.bf16.msrb.mxu0 %v2723_v55  ;;  %1597 = vmatpush.bf16.msrb.mxu1 %v2851_v56  ;;  %v3112_v44 = vld [vmem:[%s3383_s4 + $0x4c4] sm:$0xf]  ;;  %v2788_v45 = vld [vmem:[%s3383_s4 + $0x4d0] sm:$0xf0]  ;;  %v2663_v50 = vor.u32 %v3080_v40, %v2660_v43 }
  0x76   : > { %1611 = vmatpush.bf16.msrb.mxu2 %v2215_v57  ;;  %v3144_v47 = vld [vmem:[%s3383_s4 + $0x5c4] sm:$0xf]  ;;  %v2916_v48 = vld [vmem:[%s3383_s4 + $0x5d0] sm:$0xf0]  ;;  %v2791_v51 = vor.u32 %v3112_v44, %v2788_v45 }
  0x77   : > { %1625 = vmatpush.bf16.msrb.mxu3 %v2343_v61  ;;  %v3044_v52 = vld [vmem:[%s3383_s4 + $0x2a4] sm:$0xf]  ;;  %v2516_v53 = vld [vmem:[%s3383_s4 + $0x2b0] sm:$0xf0]  ;;  %v2919_v55 = vor.u32 %v3144_v47, %v2916_v48 }
  0x78   : > { %v3076_v54 = vld [vmem:[%s3383_s4 + $0x3a4] sm:$0xf]  ;;  %v2644_v56 = vld [vmem:[%s3383_s4 + $0x3b0] sm:$0xf0]  ;;  %v2519_v61 = vor.u32 %v3044_v52, %v2516_v53 }
  0x79   : > { %1584 = vmatpush.bf16.msrb.mxu0 %v2707_v4  ;;  %1598 = vmatpush.bf16.msrb.mxu1 %v2835_v8  ;;  %v3108_v57 = vld [vmem:[%s3383_s4 + $0x4a4] sm:$0xf]  ;;  %v2772_v58 = vld [vmem:[%s3383_s4 + $0x4b0] sm:$0xf0]  ;;  %v2647_v62 = vor.u32 %v3076_v54, %v2644_v56 }
  0x7a   : > { %1612 = vmatpush.bf16.msrb.mxu2 %v2199_v9  ;;  %v3140_v59 = vld [vmem:[%s3383_s4 + $0x5a4] sm:$0xf]  ;;  %v2900_v60 = vld [vmem:[%s3383_s4 + $0x5b0] sm:$0xf0]  ;;  %v2775_v63 = vor.u32 %v3108_v57, %v2772_v58 }
  0x7b   : > { %1626 = vmatpush.bf16.msrb.mxu3 %v2327_v14  ;;  %v3040_v0 = vld [vmem:[%s3383_s4 + $0x284] sm:$0xf]  ;;  %v2500_v2 = vld [vmem:[%s3383_s4 + $0x290] sm:$0xf0]  ;;  %v2903_v4 = vor.u32 %v3140_v59, %v2900_v60 }
  0x7c   : > { %v3072_v3 = vld [vmem:[%s3383_s4 + $0x384] sm:$0xf]  ;;  %v2628_v5 = vld [vmem:[%s3383_s4 + $0x390] sm:$0xf0]  ;;  %v2503_v10 = vor.u32 %v3040_v0, %v2500_v2  ;;  %v2991_v0 = vld [vmem:[%s3383_s4 + $0xf4] sm:$0xf0] }
  0x7d   : > { %1585 = vmatpush.bf16.msrb.mxu0 %v2691_v22  ;;  %1599 = vmatpush.bf16.msrb.mxu1 %v2819_v26  ;;  %v3104_v6 = vld [vmem:[%s3383_s4 + $0x484] sm:$0xf]  ;;  %v2756_v7 = vld [vmem:[%s3383_s4 + $0x490] sm:$0xf0]  ;;  %v2631_v11 = vor.u32 %v3072_v3, %v2628_v5  ;;  %v2426_v2 = vld [vmem:[%s3383_s4 + $0x1e8] sm:$0xf] }
  0x7e   : > { %1613 = vmatpush.bf16.msrb.mxu2 %v2183_v27  ;;  %v3136_v8 = vld [vmem:[%s3383_s4 + $0x584] sm:$0xf]  ;;  %v2884_v9 = vld [vmem:[%s3383_s4 + $0x590] sm:$0xf0]  ;;  %v2759_v13 = vor.u32 %v3104_v6, %v2756_v7  ;;  %v2554_v5 = vld [vmem:[%s3383_s4 + $0x2e8] sm:$0xf] }
  0x7f   : > { %1627 = vmatpush.bf16.msrb.mxu3 %v2311_v32  ;;  %v3036_v14 = vld [vmem:[%s3383_s4 + $0x264] sm:$0xf]  ;;  %v2484_v15 = vld [vmem:[%s3383_s4 + $0x270] sm:$0xf0]  ;;  %v2887_v17 = vor.u32 %v3136_v8, %v2884_v9  ;;  %v3055_v6 = vld [vmem:[%s3383_s4 + $0x2f4] sm:$0xf0] }
  0x80   : > { %1586 = vmatmul.bf16.vlgmr.msrb.gmra.mxu0 %v3553_v42  ;;  %1600 = vmatmul.bf16.vlgmr.msrb.gmra.mxu1 %v3558_v46  ;;  %v3068_v16 = vld [vmem:[%s3383_s4 + $0x364] sm:$0xf]  ;;  %v2612_v19 = vld [vmem:[%s3383_s4 + $0x370] sm:$0xf0]  ;;  %v2487_v24 = vor.u32 %v3036_v14, %v2484_v15  ;;  %v2682_v9 = vld [vmem:[%s3383_s4 + $0x3e8] sm:$0xf]  ;;  %v2555_v15 = vor.u32 %v3055_v6, %v2554_v5 }
  0x81   : > { %1634 = vmatpush.bf16.msra.mxu0 %v2551_v33  ;;  %1648 = vmatpush.bf16.msra.mxu1 %v2679_v36  ;;  %v3100_v20 = vld [vmem:[%s3383_s4 + $0x464] sm:$0xf]  ;;  %v2740_v21 = vld [vmem:[%s3383_s4 + $0x470] sm:$0xf0]  ;;  %v2615_v25 = vor.u32 %v3068_v16, %v2612_v19  ;;  %v2282_v16 = vld [vmem:[%s3383_s4 + $0xc8] sm:$0xf] }
  0x82   : > { %1662 = vmatpush.bf16.msra.mxu2 %v2807_v37  ;;  %1628 = vmatmul.bf16.vlgmr.msrb.gmra.mxu3 %v3485_v12  ;;  %v3132_v22 = vld [vmem:[%s3383_s4 + $0x564] sm:$0xf]  ;;  %v2868_v23 = vld [vmem:[%s3383_s4 + $0x570] sm:$0xf0]  ;;  %v2743_v26 = vor.u32 %v3100_v20, %v2740_v21  ;;  %v2410_v19 = vld [vmem:[%s3383_s4 + $0x1c8] sm:$0xf] }
  0x83   : > { %1676 = vmatpush.bf16.msra.mxu3 %v2935_v41  ;;  %1614 = vmatmul.bf16.vlgmr.msrb.gmra.mxu2 %v3475_v1  ;;  %v3032_v27 = vld [vmem:[%s3383_s4 + $0x244] sm:$0xf]  ;;  %v2468_v28 = vld [vmem:[%s3383_s4 + $0x250] sm:$0xf0]  ;;  %v2871_v31 = vor.u32 %v3132_v22, %v2868_v23  ;;  %v3019_v21 = vld [vmem:[%s3383_s4 + $0x1d4] sm:$0xf0] }
  0x84   : > { %v3064_v29 = vld [vmem:[%s3383_s4 + $0x344] sm:$0xf]  ;;  %v2596_v32 = vld [vmem:[%s3383_s4 + $0x350] sm:$0xf0]  ;;  %v2471_v37 = vor.u32 %v3032_v27, %v2468_v28  ;;  %v2538_v22 = vld [vmem:[%s3383_s4 + $0x2c8] sm:$0xf]  ;;  %v2411_v27 = vor.u32 %v3019_v21, %v2410_v19 }
  0x85   : > { %1635 = vmatpush.bf16.msra.mxu0 %v2535_v49  ;;  %1649 = vmatpush.bf16.msra.mxu1 %v2663_v50  ;;  %v3096_v33 = vld [vmem:[%s3383_s4 + $0x444] sm:$0xf]  ;;  %v2724_v34 = vld [vmem:[%s3383_s4 + $0x450] sm:$0xf0]  ;;  %v2599_v38 = vor.u32 %v3064_v29, %v2596_v32  ;;  %v3051_v23 = vld [vmem:[%s3383_s4 + $0x2d4] sm:$0xf0] }
  0x86   : > { %1663 = vmatpush.bf16.msra.mxu2 %v2791_v51  ;;  %v3128_v35 = vld [vmem:[%s3383_s4 + $0x544] sm:$0xf]  ;;  %v2852_v36 = vld [vmem:[%s3383_s4 + $0x550] sm:$0xf0]  ;;  %v2727_v39 = vor.u32 %v3096_v33, %v2724_v34  ;;  %v2539_v28 = vor.u32 %v3051_v23, %v2538_v22  ;;  %v2266_v29 = vld [vmem:[%s3383_s4 + $0xa8] sm:$0xf] }
  0x87   : > { %1677 = vmatpush.bf16.msra.mxu3 %v2919_v55  ;;  %v3028_v40 = vld [vmem:[%s3383_s4 + $0x224] sm:$0xf]  ;;  %v2452_v41 = vld [vmem:[%s3383_s4 + $0x230] sm:$0xf0]  ;;  %v2855_v44 = vor.u32 %v3128_v35, %v2852_v36  ;;  %v2394_v32 = vld [vmem:[%s3383_s4 + $0x1a8] sm:$0xf] }
  0x88   : > { %v3060_v43 = vld [vmem:[%s3383_s4 + $0x324] sm:$0xf]  ;;  %v2580_v45 = vld [vmem:[%s3383_s4 + $0x330] sm:$0xf0]  ;;  %v2455_v51 = vor.u32 %v3028_v40, %v2452_v41  ;;  %v3015_v34 = vld [vmem:[%s3383_s4 + $0x1b4] sm:$0xf0] }
  0x89   : > { %1636 = vmatpush.bf16.msra.mxu0 %v2519_v61  ;;  %1650 = vmatpush.bf16.msra.mxu1 %v2647_v62  ;;  %v3092_v47 = vld [vmem:[%s3383_s4 + $0x424] sm:$0xf]  ;;  %v2708_v48 = vld [vmem:[%s3383_s4 + $0x430] sm:$0xf0]  ;;  %v2583_v54 = vor.u32 %v3060_v43, %v2580_v45  ;;  %v2522_v35 = vld [vmem:[%s3383_s4 + $0x2a8] sm:$0xf]  ;;  %v2395_v40 = vor.u32 %v3015_v34, %v2394_v32 }
  0x8a   : > { %1664 = vmatpush.bf16.msra.mxu2 %v2775_v63  ;;  %v3124_v49 = vld [vmem:[%s3383_s4 + $0x524] sm:$0xf]  ;;  %v2836_v50 = vld [vmem:[%s3383_s4 + $0x530] sm:$0xf0]  ;;  %v2711_v55 = vor.u32 %v3092_v47, %v2708_v48  ;;  %v2298_v63 = vld [vmem:[%s3383_s4 + $0xe8] sm:$0xf] }
  0x8b   : > { %1678 = vmatpush.bf16.msra.mxu3 %v2903_v4  ;;  %v3024_v52 = vld [vmem:[%s3383_s4 + $0x204] sm:$0xf]  ;;  %v2436_v53 = vld [vmem:[%s3383_s4 + $0x210] sm:$0xf0]  ;;  %v2839_v59 = vor.u32 %v3124_v49, %v2836_v50  ;;  %v3023_v4 = vld [vmem:[%s3383_s4 + $0x1f4] sm:$0xf0] }
  0x8c   : > { %v3056_v56 = vld [vmem:[%s3383_s4 + $0x304] sm:$0xf]  ;;  %v2564_v57 = vld [vmem:[%s3383_s4 + $0x310] sm:$0xf0]  ;;  %v2439_v3 = vor.u32 %v3024_v52, %v2436_v53  ;;  %v2427_v14 = vor.u32 %v3023_v4, %v2426_v2  ;;  %v3047_v36 = vld [vmem:[%s3383_s4 + $0x2b4] sm:$0xf0] }
  0x8d   : > { %1637 = vmatpush.bf16.msra.mxu0 %v2503_v10  ;;  %1651 = vmatpush.bf16.msra.mxu1 %v2631_v11  ;;  %v3088_v58 = vld [vmem:[%s3383_s4 + $0x404] sm:$0xf]  ;;  %v2692_v60 = vld [vmem:[%s3383_s4 + $0x410] sm:$0xf0]  ;;  %v2567_v7 = vor.u32 %v3056_v56, %v2564_v57  ;;  %v3087_v10 = vld [vmem:[%s3383_s4 + $0x3f4] sm:$0xf0]  ;;  %v2523_v41 = vor.u32 %v3047_v36, %v2522_v35 }
  0x8e   : > { %1665 = vmatpush.bf16.msra.mxu2 %v2759_v13  ;;  %v3120_v61 = vld [vmem:[%s3383_s4 + $0x504] sm:$0xf]  ;;  %v2820_v62 = vld [vmem:[%s3383_s4 + $0x510] sm:$0xf0]  ;;  %v2695_v8 = vor.u32 %v3088_v58, %v2692_v60  ;;  %v2299_v13 = vor.u32 %v2991_v0, %v2298_v63  ;;  %v2683_v20 = vor.u32 %v3087_v10, %v2682_v9  ;;  %v2250_v43 = vld [vmem:[%s3383_s4 + $0x88] sm:$0xf] }
  0x8f   : > { %1679 = vmatpush.bf16.msra.mxu3 %v2887_v17  ;;  %v2823_v11 = vor.u32 %v3120_v61, %v2820_v62  ;;  %v2987_v17 = vld [vmem:[%s3383_s4 + $0xd4] sm:$0xf0]  ;;  %v2378_v45 = vld [vmem:[%s3383_s4 + $0x188] sm:$0xf] }
  0x90   : > { %v3011_v48 = vld [vmem:[%s3383_s4 + $0x194] sm:$0xf0]  ;;  %v2506_v49 = vld [vmem:[%s3383_s4 + $0x288] sm:$0xf] }
  0x91   : > { %1638 = vmatpush.bf16.msra.mxu0 %v2487_v24  ;;  %1652 = vmatpush.bf16.msra.mxu1 %v2615_v25  ;;  %v2666_v24 = vld [vmem:[%s3383_s4 + $0x3c8] sm:$0xf]  ;;  %v3083_v25 = vld [vmem:[%s3383_s4 + $0x3d4] sm:$0xf0] }
  0x92   : > { %1666 = vmatpush.bf16.msra.mxu2 %v2743_v26  ;;  %v2283_v26 = vor.u32 %v2987_v17, %v2282_v16  ;;  %v2667_v33 = vor.u32 %v3083_v25, %v2666_v24  ;;  %v3043_v50 = vld [vmem:[%s3383_s4 + $0x294] sm:$0xf0]  ;;  %v2234_v56 = vld [vmem:[%s3383_s4 + $0x68] sm:$0xf] }
  0x93   : > { %1680 = vmatpush.bf16.msra.mxu3 %v2871_v31  ;;  %v2983_v31 = vld [vmem:[%s3383_s4 + $0xb4] sm:$0xf0]  ;;  %v2362_v58 = vld [vmem:[%s3383_s4 + $0x168] sm:$0xf] }
  0x94   : > { %v3075_v52 = vld [vmem:[%s3383_s4 + $0x394] sm:$0xf0]  ;;  %v2490_v61 = vld [vmem:[%s3383_s4 + $0x268] sm:$0xf] }
  0x95   : > { %1639 = vmatpush.bf16.msra.mxu0 %v2471_v37  ;;  %1653 = vmatpush.bf16.msra.mxu1 %v2599_v38  ;;  %v2650_v37 = vld [vmem:[%s3383_s4 + $0x3a8] sm:$0xf]  ;;  %v3079_v38 = vld [vmem:[%s3383_s4 + $0x3b4] sm:$0xf0] }
  0x96   : > { %1667 = vmatpush.bf16.msra.mxu2 %v2727_v39  ;;  %v2267_v39 = vor.u32 %v2983_v31, %v2266_v29  ;;  %v2651_v47 = vor.u32 %v3079_v38, %v2650_v37  ;;  %v2975_v57 = vld [vmem:[%s3383_s4 + $0x74] sm:$0xf0]  ;;  %v2618_v63 = vld [vmem:[%s3383_s4 + $0x368] sm:$0xf] }
  0x97   : > { %1681 = vmatpush.bf16.msra.mxu3 %v2855_v44  ;;  %v2979_v44 = vld [vmem:[%s3383_s4 + $0x94] sm:$0xf0]  ;;  %v2235_v2 = vor.u32 %v2975_v57, %v2234_v56  ;;  %v2218_v5 = vld [vmem:[%s3383_s4 + $0x48] sm:$0xf] }
  0x98   : > { %v2251_v53 = vor.u32 %v2979_v44, %v2250_v43  ;;  %v3007_v60 = vld [vmem:[%s3383_s4 + $0x174] sm:$0xf0]  ;;  %v2474_v10 = vld [vmem:[%s3383_s4 + $0x248] sm:$0xf] }
  0x99   : > { %1640 = vmatpush.bf16.msra.mxu0 %v2455_v51  ;;  %1654 = vmatpush.bf16.msra.mxu1 %v2583_v54  ;;  %v2634_v51 = vld [vmem:[%s3383_s4 + $0x388] sm:$0xf]  ;;  %v2379_v54 = vor.u32 %v3011_v48, %v2378_v45  ;;  %v3039_v62 = vld [vmem:[%s3383_s4 + $0x274] sm:$0xf0]  ;;  %v2989_v48 = vld [vmem:[%s3383_s4 + $0xec] sm:$0xf] }
  0x9a   : > { %1668 = vmatpush.bf16.msra.mxu2 %v2711_v55  ;;  %v2507_v55 = vor.u32 %v3043_v50, %v2506_v49  ;;  %v3071_v0 = vld [vmem:[%s3383_s4 + $0x374] sm:$0xf0]  ;;  %v2491_v4 = vor.u32 %v3039_v62, %v2490_v61  ;;  %v2202_v19 = vld [vmem:[%s3383_s4 + $0x28] sm:$0xf]  ;;  %v2300_v49 = vld [vmem:[%s3383_s4 + $0xf8] sm:$0xf0] }
  0x9b   : > { %1682 = vmatpush.bf16.msra.mxu3 %v2839_v59  ;;  %v2635_v59 = vor.u32 %v3075_v52, %v2634_v51  ;;  %v2971_v6 = vld [vmem:[%s3383_s4 + $0x54] sm:$0xf0]  ;;  %v2330_v21 = vld [vmem:[%s3383_s4 + $0x128] sm:$0xf]  ;;  %v3021_v52 = vld [vmem:[%s3383_s4 + $0x1ec] sm:$0xf]  ;;  %v2303_v57 = vor.u32 %v2989_v48, %v2300_v49 }
  0x9c   : > { %v3003_v9 = vld [vmem:[%s3383_s4 + $0x154] sm:$0xf0]  ;;  %v2458_v24 = vld [vmem:[%s3383_s4 + $0x228] sm:$0xf] }
  0x9d   : > { %1641 = vmatpush.bf16.msra.mxu0 %v2439_v3  ;;  %1655 = vmatpush.bf16.msra.mxu1 %v2567_v7  ;;  %v2363_v3 = vor.u32 %v3007_v60, %v2362_v58  ;;  %v2346_v7 = vld [vmem:[%s3383_s4 + $0x148] sm:$0xf]  ;;  %v2999_v23 = vld [vmem:[%s3383_s4 + $0x134] sm:$0xf0] }
  0x9e   : > { %1669 = vmatpush.bf16.msra.mxu2 %v2695_v8  ;;  %v2619_v8 = vor.u32 %v3071_v0, %v2618_v63  ;;  %v2347_v16 = vor.u32 %v3003_v9, %v2346_v7  ;;  %v3031_v25 = vld [vmem:[%s3383_s4 + $0x234] sm:$0xf0]  ;;  %v2186_v29 = vld [vmem:[%s3383_s4 + $0x8] sm:$0xf]  ;;  %v2331_v32 = vor.u32 %v2999_v23, %v2330_v21  ;;  %v2985_v63 = vld [vmem:[%s3383_s4 + $0xcc] sm:$0xf] }
  0x9f   : > { %1683 = vmatpush.bf16.msra.mxu3 %v2823_v11  ;;  %v3035_v11 = vld [vmem:[%s3383_s4 + $0x254] sm:$0xf0]  ;;  %v2314_v34 = vld [vmem:[%s3383_s4 + $0x108] sm:$0xf]  ;;  %v2284_v0 = vld [vmem:[%s3383_s4 + $0xd8] sm:$0xf0] }
  0xa0   : > { %1642 = vmatmul.bf16.vlgmr.msra.gmra.mxu0 %v3491_v18  ;;  %1656 = vmatmul.bf16.vlgmr.msra.gmra.mxu1 %v3503_v30  ;;  %v2475_v17 = vor.u32 %v3035_v11, %v2474_v10  ;;  %v2963_v31 = vld [vmem:[%s3383_s4 + $0x14] sm:$0xf0]  ;;  %v2442_v36 = vld [vmem:[%s3383_s4 + $0x208] sm:$0xf] }
  0xa1   : > { %1690 = vmatpush.bf16.msrb.mxu0 %v2299_v13  ;;  %1704 = vmatpush.bf16.msrb.mxu1 %v2427_v14  ;;  %v2602_v13 = vld [vmem:[%s3383_s4 + $0x348] sm:$0xf]  ;;  %v3067_v14 = vld [vmem:[%s3383_s4 + $0x354] sm:$0xf0]  ;;  %v2187_v45 = vor.u32 %v2963_v31, %v2186_v29  ;;  %v2380_v29 = vld [vmem:[%s3383_s4 + $0x198] sm:$0xf0] }
  0xa2   : > { %1718 = vmatpush.bf16.msrb.mxu2 %v2555_v15  ;;  %1684 = vmatmul.bf16.vlgmr.msra.gmra.mxu3 %v3558_v46  ;;  %v2219_v15 = vor.u32 %v2971_v6, %v2218_v5  ;;  %v2603_v22 = vor.u32 %v3067_v14, %v2602_v13  ;;  %v2995_v35 = vld [vmem:[%s3383_s4 + $0x114] sm:$0xf0]  ;;  %v2938_v44 = vld [vmem:[%s3383_s4 + $0x5e8] sm:$0xf]  ;;  %v2287_v6 = vor.u32 %v2985_v63, %v2284_v0  ;;  %v2981_v13 = vld [vmem:[%s3383_s4 + $0xac] sm:$0xf] }
  0xa3   : > { %1732 = vmatpush.bf16.msrb.mxu3 %v2683_v20  ;;  %1670 = vmatmul.bf16.vlgmr.msra.gmra.mxu2 %v3553_v42  ;;  %v2967_v20 = vld [vmem:[%s3383_s4 + $0x34] sm:$0xf0]  ;;  %v2315_v50 = vor.u32 %v2995_v35, %v2314_v34  ;;  %v2794_v58 = vld [vmem:[%s3383_s4 + $0x4c8] sm:$0xf]  ;;  %v2268_v14 = vld [vmem:[%s3383_s4 + $0xb8] sm:$0xf0] }
  0xa4   : > { %v3027_v38 = vld [vmem:[%s3383_s4 + $0x214] sm:$0xf0]  ;;  %v2922_v60 = vld [vmem:[%s3383_s4 + $0x5c8] sm:$0xf] }
  0xa5   : > { %1691 = vmatpush.bf16.msrb.mxu0 %v2283_v26  ;;  %1705 = vmatpush.bf16.msrb.mxu1 %v2411_v27  ;;  %v2586_v26 = vld [vmem:[%s3383_s4 + $0x328] sm:$0xf]  ;;  %v3063_v27 = vld [vmem:[%s3383_s4 + $0x334] sm:$0xf0]  ;;  %v2443_v51 = vor.u32 %v3027_v38, %v2442_v36 }
  0xa6   : > { %1719 = vmatpush.bf16.msrb.mxu2 %v2539_v28  ;;  %v2203_v28 = vor.u32 %v2967_v20, %v2202_v19  ;;  %v2587_v37 = vor.u32 %v3063_v27, %v2586_v26  ;;  %v3119_v43 = vld [vmem:[%s3383_s4 + $0x4f4] sm:$0xf0]  ;;  %v2778_v7 = vld [vmem:[%s3383_s4 + $0x4a8] sm:$0xf]  ;;  %v2271_v20 = vor.u32 %v2981_v13, %v2268_v14  ;;  %v2977_v26 = vld [vmem:[%s3383_s4 + $0x8c] sm:$0xf] }
  0xa7   : > { %1733 = vmatpush.bf16.msrb.mxu3 %v2667_v33  ;;  %v2459_v33 = vor.u32 %v3031_v25, %v2458_v24  ;;  %v3147_v62 = vld [vmem:[%s3383_s4 + $0x5d4] sm:$0xf0]  ;;  %v2906_v9 = vld [vmem:[%s3383_s4 + $0x5a8] sm:$0xf]  ;;  %v2252_v27 = vld [vmem:[%s3383_s4 + $0x98] sm:$0xf0] }
  0xa8   : > { %v2923_v5 = vor.u32 %v3147_v62, %v2922_v60  ;;  %v3143_v11 = vld [vmem:[%s3383_s4 + $0x5b4] sm:$0xf0]  ;;  %v2762_v21 = vld [vmem:[%s3383_s4 + $0x488] sm:$0xf]  ;;  %v2961_v14 = vld [vmem:[%s3383_s4 + $0xc] sm:$0xf] }
  0xa9   : > { %1692 = vmatpush.bf16.msrb.mxu0 %v2267_v39  ;;  %1706 = vmatpush.bf16.msrb.mxu1 %v2395_v40  ;;  %v2570_v39 = vld [vmem:[%s3383_s4 + $0x308] sm:$0xf]  ;;  %v3059_v40 = vld [vmem:[%s3383_s4 + $0x314] sm:$0xf0]  ;;  %v2907_v19 = vor.u32 %v3143_v11, %v2906_v9 }
  0xaa   : > { %1720 = vmatpush.bf16.msrb.mxu2 %v2523_v41  ;;  %v2810_v41 = vld [vmem:[%s3383_s4 + $0x4e8] sm:$0xf]  ;;  %v3139_v25 = vld [vmem:[%s3383_s4 + $0x594] sm:$0xf0] }
  0xab   : > { %1734 = vmatpush.bf16.msrb.mxu3 %v2651_v47  ;;  %v3151_v47 = vld [vmem:[%s3383_s4 + $0x5f4] sm:$0xf0]  ;;  %v2890_v23 = vld [vmem:[%s3383_s4 + $0x588] sm:$0xf] }
  0xac   : > { %v2939_v56 = vor.u32 %v3151_v47, %v2938_v44  ;;  %v2746_v34 = vld [vmem:[%s3383_s4 + $0x468] sm:$0xf]  ;;  %v3103_v35 = vld [vmem:[%s3383_s4 + $0x474] sm:$0xf0] }
  0xad   : > { %1693 = vmatpush.bf16.msrb.mxu0 %v2251_v53  ;;  %1707 = vmatpush.bf16.msrb.mxu1 %v2379_v54  ;;  %v2428_v53 = vld [vmem:[%s3383_s4 + $0x1f8] sm:$0xf0]  ;;  %v2571_v54 = vor.u32 %v3059_v40, %v2570_v39  ;;  %v2874_v36 = vld [vmem:[%s3383_s4 + $0x568] sm:$0xf]  ;;  %v3135_v38 = vld [vmem:[%s3383_s4 + $0x574] sm:$0xf0]  ;;  %v2747_v44 = vor.u32 %v3103_v35, %v2746_v34 }
  0xae   : > { %1721 = vmatpush.bf16.msrb.mxu2 %v2507_v55  ;;  %v2811_v55 = vor.u32 %v3119_v43, %v2810_v41  ;;  %v2431_v61 = vor.u32 %v3021_v52, %v2428_v53  ;;  %v2973_v39 = vld [vmem:[%s3383_s4 + $0x6c] sm:$0xf]  ;;  %v2236_v40 = vld [vmem:[%s3383_s4 + $0x78] sm:$0xf0]  ;;  %v2730_v48 = vld [vmem:[%s3383_s4 + $0x448] sm:$0xf] }
  0xaf   : > { %1735 = vmatpush.bf16.msrb.mxu3 %v2635_v59  ;;  %v3115_v59 = vld [vmem:[%s3383_s4 + $0x4d4] sm:$0xf0]  ;;  %v3005_v41 = vld [vmem:[%s3383_s4 + $0x16c] sm:$0xf]  ;;  %v2364_v43 = vld [vmem:[%s3383_s4 + $0x178] sm:$0xf0]  ;;  %v2239_v47 = vor.u32 %v2973_v39, %v2236_v40 }
  0xb0   : > { %v3099_v49 = vld [vmem:[%s3383_s4 + $0x454] sm:$0xf0]  ;;  %v2969_v53 = vld [vmem:[%s3383_s4 + $0x4c] sm:$0xf]  ;;  %v2714_v60 = vld [vmem:[%s3383_s4 + $0x428] sm:$0xf] }
  0xb1   : > { %1694 = vmatpush.bf16.msrb.mxu0 %v2235_v2  ;;  %1708 = vmatpush.bf16.msrb.mxu1 %v2363_v3  ;;  %v3017_v2 = vld [vmem:[%s3383_s4 + $0x1cc] sm:$0xf]  ;;  %v2412_v3 = vld [vmem:[%s3383_s4 + $0x1d8] sm:$0xf0]  ;;  %v3131_v52 = vld [vmem:[%s3383_s4 + $0x554] sm:$0xf0] }
  0xb2   : > { %1722 = vmatpush.bf16.msrb.mxu2 %v2491_v4  ;;  %v2795_v4 = vor.u32 %v3115_v59, %v2794_v58  ;;  %v2415_v10 = vor.u32 %v3017_v2, %v2412_v3  ;;  %v2842_v62 = vld [vmem:[%s3383_s4 + $0x528] sm:$0xf]  ;;  %v3127_v0 = vld [vmem:[%s3383_s4 + $0x534] sm:$0xf0]  ;;  %v2965_v2 = vld [vmem:[%s3383_s4 + $0x2c] sm:$0xf] }
  0xb3   : > { %1736 = vmatpush.bf16.msrb.mxu3 %v2619_v8  ;;  %v3111_v8 = vld [vmem:[%s3383_s4 + $0x4b4] sm:$0xf0]  ;;  %v2204_v3 = vld [vmem:[%s3383_s4 + $0x38] sm:$0xf0]  ;;  %v2843_v9 = vor.u32 %v3127_v0, %v2842_v62  ;;  %v2826_v11 = vld [vmem:[%s3383_s4 + $0x508] sm:$0xf] }
  0xb4   : > { %v3123_v13 = vld [vmem:[%s3383_s4 + $0x514] sm:$0xf0]  ;;  %v2668_v40 = vld [vmem:[%s3383_s4 + $0x3d8] sm:$0xf0]  ;;  %v3041_v62 = vld [vmem:[%s3383_s4 + $0x28c] sm:$0xf] }
  0xb5   : > { %1695 = vmatpush.bf16.msrb.mxu0 %v2219_v15  ;;  %1709 = vmatpush.bf16.msrb.mxu1 %v2347_v16  ;;  %v3013_v15 = vld [vmem:[%s3383_s4 + $0x1ac] sm:$0xf]  ;;  %v2396_v16 = vld [vmem:[%s3383_s4 + $0x1b8] sm:$0xf0] }
  0xb6   : > { %1723 = vmatpush.bf16.msrb.mxu2 %v2475_v17  ;;  %v2779_v17 = vor.u32 %v3111_v8, %v2778_v7  ;;  %v2399_v24 = vor.u32 %v3013_v15, %v2396_v16  ;;  %v2698_v7 = vld [vmem:[%s3383_s4 + $0x408] sm:$0xf]  ;;  %v3091_v8 = vld [vmem:[%s3383_s4 + $0x414] sm:$0xf0]  ;;  %v2188_v16 = vld [vmem:[%s3383_s4 + $0x18] sm:$0xf0] }
  0xb7   : > { %1737 = vmatpush.bf16.msrb.mxu3 %v2603_v22  ;;  %v3107_v22 = vld [vmem:[%s3383_s4 + $0x494] sm:$0xf0]  ;;  %v3073_v0 = vld [vmem:[%s3383_s4 + $0x38c] sm:$0xf] }
  0xb8   : > { %v2763_v31 = vor.u32 %v3107_v22, %v2762_v21  ;;  %v2556_v21 = vld [vmem:[%s3383_s4 + $0x2f8] sm:$0xf0]  ;;  %v3085_v22 = vld [vmem:[%s3383_s4 + $0x3ec] sm:$0xf] }
  0xb9   : > { %1696 = vmatpush.bf16.msrb.mxu0 %v2203_v28  ;;  %1710 = vmatpush.bf16.msrb.mxu1 %v2331_v32  ;;  %v3009_v28 = vld [vmem:[%s3383_s4 + $0x18c] sm:$0xf]  ;;  %v2891_v32 = vor.u32 %v3139_v25, %v2890_v23  ;;  %v2699_v23 = vor.u32 %v3091_v8, %v2698_v7 }
  0xba   : > { %1724 = vmatpush.bf16.msrb.mxu2 %v2459_v33  ;;  %v2255_v33 = vor.u32 %v2977_v26, %v2252_v27  ;;  %v3117_v25 = vld [vmem:[%s3383_s4 + $0x4ec] sm:$0xf]  ;;  %v2812_v26 = vld [vmem:[%s3383_s4 + $0x4f8] sm:$0xf0]  ;;  %v2827_v27 = vor.u32 %v3123_v13, %v2826_v11 }
  0xbb   : > { %1738 = vmatpush.bf16.msrb.mxu3 %v2587_v37  ;;  %v2383_v37 = vor.u32 %v3009_v28, %v2380_v29  ;;  %v2191_v28 = vor.u32 %v2961_v14, %v2188_v16  ;;  %v3149_v29 = vld [vmem:[%s3383_s4 + $0x5ec] sm:$0xf]  ;;  %v2815_v35 = vor.u32 %v3117_v25, %v2812_v26  ;;  %v2620_v14 = vld [vmem:[%s3383_s4 + $0x378] sm:$0xf0] }
  0xbc   : > { %v3069_v11 = vld [vmem:[%s3383_s4 + $0x36c] sm:$0xf]  ;;  %v2748_v16 = vld [vmem:[%s3383_s4 + $0x478] sm:$0xf0] }
  0xbd   : > { %1697 = vmatpush.bf16.msrb.mxu0 %v2187_v45  ;;  %1711 = vmatpush.bf16.msrb.mxu1 %v2315_v50  ;;  %v2875_v45 = vor.u32 %v3135_v38, %v2874_v36  ;;  %v2858_v50 = vld [vmem:[%s3383_s4 + $0x548] sm:$0xf]  ;;  %v3049_v36 = vld [vmem:[%s3383_s4 + $0x2cc] sm:$0xf] }
  0xbe   : > { %1725 = vmatpush.bf16.msrb.mxu2 %v2443_v51  ;;  %v2367_v51 = vor.u32 %v3005_v41, %v2364_v43  ;;  %v2859_v58 = vor.u32 %v3131_v52, %v2858_v50  ;;  %v3081_v38 = vld [vmem:[%s3383_s4 + $0x3cc] sm:$0xf]  ;;  %v2796_v43 = vld [vmem:[%s3383_s4 + $0x4d8] sm:$0xf0] }
  0xbf   : > { %1739 = vmatpush.bf16.msrb.mxu3 %v2571_v54  ;;  %v2220_v54 = vld [vmem:[%s3383_s4 + $0x58] sm:$0xf0]  ;;  %v3113_v41 = vld [vmem:[%s3383_s4 + $0x4cc] sm:$0xf] }
  0xc0   : > { %1698 = vmatmul.bf16.vlgmr.msrb.gmra.mxu0 %v3475_v1  ;;  %1712 = vmatmul.bf16.vlgmr.msrb.gmra.mxu1 %v3485_v12  ;;  %v2223_v59 = vor.u32 %v2969_v53, %v2220_v54  ;;  %v3045_v50 = vld [vmem:[%s3383_s4 + $0x2ac] sm:$0xf]  ;;  %v2652_v54 = vld [vmem:[%s3383_s4 + $0x3b8] sm:$0xf0] }
  0xc1   : > { %1746 = vmatpush.bf16.msra.mxu0 %v2811_v55  ;;  %1760 = vmatpush.bf16.msra.mxu1 %v2939_v56  ;;  %v3001_v55 = vld [vmem:[%s3383_s4 + $0x14c] sm:$0xf]  ;;  %v2348_v56 = vld [vmem:[%s3383_s4 + $0x158] sm:$0xf0] }
  0xc2   : > { %1774 = vmatpush.bf16.msra.mxu2 %v2303_v57  ;;  %1740 = vmatmul.bf16.vlgmr.msrb.gmra.mxu3 %v3503_v30  ;;  %v2731_v57 = vor.u32 %v3099_v49, %v2730_v48  ;;  %v2351_v63 = vor.u32 %v3001_v55, %v2348_v56  ;;  %v2671_v48 = vor.u32 %v3081_v38, %v2668_v40  ;;  %v3077_v52 = vld [vmem:[%s3383_s4 + $0x3ac] sm:$0xf]  ;;  %v2780_v56 = vld [vmem:[%s3383_s4 + $0x4b8] sm:$0xf0] }
  0xc3   : > { %1788 = vmatpush.bf16.msra.mxu3 %v2431_v61  ;;  %1726 = vmatmul.bf16.vlgmr.msrb.gmra.mxu2 %v3491_v18  ;;  %v3095_v61 = vld [vmem:[%s3383_s4 + $0x434] sm:$0xf0]  ;;  %v2799_v49 = vor.u32 %v3113_v41, %v2796_v43  ;;  %v3109_v55 = vld [vmem:[%s3383_s4 + $0x4ac] sm:$0xf]  ;;  %v2460_v38 = vld [vmem:[%s3383_s4 + $0x238] sm:$0xf0] }
  0xc4   : > { %v3065_v25 = vld [vmem:[%s3383_s4 + $0x34c] sm:$0xf]  ;;  %v2588_v41 = vld [vmem:[%s3383_s4 + $0x338] sm:$0xf0] }
  0xc5   : > { %1747 = vmatpush.bf16.msra.mxu0 %v2795_v4  ;;  %1761 = vmatpush.bf16.msra.mxu1 %v2923_v5  ;;  %v2997_v4 = vld [vmem:[%s3383_s4 + $0x12c] sm:$0xf]  ;;  %v2332_v5 = vld [vmem:[%s3383_s4 + $0x138] sm:$0xf0] }
  0xc6   : > { %1775 = vmatpush.bf16.msra.mxu2 %v2287_v6  ;;  %v2715_v6 = vor.u32 %v3095_v61, %v2714_v60  ;;  %v2335_v15 = vor.u32 %v2997_v4, %v2332_v5  ;;  %v2655_v60 = vor.u32 %v3077_v52, %v2652_v54  ;;  %v2783_v61 = vor.u32 %v3109_v55, %v2780_v56  ;;  %v2764_v4 = vld [vmem:[%s3383_s4 + $0x498] sm:$0xf0]  ;;  %v3093_v43 = vld [vmem:[%s3383_s4 + $0x42c] sm:$0xf] }
  0xc7   : > { %1789 = vmatpush.bf16.msra.mxu3 %v2415_v10  ;;  %v2207_v10 = vor.u32 %v2965_v2, %v2204_v3  ;;  %v2636_v2 = vld [vmem:[%s3383_s4 + $0x398] sm:$0xf0]  ;;  %v3105_v3 = vld [vmem:[%s3383_s4 + $0x48c] sm:$0xf] }
  0xc8   : > { %v2892_v5 = vld [vmem:[%s3383_s4 + $0x598] sm:$0xf0]  ;;  %v2639_v7 = vor.u32 %v3073_v0, %v2636_v2  ;;  %v2767_v8 = vor.u32 %v3105_v3, %v2764_v4  ;;  %v3025_v52 = vld [vmem:[%s3383_s4 + $0x20c] sm:$0xf] }
  0xc9   : > { %1748 = vmatpush.bf16.msra.mxu0 %v2779_v17  ;;  %1762 = vmatpush.bf16.msra.mxu1 %v2907_v19  ;;  %v2993_v17 = vld [vmem:[%s3383_s4 + $0x10c] sm:$0xf]  ;;  %v2316_v19 = vld [vmem:[%s3383_s4 + $0x118] sm:$0xf0] }
  0xca   : > { %1776 = vmatpush.bf16.msra.mxu2 %v2271_v20  ;;  %v3053_v20 = vld [vmem:[%s3383_s4 + $0x2ec] sm:$0xf]  ;;  %v2572_v56 = vld [vmem:[%s3383_s4 + $0x318] sm:$0xf0] }
  0xcb   : > { %1790 = vmatpush.bf16.msra.mxu3 %v2399_v24  ;;  %v2684_v24 = vld [vmem:[%s3383_s4 + $0x3f8] sm:$0xf0]  ;;  %v3057_v54 = vld [vmem:[%s3383_s4 + $0x30c] sm:$0xf] }
  0xcc   : > { %v2687_v34 = vor.u32 %v3085_v22, %v2684_v24  ;;  %v2476_v24 = vld [vmem:[%s3383_s4 + $0x258] sm:$0xf0] }
  0xcd   : > { %1749 = vmatpush.bf16.msra.mxu0 %v2763_v31  ;;  %1763 = vmatpush.bf16.msra.mxu1 %v2891_v32  ;;  %v2940_v31 = vld [vmem:[%s3383_s4 + $0x5f8] sm:$0xf0]  ;;  %v2319_v32 = vor.u32 %v2993_v17, %v2316_v19  ;;  %v3133_v17 = vld [vmem:[%s3383_s4 + $0x56c] sm:$0xf] }
  0xce   : > { %1777 = vmatpush.bf16.msra.mxu2 %v2255_v33  ;;  %v2559_v33 = vor.u32 %v3053_v20, %v2556_v21  ;;  %v2943_v39 = vor.u32 %v3149_v29, %v2940_v31  ;;  %v2876_v19 = vld [vmem:[%s3383_s4 + $0x578] sm:$0xf0]  ;;  %v2623_v21 = vor.u32 %v3069_v11, %v2620_v14  ;;  %v3129_v31 = vld [vmem:[%s3383_s4 + $0x54c] sm:$0xf] }
  0xcf   : > { %1791 = vmatpush.bf16.msra.mxu3 %v2383_v37  ;;  %v2540_v37 = vld [vmem:[%s3383_s4 + $0x2d8] sm:$0xf0]  ;;  %v2879_v26 = vor.u32 %v3133_v17, %v2876_v19 }
  0xd0   : > { %v2732_v29 = vld [vmem:[%s3383_s4 + $0x458] sm:$0xf0] }
  0xd1   : > { %1750 = vmatpush.bf16.msra.mxu0 %v2747_v44  ;;  %1764 = vmatpush.bf16.msra.mxu1 %v2875_v45  ;;  %v3145_v44 = vld [vmem:[%s3383_s4 + $0x5cc] sm:$0xf]  ;;  %v2924_v45 = vld [vmem:[%s3383_s4 + $0x5d8] sm:$0xf0] }
  0xd2   : > { %1778 = vmatpush.bf16.msra.mxu2 %v2239_v47  ;;  %v2543_v47 = vor.u32 %v3049_v36, %v2540_v37  ;;  %v2927_v53 = vor.u32 %v3145_v44, %v2924_v45  ;;  %v3029_v37 = vld [vmem:[%s3383_s4 + $0x22c] sm:$0xf]  ;;  %v2716_v44 = vld [vmem:[%s3383_s4 + $0x438] sm:$0xf0] }
  0xd3   : > { %1792 = vmatpush.bf16.msra.mxu3 %v2367_v51  ;;  %v2524_v51 = vld [vmem:[%s3383_s4 + $0x2b8] sm:$0xf0] }
  0xd5   : > { %1751 = vmatpush.bf16.msra.mxu0 %v2731_v57  ;;  %1765 = vmatpush.bf16.msra.mxu1 %v2859_v58  ;;  %v3141_v57 = vld [vmem:[%s3383_s4 + $0x5ac] sm:$0xf]  ;;  %v2908_v58 = vld [vmem:[%s3383_s4 + $0x5b8] sm:$0xf0] }
  0xd6   : > { %1779 = vmatpush.bf16.msra.mxu2 %v2223_v59  ;;  %v2527_v59 = vor.u32 %v3045_v50, %v2524_v51  ;;  %v2719_v51 = vor.u32 %v3093_v43, %v2716_v44 }
  0xd7   : > { %1793 = vmatpush.bf16.msra.mxu3 %v2351_v63  ;;  %v2508_v63 = vld [vmem:[%s3383_s4 + $0x298] sm:$0xf0] }
  0xd9   : > { %1752 = vmatpush.bf16.msra.mxu0 %v2715_v6  ;;  %1766 = vmatpush.bf16.msra.mxu1 %v2843_v9  ;;  %v2511_v6 = vor.u32 %v3041_v62, %v2508_v63  ;;  %v3037_v9 = vld [vmem:[%s3383_s4 + $0x26c] sm:$0xf]  ;;  %v2575_v62 = vor.u32 %v3057_v54, %v2572_v56 }
  0xda   : > { %1780 = vmatpush.bf16.msra.mxu2 %v2207_v10  ;;  %v2492_v10 = vld [vmem:[%s3383_s4 + $0x278] sm:$0xf0] }
  0xdb   : > { %1794 = vmatpush.bf16.msra.mxu3 %v2335_v15  ;;  %v3101_v15 = vld [vmem:[%s3383_s4 + $0x46c] sm:$0xf]  ;;  %v2495_v20 = vor.u32 %v3037_v9, %v2492_v10 }
  0xdc   : > { %v2751_v22 = vor.u32 %v3101_v15, %v2748_v16 }
  0xdd   : > { %1753 = vmatpush.bf16.msra.mxu0 %v2699_v23  ;;  %1767 = vmatpush.bf16.msra.mxu1 %v2827_v27  ;;  %v3033_v23 = vld [vmem:[%s3383_s4 + $0x24c] sm:$0xf]  ;;  %v2604_v27 = vld [vmem:[%s3383_s4 + $0x358] sm:$0xf0]  ;;  %v1545_v45 = vpop.f32.mrf.mxu1 }
  0xde   : > { %1781 = vmatpush.bf16.msra.mxu2 %v2191_v28  ;;  %v3097_v28 = vld [vmem:[%s3383_s4 + $0x44c] sm:$0xf] }
  0xdf   : > { %1795 = vmatpush.bf16.msra.mxu3 %v2319_v32  ;;  %v2860_v32 = vld [vmem:[%s3383_s4 + $0x558] sm:$0xf0] }
  0xe0   : > { %1754 = vmatmul.bf16.vlgmr.msra.gmra.mxu0 %v3553_v42  ;;  %1768 = vmatmul.bf16.vlgmr.msra.gmra.mxu1 %v3558_v46  ;;  %v2863_v40 = vor.u32 %v3129_v31, %v2860_v32 }
  0xe1   : > { %1802 = vmatpush.bf16.msrb.mxu0 %v2559_v33  ;;  %1816 = vmatpush.bf16.msrb.mxu1 %v2687_v34  ;;  %v2479_v33 = vor.u32 %v3033_v23, %v2476_v24  ;;  %v2607_v34 = vor.u32 %v3065_v25, %v2604_v27  ;;  %v1531_v36 = vpop.f32.mrf.mxu0 }
  0xe2   : > { %1830 = vmatpush.bf16.msrb.mxu2 %v2815_v35  ;;  %1796 = vmatmul.bf16.vlgmr.msra.gmra.mxu3 %v3485_v12  ;;  %v3137_v12 = vld [vmem:[%s3383_s4 + $0x58c] sm:$0xf]  ;;  %v2735_v35 = vor.u32 %v3097_v28, %v2732_v29  ;;  %v1546_v0 = vadd.f32 %v1545_v45, %v1531_v36 }
  0xe3   : > { %1844 = vmatpush.bf16.msrb.mxu3 %v2943_v39  ;;  %1782 = vmatmul.bf16.vlgmr.msra.gmra.mxu2 %v3475_v1  ;;  %v2911_v1 = vor.u32 %v3141_v57, %v2908_v58  ;;  %v2895_v13 = vor.u32 %v3137_v12, %v2892_v5  ;;  %v3061_v39 = vld [vmem:[%s3383_s4 + $0x32c] sm:$0xf]  ;;  %v2700_v58 = vld [vmem:[%s3383_s4 + $0x418] sm:$0xf0] }
  0xe4   : > { %v2591_v50 = vor.u32 %v3061_v39, %v2588_v41  ;;  %v3089_v57 = vld [vmem:[%s3383_s4 + $0x40c] sm:$0xf] }
  0xe5   : > { %1803 = vmatpush.bf16.msrb.mxu0 %v2543_v47  ;;  %1817 = vmatpush.bf16.msrb.mxu1 %v2671_v48  ;;  %v3125_v47 = vld [vmem:[%s3383_s4 + $0x52c] sm:$0xf]  ;;  %v2844_v48 = vld [vmem:[%s3383_s4 + $0x538] sm:$0xf0]  ;;  %v2703_v63 = vor.u32 %v3089_v57, %v2700_v58  ;;  %v1547_v4 = vpop.f32.mrf.mxu1  ;;  %v1573_v5 = vpop.f32.mrf.mxu3 }
  0xe6   : > { %1831 = vmatpush.bf16.msrb.mxu2 %v2799_v49  ;;  %v2463_v49 = vor.u32 %v3029_v37, %v2460_v38  ;;  %v2847_v55 = vor.u32 %v3125_v47, %v2844_v48  ;;  %v327_v37 = vld [vmem:[#allocation2] sm:$0xff] }
  0xe7   : > { %1845 = vmatpush.bf16.msrb.mxu3 %v2927_v53  ;;  %v2444_v53 = vld [vmem:[%s3383_s4 + $0x218] sm:$0xf0]  ;;  %v331_v48 = vld [vmem:[#allocation2 + $0x20] sm:$0xff] }
  0xe9   : > { %1804 = vmatpush.bf16.msrb.mxu0 %v2527_v59  ;;  %1818 = vmatpush.bf16.msrb.mxu1 %v2655_v60  ;;  %v3121_v59 = vld [vmem:[%s3383_s4 + $0x50c] sm:$0xf]  ;;  %v2828_v60 = vld [vmem:[%s3383_s4 + $0x518] sm:$0xf0]  ;;  %v1533_v2 = vpop.f32.mrf.mxu0 }
  0xea   : > { %1832 = vmatpush.bf16.msrb.mxu2 %v2783_v61  ;;  %v2447_v61 = vor.u32 %v3025_v52, %v2444_v53  ;;  %v1559_v3 = vpop.f32.mrf.mxu2 }
  0xeb   : > { %1846 = vmatpush.bf16.msrb.mxu3 %v2911_v1  ;;  %v2831_v1 = vor.u32 %v3121_v59, %v2828_v60  ;;  %v1560_v12 = vadd.f32 %v1559_v3, %v1546_v0 }
  0xed   : > { %1805 = vmatpush.bf16.msrb.mxu0 %v2511_v6  ;;  %1819 = vmatpush.bf16.msrb.mxu1 %v2639_v7  ;;  %v1574_v6 = vadd.f32 %v1573_v5, %v1560_v12  ;;  %v1548_v7 = vadd.f32 %v1547_v4, %v1533_v2  ;;  %v1575_v16 = vpop.f32.mrf.mxu3 }
  0xee   : > { %1833 = vmatpush.bf16.msrb.mxu2 %v2767_v8 }
  0xef   : > { %1847 = vmatpush.bf16.msrb.mxu3 %v2895_v13  ;;  %v326_v13 = vld [vmem:[#allocation2 + $0x30] sm:$0xff] }
  0xf1   : > { %1806 = vmatpush.bf16.msrb.mxu0 %v2495_v20  ;;  %1820 = vmatpush.bf16.msrb.mxu1 %v2623_v21  ;;  %v330_v21 = vld [vmem:[#allocation2 + $0x8] sm:$0xff] }
  0xf2   : > { %1834 = vmatpush.bf16.msrb.mxu2 %v2751_v22  ;;  %v1561_v9 = vpop.f32.mrf.mxu2 }
  0xf3   : > { %1848 = vmatpush.bf16.msrb.mxu3 %v2879_v26  ;;  %v1562_v14 = vadd.f32 %v1561_v9, %v1548_v7  ;;  %v332_v9 = vld [vmem:[#allocation2 + $0x28] sm:$0xff] }
  0xf5   : > { %1807 = vmatpush.bf16.msrb.mxu0 %v2479_v33  ;;  %1821 = vmatpush.bf16.msrb.mxu1 %v2607_v34 }
  0xf6   : > { %1835 = vmatpush.bf16.msrb.mxu2 %v2735_v35 }
  0xf7   : > { %1849 = vmatpush.bf16.msrb.mxu3 %v2863_v40 }
  0xf9   : > { %1808 = vmatpush.bf16.msrb.mxu0 %v2463_v49  ;;  %1822 = vmatpush.bf16.msrb.mxu1 %v2591_v50 }
  0xfa   : > { %1836 = vmatpush.bf16.msrb.mxu2 %v2719_v51 }
  0xfb   : > { %1850 = vmatpush.bf16.msrb.mxu3 %v2847_v55 }
  0xfd   : > { %1809 = vmatpush.bf16.msrb.mxu0 %v2447_v61  ;;  %1823 = vmatpush.bf16.msrb.mxu1 %v2575_v62  ;;  %v1587_v8 = vpop.f32.mrf.mxu0  ;;  %v1601_v11 = vpop.f32.mrf.mxu1 }
  0xfe   : > { %1837 = vmatpush.bf16.msrb.mxu2 %v2703_v63  ;;  %v1588_v10 = vadd.f32 %v1587_v8, %v1574_v6 }
  0xff   : > { %1851 = vmatpush.bf16.msrb.mxu3 %v2831_v1  ;;  %v328_v1 = vld [vmem:[#allocation2 + $0x18] sm:$0xff] }
 0x100   : > { %1810 = vmatmul.bf16.vlgmr.msrb.gmra.mxu0 %v3491_v18  ;;  %1824 = vmatmul.bf16.vlgmr.msrb.gmra.mxu1 %v3503_v30  ;;  %v1602_v15 = vadd.f32 %v1601_v11, %v1588_v10  ;;  %v1576_v18 = vadd.f32 %v1575_v16, %v1562_v14 }
 0x101   : > { %1838 = vmatmul.bf16.vlgmr.msrb.gmra.mxu2 %v3553_v42 }
 0x102   : > { %1852 = vmatmul.bf16.vlgmr.msrb.gmra.mxu3 %v3558_v46  ;;  %v1858_v17 = vadd.f32 %v1602_v15, %v326_v13 }
 0x104   : > { %1866 = vst [vmem:[#allocation2 + $0x30] sm:$0xff] %v1858_v17 }
 0x105   : > { %v1589_v19 = vpop.f32.mrf.mxu0  ;;  %v1603_v30 = vpop.f32.mrf.mxu1 }
 0x106   : > { %v1590_v20 = vadd.f32 %v1589_v19, %v1576_v18  ;;  %v1615_v46 = vpop.f32.mrf.mxu2  ;;  %v1629_v23 = vpop.f32.mrf.mxu3 }
 0x107   : > { %v1630_v24 = vadd.f32 %v1629_v23, %v1615_v46 }
 0x108   : > { %v1604_v42 = vadd.f32 %v1603_v30, %v1590_v20 }
 0x10a   : > { %v1862_v22 = vadd.f32 %v1604_v42, %v330_v21 }
 0x10c   : > { %1870 = vst [vmem:[#allocation2 + $0x8] sm:$0xff] %v1862_v22 }
 0x10e   : > { %v1617_v25 = vpop.f32.mrf.mxu2  ;;  %v1631_v26 = vpop.f32.mrf.mxu3 }
 0x10f   : > { %v1632_v33 = vadd.f32 %v1631_v26, %v1617_v25 }
 0x11d   : > { %v1643_v27 = vpop.f32.mrf.mxu0  ;;  %v1657_v29 = vpop.f32.mrf.mxu1 }
 0x11e   : > { %v1644_v28 = vadd.f32 %v1643_v27, %v1630_v24  ;;  %v329_v24 = vld [vmem:[#allocation2 + $0x10] sm:$0xff] }
 0x120   : > { %v1658_v31 = vadd.f32 %v1657_v29, %v1644_v28 }
 0x125   : > { %v1645_v35 = vpop.f32.mrf.mxu0  ;;  %v1685_v36 = vpop.f32.mrf.mxu3 }
 0x126   : > { %v1671_v32 = vpop.f32.mrf.mxu2  ;;  %v1646_v38 = vadd.f32 %v1645_v35, %v1632_v33  ;;  %v1659_v40 = vpop.f32.mrf.mxu1  ;;  %v333_v33 = vld [vmem:[#allocation2 + $0x38] sm:$0xff] }
 0x127   : > { %v1672_v34 = vadd.f32 %v1671_v32, %v1658_v31 }
 0x128   : > { %v1660_v43 = vadd.f32 %v1659_v40, %v1646_v38 }
 0x129   : > { %v1686_v39 = vadd.f32 %v1685_v36, %v1672_v34 }
 0x12b   : > { %v1859_v41 = vadd.f32 %v1686_v39, %v327_v37 }
 0x12d   : > { %1867 = vst [vmem:[#allocation2] sm:$0xff] %v1859_v41  ;;  %v1687_v47 = vpop.f32.mrf.mxu3 }
 0x12e   : > { %v1673_v44 = vpop.f32.mrf.mxu2 }
 0x12f   : > { %v1674_v45 = vadd.f32 %v1673_v44, %v1660_v43 }
 0x131   : > { %v1688_v49 = vadd.f32 %v1687_v47, %v1674_v45 }
 0x133   : > { %v1863_v50 = vadd.f32 %v1688_v49, %v331_v48 }
 0x135   : > { %1871 = vst [vmem:[#allocation2 + $0x20] sm:$0xff] %v1863_v50 }
 0x13d   : > { %v1699_v51 = vpop.f32.mrf.mxu0  ;;  %v1713_v52 = vpop.f32.mrf.mxu1 }
 0x13e   : > { %v1714_v53 = vadd.f32 %v1713_v52, %v1699_v51 }
 0x145   : > { %v1701_v54 = vpop.f32.mrf.mxu0  ;;  %v1715_v56 = vpop.f32.mrf.mxu1 }
 0x146   : > { %v1727_v55 = vpop.f32.mrf.mxu2  ;;  %v1741_v58 = vpop.f32.mrf.mxu3  ;;  %v1716_v60 = vadd.f32 %v1715_v56, %v1701_v54 }
 0x147   : > { %v1728_v57 = vadd.f32 %v1727_v55, %v1714_v53 }
 0x149   : > { %v1742_v59 = vadd.f32 %v1741_v58, %v1728_v57 }
 0x14e   : > { %v1729_v62 = vpop.f32.mrf.mxu2  ;;  %v1743_v4 = vpop.f32.mrf.mxu3 }
 0x14f   : > { %v1730_v2 = vadd.f32 %v1729_v62, %v1716_v60 }
 0x151   : > { %v1744_v5 = vadd.f32 %v1743_v4, %v1730_v2 }
 0x15d   : > { %v1755_v61 = vpop.f32.mrf.mxu0  ;;  %v1769_v0 = vpop.f32.mrf.mxu1 }
 0x15e   : > { %v1756_v63 = vadd.f32 %v1755_v61, %v1742_v59 }
 0x160   : > { %v1770_v3 = vadd.f32 %v1769_v0, %v1756_v63 }
 0x162   : > { %v1860_v12 = vadd.f32 %v1770_v3, %v328_v1 }
 0x164   : > { %1868 = vst [vmem:[#allocation2 + $0x18] sm:$0xff] %v1860_v12 }
 0x165   : > { %v1757_v6 = vpop.f32.mrf.mxu0  ;;  %v1771_v8 = vpop.f32.mrf.mxu1 }
 0x166   : > { %v1758_v7 = vadd.f32 %v1757_v6, %v1744_v5  ;;  %v1783_v13 = vpop.f32.mrf.mxu2  ;;  %v1797_v14 = vpop.f32.mrf.mxu3 }
 0x167   : > { %v1798_v16 = vadd.f32 %v1797_v14, %v1783_v13 }
 0x168   : > { %v1772_v10 = vadd.f32 %v1771_v8, %v1758_v7 }
 0x16a   : > { %v1864_v11 = vadd.f32 %v1772_v10, %v332_v9 }
 0x16c   : > { %1872 = vst [vmem:[#allocation2 + $0x28] sm:$0xff] %v1864_v11 }
 0x16e   : > { %v1785_v15 = vpop.f32.mrf.mxu2  ;;  %v1799_v17 = vpop.f32.mrf.mxu3 }
 0x16f   : > { %v1800_v42 = vadd.f32 %v1799_v17, %v1785_v15 }
 0x17d   : > { %v1811_v18 = vpop.f32.mrf.mxu0  ;;  %v1825_v20 = vpop.f32.mrf.mxu1 }
 0x17e   : > { %v1812_v19 = vadd.f32 %v1811_v18, %v1798_v16 }
 0x180   : > { %v1826_v30 = vadd.f32 %v1825_v20, %v1812_v19 }
 0x184   : > { %v1839_v21 = vpop.f32.mrf.mxu2 }
 0x185   : > { %v1840_v22 = vadd.f32 %v1839_v21, %v1826_v30  ;;  %v1853_v46 = vpop.f32.mrf.mxu3  ;;  %v1813_v23 = vpop.f32.mrf.mxu0 }
 0x186   : > { %v1814_v26 = vadd.f32 %v1813_v23, %v1800_v42  ;;  %v1827_v28 = vpop.f32.mrf.mxu1 }
 0x187   : > { %v1854_v25 = vadd.f32 %v1853_v46, %v1840_v22 }
 0x188   : > { %v1828_v29 = vadd.f32 %v1827_v28, %v1814_v26 }
 0x189   : > { %v1861_v27 = vadd.f32 %v1854_v25, %v329_v24 }
 0x18b   : > { %1869 = vst [vmem:[#allocation2 + $0x10] sm:$0xff] %v1861_v27 }
 0x18c   : > { %v1841_v31 = vpop.f32.mrf.mxu2 }
 0x18d   : > { %v1842_v32 = vadd.f32 %v1841_v31, %v1828_v29  ;;  %v1855_v34 = vpop.f32.mrf.mxu3 }
 0x18f   : > { %v1856_v35 = vadd.f32 %v1855_v34, %v1842_v32  ;;  %1877 = sbr.rel (%p2944_p13) target bundleno = 433 (0x1b1), region = 63 }
 0x191   : > { %v1865_v36 = vadd.f32 %v1856_v35, %v333_v33 }
 0x193   : > { %1873 = vst [vmem:[#allocation2 + $0x38] sm:$0xff] %v1865_v36 }
 0x194   : > { %v1878_v37 = vld [vmem:[#allocation2 + $0x30] sm:$0xff]  ;;  %v1879_v38 = vld [vmem:[#allocation2] sm:$0xff]  ;;  %v1880_v39 = vld [vmem:[#allocation2 + $0x18] sm:$0xff]  ;;  %vm1958_vm0 = vcmask 1040384   ;;  %vm1970_vm1 = vcmask 1041408   ;;  %vm1972_vm2 = vcmask 1045508  }
 0x195   : > { %v1886_v40 = vpack.c.bf16 %v1879_v38, %v1878_v37  ;;  %v1922_v41 = vmul.f32 %v1878_v37, %v1878_v37  ;;  %v1923_v43 = vmul.f32 %v1879_v38, %v1879_v38  ;;  %v1881_v44 = vld [vmem:[#allocation2 + $0x10] sm:$0xff]  ;;  %v1924_v45 = vmul.f32 %v1880_v39, %v1880_v39  ;;  %v1882_v47 = vld [vmem:[#allocation2 + $0x8] sm:$0xff]  ;;  %v1883_v48 = vld [vmem:[#allocation2 + $0x20] sm:$0xff] }
 0x196   : > { %v1887_v49 = vpack.c.bf16 %v1881_v44, %v1880_v39  ;;  %v1925_v50 = vmul.f32 %v1881_v44, %v1881_v44  ;;  %v1888_v51 = vpack.c.bf16 %v1883_v48, %v1882_v47  ;;  %v1894_v52 = vadd.f32 %v1882_v47, %v1878_v37  ;;  %v1884_v53 = vld [vmem:[#allocation2 + $0x28] sm:$0xff] }
 0x197   : > { %1890 = vst [vmem:[%s3858_s2] sm:$0xff] %v1886_v40  ;;  %v1901_v55 = vadd.f32 %v1883_v48, %v1879_v38  ;;  %v1926_v56 = vmul.f32 %v1882_v47, %v1882_v47  ;;  %v1927_v57 = vmul.f32 %v1883_v48, %v1883_v48  ;;  %v1908_v60 = vadd.f32 %v1884_v53, %v1880_v39 }
 0x198   : > { %1891 = vst [vmem:[%s3858_s2 + $0x8] sm:$0xff] %v1887_v49  ;;  %v1895_v59 = vrot.slane %v1894_v52, 4  ;;  %v1928_v62 = vmul.f32 %v1884_v53, %v1884_v53  ;;  %vm1974_vm3 = vcmask 1043456  }
 0x199   : > { %1892 = vst [vmem:[%s3858_s2 + $0x10] sm:$0xff] %v1888_v51  ;;  %v1902_v63 = vrot.slane %v1901_v55, 4  ;;  %v1930_v0 = vadd.f32 %v1926_v56, %v1922_v41  ;;  %v1937_v1 = vadd.f32 %v1927_v57, %v1923_v43  ;;  %v1909_v4 = vrot.slane %v1908_v60, 4 }
 0x19a   : > { %v1885_v54 = vld [vmem:[#allocation2 + $0x38] sm:$0xff]  ;;  %v1896_v3 = vadd.f32 %v1895_v59, %v1894_v52  ;;  %v1944_v5 = vadd.f32 %v1928_v62, %v1924_v45 }
 0x19b   : > { %v1889_v58 = vpack.c.bf16 %v1885_v54, %v1884_v53  ;;  %v1915_v61 = vadd.f32 %v1885_v54, %v1881_v44  ;;  %v1929_v2 = vmul.f32 %v1885_v54, %v1885_v54  ;;  %v1903_v6 = vadd.f32 %v1902_v63, %v1901_v55 }
 0x19c   : > { %v1931_v7 = vrot.slane %v1930_v0, 4  ;;  %v1938_v8 = vrot.slane %v1937_v1, 4  ;;  %v1897_v10 = vrot.slane %v1896_v3, 2  ;;  %v1910_v11 = vadd.f32 %v1909_v4, %v1908_v60 }
 0x19d   : > { %1893 = vst [vmem:[%s3858_s2 + $0x18] sm:$0xff] %v1889_v58  ;;  %v1916_v12 = vrot.slane %v1915_v61, 4  ;;  %v1951_v9 = vadd.f32 %v1929_v2, %v1925_v50  ;;  %v1945_v14 = vrot.slane %v1944_v5, 4  ;;  %v1904_v15 = vrot.slane %v1903_v6, 2 }
 0x19e   : > { %v1932_v16 = vadd.f32 %v1931_v7, %v1930_v0  ;;  %v1939_v17 = vadd.f32 %v1938_v8, %v1937_v1  ;;  %v1898_v19 = vadd.f32 %v1897_v10, %v1896_v3  ;;  %v1911_v20 = vrot.slane %v1910_v11, 2 }
 0x19f   : > { %v1917_v13 = vadd.f32 %v1916_v12, %v1915_v61  ;;  %v1952_v18 = vrot.slane %v1951_v9, 4  ;;  %v1946_v21 = vadd.f32 %v1945_v14, %v1944_v5  ;;  %v1905_v42 = vadd.f32 %v1904_v15, %v1903_v6 }
 0x1a0   : > { %v1933_v22 = vrot.slane %v1932_v16, 2  ;;  %v1940_v46 = vrot.slane %v1939_v17, 2  ;;  %v1899_v24 = vrot.slane %v1898_v19, 1  ;;  %v1912_v25 = vadd.f32 %v1911_v20, %v1910_v11 }
 0x1a1   : > { %v1918_v30 = vrot.slane %v1917_v13, 2  ;;  %v1953_v23 = vadd.f32 %v1952_v18, %v1951_v9  ;;  %v1947_v27 = vrot.slane %v1946_v21, 2  ;;  %v1906_v28 = vrot.slane %v1905_v42, 1 }
 0x1a2   : > { %v1934_v29 = vadd.f32 %v1933_v22, %v1932_v16  ;;  %v1941_v31 = vadd.f32 %v1940_v46, %v1939_v17  ;;  %v1913_v33 = vrot.slane %v1912_v25, 1  ;;  %v1900_v36 = vadd.f32 %v1899_v24, %v1898_v19 }
 0x1a3   : > { %v1919_v26 = vadd.f32 %v1918_v30, %v1917_v13  ;;  %v1954_v32 = vrot.slane %v1953_v23, 2  ;;  %v1948_v35 = vadd.f32 %v1947_v27, %v1946_v21  ;;  %v1907_v37 = vadd.f32 %v1906_v28, %v1905_v42 }
 0x1a4   : > { %v1942_v38 = vrot.slane %v1941_v31, 1  ;;  %v1935_v40 = vrot.slane %v1934_v29, 1  ;;  %v1914_v41 = vadd.f32 %v1913_v33, %v1912_v25 }
 0x1a5   : > { %v1920_v34 = vrot.slane %v1919_v26, 1  ;;  %v1955_v39 = vadd.f32 %v1954_v32, %v1953_v23  ;;  %v1949_v43 = vrot.slane %v1948_v35, 1 }
 0x1a6   : > { %v1936_v47 = vadd.f32 %v1935_v40, %v1934_v29  ;;  %v1943_v48 = vadd.f32 %v1942_v38, %v1941_v31 }
 0x1a7   : > { %v1921_v44 = vadd.f32 %v1920_v34, %v1919_v26  ;;  %v1956_v45 = vrot.slane %v1955_v39, 1  ;;  %v1950_v49 = vadd.f32 %v1949_v43, %v1948_v35 }
 0x1a8   : > { %v1959_v51 = vsel %vm1958_vm0, %v1900_v36, %v1936_v47  ;;  %v1960_v52 = vsel %vm1958_vm0, %v1907_v37, %v1943_v48 }
 0x1a9   : > { %v1957_v50 = vadd.f32 %v1956_v45, %v1955_v39  ;;  %v1961_v53 = vsel %vm1958_vm0, %v1914_v41, %v1950_v49  ;;  %v1967_v54 = vrot.slane %v1960_v52, 6 }
 0x1aa   : > { %v1968_v56 = vrot.slane %v1961_v53, 4 }
 0x1ab   : > { %v1962_v55 = vsel %vm1958_vm0, %v1921_v44, %v1957_v50  ;;  %v1971_v58 = vsel %vm1970_vm1, %v1959_v51, %v1967_v54 }
 0x1ac   : > { %v1969_v57 = vrot.slane %v1962_v55, 2 }
 0x1ae   : > { %v1973_v59 = vsel %vm1972_vm2, %v1968_v56, %v1969_v57 }
 0x1af   : > { %v1975_v60 = vsel %vm1974_vm3, %v1971_v58, %v1973_v59 }
 0x1b0   : > { %1977 = vst [vmem:[%s3859_s3] sm:$0xff] %v1975_v60 }
 0x1b1 PF: > { %s17_s17 = sadd.s32 1, %s3288_s17   ;;  %s3862_s12 = smov %s3272_s13 }
 0x1b2   : > { %p14_p0 = scmp.ge.s32.totalorder %s17_s17, 5   ;;  %s3863_s13 = smov %s3276_s14 }
 0x1b3   : > { %s3864_s14 = smov %s3361_s24  ;;  %s3865_s15 = smov %s3284_s16 }
 0x1b4   : > { %s3866_s16 = smov %s3868_s19  ;;  %16 = sbr.rel (!%p14_p0) target bundleno = 4 (0x4), region = 119 }
 0x1b9   :  { %2036 = vsyncpa [#allocation5], 1 }
 0x1ba   :  { %2038 = vsyncpa [#allocation5 + $0x1], 1 }

// kernel: _lambda_.20
= control target key start
LH: loop header
LB: loop body
LE: loop exit
PB: predicated region body
PF: predicated region fallthrough
CT: control target
= control target key end

     0   :  { %s4056_s0 = inlined_call_operand.vmem [shape: bf16[16,4608], index: 0, kind: input, shape index: {}]   ;;  %s4057_s1 = inlined_call_operand.hbm [shape: bf16[4608,1024], index: 1, kind: input, shape index: {}]   ;;  %s4058_s2 = inlined_call_operand.vmem [shape: bf16[16,1024], index: 2, kind: output, shape index: {0}]   ;;  %s4059_s3 = inlined_call_operand.vmem [shape: f32[1,2,1024], index: 3, kind: output, shape index: {1}]  }
   0x1   :  { %4064 = sst [smem:[#allocation15_spill]] %s4056_s0 }
   0x2   :  { %9 = vsyncpa [#allocation5], 0 }
   0x3   :  { %11 = vsyncpa [#allocation5 + $0x1], 0  ;;  %s3421_s12 = smov 0   ;;  %s3423_s13 = smov 0  }
   0x4   :  { %s3425_s14 = smov 0   ;;  %s3427_s15 = smov 0  }
   0x5   :  { %s3429_s16 = smov 0   ;;  %s3431_s17 = smov 0  }
   0x6   :  { %s3433_s18 = smov 0   ;;  %s3435_s19 = smov 0  }
   0x7   :  { %s3437_s20 = smov 0   ;;  %s3439_s21 = smov 0  }
   0x8   :  { %s3441_s22 = smov 0   ;;  %s3443_s23 = smov 0  }
   0x9 LB: > { %4065 = sst [smem:[#allocation8_spill]] %s3355_s13  ;;  %s2151_s24 = sadd.s32 4294967295, %s3395_s23   ;;  %s3395_s23 = sphi %s3443_s23, %s17_s23   ;;  %s3391_s22 = sphi %s3441_s22, %s4090_s22   ;;  %s3387_s21 = sphi %s3439_s21, %s4089_s21   ;;  %s3383_s20 = sphi %s3437_s20, %s4088_s20   ;;  %s3379_s19 = sphi %s3435_s19, %s4087_s19   ;;  %s3375_s18 = sphi %s3433_s18, %s4081_s18   ;;  %s3371_s17 = sphi %s3431_s17, %s4080_s17   ;;  %s3367_s16 = sphi %s3429_s16, %s4086_s16   ;;  %s3363_s15 = sphi %s3427_s15, %s4085_s15   ;;  %s3359_s14 = sphi %s3425_s14, %s4084_s14   ;;  %s3355_s13 = sphi %s3423_s13, %s4078_s13   ;;  %s3351_s12 = sphi %s3421_s12, %s4077_s12  }
   0xa   : > { %4066 = sst [smem:[#allocation9_spill]] %s3375_s18  ;;  %s29_s25 = sadd.s32 1, %s3387_s21 }
   0xb   : > { %p30_p0 = scmp.ge.s32.totalorder %s29_s25, 6  ;;  %s32_s26 = sadd.s32 1, %s3391_s22 }
   0xc   : > { %s45_s27 = sadd.s32 1, %s3375_s18  ;;  %p52_p1 = scmp.ne.s32.totalorder %s3375_s18, %s3371_s17 }
   0xd   : > { %s4092_s25 = smov (%p30_p0, %s29_s25), 0  ;;  %s4094_s26 = smov (!%p30_p0, %s32_s26), %s3391_s22 }
   0xe   : > { %4067 = sst [smem:[#allocation10_spill]] %s4092_s25  ;;  %s41_s28 = ssub.s32 %s3387_s21, %s4092_s25 }
   0xf   : > { %p53_p2 = scmp.eq.s32.totalorder %s3395_s23, 0  ;;  %p34_p3 = scmp.ge.s32.totalorder %s4094_s26, 2 }
  0x10   : > { %p43_p4 = scmp.eq.s32.totalorder %s41_s28, 0  ;;  %s73_s30 = sadd.s32 1, %s3367_s16 }
  0x11   : > { %p3493_p5 = por %p53_p2, %p52_p1  ;;  %s4096_s26 = smov (%p34_p3, %s4094_s26), 0 }
  0x12   : > { %4069 = sst [smem:[#allocation11_spill]] %s4096_s26  ;;  %s69_s5 = ssub.s32 %s3391_s22, %s4096_s26 }
  0x13   : > { %s3501_s4 = scalar_select %p43_p4, %s3375_s18, %s45_s27  }
  0x14   : > { %p80_p6 = scmp.ne.s32.totalorder %s3367_s16, %s3363_s15  ;;  %s70_s6 = sor.u32 %s69_s5, %s41_s28 }
  0x15   : > { %4070 = sst [smem:[#allocation12_spill]] %s3501_s4  ;;  %p86_p7 = scmp.ne.s32.totalorder %s3363_s15, %s3359_s14 }
  0x16   : > { %p71_p8 = scmp.eq.s32.totalorder %s70_s6, 0  ;;  %p3509_p9 = por %p80_p6, %p53_p2 }
  0x17   : > { %p87_p10 = scmp.eq.s32.totalorder %s2151_s24, 0  ;;  %p99_p11 = scmp.eq.s32.totalorder %s69_s5, 0 }
  0x18   : > { %s3516_s8 = scalar_select %p71_p8, %s3367_s16, %s73_s30  }
  0x19   : > { %p3518_p12 = por %p87_p10, %p86_p7  ;;  %s101_s10 = sadd.s32 1, %s3355_s13 }
  0x1a   : > { %4072 = sst [smem:[#allocation13_spill]] %s3516_s8  ;;  %p111_p13 = scmp.ne.s32.totalorder %s3355_s13, %s3351_s12 }
  0x1b   : > { %s3524_s11 = scalar_select %p99_p11, %s3355_s13, %s101_s10  }
  0x1c   : > { %p112_p0 = scmp.eq.s32.totalorder %s2151_s24, 11  ;;  %p2154_p2 = scmp.ge.s32.totalorder %s3395_s23, 12 }
  0x1d   : > { %4074 = sst [smem:[#allocation14_spill]] %s3524_s11 }
  0x1e   : > { %p3530_p1 = por %p112_p0, %p111_p13  ;;  %162 = sbr.rel (%p2154_p2) target bundleno = 59 (0x3b), region = 16 }
  0x23   : > { %165 = sbr.rel (!%p3493_p5) target bundleno = 50 (0x32), region = 20  ;;  %s167_s27 = sand.u32 (%p3493_p5), 1, %s3375_s18  }
  0x24   : > { %s2962_s28 = smul.u32 (%p3493_p5), 24, %s3387_s21  ;;  %s4076_s0 = sld [smem:[#allocation15_spill]] (%p3493_p5) }
  0x25   : > { %s3163_s30 = smul.u32 (%p3493_p5), 48, %s167_s27 }
  0x27   : > { %s169_s24 = scalar_lea.vmem (%p3493_p5), [#allocation3], %s3163_s30 }
  0x2a   : > { %s175_s10 = scalar_lea.vmem %s4076_s0, %s2962_s28 }
  0x2b   : > { %v188_v0 = vld [vmem:[%s175_s10] sm:$0xff]  ;;  %v190_v1 = vld [vmem:[%s175_s10 + $0x8] sm:$0xff]  ;;  %v192_v2 = vld [vmem:[%s175_s10 + $0x10] sm:$0xff] }
  0x2c   : > { %189 = vst [vmem:[%s169_s24] sm:$0xff] %v188_v0  ;;  %v194_v3 = vld [vmem:[%s175_s10 + $0x90] sm:$0xff]  ;;  %v196_v4 = vld [vmem:[%s175_s10 + $0x98] sm:$0xff]  ;;  %v198_v5 = vld [vmem:[%s175_s10 + $0xa0] sm:$0xff] }
  0x2d   : > { %191 = vst [vmem:[%s169_s24 + $0x8] sm:$0xff] %v190_v1 }
  0x2e   : > { %193 = vst [vmem:[%s169_s24 + $0x10] sm:$0xff] %v192_v2 }
  0x2f   : > { %195 = vst [vmem:[%s169_s24 + $0x18] sm:$0xff] %v194_v3 }
  0x30   : > { %197 = vst [vmem:[%s169_s24 + $0x20] sm:$0xff] %v196_v4 }
  0x31   : > { %199 = vst [vmem:[%s169_s24 + $0x28] sm:$0xff] %v198_v5 }
  0x32 PF: > { %s206_s29 = sand.u32 1, %s3367_s16   ;;  %s2156_s27 = sshll.u32 %s3391_s22, 2 }
  0x33   : > { %s3164_s28 = smul.u32 1536, %s206_s29  ;;  %s207_s24 = scalar_lea.sflag [#allocation5], %s206_s29 }
  0x34   : > { %s2963_s5 = smul.u32 768, %s3387_s21  ;;  %s3397_s8 = smov 512  }
  0x35   : > { %s210_s30 = scalar_lea.vmem [#allocation4], %s3164_s28  ;;  %s3398_s11 = smov 256  }
  0x36   : > { %s216_s6 = sadd.s32 %s2963_s5, %s2156_s27  ;;  %s221_s0 = sshll.u32 %s210_s30, 4  ;;  %s222_s0 = int_to_ptr.vmem [resolvable:$true] %s221_s0 }
  0x37   : > { %s2158_s26 = sshll.u32 %s216_s6, 2  ;;  %s3399_s13 = smov 16  }
  0x38   : > { %s218_s10 = scalar_lea.hbm %s4057_s1, %s2158_s26 }
  0x39   : > { %s219_s18 = sshll.u32 %s218_s10, 4  ;;  %s220_s18 = int_to_ptr.hbm [resolvable:$true] %s219_s18 }
  0x3a   : > { %3167 = dma.hbm_to_vmem [thread:$0]  (%p3509_p9), %s220_s18, 24576, %s222_s0, %s207_s24, %s3397_s8, %s3398_s11, %s3399_s13  }
  0x3b PF: > { %p2159_p3 = scmp.ge.s32.totalorder %s3395_s23, 1  ;;  %p229_p4 = scmp.lt.s32.totalorder %s3395_s23, 13 }
  0x3d   : > { %p230_p5 = pnand %p2159_p3, %p229_p4 }
  0x3e   : > { %s236_s25 = sand.u32 (!%p230_p5), 1, %s3371_s17   ;;  %s242_s26 = sand.u32 (!%p230_p5), 1, %s3363_s15  }
  0x3f   : > { %233 = sbr.rel (%p230_p5) target bundleno = 465 (0x1d1), region = 47  ;;  %s243_s28 = scalar_lea.sflag (!%p230_p5), [#allocation5], %s242_s26 }
  0x40   : > { %s3165_s4 = smul.u32 (!%p230_p5), 48, %s236_s25 }
  0x41   : > { %s3166_s27 = smul.u32 (!%p230_p5), 1536, %s242_s26 }
  0x42   : > { %s3554_s29 = scalar_lea.vmem (!%p230_p5), [#allocation3], %s3165_s4 }
  0x43   : > { %s3556_s5 = scalar_lea.vmem (!%p230_p5), [#allocation4], %s3166_s27 }
  0x44   : > { %3346 = dma.done.wait (%p3518_p12), %s243_s28, 24576  }
  0x45   : > { %3348 = vsyncadd (%p3518_p12), %s243_s28, 4294942720  ;;  %s268_s0 = sand.u32 1, %s3351_s12   ;;  %s2161_s13 = sshll.u32 %s3383_s20, 2 }
  0x46   : > { %s2160_s18 = sshll.u32 %s268_s0, 5  ;;  %p291_p6 = scmp.lt.s32.totalorder %s2161_s13, 7 }
  0x47   : > { %s3569_s6 = scalar_lea.vmem [#allocation6], %s2160_s18  ;;  %p2163_p7 = scmp.ne.s32.totalorder %s3379_s19, 0 }
  0x48   : > { %s4098_s13 = smov (!%p291_p6, %s2161_s13), 7 }
  0x49   : > { %s2162_s17 = sshll.u32 %s4098_s13, 1  ;;  %301 = sbr.rel (%p2163_p7) target bundleno = 87 (0x57), region = 59 }
  0x4a   : > { %s3567_s11 = scalar_lea.vmem %s4059_s3, %s2162_s17 }
  0x4e   : > { %v3400_v6 = vmov 0.0  }
  0x4f   : > { %302 = vst [vmem:[#allocation2 + $0x30] sm:$0xff] %v3400_v6 }
  0x50   : > { %303 = vst [vmem:[#allocation2] sm:$0xff] %v3400_v6 }
  0x51   : > { %304 = vst [vmem:[#allocation2 + $0x18] sm:$0xff] %v3400_v6 }
  0x52   : > { %305 = vst [vmem:[#allocation2 + $0x10] sm:$0xff] %v3400_v6 }
  0x53   : > { %306 = vst [vmem:[#allocation2 + $0x8] sm:$0xff] %v3400_v6 }
  0x54   : > { %307 = vst [vmem:[#allocation2 + $0x20] sm:$0xff] %v3400_v6 }
  0x55   : > { %308 = vst [vmem:[#allocation2 + $0x28] sm:$0xff] %v3400_v6 }
  0x56   : > { %309 = vst [vmem:[#allocation2 + $0x38] sm:$0xff] %v3400_v6 }
  0x57 PF: > { %v2302_v7 = vld [vmem:[%s3556_s5 + $0xe0] sm:$0xf]  ;;  %v3000_v8 = vld [vmem:[%s3556_s5 + $0xec] sm:$0xf0]  ;;  %p2956_p8 = scmp.ne.s32.totalorder %s3379_s19, 5 }
  0x58   : > { %v2430_v9 = vld [vmem:[%s3556_s5 + $0x1e0] sm:$0xf]  ;;  %v2303_v10 = vor.u32 %v3000_v8, %v2302_v7  ;;  %v3032_v11 = vld [vmem:[%s3556_s5 + $0x1ec] sm:$0xf0] }
  0x59   : > { %v2558_v12 = vld [vmem:[%s3556_s5 + $0x2e0] sm:$0xf]  ;;  %v3064_v13 = vld [vmem:[%s3556_s5 + $0x2ec] sm:$0xf0]  ;;  %v2431_v14 = vor.u32 %v3032_v11, %v2430_v9 }
  0x5a   : > { %v2559_v15 = vor.u32 %v3064_v13, %v2558_v12  ;;  %v2686_v16 = vld [vmem:[%s3556_s5 + $0x3e0] sm:$0xf]  ;;  %v3096_v17 = vld [vmem:[%s3556_s5 + $0x3ec] sm:$0xf0]  ;;  %1506 = vmatpush.bf16.msra.mxu0 %v2303_v10 }
  0x5b   : > { %v2286_v18 = vld [vmem:[%s3556_s5 + $0xc0] sm:$0xf]  ;;  %v2687_v19 = vor.u32 %v3096_v17, %v2686_v16  ;;  %v2996_v20 = vld [vmem:[%s3556_s5 + $0xcc] sm:$0xf0]  ;;  %1520 = vmatpush.bf16.msra.mxu1 %v2431_v14 }
  0x5c   : > { %v2414_v21 = vld [vmem:[%s3556_s5 + $0x1c0] sm:$0xf]  ;;  %v3028_v22 = vld [vmem:[%s3556_s5 + $0x1cc] sm:$0xf0]  ;;  %1534 = vmatpush.bf16.msra.mxu2 %v2559_v15  ;;  %v2287_v23 = vor.u32 %v2996_v20, %v2286_v18 }
  0x5d   : > { %v2415_v24 = vor.u32 %v3028_v22, %v2414_v21  ;;  %v2542_v25 = vld [vmem:[%s3556_s5 + $0x2c0] sm:$0xf]  ;;  %v3060_v26 = vld [vmem:[%s3556_s5 + $0x2cc] sm:$0xf0]  ;;  %1548 = vmatpush.bf16.msra.mxu3 %v2687_v19 }
  0x5e   : > { %v2670_v27 = vld [vmem:[%s3556_s5 + $0x3c0] sm:$0xf]  ;;  %v2543_v28 = vor.u32 %v3060_v26, %v2542_v25  ;;  %v3092_v29 = vld [vmem:[%s3556_s5 + $0x3cc] sm:$0xf0]  ;;  %1507 = vmatpush.bf16.msra.mxu0 %v2287_v23 }
  0x5f   : > { %v2270_v30 = vld [vmem:[%s3556_s5 + $0xa0] sm:$0xf]  ;;  %v2992_v31 = vld [vmem:[%s3556_s5 + $0xac] sm:$0xf0]  ;;  %v2671_v32 = vor.u32 %v3092_v29, %v2670_v27  ;;  %1521 = vmatpush.bf16.msra.mxu1 %v2415_v24 }
  0x60   : > { %v2398_v33 = vld [vmem:[%s3556_s5 + $0x1a0] sm:$0xf]  ;;  %v3024_v34 = vld [vmem:[%s3556_s5 + $0x1ac] sm:$0xf0]  ;;  %v2271_v36 = vor.u32 %v2992_v31, %v2270_v30  ;;  %1535 = vmatpush.bf16.msra.mxu2 %v2543_v28 }
  0x61   : > { %v2526_v35 = vld [vmem:[%s3556_s5 + $0x2a0] sm:$0xf]  ;;  %v3056_v37 = vld [vmem:[%s3556_s5 + $0x2ac] sm:$0xf0]  ;;  %v2399_v40 = vor.u32 %v3024_v34, %v2398_v33  ;;  %1549 = vmatpush.bf16.msra.mxu3 %v2671_v32 }
  0x62   : > { %v2654_v38 = vld [vmem:[%s3556_s5 + $0x3a0] sm:$0xf]  ;;  %v3088_v39 = vld [vmem:[%s3556_s5 + $0x3ac] sm:$0xf0]  ;;  %v2527_v41 = vor.u32 %v3056_v37, %v2526_v35  ;;  %1508 = vmatpush.bf16.msra.mxu0 %v2271_v36 }
  0x63   : > { %v2254_v42 = vld [vmem:[%s3556_s5 + $0x80] sm:$0xf]  ;;  %v2988_v43 = vld [vmem:[%s3556_s5 + $0x8c] sm:$0xf0]  ;;  %v2655_v45 = vor.u32 %v3088_v39, %v2654_v38  ;;  %1522 = vmatpush.bf16.msra.mxu1 %v2399_v40  ;;  %v2998_v40 = vld [vmem:[%s3556_s5 + $0xe4] sm:$0xf] }
  0x64   : > { %v2382_v44 = vld [vmem:[%s3556_s5 + $0x180] sm:$0xf]  ;;  %v3020_v46 = vld [vmem:[%s3556_s5 + $0x18c] sm:$0xf0]  ;;  %v2255_v51 = vor.u32 %v2988_v43, %v2254_v42  ;;  %1536 = vmatpush.bf16.msra.mxu2 %v2527_v41  ;;  %v2304_v41 = vld [vmem:[%s3556_s5 + $0xf0] sm:$0xf0] }
  0x65   : > { %v2510_v47 = vld [vmem:[%s3556_s5 + $0x280] sm:$0xf]  ;;  %v3052_v48 = vld [vmem:[%s3556_s5 + $0x28c] sm:$0xf0]  ;;  %v2383_v52 = vor.u32 %v3020_v46, %v2382_v44  ;;  %1550 = vmatpush.bf16.msra.mxu3 %v2655_v45  ;;  %v3030_v44 = vld [vmem:[%s3556_s5 + $0x1e4] sm:$0xf] }
  0x66   : > { %v2638_v49 = vld [vmem:[%s3556_s5 + $0x380] sm:$0xf]  ;;  %v3084_v50 = vld [vmem:[%s3556_s5 + $0x38c] sm:$0xf0]  ;;  %v2511_v53 = vor.u32 %v3052_v48, %v2510_v47  ;;  %1509 = vmatpush.bf16.msra.mxu0 %v2255_v51  ;;  %v2432_v45 = vld [vmem:[%s3556_s5 + $0x1f0] sm:$0xf0] }
  0x67   : > { %v2238_v54 = vld [vmem:[%s3556_s5 + $0x60] sm:$0xf]  ;;  %v2984_v55 = vld [vmem:[%s3556_s5 + $0x6c] sm:$0xf0]  ;;  %v2639_v57 = vor.u32 %v3084_v50, %v2638_v49  ;;  %1523 = vmatpush.bf16.msra.mxu1 %v2383_v52  ;;  %v2307_v50 = vor.u32 %v2998_v40, %v2304_v41  ;;  %v2240_v40 = vld [vmem:[%s3556_s5 + $0x70] sm:$0xf0] }
  0x68   : > { %v2366_v56 = vld [vmem:[%s3556_s5 + $0x160] sm:$0xf]  ;;  %v3016_v58 = vld [vmem:[%s3556_s5 + $0x16c] sm:$0xf0]  ;;  %v2239_v63 = vor.u32 %v2984_v55, %v2238_v54  ;;  %1537 = vmatpush.bf16.msra.mxu2 %v2511_v53  ;;  %v2435_v54 = vor.u32 %v3030_v44, %v2432_v45  ;;  %v2994_v55 = vld [vmem:[%s3556_s5 + $0xc4] sm:$0xf] }
  0x69   : > { %v2494_v59 = vld [vmem:[%s3556_s5 + $0x260] sm:$0xf]  ;;  %v3048_v60 = vld [vmem:[%s3556_s5 + $0x26c] sm:$0xf0]  ;;  %v2367_v0 = vor.u32 %v3016_v58, %v2366_v56  ;;  %1551 = vmatpush.bf16.msra.mxu3 %v2639_v57  ;;  %v2288_v56 = vld [vmem:[%s3556_s5 + $0xd0] sm:$0xf0] }
  0x6a   : > { %v2622_v61 = vld [vmem:[%s3556_s5 + $0x360] sm:$0xf]  ;;  %v3080_v62 = vld [vmem:[%s3556_s5 + $0x36c] sm:$0xf0]  ;;  %v2495_v1 = vor.u32 %v3048_v60, %v2494_v59  ;;  %1510 = vmatpush.bf16.msra.mxu0 %v2239_v63  ;;  %v3026_v57 = vld [vmem:[%s3556_s5 + $0x1c4] sm:$0xf] }
  0x6b   : > { %v2222_v2 = vld [vmem:[%s3556_s5 + $0x40] sm:$0xf]  ;;  %v2980_v3 = vld [vmem:[%s3556_s5 + $0x4c] sm:$0xf0]  ;;  %v2623_v5 = vor.u32 %v3080_v62, %v2622_v61  ;;  %1524 = vmatpush.bf16.msra.mxu1 %v2367_v0  ;;  %v2416_v58 = vld [vmem:[%s3556_s5 + $0x1d0] sm:$0xf0] }
  0x6c   : > { %v2350_v4 = vld [vmem:[%s3556_s5 + $0x140] sm:$0xf]  ;;  %v3012_v6 = vld [vmem:[%s3556_s5 + $0x14c] sm:$0xf0]  ;;  %v2223_v11 = vor.u32 %v2980_v3, %v2222_v2  ;;  %1538 = vmatpush.bf16.msra.mxu2 %v2495_v1  ;;  %v2967_v60 = vld [vmem:[%s3554_s29 + $0x14] sm:$0xf0]  ;;  %v2291_v3 = vor.u32 %v2994_v55, %v2288_v56 }
  0x6d   : > { %v2478_v7 = vld [vmem:[%s3556_s5 + $0x240] sm:$0xf]  ;;  %v3044_v8 = vld [vmem:[%s3556_s5 + $0x24c] sm:$0xf0]  ;;  %v2351_v12 = vor.u32 %v3012_v6, %v2350_v4  ;;  %1552 = vmatpush.bf16.msra.mxu3 %v2623_v5  ;;  %v2990_v5 = vld [vmem:[%s3556_s5 + $0xa4] sm:$0xf] }
  0x6e   : > { %v2606_v9 = vld [vmem:[%s3556_s5 + $0x340] sm:$0xf]  ;;  %v3076_v10 = vld [vmem:[%s3556_s5 + $0x34c] sm:$0xf0]  ;;  %v2479_v13 = vor.u32 %v3044_v8, %v2478_v7  ;;  %1511 = vmatpush.bf16.msra.mxu0 %v2223_v11  ;;  %v2272_v6 = vld [vmem:[%s3556_s5 + $0xb0] sm:$0xf0]  ;;  %v2419_v7 = vor.u32 %v3026_v57, %v2416_v58 }
  0x6f   : > { %v2206_v14 = vld [vmem:[%s3556_s5 + $0x20] sm:$0xf]  ;;  %v2976_v15 = vld [vmem:[%s3556_s5 + $0x2c] sm:$0xf0]  ;;  %v2607_v17 = vor.u32 %v3076_v10, %v2606_v9  ;;  %1525 = vmatpush.bf16.msra.mxu1 %v2351_v12  ;;  %v3022_v8 = vld [vmem:[%s3556_s5 + $0x1a4] sm:$0xf] }
  0x70   : > { %v2334_v16 = vld [vmem:[%s3556_s5 + $0x120] sm:$0xf]  ;;  %v3008_v18 = vld [vmem:[%s3556_s5 + $0x12c] sm:$0xf0]  ;;  %v2207_v23 = vor.u32 %v2976_v15, %v2206_v14  ;;  %1539 = vmatpush.bf16.msra.mxu2 %v2479_v13  ;;  %v2964_v9 = vld [vmem:[%s3554_s29 + $0x4] sm:$0xf] }
  0x71   : > { %v2462_v19 = vld [vmem:[%s3556_s5 + $0x220] sm:$0xf]  ;;  %v3040_v20 = vld [vmem:[%s3556_s5 + $0x22c] sm:$0xf0]  ;;  %v2335_v26 = vor.u32 %v3008_v18, %v2334_v16  ;;  %1553 = vmatpush.bf16.msra.mxu3 %v2607_v17  ;;  %v2168_v10 = vld [vmem:[%s3554_s29 + $0x18] sm:$0xf0] }
  0x72   : > { %v2590_v21 = vld [vmem:[%s3556_s5 + $0x320] sm:$0xf]  ;;  %v3072_v22 = vld [vmem:[%s3556_s5 + $0x32c] sm:$0xf0]  ;;  %v2463_v27 = vor.u32 %v3040_v20, %v2462_v19  ;;  %1512 = vmatpush.bf16.msra.mxu0 %v2207_v23  ;;  %v2400_v11 = vld [vmem:[%s3556_s5 + $0x1b0] sm:$0xf0]  ;;  %v3667_v12 = vor.u32 %v2964_v9, %v2168_v10  ;;  %v2275_v20 = vor.u32 %v2990_v5, %v2272_v6 }
  0x73   : > { %v2190_v24 = vld [vmem:[%s3556_s5] sm:$0xf]  ;;  %v2972_v25 = vld [vmem:[%s3556_s5 + $0xc] sm:$0xf0]  ;;  %v2591_v31 = vor.u32 %v3072_v22, %v2590_v21  ;;  %1526 = vmatpush.bf16.msra.mxu1 %v2335_v26  ;;  %v2174_v13 = vld [vmem:[%s3554_s29 + $0x8] sm:$0xf] }
  0x74   : > { %v2318_v28 = vld [vmem:[%s3556_s5 + $0x100] sm:$0xf]  ;;  %v3004_v29 = vld [vmem:[%s3556_s5 + $0x10c] sm:$0xf0]  ;;  %v2191_v38 = vor.u32 %v2972_v25, %v2190_v24  ;;  %1540 = vmatpush.bf16.msra.mxu2 %v2463_v27  ;;  %v2986_v23 = vld [vmem:[%s3556_s5 + $0x84] sm:$0xf]  ;;  %v2403_v24 = vor.u32 %v3022_v8, %v2400_v11 }
  0x75   : > { %v2446_v30 = vld [vmem:[%s3556_s5 + $0x200] sm:$0xf]  ;;  %v3036_v32 = vld [vmem:[%s3556_s5 + $0x20c] sm:$0xf0]  ;;  %v2319_v42 = vor.u32 %v3004_v29, %v2318_v28  ;;  %1554 = vmatpush.bf16.msra.mxu3 %v2591_v31  ;;  %v2256_v25 = vld [vmem:[%s3556_s5 + $0x90] sm:$0xf0] }
  0x76   : > { %v2574_v33 = vld [vmem:[%s3556_s5 + $0x300] sm:$0xf]  ;;  %v3068_v34 = vld [vmem:[%s3556_s5 + $0x30c] sm:$0xf0]  ;;  %v2447_v43 = vor.u32 %v3036_v32, %v2446_v30  ;;  %1513 = vmatpush.bf16.msra.mxu0 %v2191_v38  ;;  %v2965_v26 = vld [vmem:[%s3554_s29 + $0xc] sm:$0xf] }
  0x77   : > { %v2814_v35 = vld [vmem:[%s3556_s5 + $0x4e0] sm:$0xf]  ;;  %v3128_v36 = vld [vmem:[%s3556_s5 + $0x4ec] sm:$0xf0]  ;;  %v2575_v46 = vor.u32 %v3068_v34, %v2574_v33  ;;  %1527 = vmatpush.bf16.msra.mxu1 %v2319_v42  ;;  %v2176_v27 = vld [vmem:[%s3554_s29 + $0x20] sm:$0xf0]  ;;  %v2259_v33 = vor.u32 %v2986_v23, %v2256_v25 }
  0x78   : > { %v2942_v37 = vld [vmem:[%s3556_s5 + $0x5e0] sm:$0xf]  ;;  %v3160_v39 = vld [vmem:[%s3556_s5 + $0x5ec] sm:$0xf0]  ;;  %v2815_v47 = vor.u32 %v3128_v36, %v2814_v35  ;;  %1541 = vmatpush.bf16.msra.mxu2 %v2447_v43  ;;  %v3018_v28 = vld [vmem:[%s3556_s5 + $0x184] sm:$0xf]  ;;  %v3685_v30 = vor.u32 %v2965_v26, %v2176_v27 }
  0x79   : > { %v2798_v48 = vld [vmem:[%s3556_s5 + $0x4c0] sm:$0xf]  ;;  %v2943_v49 = vor.u32 %v3160_v39, %v2942_v37  ;;  %v3124_v51 = vld [vmem:[%s3556_s5 + $0x4cc] sm:$0xf0]  ;;  %1555 = vmatpush.bf16.msra.mxu3 %v2575_v46  ;;  %v2384_v29 = vld [vmem:[%s3556_s5 + $0x190] sm:$0xf0] }
  0x7a   : > { %v2926_v52 = vld [vmem:[%s3556_s5 + $0x5c0] sm:$0xf]  ;;  %v3156_v53 = vld [vmem:[%s3556_s5 + $0x5cc] sm:$0xf0]  ;;  %1562 = vmatpush.bf16.msrb.mxu0 %v2815_v47  ;;  %v2799_v61 = vor.u32 %v3124_v51, %v2798_v48  ;;  %1528 = vmatmul.bf16.vlgmr.msra.gmra.mxu1 %v3667_v12  ;;  %v2387_v37 = vor.u32 %v3018_v28, %v2384_v29  ;;  %v2982_v39 = vld [vmem:[%s3556_s5 + $0x64] sm:$0xf] }
  0x7b   : > { %v2166_v59 = vld [vmem:[%s3554_s29] sm:$0xf]  ;;  %1576 = vmatpush.bf16.msrb.mxu1 %v2943_v49  ;;  %v2927_v2 = vor.u32 %v3156_v53, %v2926_v52  ;;  %v3014_v41 = vld [vmem:[%s3556_s5 + $0x164] sm:$0xf]  ;;  %v2368_v42 = vld [vmem:[%s3556_s5 + $0x170] sm:$0xf0]  ;;  %v2243_v45 = vor.u32 %v2982_v39, %v2240_v40 }
  0x7c   : > { %v2782_v62 = vld [vmem:[%s3556_s5 + $0x4a0] sm:$0xf]  ;;  %v3120_v63 = vld [vmem:[%s3556_s5 + $0x4ac] sm:$0xf0]  ;;  %v3657_v1 = vor.u32 %v2967_v60, %v2166_v59  ;;  %1590 = vmatpush.bf16.msrb.mxu2 %v2307_v50  ;;  %1556 = vmatmul.bf16.vlgmr.msra.gmra.mxu3 %v3685_v30  ;;  %v2371_v49 = vor.u32 %v3014_v41, %v2368_v42  ;;  %v2978_v51 = vld [vmem:[%s3556_s5 + $0x44] sm:$0xf] }
  0x7d   : > { %v2910_v0 = vld [vmem:[%s3556_s5 + $0x5a0] sm:$0xf]  ;;  %v3152_v4 = vld [vmem:[%s3556_s5 + $0x5ac] sm:$0xf0]  ;;  %1604 = vmatpush.bf16.msrb.mxu3 %v2435_v54  ;;  %v2783_v15 = vor.u32 %v3120_v63, %v2782_v62  ;;  %v2224_v52 = vld [vmem:[%s3556_s5 + $0x50] sm:$0xf0] }
  0x7e   : > { %1514 = vmatmul.bf16.vlgmr.msra.gmra.mxu0 %v3657_v1  ;;  %v2968_v14 = vld [vmem:[%s3554_s29 + $0x1c] sm:$0xf0]  ;;  %v2911_v19 = vor.u32 %v3152_v4, %v2910_v0  ;;  %v3010_v53 = vld [vmem:[%s3556_s5 + $0x144] sm:$0xf]  ;;  %v2352_v54 = vld [vmem:[%s3556_s5 + $0x150] sm:$0xf0]  ;;  %v2227_v57 = vor.u32 %v2978_v51, %v2224_v52 }
  0x7f   : > { %1563 = vmatpush.bf16.msrb.mxu0 %v2799_v61  ;;  %v2766_v16 = vld [vmem:[%s3556_s5 + $0x480] sm:$0xf]  ;;  %v3116_v17 = vld [vmem:[%s3556_s5 + $0x48c] sm:$0xf0]  ;;  %v3673_v18 = vor.u32 %v2968_v14, %v2174_v13  ;;  %1577 = vmatpush.bf16.msrb.mxu1 %v2927_v2  ;;  %v2355_v61 = vor.u32 %v3010_v53, %v2352_v54  ;;  %v2974_v63 = vld [vmem:[%s3556_s5 + $0x24] sm:$0xf] }
  0x80   : > { %1591 = vmatpush.bf16.msrb.mxu2 %v2291_v3  ;;  %v2894_v21 = vld [vmem:[%s3556_s5 + $0x580] sm:$0xf]  ;;  %v3148_v22 = vld [vmem:[%s3556_s5 + $0x58c] sm:$0xf0]  ;;  %v2767_v31 = vor.u32 %v3116_v17, %v2766_v16  ;;  %v2208_v0 = vld [vmem:[%s3556_s5 + $0x30] sm:$0xf0] }
  0x81   : > { %1605 = vmatpush.bf16.msrb.mxu3 %v2419_v7  ;;  %1542 = vmatmul.bf16.vlgmr.msra.gmra.mxu2 %v3673_v18  ;;  %v2895_v32 = vor.u32 %v3148_v22, %v2894_v21  ;;  %v2750_v34 = vld [vmem:[%s3556_s5 + $0x460] sm:$0xf]  ;;  %v3112_v35 = vld [vmem:[%s3556_s5 + $0x46c] sm:$0xf0]  ;;  %v3006_v2 = vld [vmem:[%s3556_s5 + $0x124] sm:$0xf]  ;;  %v2211_v9 = vor.u32 %v2974_v63, %v2208_v0 }
  0x82   : > { %v2878_v36 = vld [vmem:[%s3556_s5 + $0x560] sm:$0xf]  ;;  %v3144_v38 = vld [vmem:[%s3556_s5 + $0x56c] sm:$0xf0]  ;;  %v2751_v43 = vor.u32 %v3112_v35, %v2750_v34  ;;  %v2336_v3 = vld [vmem:[%s3556_s5 + $0x130] sm:$0xf0] }
  0x83   : > { %1564 = vmatpush.bf16.msrb.mxu0 %v2783_v15  ;;  %1578 = vmatpush.bf16.msrb.mxu1 %v2911_v19  ;;  %v2879_v44 = vor.u32 %v3144_v38, %v2878_v36  ;;  %v2734_v46 = vld [vmem:[%s3556_s5 + $0x440] sm:$0xf]  ;;  %v3108_v47 = vld [vmem:[%s3556_s5 + $0x44c] sm:$0xf0]  ;;  %v2970_v11 = vld [vmem:[%s3556_s5 + $0x4] sm:$0xf]  ;;  %v2339_v14 = vor.u32 %v3006_v2, %v2336_v3 }
  0x84   : > { %1592 = vmatpush.bf16.msrb.mxu2 %v2275_v20  ;;  %v2862_v48 = vld [vmem:[%s3556_s5 + $0x540] sm:$0xf]  ;;  %v3140_v50 = vld [vmem:[%s3556_s5 + $0x54c] sm:$0xf0]  ;;  %v2735_v55 = vor.u32 %v3108_v47, %v2734_v46  ;;  %v2192_v13 = vld [vmem:[%s3556_s5 + $0x10] sm:$0xf0] }
  0x85   : > { %1606 = vmatpush.bf16.msrb.mxu3 %v2403_v24  ;;  %v2863_v56 = vor.u32 %v3140_v50, %v2862_v48  ;;  %v2718_v58 = vld [vmem:[%s3556_s5 + $0x420] sm:$0xf]  ;;  %v3104_v59 = vld [vmem:[%s3556_s5 + $0x42c] sm:$0xf0]  ;;  %v3002_v15 = vld [vmem:[%s3556_s5 + $0x104] sm:$0xf]  ;;  %v2195_v27 = vor.u32 %v2970_v11, %v2192_v13 }
  0x86   : > { %v2846_v60 = vld [vmem:[%s3556_s5 + $0x520] sm:$0xf]  ;;  %v3136_v62 = vld [vmem:[%s3556_s5 + $0x52c] sm:$0xf0]  ;;  %v2719_v4 = vor.u32 %v3104_v59, %v2718_v58  ;;  %v2320_v16 = vld [vmem:[%s3556_s5 + $0x110] sm:$0xf0] }
  0x87   : > { %1565 = vmatpush.bf16.msrb.mxu0 %v2767_v31  ;;  %1579 = vmatpush.bf16.msrb.mxu1 %v2895_v32  ;;  %v2702_v5 = vld [vmem:[%s3556_s5 + $0x400] sm:$0xf]  ;;  %v3100_v6 = vld [vmem:[%s3556_s5 + $0x40c] sm:$0xf0]  ;;  %v2847_v8 = vor.u32 %v3136_v62, %v2846_v60  ;;  %v3062_v17 = vld [vmem:[%s3556_s5 + $0x2e4] sm:$0xf]  ;;  %v2323_v32 = vor.u32 %v3002_v15, %v2320_v16 }
  0x88   : > { %1593 = vmatpush.bf16.msrb.mxu2 %v2259_v33  ;;  %v2830_v7 = vld [vmem:[%s3556_s5 + $0x500] sm:$0xf]  ;;  %v3132_v10 = vld [vmem:[%s3556_s5 + $0x50c] sm:$0xf0]  ;;  %v2560_v19 = vld [vmem:[%s3556_s5 + $0x2f0] sm:$0xf0]  ;;  %v2703_v22 = vor.u32 %v3100_v6, %v2702_v5 }
  0x89   : > { %1607 = vmatpush.bf16.msrb.mxu3 %v2387_v37  ;;  %v3094_v20 = vld [vmem:[%s3556_s5 + $0x3e4] sm:$0xf]  ;;  %v2688_v21 = vld [vmem:[%s3556_s5 + $0x3f0] sm:$0xf0]  ;;  %v2831_v26 = vor.u32 %v3132_v10, %v2830_v7  ;;  %v2182_v29 = vld [vmem:[%s3554_s29 + $0x10] sm:$0xf]  ;;  %v2563_v33 = vor.u32 %v3062_v17, %v2560_v19 }
  0x8a   : > { %v3126_v23 = vld [vmem:[%s3556_s5 + $0x4e4] sm:$0xf]  ;;  %v2816_v24 = vld [vmem:[%s3556_s5 + $0x4f0] sm:$0xf0]  ;;  %v2969_v31 = vld [vmem:[%s3554_s29 + $0x24] sm:$0xf0]  ;;  %v2691_v36 = vor.u32 %v3094_v20, %v2688_v21 }
  0x8b   : > { %1566 = vmatpush.bf16.msrb.mxu0 %v2751_v43  ;;  %1580 = vmatpush.bf16.msrb.mxu1 %v2879_v44  ;;  %v3158_v25 = vld [vmem:[%s3556_s5 + $0x5e4] sm:$0xf]  ;;  %v2944_v28 = vld [vmem:[%s3556_s5 + $0x5f0] sm:$0xf0]  ;;  %v2184_v35 = vld [vmem:[%s3554_s29 + $0x28] sm:$0xf0]  ;;  %v2819_v37 = vor.u32 %v3126_v23, %v2816_v24  ;;  %v3735_v42 = vor.u32 %v2969_v31, %v2182_v29 }
  0x8c   : > { %1594 = vmatpush.bf16.msrb.mxu2 %v2243_v45  ;;  %v2966_v34 = vld [vmem:[%s3554_s29 + $0x14] sm:$0xf]  ;;  %v2947_v41 = vor.u32 %v3158_v25, %v2944_v28 }
  0x8d   : > { %1608 = vmatpush.bf16.msrb.mxu3 %v2371_v49  ;;  %v3058_v38 = vld [vmem:[%s3556_s5 + $0x2c4] sm:$0xf]  ;;  %v2544_v39 = vld [vmem:[%s3556_s5 + $0x2d0] sm:$0xf0]  ;;  %v3740_v46 = vor.u32 %v2966_v34, %v2184_v35 }
  0x8e   : > { %v3090_v40 = vld [vmem:[%s3556_s5 + $0x3c4] sm:$0xf]  ;;  %v2672_v43 = vld [vmem:[%s3556_s5 + $0x3d0] sm:$0xf0]  ;;  %v2547_v49 = vor.u32 %v3058_v38, %v2544_v39 }
  0x8f   : > { %1567 = vmatpush.bf16.msrb.mxu0 %v2735_v55  ;;  %1581 = vmatpush.bf16.msrb.mxu1 %v2863_v56  ;;  %v3122_v44 = vld [vmem:[%s3556_s5 + $0x4c4] sm:$0xf]  ;;  %v2800_v45 = vld [vmem:[%s3556_s5 + $0x4d0] sm:$0xf0]  ;;  %v2675_v50 = vor.u32 %v3090_v40, %v2672_v43 }
  0x90   : > { %1595 = vmatpush.bf16.msrb.mxu2 %v2227_v57  ;;  %v3154_v47 = vld [vmem:[%s3556_s5 + $0x5c4] sm:$0xf]  ;;  %v2928_v48 = vld [vmem:[%s3556_s5 + $0x5d0] sm:$0xf0]  ;;  %v2803_v51 = vor.u32 %v3122_v44, %v2800_v45 }
  0x91   : > { %1609 = vmatpush.bf16.msrb.mxu3 %v2355_v61  ;;  %v3054_v52 = vld [vmem:[%s3556_s5 + $0x2a4] sm:$0xf]  ;;  %v2528_v53 = vld [vmem:[%s3556_s5 + $0x2b0] sm:$0xf0]  ;;  %v2931_v55 = vor.u32 %v3154_v47, %v2928_v48 }
  0x92   : > { %v3086_v54 = vld [vmem:[%s3556_s5 + $0x3a4] sm:$0xf]  ;;  %v2656_v56 = vld [vmem:[%s3556_s5 + $0x3b0] sm:$0xf0]  ;;  %v2531_v61 = vor.u32 %v3054_v52, %v2528_v53 }
  0x93   : > { %1568 = vmatpush.bf16.msrb.mxu0 %v2719_v4  ;;  %1582 = vmatpush.bf16.msrb.mxu1 %v2847_v8  ;;  %v3118_v57 = vld [vmem:[%s3556_s5 + $0x4a4] sm:$0xf]  ;;  %v2784_v58 = vld [vmem:[%s3556_s5 + $0x4b0] sm:$0xf0]  ;;  %v2659_v62 = vor.u32 %v3086_v54, %v2656_v56 }
  0x94   : > { %1596 = vmatpush.bf16.msrb.mxu2 %v2211_v9  ;;  %v3150_v59 = vld [vmem:[%s3556_s5 + $0x5a4] sm:$0xf]  ;;  %v2912_v60 = vld [vmem:[%s3556_s5 + $0x5b0] sm:$0xf0]  ;;  %v2787_v63 = vor.u32 %v3118_v57, %v2784_v58 }
  0x95   : > { %1610 = vmatpush.bf16.msrb.mxu3 %v2339_v14  ;;  %v3050_v0 = vld [vmem:[%s3556_s5 + $0x284] sm:$0xf]  ;;  %v2512_v2 = vld [vmem:[%s3556_s5 + $0x290] sm:$0xf0]  ;;  %v2915_v4 = vor.u32 %v3150_v59, %v2912_v60 }
  0x96   : > { %v3082_v3 = vld [vmem:[%s3556_s5 + $0x384] sm:$0xf]  ;;  %v2640_v5 = vld [vmem:[%s3556_s5 + $0x390] sm:$0xf0]  ;;  %v2515_v10 = vor.u32 %v3050_v0, %v2512_v2  ;;  %v3001_v0 = vld [vmem:[%s3556_s5 + $0xf4] sm:$0xf0] }
  0x97   : > { %1569 = vmatpush.bf16.msrb.mxu0 %v2703_v22  ;;  %1583 = vmatpush.bf16.msrb.mxu1 %v2831_v26  ;;  %v3114_v6 = vld [vmem:[%s3556_s5 + $0x484] sm:$0xf]  ;;  %v2768_v7 = vld [vmem:[%s3556_s5 + $0x490] sm:$0xf0]  ;;  %v2643_v11 = vor.u32 %v3082_v3, %v2640_v5  ;;  %v2438_v2 = vld [vmem:[%s3556_s5 + $0x1e8] sm:$0xf] }
  0x98   : > { %1597 = vmatpush.bf16.msrb.mxu2 %v2195_v27  ;;  %v3146_v8 = vld [vmem:[%s3556_s5 + $0x584] sm:$0xf]  ;;  %v2896_v9 = vld [vmem:[%s3556_s5 + $0x590] sm:$0xf0]  ;;  %v2771_v13 = vor.u32 %v3114_v6, %v2768_v7  ;;  %v2566_v5 = vld [vmem:[%s3556_s5 + $0x2e8] sm:$0xf] }
  0x99   : > { %1611 = vmatpush.bf16.msrb.mxu3 %v2323_v32  ;;  %v3046_v14 = vld [vmem:[%s3556_s5 + $0x264] sm:$0xf]  ;;  %v2496_v15 = vld [vmem:[%s3556_s5 + $0x270] sm:$0xf0]  ;;  %v2899_v17 = vor.u32 %v3146_v8, %v2896_v9  ;;  %v3065_v6 = vld [vmem:[%s3556_s5 + $0x2f4] sm:$0xf0] }
  0x9a   : > { %1570 = vmatmul.bf16.vlgmr.msrb.gmra.mxu0 %v3735_v42  ;;  %1584 = vmatmul.bf16.vlgmr.msrb.gmra.mxu1 %v3740_v46  ;;  %v3078_v16 = vld [vmem:[%s3556_s5 + $0x364] sm:$0xf]  ;;  %v2624_v19 = vld [vmem:[%s3556_s5 + $0x370] sm:$0xf0]  ;;  %v2499_v24 = vor.u32 %v3046_v14, %v2496_v15  ;;  %v2694_v9 = vld [vmem:[%s3556_s5 + $0x3e8] sm:$0xf]  ;;  %v2567_v15 = vor.u32 %v3065_v6, %v2566_v5 }
  0x9b   : > { %1618 = vmatpush.bf16.msra.mxu0 %v2563_v33  ;;  %1632 = vmatpush.bf16.msra.mxu1 %v2691_v36  ;;  %v3110_v20 = vld [vmem:[%s3556_s5 + $0x464] sm:$0xf]  ;;  %v2752_v21 = vld [vmem:[%s3556_s5 + $0x470] sm:$0xf0]  ;;  %v2627_v25 = vor.u32 %v3078_v16, %v2624_v19  ;;  %v2294_v16 = vld [vmem:[%s3556_s5 + $0xc8] sm:$0xf] }
  0x9c   : > { %1646 = vmatpush.bf16.msra.mxu2 %v2819_v37  ;;  %1612 = vmatmul.bf16.vlgmr.msrb.gmra.mxu3 %v3667_v12  ;;  %v3142_v22 = vld [vmem:[%s3556_s5 + $0x564] sm:$0xf]  ;;  %v2880_v23 = vld [vmem:[%s3556_s5 + $0x570] sm:$0xf0]  ;;  %v2755_v26 = vor.u32 %v3110_v20, %v2752_v21  ;;  %v2422_v19 = vld [vmem:[%s3556_s5 + $0x1c8] sm:$0xf] }
  0x9d   : > { %1660 = vmatpush.bf16.msra.mxu3 %v2947_v41  ;;  %1598 = vmatmul.bf16.vlgmr.msrb.gmra.mxu2 %v3657_v1  ;;  %v3042_v27 = vld [vmem:[%s3556_s5 + $0x244] sm:$0xf]  ;;  %v2480_v28 = vld [vmem:[%s3556_s5 + $0x250] sm:$0xf0]  ;;  %v2883_v31 = vor.u32 %v3142_v22, %v2880_v23  ;;  %v3029_v21 = vld [vmem:[%s3556_s5 + $0x1d4] sm:$0xf0] }
  0x9e   : > { %v3074_v29 = vld [vmem:[%s3556_s5 + $0x344] sm:$0xf]  ;;  %v2608_v32 = vld [vmem:[%s3556_s5 + $0x350] sm:$0xf0]  ;;  %v2483_v37 = vor.u32 %v3042_v27, %v2480_v28  ;;  %v2550_v22 = vld [vmem:[%s3556_s5 + $0x2c8] sm:$0xf]  ;;  %v2423_v27 = vor.u32 %v3029_v21, %v2422_v19 }
  0x9f   : > { %1619 = vmatpush.bf16.msra.mxu0 %v2547_v49  ;;  %1633 = vmatpush.bf16.msra.mxu1 %v2675_v50  ;;  %v3106_v33 = vld [vmem:[%s3556_s5 + $0x444] sm:$0xf]  ;;  %v2736_v34 = vld [vmem:[%s3556_s5 + $0x450] sm:$0xf0]  ;;  %v2611_v38 = vor.u32 %v3074_v29, %v2608_v32  ;;  %v3061_v23 = vld [vmem:[%s3556_s5 + $0x2d4] sm:$0xf0] }
  0xa0   : > { %1647 = vmatpush.bf16.msra.mxu2 %v2803_v51  ;;  %v3138_v35 = vld [vmem:[%s3556_s5 + $0x544] sm:$0xf]  ;;  %v2864_v36 = vld [vmem:[%s3556_s5 + $0x550] sm:$0xf0]  ;;  %v2739_v39 = vor.u32 %v3106_v33, %v2736_v34  ;;  %v2551_v28 = vor.u32 %v3061_v23, %v2550_v22  ;;  %v2278_v29 = vld [vmem:[%s3556_s5 + $0xa8] sm:$0xf] }
  0xa1   : > { %1661 = vmatpush.bf16.msra.mxu3 %v2931_v55  ;;  %v3038_v40 = vld [vmem:[%s3556_s5 + $0x224] sm:$0xf]  ;;  %v2464_v41 = vld [vmem:[%s3556_s5 + $0x230] sm:$0xf0]  ;;  %v2867_v44 = vor.u32 %v3138_v35, %v2864_v36  ;;  %v2406_v32 = vld [vmem:[%s3556_s5 + $0x1a8] sm:$0xf] }
  0xa2   : > { %v3070_v43 = vld [vmem:[%s3556_s5 + $0x324] sm:$0xf]  ;;  %v2592_v45 = vld [vmem:[%s3556_s5 + $0x330] sm:$0xf0]  ;;  %v2467_v51 = vor.u32 %v3038_v40, %v2464_v41  ;;  %v3025_v34 = vld [vmem:[%s3556_s5 + $0x1b4] sm:$0xf0] }
  0xa3   : > { %1620 = vmatpush.bf16.msra.mxu0 %v2531_v61  ;;  %1634 = vmatpush.bf16.msra.mxu1 %v2659_v62  ;;  %v3102_v47 = vld [vmem:[%s3556_s5 + $0x424] sm:$0xf]  ;;  %v2720_v48 = vld [vmem:[%s3556_s5 + $0x430] sm:$0xf0]  ;;  %v2595_v54 = vor.u32 %v3070_v43, %v2592_v45  ;;  %v2534_v35 = vld [vmem:[%s3556_s5 + $0x2a8] sm:$0xf]  ;;  %v2407_v40 = vor.u32 %v3025_v34, %v2406_v32 }
  0xa4   : > { %1648 = vmatpush.bf16.msra.mxu2 %v2787_v63  ;;  %v3134_v49 = vld [vmem:[%s3556_s5 + $0x524] sm:$0xf]  ;;  %v2848_v50 = vld [vmem:[%s3556_s5 + $0x530] sm:$0xf0]  ;;  %v2723_v55 = vor.u32 %v3102_v47, %v2720_v48  ;;  %v2310_v63 = vld [vmem:[%s3556_s5 + $0xe8] sm:$0xf] }
  0xa5   : > { %1662 = vmatpush.bf16.msra.mxu3 %v2915_v4  ;;  %v3034_v52 = vld [vmem:[%s3556_s5 + $0x204] sm:$0xf]  ;;  %v2448_v53 = vld [vmem:[%s3556_s5 + $0x210] sm:$0xf0]  ;;  %v2851_v59 = vor.u32 %v3134_v49, %v2848_v50  ;;  %v3033_v4 = vld [vmem:[%s3556_s5 + $0x1f4] sm:$0xf0] }
  0xa6   : > { %v3066_v56 = vld [vmem:[%s3556_s5 + $0x304] sm:$0xf]  ;;  %v2576_v57 = vld [vmem:[%s3556_s5 + $0x310] sm:$0xf0]  ;;  %v2451_v3 = vor.u32 %v3034_v52, %v2448_v53  ;;  %v2439_v14 = vor.u32 %v3033_v4, %v2438_v2  ;;  %v3057_v36 = vld [vmem:[%s3556_s5 + $0x2b4] sm:$0xf0] }
  0xa7   : > { %1621 = vmatpush.bf16.msra.mxu0 %v2515_v10  ;;  %1635 = vmatpush.bf16.msra.mxu1 %v2643_v11  ;;  %v3098_v58 = vld [vmem:[%s3556_s5 + $0x404] sm:$0xf]  ;;  %v2704_v60 = vld [vmem:[%s3556_s5 + $0x410] sm:$0xf0]  ;;  %v2579_v7 = vor.u32 %v3066_v56, %v2576_v57  ;;  %v3097_v10 = vld [vmem:[%s3556_s5 + $0x3f4] sm:$0xf0]  ;;  %v2535_v41 = vor.u32 %v3057_v36, %v2534_v35 }
  0xa8   : > { %1649 = vmatpush.bf16.msra.mxu2 %v2771_v13  ;;  %v3130_v61 = vld [vmem:[%s3556_s5 + $0x504] sm:$0xf]  ;;  %v2832_v62 = vld [vmem:[%s3556_s5 + $0x510] sm:$0xf0]  ;;  %v2707_v8 = vor.u32 %v3098_v58, %v2704_v60  ;;  %v2311_v13 = vor.u32 %v3001_v0, %v2310_v63  ;;  %v2695_v20 = vor.u32 %v3097_v10, %v2694_v9  ;;  %v2262_v43 = vld [vmem:[%s3556_s5 + $0x88] sm:$0xf] }
  0xa9   : > { %1663 = vmatpush.bf16.msra.mxu3 %v2899_v17  ;;  %v2835_v11 = vor.u32 %v3130_v61, %v2832_v62  ;;  %v2997_v17 = vld [vmem:[%s3556_s5 + $0xd4] sm:$0xf0]  ;;  %v2390_v45 = vld [vmem:[%s3556_s5 + $0x188] sm:$0xf] }
  0xaa   : > { %v3021_v48 = vld [vmem:[%s3556_s5 + $0x194] sm:$0xf0]  ;;  %v2518_v49 = vld [vmem:[%s3556_s5 + $0x288] sm:$0xf] }
  0xab   : > { %1622 = vmatpush.bf16.msra.mxu0 %v2499_v24  ;;  %1636 = vmatpush.bf16.msra.mxu1 %v2627_v25  ;;  %v2678_v24 = vld [vmem:[%s3556_s5 + $0x3c8] sm:$0xf]  ;;  %v3093_v25 = vld [vmem:[%s3556_s5 + $0x3d4] sm:$0xf0] }
  0xac   : > { %1650 = vmatpush.bf16.msra.mxu2 %v2755_v26  ;;  %v2295_v26 = vor.u32 %v2997_v17, %v2294_v16  ;;  %v2679_v33 = vor.u32 %v3093_v25, %v2678_v24  ;;  %v3053_v50 = vld [vmem:[%s3556_s5 + $0x294] sm:$0xf0]  ;;  %v2246_v56 = vld [vmem:[%s3556_s5 + $0x68] sm:$0xf] }
  0xad   : > { %1664 = vmatpush.bf16.msra.mxu3 %v2883_v31  ;;  %v2993_v31 = vld [vmem:[%s3556_s5 + $0xb4] sm:$0xf0]  ;;  %v2374_v58 = vld [vmem:[%s3556_s5 + $0x168] sm:$0xf] }
  0xae   : > { %v3085_v52 = vld [vmem:[%s3556_s5 + $0x394] sm:$0xf0]  ;;  %v2502_v61 = vld [vmem:[%s3556_s5 + $0x268] sm:$0xf] }
  0xaf   : > { %1623 = vmatpush.bf16.msra.mxu0 %v2483_v37  ;;  %1637 = vmatpush.bf16.msra.mxu1 %v2611_v38  ;;  %v2662_v37 = vld [vmem:[%s3556_s5 + $0x3a8] sm:$0xf]  ;;  %v3089_v38 = vld [vmem:[%s3556_s5 + $0x3b4] sm:$0xf0] }
  0xb0   : > { %1651 = vmatpush.bf16.msra.mxu2 %v2739_v39  ;;  %v2279_v39 = vor.u32 %v2993_v31, %v2278_v29  ;;  %v2663_v47 = vor.u32 %v3089_v38, %v2662_v37  ;;  %v2985_v57 = vld [vmem:[%s3556_s5 + $0x74] sm:$0xf0]  ;;  %v2630_v63 = vld [vmem:[%s3556_s5 + $0x368] sm:$0xf] }
  0xb1   : > { %1665 = vmatpush.bf16.msra.mxu3 %v2867_v44  ;;  %v2989_v44 = vld [vmem:[%s3556_s5 + $0x94] sm:$0xf0]  ;;  %v2247_v2 = vor.u32 %v2985_v57, %v2246_v56  ;;  %v2230_v5 = vld [vmem:[%s3556_s5 + $0x48] sm:$0xf] }
  0xb2   : > { %v2263_v53 = vor.u32 %v2989_v44, %v2262_v43  ;;  %v3017_v60 = vld [vmem:[%s3556_s5 + $0x174] sm:$0xf0]  ;;  %v2486_v10 = vld [vmem:[%s3556_s5 + $0x248] sm:$0xf] }
  0xb3   : > { %1624 = vmatpush.bf16.msra.mxu0 %v2467_v51  ;;  %1638 = vmatpush.bf16.msra.mxu1 %v2595_v54  ;;  %v2646_v51 = vld [vmem:[%s3556_s5 + $0x388] sm:$0xf]  ;;  %v2391_v54 = vor.u32 %v3021_v48, %v2390_v45  ;;  %v3049_v62 = vld [vmem:[%s3556_s5 + $0x274] sm:$0xf0]  ;;  %v2999_v48 = vld [vmem:[%s3556_s5 + $0xec] sm:$0xf] }
  0xb4   : > { %1652 = vmatpush.bf16.msra.mxu2 %v2723_v55  ;;  %v2519_v55 = vor.u32 %v3053_v50, %v2518_v49  ;;  %v3081_v0 = vld [vmem:[%s3556_s5 + $0x374] sm:$0xf0]  ;;  %v2503_v4 = vor.u32 %v3049_v62, %v2502_v61  ;;  %v2214_v19 = vld [vmem:[%s3556_s5 + $0x28] sm:$0xf]  ;;  %v2312_v49 = vld [vmem:[%s3556_s5 + $0xf8] sm:$0xf0] }
  0xb5   : > { %1666 = vmatpush.bf16.msra.mxu3 %v2851_v59  ;;  %v2647_v59 = vor.u32 %v3085_v52, %v2646_v51  ;;  %v2981_v6 = vld [vmem:[%s3556_s5 + $0x54] sm:$0xf0]  ;;  %v2342_v21 = vld [vmem:[%s3556_s5 + $0x128] sm:$0xf]  ;;  %v3031_v52 = vld [vmem:[%s3556_s5 + $0x1ec] sm:$0xf]  ;;  %v2315_v57 = vor.u32 %v2999_v48, %v2312_v49 }
  0xb6   : > { %v3013_v9 = vld [vmem:[%s3556_s5 + $0x154] sm:$0xf0]  ;;  %v2470_v24 = vld [vmem:[%s3556_s5 + $0x228] sm:$0xf] }
  0xb7   : > { %1625 = vmatpush.bf16.msra.mxu0 %v2451_v3  ;;  %1639 = vmatpush.bf16.msra.mxu1 %v2579_v7  ;;  %v2375_v3 = vor.u32 %v3017_v60, %v2374_v58  ;;  %v2358_v7 = vld [vmem:[%s3556_s5 + $0x148] sm:$0xf]  ;;  %v3009_v23 = vld [vmem:[%s3556_s5 + $0x134] sm:$0xf0] }
  0xb8   : > { %1653 = vmatpush.bf16.msra.mxu2 %v2707_v8  ;;  %v2631_v8 = vor.u32 %v3081_v0, %v2630_v63  ;;  %v2359_v16 = vor.u32 %v3013_v9, %v2358_v7  ;;  %v3041_v25 = vld [vmem:[%s3556_s5 + $0x234] sm:$0xf0]  ;;  %v2198_v29 = vld [vmem:[%s3556_s5 + $0x8] sm:$0xf]  ;;  %v2343_v32 = vor.u32 %v3009_v23, %v2342_v21  ;;  %v2995_v63 = vld [vmem:[%s3556_s5 + $0xcc] sm:$0xf] }
  0xb9   : > { %1667 = vmatpush.bf16.msra.mxu3 %v2835_v11  ;;  %v3045_v11 = vld [vmem:[%s3556_s5 + $0x254] sm:$0xf0]  ;;  %v2326_v34 = vld [vmem:[%s3556_s5 + $0x108] sm:$0xf]  ;;  %v2296_v0 = vld [vmem:[%s3556_s5 + $0xd8] sm:$0xf0] }
  0xba   : > { %1626 = vmatmul.bf16.vlgmr.msra.gmra.mxu0 %v3673_v18  ;;  %1640 = vmatmul.bf16.vlgmr.msra.gmra.mxu1 %v3685_v30  ;;  %v2487_v17 = vor.u32 %v3045_v11, %v2486_v10  ;;  %v2973_v31 = vld [vmem:[%s3556_s5 + $0x14] sm:$0xf0]  ;;  %v2454_v36 = vld [vmem:[%s3556_s5 + $0x208] sm:$0xf] }
  0xbb   : > { %1674 = vmatpush.bf16.msrb.mxu0 %v2311_v13  ;;  %1688 = vmatpush.bf16.msrb.mxu1 %v2439_v14  ;;  %v2614_v13 = vld [vmem:[%s3556_s5 + $0x348] sm:$0xf]  ;;  %v3077_v14 = vld [vmem:[%s3556_s5 + $0x354] sm:$0xf0]  ;;  %v2199_v45 = vor.u32 %v2973_v31, %v2198_v29  ;;  %v2392_v29 = vld [vmem:[%s3556_s5 + $0x198] sm:$0xf0] }
  0xbc   : > { %1702 = vmatpush.bf16.msrb.mxu2 %v2567_v15  ;;  %1668 = vmatmul.bf16.vlgmr.msra.gmra.mxu3 %v3740_v46  ;;  %v2231_v15 = vor.u32 %v2981_v6, %v2230_v5  ;;  %v2615_v22 = vor.u32 %v3077_v14, %v2614_v13  ;;  %v3005_v35 = vld [vmem:[%s3556_s5 + $0x114] sm:$0xf0]  ;;  %v2950_v44 = vld [vmem:[%s3556_s5 + $0x5e8] sm:$0xf]  ;;  %v2299_v6 = vor.u32 %v2995_v63, %v2296_v0  ;;  %v2991_v13 = vld [vmem:[%s3556_s5 + $0xac] sm:$0xf] }
  0xbd   : > { %1716 = vmatpush.bf16.msrb.mxu3 %v2695_v20  ;;  %1654 = vmatmul.bf16.vlgmr.msra.gmra.mxu2 %v3735_v42  ;;  %v2977_v20 = vld [vmem:[%s3556_s5 + $0x34] sm:$0xf0]  ;;  %v2327_v50 = vor.u32 %v3005_v35, %v2326_v34  ;;  %v2806_v58 = vld [vmem:[%s3556_s5 + $0x4c8] sm:$0xf]  ;;  %v2280_v14 = vld [vmem:[%s3556_s5 + $0xb8] sm:$0xf0] }
  0xbe   : > { %v3037_v38 = vld [vmem:[%s3556_s5 + $0x214] sm:$0xf0]  ;;  %v2934_v60 = vld [vmem:[%s3556_s5 + $0x5c8] sm:$0xf] }
  0xbf   : > { %1675 = vmatpush.bf16.msrb.mxu0 %v2295_v26  ;;  %1689 = vmatpush.bf16.msrb.mxu1 %v2423_v27  ;;  %v2598_v26 = vld [vmem:[%s3556_s5 + $0x328] sm:$0xf]  ;;  %v3073_v27 = vld [vmem:[%s3556_s5 + $0x334] sm:$0xf0]  ;;  %v2455_v51 = vor.u32 %v3037_v38, %v2454_v36 }
  0xc0   : > { %1703 = vmatpush.bf16.msrb.mxu2 %v2551_v28  ;;  %v2215_v28 = vor.u32 %v2977_v20, %v2214_v19  ;;  %v2599_v37 = vor.u32 %v3073_v27, %v2598_v26  ;;  %v3129_v43 = vld [vmem:[%s3556_s5 + $0x4f4] sm:$0xf0]  ;;  %v2790_v7 = vld [vmem:[%s3556_s5 + $0x4a8] sm:$0xf]  ;;  %v2283_v20 = vor.u32 %v2991_v13, %v2280_v14  ;;  %v2987_v26 = vld [vmem:[%s3556_s5 + $0x8c] sm:$0xf] }
  0xc1   : > { %1717 = vmatpush.bf16.msrb.mxu3 %v2679_v33  ;;  %v2471_v33 = vor.u32 %v3041_v25, %v2470_v24  ;;  %v3157_v62 = vld [vmem:[%s3556_s5 + $0x5d4] sm:$0xf0]  ;;  %v2918_v9 = vld [vmem:[%s3556_s5 + $0x5a8] sm:$0xf]  ;;  %v2264_v27 = vld [vmem:[%s3556_s5 + $0x98] sm:$0xf0] }
  0xc2   : > { %v2935_v5 = vor.u32 %v3157_v62, %v2934_v60  ;;  %v3153_v11 = vld [vmem:[%s3556_s5 + $0x5b4] sm:$0xf0]  ;;  %v2774_v21 = vld [vmem:[%s3556_s5 + $0x488] sm:$0xf]  ;;  %v2971_v14 = vld [vmem:[%s3556_s5 + $0xc] sm:$0xf] }
  0xc3   : > { %1676 = vmatpush.bf16.msrb.mxu0 %v2279_v39  ;;  %1690 = vmatpush.bf16.msrb.mxu1 %v2407_v40  ;;  %v2582_v39 = vld [vmem:[%s3556_s5 + $0x308] sm:$0xf]  ;;  %v3069_v40 = vld [vmem:[%s3556_s5 + $0x314] sm:$0xf0]  ;;  %v2919_v19 = vor.u32 %v3153_v11, %v2918_v9 }
  0xc4   : > { %1704 = vmatpush.bf16.msrb.mxu2 %v2535_v41  ;;  %v2822_v41 = vld [vmem:[%s3556_s5 + $0x4e8] sm:$0xf]  ;;  %v3149_v25 = vld [vmem:[%s3556_s5 + $0x594] sm:$0xf0] }
  0xc5   : > { %1718 = vmatpush.bf16.msrb.mxu3 %v2663_v47  ;;  %v3161_v47 = vld [vmem:[%s3556_s5 + $0x5f4] sm:$0xf0]  ;;  %v2902_v23 = vld [vmem:[%s3556_s5 + $0x588] sm:$0xf] }
  0xc6   : > { %v2951_v56 = vor.u32 %v3161_v47, %v2950_v44  ;;  %v2758_v34 = vld [vmem:[%s3556_s5 + $0x468] sm:$0xf]  ;;  %v3113_v35 = vld [vmem:[%s3556_s5 + $0x474] sm:$0xf0] }
  0xc7   : > { %1677 = vmatpush.bf16.msrb.mxu0 %v2263_v53  ;;  %1691 = vmatpush.bf16.msrb.mxu1 %v2391_v54  ;;  %v2440_v53 = vld [vmem:[%s3556_s5 + $0x1f8] sm:$0xf0]  ;;  %v2583_v54 = vor.u32 %v3069_v40, %v2582_v39  ;;  %v2886_v36 = vld [vmem:[%s3556_s5 + $0x568] sm:$0xf]  ;;  %v3145_v38 = vld [vmem:[%s3556_s5 + $0x574] sm:$0xf0]  ;;  %v2759_v44 = vor.u32 %v3113_v35, %v2758_v34 }
  0xc8   : > { %1705 = vmatpush.bf16.msrb.mxu2 %v2519_v55  ;;  %v2823_v55 = vor.u32 %v3129_v43, %v2822_v41  ;;  %v2443_v61 = vor.u32 %v3031_v52, %v2440_v53  ;;  %v2983_v39 = vld [vmem:[%s3556_s5 + $0x6c] sm:$0xf]  ;;  %v2248_v40 = vld [vmem:[%s3556_s5 + $0x78] sm:$0xf0]  ;;  %v2742_v48 = vld [vmem:[%s3556_s5 + $0x448] sm:$0xf] }
  0xc9   : > { %1719 = vmatpush.bf16.msrb.mxu3 %v2647_v59  ;;  %v3125_v59 = vld [vmem:[%s3556_s5 + $0x4d4] sm:$0xf0]  ;;  %v3015_v41 = vld [vmem:[%s3556_s5 + $0x16c] sm:$0xf]  ;;  %v2376_v43 = vld [vmem:[%s3556_s5 + $0x178] sm:$0xf0]  ;;  %v2251_v47 = vor.u32 %v2983_v39, %v2248_v40 }
  0xca   : > { %v3109_v49 = vld [vmem:[%s3556_s5 + $0x454] sm:$0xf0]  ;;  %v2979_v53 = vld [vmem:[%s3556_s5 + $0x4c] sm:$0xf]  ;;  %v2726_v60 = vld [vmem:[%s3556_s5 + $0x428] sm:$0xf] }
  0xcb   : > { %1678 = vmatpush.bf16.msrb.mxu0 %v2247_v2  ;;  %1692 = vmatpush.bf16.msrb.mxu1 %v2375_v3  ;;  %v3027_v2 = vld [vmem:[%s3556_s5 + $0x1cc] sm:$0xf]  ;;  %v2424_v3 = vld [vmem:[%s3556_s5 + $0x1d8] sm:$0xf0]  ;;  %v3141_v52 = vld [vmem:[%s3556_s5 + $0x554] sm:$0xf0] }
  0xcc   : > { %1706 = vmatpush.bf16.msrb.mxu2 %v2503_v4  ;;  %v2807_v4 = vor.u32 %v3125_v59, %v2806_v58  ;;  %v2427_v10 = vor.u32 %v3027_v2, %v2424_v3  ;;  %v2854_v62 = vld [vmem:[%s3556_s5 + $0x528] sm:$0xf]  ;;  %v3137_v0 = vld [vmem:[%s3556_s5 + $0x534] sm:$0xf0]  ;;  %v2975_v2 = vld [vmem:[%s3556_s5 + $0x2c] sm:$0xf] }
  0xcd   : > { %1720 = vmatpush.bf16.msrb.mxu3 %v2631_v8  ;;  %v3121_v8 = vld [vmem:[%s3556_s5 + $0x4b4] sm:$0xf0]  ;;  %v2216_v3 = vld [vmem:[%s3556_s5 + $0x38] sm:$0xf0]  ;;  %v2855_v9 = vor.u32 %v3137_v0, %v2854_v62  ;;  %v2838_v11 = vld [vmem:[%s3556_s5 + $0x508] sm:$0xf] }
  0xce   : > { %v3133_v13 = vld [vmem:[%s3556_s5 + $0x514] sm:$0xf0]  ;;  %v2680_v40 = vld [vmem:[%s3556_s5 + $0x3d8] sm:$0xf0]  ;;  %v3051_v62 = vld [vmem:[%s3556_s5 + $0x28c] sm:$0xf] }
  0xcf   : > { %1679 = vmatpush.bf16.msrb.mxu0 %v2231_v15  ;;  %1693 = vmatpush.bf16.msrb.mxu1 %v2359_v16  ;;  %v3023_v15 = vld [vmem:[%s3556_s5 + $0x1ac] sm:$0xf]  ;;  %v2408_v16 = vld [vmem:[%s3556_s5 + $0x1b8] sm:$0xf0] }
  0xd0   : > { %1707 = vmatpush.bf16.msrb.mxu2 %v2487_v17  ;;  %v2791_v17 = vor.u32 %v3121_v8, %v2790_v7  ;;  %v2411_v24 = vor.u32 %v3023_v15, %v2408_v16  ;;  %v2710_v7 = vld [vmem:[%s3556_s5 + $0x408] sm:$0xf]  ;;  %v3101_v8 = vld [vmem:[%s3556_s5 + $0x414] sm:$0xf0]  ;;  %v2200_v16 = vld [vmem:[%s3556_s5 + $0x18] sm:$0xf0] }
  0xd1   : > { %1721 = vmatpush.bf16.msrb.mxu3 %v2615_v22  ;;  %v3117_v22 = vld [vmem:[%s3556_s5 + $0x494] sm:$0xf0]  ;;  %v3083_v0 = vld [vmem:[%s3556_s5 + $0x38c] sm:$0xf] }
  0xd2   : > { %v2775_v31 = vor.u32 %v3117_v22, %v2774_v21  ;;  %v2568_v21 = vld [vmem:[%s3556_s5 + $0x2f8] sm:$0xf0]  ;;  %v3095_v22 = vld [vmem:[%s3556_s5 + $0x3ec] sm:$0xf] }
  0xd3   : > { %1680 = vmatpush.bf16.msrb.mxu0 %v2215_v28  ;;  %1694 = vmatpush.bf16.msrb.mxu1 %v2343_v32  ;;  %v3019_v28 = vld [vmem:[%s3556_s5 + $0x18c] sm:$0xf]  ;;  %v2903_v32 = vor.u32 %v3149_v25, %v2902_v23  ;;  %v2711_v23 = vor.u32 %v3101_v8, %v2710_v7 }
  0xd4   : > { %1708 = vmatpush.bf16.msrb.mxu2 %v2471_v33  ;;  %v2267_v33 = vor.u32 %v2987_v26, %v2264_v27  ;;  %v3127_v25 = vld [vmem:[%s3556_s5 + $0x4ec] sm:$0xf]  ;;  %v2824_v26 = vld [vmem:[%s3556_s5 + $0x4f8] sm:$0xf0]  ;;  %v2839_v27 = vor.u32 %v3133_v13, %v2838_v11 }
  0xd5   : > { %1722 = vmatpush.bf16.msrb.mxu3 %v2599_v37  ;;  %v2395_v37 = vor.u32 %v3019_v28, %v2392_v29  ;;  %v2203_v28 = vor.u32 %v2971_v14, %v2200_v16  ;;  %v3159_v29 = vld [vmem:[%s3556_s5 + $0x5ec] sm:$0xf]  ;;  %v2827_v35 = vor.u32 %v3127_v25, %v2824_v26  ;;  %v2632_v14 = vld [vmem:[%s3556_s5 + $0x378] sm:$0xf0] }
  0xd6   : > { %v3079_v11 = vld [vmem:[%s3556_s5 + $0x36c] sm:$0xf]  ;;  %v2760_v16 = vld [vmem:[%s3556_s5 + $0x478] sm:$0xf0] }
  0xd7   : > { %1681 = vmatpush.bf16.msrb.mxu0 %v2199_v45  ;;  %1695 = vmatpush.bf16.msrb.mxu1 %v2327_v50  ;;  %v2887_v45 = vor.u32 %v3145_v38, %v2886_v36  ;;  %v2870_v50 = vld [vmem:[%s3556_s5 + $0x548] sm:$0xf]  ;;  %v3059_v36 = vld [vmem:[%s3556_s5 + $0x2cc] sm:$0xf] }
  0xd8   : > { %1709 = vmatpush.bf16.msrb.mxu2 %v2455_v51  ;;  %v2379_v51 = vor.u32 %v3015_v41, %v2376_v43  ;;  %v2871_v58 = vor.u32 %v3141_v52, %v2870_v50  ;;  %v3091_v38 = vld [vmem:[%s3556_s5 + $0x3cc] sm:$0xf]  ;;  %v2808_v43 = vld [vmem:[%s3556_s5 + $0x4d8] sm:$0xf0] }
  0xd9   : > { %1723 = vmatpush.bf16.msrb.mxu3 %v2583_v54  ;;  %v2232_v54 = vld [vmem:[%s3556_s5 + $0x58] sm:$0xf0]  ;;  %v3123_v41 = vld [vmem:[%s3556_s5 + $0x4cc] sm:$0xf] }
  0xda   : > { %1682 = vmatmul.bf16.vlgmr.msrb.gmra.mxu0 %v3657_v1  ;;  %1696 = vmatmul.bf16.vlgmr.msrb.gmra.mxu1 %v3667_v12  ;;  %v2235_v59 = vor.u32 %v2979_v53, %v2232_v54  ;;  %v3055_v50 = vld [vmem:[%s3556_s5 + $0x2ac] sm:$0xf]  ;;  %v2664_v54 = vld [vmem:[%s3556_s5 + $0x3b8] sm:$0xf0] }
  0xdb   : > { %1730 = vmatpush.bf16.msra.mxu0 %v2823_v55  ;;  %1744 = vmatpush.bf16.msra.mxu1 %v2951_v56  ;;  %v3011_v55 = vld [vmem:[%s3556_s5 + $0x14c] sm:$0xf]  ;;  %v2360_v56 = vld [vmem:[%s3556_s5 + $0x158] sm:$0xf0] }
  0xdc   : > { %1758 = vmatpush.bf16.msra.mxu2 %v2315_v57  ;;  %1724 = vmatmul.bf16.vlgmr.msrb.gmra.mxu3 %v3685_v30  ;;  %v2743_v57 = vor.u32 %v3109_v49, %v2742_v48  ;;  %v2363_v63 = vor.u32 %v3011_v55, %v2360_v56  ;;  %v2683_v48 = vor.u32 %v3091_v38, %v2680_v40  ;;  %v3087_v52 = vld [vmem:[%s3556_s5 + $0x3ac] sm:$0xf]  ;;  %v2792_v56 = vld [vmem:[%s3556_s5 + $0x4b8] sm:$0xf0] }
  0xdd   : > { %1772 = vmatpush.bf16.msra.mxu3 %v2443_v61  ;;  %1710 = vmatmul.bf16.vlgmr.msrb.gmra.mxu2 %v3673_v18  ;;  %v3105_v61 = vld [vmem:[%s3556_s5 + $0x434] sm:$0xf0]  ;;  %v2811_v49 = vor.u32 %v3123_v41, %v2808_v43  ;;  %v3119_v55 = vld [vmem:[%s3556_s5 + $0x4ac] sm:$0xf]  ;;  %v2472_v38 = vld [vmem:[%s3556_s5 + $0x238] sm:$0xf0] }
  0xde   : > { %v3075_v25 = vld [vmem:[%s3556_s5 + $0x34c] sm:$0xf]  ;;  %v2600_v41 = vld [vmem:[%s3556_s5 + $0x338] sm:$0xf0] }
  0xdf   : > { %1731 = vmatpush.bf16.msra.mxu0 %v2807_v4  ;;  %1745 = vmatpush.bf16.msra.mxu1 %v2935_v5  ;;  %v3007_v4 = vld [vmem:[%s3556_s5 + $0x12c] sm:$0xf]  ;;  %v2344_v5 = vld [vmem:[%s3556_s5 + $0x138] sm:$0xf0] }
  0xe0   : > { %1759 = vmatpush.bf16.msra.mxu2 %v2299_v6  ;;  %v2727_v6 = vor.u32 %v3105_v61, %v2726_v60  ;;  %v2347_v15 = vor.u32 %v3007_v4, %v2344_v5  ;;  %v2667_v60 = vor.u32 %v3087_v52, %v2664_v54  ;;  %v2795_v61 = vor.u32 %v3119_v55, %v2792_v56  ;;  %v2776_v4 = vld [vmem:[%s3556_s5 + $0x498] sm:$0xf0]  ;;  %v3103_v43 = vld [vmem:[%s3556_s5 + $0x42c] sm:$0xf] }
  0xe1   : > { %1773 = vmatpush.bf16.msra.mxu3 %v2427_v10  ;;  %v2219_v10 = vor.u32 %v2975_v2, %v2216_v3  ;;  %v2648_v2 = vld [vmem:[%s3556_s5 + $0x398] sm:$0xf0]  ;;  %v3115_v3 = vld [vmem:[%s3556_s5 + $0x48c] sm:$0xf] }
  0xe2   : > { %v2904_v5 = vld [vmem:[%s3556_s5 + $0x598] sm:$0xf0]  ;;  %v2651_v7 = vor.u32 %v3083_v0, %v2648_v2  ;;  %v2779_v8 = vor.u32 %v3115_v3, %v2776_v4  ;;  %v3035_v52 = vld [vmem:[%s3556_s5 + $0x20c] sm:$0xf] }
  0xe3   : > { %1732 = vmatpush.bf16.msra.mxu0 %v2791_v17  ;;  %1746 = vmatpush.bf16.msra.mxu1 %v2919_v19  ;;  %v3003_v17 = vld [vmem:[%s3556_s5 + $0x10c] sm:$0xf]  ;;  %v2328_v19 = vld [vmem:[%s3556_s5 + $0x118] sm:$0xf0] }
  0xe4   : > { %1760 = vmatpush.bf16.msra.mxu2 %v2283_v20  ;;  %v3063_v20 = vld [vmem:[%s3556_s5 + $0x2ec] sm:$0xf]  ;;  %v2584_v56 = vld [vmem:[%s3556_s5 + $0x318] sm:$0xf0] }
  0xe5   : > { %1774 = vmatpush.bf16.msra.mxu3 %v2411_v24  ;;  %v2696_v24 = vld [vmem:[%s3556_s5 + $0x3f8] sm:$0xf0]  ;;  %v3067_v54 = vld [vmem:[%s3556_s5 + $0x30c] sm:$0xf] }
  0xe6   : > { %v2699_v34 = vor.u32 %v3095_v22, %v2696_v24  ;;  %v2488_v24 = vld [vmem:[%s3556_s5 + $0x258] sm:$0xf0] }
  0xe7   : > { %1733 = vmatpush.bf16.msra.mxu0 %v2775_v31  ;;  %1747 = vmatpush.bf16.msra.mxu1 %v2903_v32  ;;  %v2952_v31 = vld [vmem:[%s3556_s5 + $0x5f8] sm:$0xf0]  ;;  %v2331_v32 = vor.u32 %v3003_v17, %v2328_v19  ;;  %v3143_v17 = vld [vmem:[%s3556_s5 + $0x56c] sm:$0xf] }
  0xe8   : > { %1761 = vmatpush.bf16.msra.mxu2 %v2267_v33  ;;  %v2571_v33 = vor.u32 %v3063_v20, %v2568_v21  ;;  %v2955_v39 = vor.u32 %v3159_v29, %v2952_v31  ;;  %v2888_v19 = vld [vmem:[%s3556_s5 + $0x578] sm:$0xf0]  ;;  %v2635_v21 = vor.u32 %v3079_v11, %v2632_v14  ;;  %v3139_v31 = vld [vmem:[%s3556_s5 + $0x54c] sm:$0xf] }
  0xe9   : > { %1775 = vmatpush.bf16.msra.mxu3 %v2395_v37  ;;  %v2552_v37 = vld [vmem:[%s3556_s5 + $0x2d8] sm:$0xf0]  ;;  %v2891_v26 = vor.u32 %v3143_v17, %v2888_v19 }
  0xea   : > { %v2744_v29 = vld [vmem:[%s3556_s5 + $0x458] sm:$0xf0] }
  0xeb   : > { %1734 = vmatpush.bf16.msra.mxu0 %v2759_v44  ;;  %1748 = vmatpush.bf16.msra.mxu1 %v2887_v45  ;;  %v3155_v44 = vld [vmem:[%s3556_s5 + $0x5cc] sm:$0xf]  ;;  %v2936_v45 = vld [vmem:[%s3556_s5 + $0x5d8] sm:$0xf0] }
  0xec   : > { %1762 = vmatpush.bf16.msra.mxu2 %v2251_v47  ;;  %v2555_v47 = vor.u32 %v3059_v36, %v2552_v37  ;;  %v2939_v53 = vor.u32 %v3155_v44, %v2936_v45  ;;  %v3039_v37 = vld [vmem:[%s3556_s5 + $0x22c] sm:$0xf]  ;;  %v2728_v44 = vld [vmem:[%s3556_s5 + $0x438] sm:$0xf0] }
  0xed   : > { %1776 = vmatpush.bf16.msra.mxu3 %v2379_v51  ;;  %v2536_v51 = vld [vmem:[%s3556_s5 + $0x2b8] sm:$0xf0] }
  0xef   : > { %1735 = vmatpush.bf16.msra.mxu0 %v2743_v57  ;;  %1749 = vmatpush.bf16.msra.mxu1 %v2871_v58  ;;  %v3151_v57 = vld [vmem:[%s3556_s5 + $0x5ac] sm:$0xf]  ;;  %v2920_v58 = vld [vmem:[%s3556_s5 + $0x5b8] sm:$0xf0] }
  0xf0   : > { %1763 = vmatpush.bf16.msra.mxu2 %v2235_v59  ;;  %v2539_v59 = vor.u32 %v3055_v50, %v2536_v51  ;;  %v2731_v51 = vor.u32 %v3103_v43, %v2728_v44 }
  0xf1   : > { %1777 = vmatpush.bf16.msra.mxu3 %v2363_v63  ;;  %v2520_v63 = vld [vmem:[%s3556_s5 + $0x298] sm:$0xf0] }
  0xf3   : > { %1736 = vmatpush.bf16.msra.mxu0 %v2727_v6  ;;  %1750 = vmatpush.bf16.msra.mxu1 %v2855_v9  ;;  %v2523_v6 = vor.u32 %v3051_v62, %v2520_v63  ;;  %v3047_v9 = vld [vmem:[%s3556_s5 + $0x26c] sm:$0xf]  ;;  %v2587_v62 = vor.u32 %v3067_v54, %v2584_v56 }
  0xf4   : > { %1764 = vmatpush.bf16.msra.mxu2 %v2219_v10  ;;  %v2504_v10 = vld [vmem:[%s3556_s5 + $0x278] sm:$0xf0] }
  0xf5   : > { %1778 = vmatpush.bf16.msra.mxu3 %v2347_v15  ;;  %v3111_v15 = vld [vmem:[%s3556_s5 + $0x46c] sm:$0xf]  ;;  %v2507_v20 = vor.u32 %v3047_v9, %v2504_v10 }
  0xf6   : > { %v2763_v22 = vor.u32 %v3111_v15, %v2760_v16 }
  0xf7   : > { %1737 = vmatpush.bf16.msra.mxu0 %v2711_v23  ;;  %1751 = vmatpush.bf16.msra.mxu1 %v2839_v27  ;;  %v3043_v23 = vld [vmem:[%s3556_s5 + $0x24c] sm:$0xf]  ;;  %v2616_v27 = vld [vmem:[%s3556_s5 + $0x358] sm:$0xf0]  ;;  %v1529_v45 = vpop.f32.mrf.mxu1 }
  0xf8   : > { %1765 = vmatpush.bf16.msra.mxu2 %v2203_v28  ;;  %v3107_v28 = vld [vmem:[%s3556_s5 + $0x44c] sm:$0xf] }
  0xf9   : > { %1779 = vmatpush.bf16.msra.mxu3 %v2331_v32  ;;  %v2872_v32 = vld [vmem:[%s3556_s5 + $0x558] sm:$0xf0] }
  0xfa   : > { %1738 = vmatmul.bf16.vlgmr.msra.gmra.mxu0 %v3735_v42  ;;  %1752 = vmatmul.bf16.vlgmr.msra.gmra.mxu1 %v3740_v46  ;;  %v2875_v40 = vor.u32 %v3139_v31, %v2872_v32 }
  0xfb   : > { %1786 = vmatpush.bf16.msrb.mxu0 %v2571_v33  ;;  %1800 = vmatpush.bf16.msrb.mxu1 %v2699_v34  ;;  %v2491_v33 = vor.u32 %v3043_v23, %v2488_v24  ;;  %v2619_v34 = vor.u32 %v3075_v25, %v2616_v27  ;;  %v1515_v36 = vpop.f32.mrf.mxu0 }
  0xfc   : > { %1814 = vmatpush.bf16.msrb.mxu2 %v2827_v35  ;;  %1780 = vmatmul.bf16.vlgmr.msra.gmra.mxu3 %v3667_v12  ;;  %v3147_v12 = vld [vmem:[%s3556_s5 + $0x58c] sm:$0xf]  ;;  %v2747_v35 = vor.u32 %v3107_v28, %v2744_v29  ;;  %v1530_v0 = vadd.f32 %v1529_v45, %v1515_v36 }
  0xfd   : > { %1828 = vmatpush.bf16.msrb.mxu3 %v2955_v39  ;;  %1766 = vmatmul.bf16.vlgmr.msra.gmra.mxu2 %v3657_v1  ;;  %v2923_v1 = vor.u32 %v3151_v57, %v2920_v58  ;;  %v2907_v13 = vor.u32 %v3147_v12, %v2904_v5  ;;  %v3071_v39 = vld [vmem:[%s3556_s5 + $0x32c] sm:$0xf]  ;;  %v2712_v58 = vld [vmem:[%s3556_s5 + $0x418] sm:$0xf0] }
  0xfe   : > { %v2603_v50 = vor.u32 %v3071_v39, %v2600_v41  ;;  %v3099_v57 = vld [vmem:[%s3556_s5 + $0x40c] sm:$0xf] }
  0xff   : > { %1787 = vmatpush.bf16.msrb.mxu0 %v2555_v47  ;;  %1801 = vmatpush.bf16.msrb.mxu1 %v2683_v48  ;;  %v3135_v47 = vld [vmem:[%s3556_s5 + $0x52c] sm:$0xf]  ;;  %v2856_v48 = vld [vmem:[%s3556_s5 + $0x538] sm:$0xf0]  ;;  %v2715_v63 = vor.u32 %v3099_v57, %v2712_v58  ;;  %v1531_v4 = vpop.f32.mrf.mxu1  ;;  %v1557_v5 = vpop.f32.mrf.mxu3 }
 0x100   : > { %1815 = vmatpush.bf16.msrb.mxu2 %v2811_v49  ;;  %v2475_v49 = vor.u32 %v3039_v37, %v2472_v38  ;;  %v2859_v55 = vor.u32 %v3135_v47, %v2856_v48  ;;  %v311_v37 = vld [vmem:[#allocation2] sm:$0xff] }
 0x101   : > { %1829 = vmatpush.bf16.msrb.mxu3 %v2939_v53  ;;  %v2456_v53 = vld [vmem:[%s3556_s5 + $0x218] sm:$0xf0]  ;;  %v315_v48 = vld [vmem:[#allocation2 + $0x20] sm:$0xff] }
 0x103   : > { %1788 = vmatpush.bf16.msrb.mxu0 %v2539_v59  ;;  %1802 = vmatpush.bf16.msrb.mxu1 %v2667_v60  ;;  %v3131_v59 = vld [vmem:[%s3556_s5 + $0x50c] sm:$0xf]  ;;  %v2840_v60 = vld [vmem:[%s3556_s5 + $0x518] sm:$0xf0]  ;;  %v1517_v2 = vpop.f32.mrf.mxu0 }
 0x104   : > { %1816 = vmatpush.bf16.msrb.mxu2 %v2795_v61  ;;  %v2459_v61 = vor.u32 %v3035_v52, %v2456_v53  ;;  %v1543_v3 = vpop.f32.mrf.mxu2 }
 0x105   : > { %1830 = vmatpush.bf16.msrb.mxu3 %v2923_v1  ;;  %v2843_v1 = vor.u32 %v3131_v59, %v2840_v60  ;;  %v1544_v12 = vadd.f32 %v1543_v3, %v1530_v0 }
 0x107   : > { %1789 = vmatpush.bf16.msrb.mxu0 %v2523_v6  ;;  %1803 = vmatpush.bf16.msrb.mxu1 %v2651_v7  ;;  %v1558_v6 = vadd.f32 %v1557_v5, %v1544_v12  ;;  %v1532_v7 = vadd.f32 %v1531_v4, %v1517_v2  ;;  %v1559_v16 = vpop.f32.mrf.mxu3 }
 0x108   : > { %1817 = vmatpush.bf16.msrb.mxu2 %v2779_v8 }
 0x109   : > { %1831 = vmatpush.bf16.msrb.mxu3 %v2907_v13  ;;  %v310_v13 = vld [vmem:[#allocation2 + $0x30] sm:$0xff] }
 0x10b   : > { %1790 = vmatpush.bf16.msrb.mxu0 %v2507_v20  ;;  %1804 = vmatpush.bf16.msrb.mxu1 %v2635_v21  ;;  %v314_v21 = vld [vmem:[#allocation2 + $0x8] sm:$0xff] }
 0x10c   : > { %1818 = vmatpush.bf16.msrb.mxu2 %v2763_v22  ;;  %v1545_v9 = vpop.f32.mrf.mxu2 }
 0x10d   : > { %1832 = vmatpush.bf16.msrb.mxu3 %v2891_v26  ;;  %v1546_v14 = vadd.f32 %v1545_v9, %v1532_v7  ;;  %v316_v9 = vld [vmem:[#allocation2 + $0x28] sm:$0xff] }
 0x10f   : > { %1791 = vmatpush.bf16.msrb.mxu0 %v2491_v33  ;;  %1805 = vmatpush.bf16.msrb.mxu1 %v2619_v34 }
 0x110   : > { %1819 = vmatpush.bf16.msrb.mxu2 %v2747_v35 }
 0x111   : > { %1833 = vmatpush.bf16.msrb.mxu3 %v2875_v40 }
 0x113   : > { %1792 = vmatpush.bf16.msrb.mxu0 %v2475_v49  ;;  %1806 = vmatpush.bf16.msrb.mxu1 %v2603_v50 }
 0x114   : > { %1820 = vmatpush.bf16.msrb.mxu2 %v2731_v51 }
 0x115   : > { %1834 = vmatpush.bf16.msrb.mxu3 %v2859_v55 }
 0x117   : > { %1793 = vmatpush.bf16.msrb.mxu0 %v2459_v61  ;;  %1807 = vmatpush.bf16.msrb.mxu1 %v2587_v62  ;;  %v1571_v8 = vpop.f32.mrf.mxu0  ;;  %v1585_v11 = vpop.f32.mrf.mxu1 }
 0x118   : > { %1821 = vmatpush.bf16.msrb.mxu2 %v2715_v63  ;;  %v1572_v10 = vadd.f32 %v1571_v8, %v1558_v6 }
 0x119   : > { %1835 = vmatpush.bf16.msrb.mxu3 %v2843_v1  ;;  %v312_v1 = vld [vmem:[#allocation2 + $0x18] sm:$0xff] }
 0x11a   : > { %1794 = vmatmul.bf16.vlgmr.msrb.gmra.mxu0 %v3673_v18  ;;  %1808 = vmatmul.bf16.vlgmr.msrb.gmra.mxu1 %v3685_v30  ;;  %v1586_v15 = vadd.f32 %v1585_v11, %v1572_v10  ;;  %v1560_v18 = vadd.f32 %v1559_v16, %v1546_v14 }
 0x11b   : > { %1822 = vmatmul.bf16.vlgmr.msrb.gmra.mxu2 %v3735_v42 }
 0x11c   : > { %1836 = vmatmul.bf16.vlgmr.msrb.gmra.mxu3 %v3740_v46  ;;  %v1842_v17 = vadd.f32 %v1586_v15, %v310_v13 }
 0x11e   : > { %1850 = vst [vmem:[#allocation2 + $0x30] sm:$0xff] %v1842_v17 }
 0x11f   : > { %v1573_v19 = vpop.f32.mrf.mxu0  ;;  %v1587_v30 = vpop.f32.mrf.mxu1 }
 0x120   : > { %v1574_v20 = vadd.f32 %v1573_v19, %v1560_v18  ;;  %v1599_v46 = vpop.f32.mrf.mxu2  ;;  %v1613_v23 = vpop.f32.mrf.mxu3 }
 0x121   : > { %v1614_v24 = vadd.f32 %v1613_v23, %v1599_v46 }
 0x122   : > { %v1588_v42 = vadd.f32 %v1587_v30, %v1574_v20 }
 0x124   : > { %v1846_v22 = vadd.f32 %v1588_v42, %v314_v21 }
 0x126   : > { %1854 = vst [vmem:[#allocation2 + $0x8] sm:$0xff] %v1846_v22 }
 0x128   : > { %v1601_v25 = vpop.f32.mrf.mxu2  ;;  %v1615_v26 = vpop.f32.mrf.mxu3 }
 0x129   : > { %v1616_v33 = vadd.f32 %v1615_v26, %v1601_v25 }
 0x137   : > { %v1627_v27 = vpop.f32.mrf.mxu0  ;;  %v1641_v29 = vpop.f32.mrf.mxu1 }
 0x138   : > { %v1628_v28 = vadd.f32 %v1627_v27, %v1614_v24  ;;  %v313_v24 = vld [vmem:[#allocation2 + $0x10] sm:$0xff] }
 0x13a   : > { %v1642_v31 = vadd.f32 %v1641_v29, %v1628_v28 }
 0x13f   : > { %v1629_v35 = vpop.f32.mrf.mxu0  ;;  %v1669_v36 = vpop.f32.mrf.mxu3 }
 0x140   : > { %v1655_v32 = vpop.f32.mrf.mxu2  ;;  %v1630_v38 = vadd.f32 %v1629_v35, %v1616_v33  ;;  %v1643_v40 = vpop.f32.mrf.mxu1  ;;  %v317_v33 = vld [vmem:[#allocation2 + $0x38] sm:$0xff] }
 0x141   : > { %v1656_v34 = vadd.f32 %v1655_v32, %v1642_v31 }
 0x142   : > { %v1644_v43 = vadd.f32 %v1643_v40, %v1630_v38 }
 0x143   : > { %v1670_v39 = vadd.f32 %v1669_v36, %v1656_v34 }
 0x145   : > { %v1843_v41 = vadd.f32 %v1670_v39, %v311_v37 }
 0x147   : > { %1851 = vst [vmem:[#allocation2] sm:$0xff] %v1843_v41  ;;  %v1671_v47 = vpop.f32.mrf.mxu3 }
 0x148   : > { %v1657_v44 = vpop.f32.mrf.mxu2 }
 0x149   : > { %v1658_v45 = vadd.f32 %v1657_v44, %v1644_v43 }
 0x14b   : > { %v1672_v49 = vadd.f32 %v1671_v47, %v1658_v45 }
 0x14d   : > { %v1847_v50 = vadd.f32 %v1672_v49, %v315_v48 }
 0x14f   : > { %1855 = vst [vmem:[#allocation2 + $0x20] sm:$0xff] %v1847_v50 }
 0x157   : > { %v1683_v51 = vpop.f32.mrf.mxu0  ;;  %v1697_v52 = vpop.f32.mrf.mxu1 }
 0x158   : > { %v1698_v53 = vadd.f32 %v1697_v52, %v1683_v51 }
 0x15f   : > { %v1685_v54 = vpop.f32.mrf.mxu0  ;;  %v1699_v56 = vpop.f32.mrf.mxu1 }
 0x160   : > { %v1711_v55 = vpop.f32.mrf.mxu2  ;;  %v1725_v58 = vpop.f32.mrf.mxu3  ;;  %v1700_v60 = vadd.f32 %v1699_v56, %v1685_v54 }
 0x161   : > { %v1712_v57 = vadd.f32 %v1711_v55, %v1698_v53 }
 0x163   : > { %v1726_v59 = vadd.f32 %v1725_v58, %v1712_v57 }
 0x168   : > { %v1713_v62 = vpop.f32.mrf.mxu2  ;;  %v1727_v4 = vpop.f32.mrf.mxu3 }
 0x169   : > { %v1714_v2 = vadd.f32 %v1713_v62, %v1700_v60 }
 0x16b   : > { %v1728_v5 = vadd.f32 %v1727_v4, %v1714_v2 }
 0x177   : > { %v1739_v61 = vpop.f32.mrf.mxu0  ;;  %v1753_v0 = vpop.f32.mrf.mxu1 }
 0x178   : > { %v1740_v63 = vadd.f32 %v1739_v61, %v1726_v59 }
 0x17a   : > { %v1754_v3 = vadd.f32 %v1753_v0, %v1740_v63 }
 0x17c   : > { %v1844_v12 = vadd.f32 %v1754_v3, %v312_v1 }
 0x17e   : > { %1852 = vst [vmem:[#allocation2 + $0x18] sm:$0xff] %v1844_v12 }
 0x17f   : > { %v1741_v6 = vpop.f32.mrf.mxu0  ;;  %v1755_v8 = vpop.f32.mrf.mxu1 }
 0x180   : > { %v1742_v7 = vadd.f32 %v1741_v6, %v1728_v5  ;;  %v1767_v13 = vpop.f32.mrf.mxu2  ;;  %v1781_v14 = vpop.f32.mrf.mxu3 }
 0x181   : > { %v1782_v16 = vadd.f32 %v1781_v14, %v1767_v13 }
 0x182   : > { %v1756_v10 = vadd.f32 %v1755_v8, %v1742_v7 }
 0x184   : > { %v1848_v11 = vadd.f32 %v1756_v10, %v316_v9 }
 0x186   : > { %1856 = vst [vmem:[#allocation2 + $0x28] sm:$0xff] %v1848_v11 }
 0x188   : > { %v1769_v15 = vpop.f32.mrf.mxu2  ;;  %v1783_v17 = vpop.f32.mrf.mxu3 }
 0x189   : > { %v1784_v42 = vadd.f32 %v1783_v17, %v1769_v15 }
 0x197   : > { %v1795_v18 = vpop.f32.mrf.mxu0  ;;  %v1809_v20 = vpop.f32.mrf.mxu1 }
 0x198   : > { %v1796_v19 = vadd.f32 %v1795_v18, %v1782_v16 }
 0x19a   : > { %v1810_v30 = vadd.f32 %v1809_v20, %v1796_v19 }
 0x19e   : > { %v1823_v21 = vpop.f32.mrf.mxu2 }
 0x19f   : > { %v1824_v22 = vadd.f32 %v1823_v21, %v1810_v30  ;;  %v1837_v46 = vpop.f32.mrf.mxu3  ;;  %v1797_v23 = vpop.f32.mrf.mxu0 }
 0x1a0   : > { %v1798_v26 = vadd.f32 %v1797_v23, %v1784_v42  ;;  %v1811_v28 = vpop.f32.mrf.mxu1 }
 0x1a1   : > { %v1838_v25 = vadd.f32 %v1837_v46, %v1824_v22 }
 0x1a2   : > { %v1812_v29 = vadd.f32 %v1811_v28, %v1798_v26 }
 0x1a3   : > { %v1845_v27 = vadd.f32 %v1838_v25, %v313_v24 }
 0x1a5   : > { %1853 = vst [vmem:[#allocation2 + $0x10] sm:$0xff] %v1845_v27 }
 0x1a6   : > { %v1825_v31 = vpop.f32.mrf.mxu2 }
 0x1a7   : > { %v1826_v32 = vadd.f32 %v1825_v31, %v1812_v29  ;;  %v1839_v34 = vpop.f32.mrf.mxu3 }
 0x1a9   : > { %v1840_v35 = vadd.f32 %v1839_v34, %v1826_v32  ;;  %1861 = sbr.rel (%p2956_p8) target bundleno = 459 (0x1cb), region = 63 }
 0x1ab   : > { %v1849_v36 = vadd.f32 %v1840_v35, %v317_v33 }
 0x1ad   : > { %1857 = vst [vmem:[#allocation2 + $0x38] sm:$0xff] %v1849_v36 }
 0x1ae   : > { %v1862_v37 = vld [vmem:[#allocation2 + $0x30] sm:$0xff]  ;;  %v1863_v38 = vld [vmem:[#allocation2] sm:$0xff]  ;;  %v1864_v39 = vld [vmem:[#allocation2 + $0x18] sm:$0xff]  ;;  %vm1942_vm0 = vcmask 1040384   ;;  %vm1954_vm1 = vcmask 1041408   ;;  %vm1956_vm2 = vcmask 1045508  }
 0x1af   : > { %v1870_v40 = vpack.c.bf16 %v1863_v38, %v1862_v37  ;;  %v1906_v41 = vmul.f32 %v1862_v37, %v1862_v37  ;;  %v1907_v43 = vmul.f32 %v1863_v38, %v1863_v38  ;;  %v1865_v44 = vld [vmem:[#allocation2 + $0x10] sm:$0xff]  ;;  %v1908_v45 = vmul.f32 %v1864_v39, %v1864_v39  ;;  %v1866_v47 = vld [vmem:[#allocation2 + $0x8] sm:$0xff]  ;;  %v1867_v48 = vld [vmem:[#allocation2 + $0x20] sm:$0xff] }
 0x1b0   : > { %v1871_v49 = vpack.c.bf16 %v1865_v44, %v1864_v39  ;;  %v1909_v50 = vmul.f32 %v1865_v44, %v1865_v44  ;;  %v1872_v51 = vpack.c.bf16 %v1867_v48, %v1866_v47  ;;  %v1878_v52 = vadd.f32 %v1866_v47, %v1862_v37  ;;  %v1868_v53 = vld [vmem:[#allocation2 + $0x28] sm:$0xff] }
 0x1b1   : > { %1874 = vst [vmem:[%s3569_s6] sm:$0xff] %v1870_v40  ;;  %v1885_v55 = vadd.f32 %v1867_v48, %v1863_v38  ;;  %v1910_v56 = vmul.f32 %v1866_v47, %v1866_v47  ;;  %v1911_v57 = vmul.f32 %v1867_v48, %v1867_v48  ;;  %v1892_v60 = vadd.f32 %v1868_v53, %v1864_v39 }
 0x1b2   : > { %1875 = vst [vmem:[%s3569_s6 + $0x8] sm:$0xff] %v1871_v49  ;;  %v1879_v59 = vrot.slane %v1878_v52, 4  ;;  %v1912_v62 = vmul.f32 %v1868_v53, %v1868_v53  ;;  %vm1958_vm3 = vcmask 1043456  }
 0x1b3   : > { %1876 = vst [vmem:[%s3569_s6 + $0x10] sm:$0xff] %v1872_v51  ;;  %v1886_v63 = vrot.slane %v1885_v55, 4  ;;  %v1914_v0 = vadd.f32 %v1910_v56, %v1906_v41  ;;  %v1921_v1 = vadd.f32 %v1911_v57, %v1907_v43  ;;  %v1893_v4 = vrot.slane %v1892_v60, 4 }
 0x1b4   : > { %v1869_v54 = vld [vmem:[#allocation2 + $0x38] sm:$0xff]  ;;  %v1880_v3 = vadd.f32 %v1879_v59, %v1878_v52  ;;  %v1928_v5 = vadd.f32 %v1912_v62, %v1908_v45 }
 0x1b5   : > { %v1873_v58 = vpack.c.bf16 %v1869_v54, %v1868_v53  ;;  %v1899_v61 = vadd.f32 %v1869_v54, %v1865_v44  ;;  %v1913_v2 = vmul.f32 %v1869_v54, %v1869_v54  ;;  %v1887_v6 = vadd.f32 %v1886_v63, %v1885_v55 }
 0x1b6   : > { %v1915_v7 = vrot.slane %v1914_v0, 4  ;;  %v1922_v8 = vrot.slane %v1921_v1, 4  ;;  %v1881_v10 = vrot.slane %v1880_v3, 2  ;;  %v1894_v11 = vadd.f32 %v1893_v4, %v1892_v60 }
 0x1b7   : > { %1877 = vst [vmem:[%s3569_s6 + $0x18] sm:$0xff] %v1873_v58  ;;  %v1900_v12 = vrot.slane %v1899_v61, 4  ;;  %v1935_v9 = vadd.f32 %v1913_v2, %v1909_v50  ;;  %v1929_v14 = vrot.slane %v1928_v5, 4  ;;  %v1888_v15 = vrot.slane %v1887_v6, 2 }
 0x1b8   : > { %v1916_v16 = vadd.f32 %v1915_v7, %v1914_v0  ;;  %v1923_v17 = vadd.f32 %v1922_v8, %v1921_v1  ;;  %v1882_v19 = vadd.f32 %v1881_v10, %v1880_v3  ;;  %v1895_v20 = vrot.slane %v1894_v11, 2 }
 0x1b9   : > { %v1901_v13 = vadd.f32 %v1900_v12, %v1899_v61  ;;  %v1936_v18 = vrot.slane %v1935_v9, 4  ;;  %v1930_v21 = vadd.f32 %v1929_v14, %v1928_v5  ;;  %v1889_v42 = vadd.f32 %v1888_v15, %v1887_v6 }
 0x1ba   : > { %v1917_v22 = vrot.slane %v1916_v16, 2  ;;  %v1924_v46 = vrot.slane %v1923_v17, 2  ;;  %v1883_v24 = vrot.slane %v1882_v19, 1  ;;  %v1896_v25 = vadd.f32 %v1895_v20, %v1894_v11 }
 0x1bb   : > { %v1902_v30 = vrot.slane %v1901_v13, 2  ;;  %v1937_v23 = vadd.f32 %v1936_v18, %v1935_v9  ;;  %v1931_v27 = vrot.slane %v1930_v21, 2  ;;  %v1890_v28 = vrot.slane %v1889_v42, 1 }
 0x1bc   : > { %v1918_v29 = vadd.f32 %v1917_v22, %v1916_v16  ;;  %v1925_v31 = vadd.f32 %v1924_v46, %v1923_v17  ;;  %v1897_v33 = vrot.slane %v1896_v25, 1  ;;  %v1884_v36 = vadd.f32 %v1883_v24, %v1882_v19 }
 0x1bd   : > { %v1903_v26 = vadd.f32 %v1902_v30, %v1901_v13  ;;  %v1938_v32 = vrot.slane %v1937_v23, 2  ;;  %v1932_v35 = vadd.f32 %v1931_v27, %v1930_v21  ;;  %v1891_v37 = vadd.f32 %v1890_v28, %v1889_v42 }
 0x1be   : > { %v1926_v38 = vrot.slane %v1925_v31, 1  ;;  %v1919_v40 = vrot.slane %v1918_v29, 1  ;;  %v1898_v41 = vadd.f32 %v1897_v33, %v1896_v25 }
 0x1bf   : > { %v1904_v34 = vrot.slane %v1903_v26, 1  ;;  %v1939_v39 = vadd.f32 %v1938_v32, %v1937_v23  ;;  %v1933_v43 = vrot.slane %v1932_v35, 1 }
 0x1c0   : > { %v1920_v47 = vadd.f32 %v1919_v40, %v1918_v29  ;;  %v1927_v48 = vadd.f32 %v1926_v38, %v1925_v31 }
 0x1c1   : > { %v1905_v44 = vadd.f32 %v1904_v34, %v1903_v26  ;;  %v1940_v45 = vrot.slane %v1939_v39, 1  ;;  %v1934_v49 = vadd.f32 %v1933_v43, %v1932_v35 }
 0x1c2   : > { %v1943_v51 = vsel %vm1942_vm0, %v1884_v36, %v1920_v47  ;;  %v1944_v52 = vsel %vm1942_vm0, %v1891_v37, %v1927_v48 }
 0x1c3   : > { %v1941_v50 = vadd.f32 %v1940_v45, %v1939_v39  ;;  %v1945_v53 = vsel %vm1942_vm0, %v1898_v41, %v1934_v49  ;;  %v1951_v54 = vrot.slane %v1944_v52, 6 }
 0x1c4   : > { %v1952_v56 = vrot.slane %v1945_v53, 4 }
 0x1c5   : > { %v1946_v55 = vsel %vm1942_vm0, %v1905_v44, %v1941_v50  ;;  %v1955_v58 = vsel %vm1954_vm1, %v1943_v51, %v1951_v54 }
 0x1c6   : > { %v1953_v57 = vrot.slane %v1946_v55, 2 }
 0x1c8   : > { %v1957_v59 = vsel %vm1956_vm2, %v1952_v56, %v1953_v57 }
 0x1c9   : > { %v1959_v60 = vsel %vm1958_vm3, %v1955_v58, %v1957_v59 }
 0x1ca   : > { %1961 = vst [vmem:[%s3567_s11] sm:$0xff] %v1959_v60 }
 0x1cb PF: > { %1977 = sbr.rel (!%p3530_p1) target bundleno = 465 (0x1d1), region = 67  ;;  %s3162_s12 = sshll.u32 (%p3530_p1), %s3383_s20, 4  ;;  %v1996_v61 = vld [vmem:[%s3569_s6] sm:$0xff] (%p3530_p1)  ;;  %v1998_v62 = vld [vmem:[%s3569_s6 + $0x8] sm:$0xff] (%p3530_p1)  ;;  %v2000_v63 = vld [vmem:[%s3569_s6 + $0x10] sm:$0xff] (%p3530_p1) }
 0x1cc   : > { %s1983_s30 = scalar_lea.vmem (%p3530_p1), %s4058_s2, %s3162_s12  ;;  %v2002_v0 = vld [vmem:[%s3569_s6 + $0x18] sm:$0xff] (%p3530_p1) }
 0x1cd   : > { %1997 = vst [vmem:[%s1983_s30] sm:$0xff] (%p3530_p1), %v1996_v61 }
 0x1ce   : > { %1999 = vst [vmem:[%s1983_s30 + $0x8] sm:$0xff] (%p3530_p1), %v1998_v62 }
 0x1cf   : > { %2001 = vst [vmem:[%s1983_s30 + $0x20] sm:$0xff] (%p3530_p1), %v2000_v63 }
 0x1d0   : > { %2003 = vst [vmem:[%s1983_s30 + $0x28] sm:$0xff] %v2002_v0 }
 0x1d1 PF: > { %s17_s23 = sadd.s32 1, %s3395_s23   ;;  %s4077_s12 = sld [smem:[#allocation8_spill]] }
 0x1d2   : > { %p14_p9 = scmp.ge.s32.totalorder %s17_s23, 14   ;;  %s4078_s13 = sld [smem:[#allocation14_spill]] }
 0x1d3   : > { %s4079_s20 = sld [smem:[#allocation13_spill]]  ;;  %s4084_s14 = smov %s3363_s15 }
 0x1d4   : > { %s4080_s17 = sld [smem:[#allocation9_spill]]  ;;  %s4085_s15 = smov %s3367_s16 }
 0x1d5   : > { %s4081_s18 = sld [smem:[#allocation12_spill]]  ;;  %s4087_s19 = smov %s3387_s21 }
 0x1d6   : > { %s4082_s10 = sld [smem:[#allocation10_spill]] }
 0x1d7   : > { %s4083_s24 = sld [smem:[#allocation11_spill]] }
 0x1d9   : > { %s4086_s16 = smov %s4079_s20  ;;  %s4088_s20 = smov %s3391_s22 }
 0x1da   :  { %16 = sbr.rel (!%p14_p9) target bundleno = 9 (0x9), region = 142 }
 0x1dc   : > { %s4089_s21 = smov %s4082_s10 }
 0x1dd   : > { %s4090_s22 = smov %s4083_s24 }
 0x1df   :  { %2035 = vsyncpa [#allocation5], 1 }
 0x1e0   :  { %2037 = vsyncpa [#allocation5 + $0x1], 1 }

// kernel: _lambda_.23
= control target key start
LH: loop header
LB: loop body
LE: loop exit
PB: predicated region body
PF: predicated region fallthrough
CT: control target
= control target key end

     0   :  { %9 = vsyncpa [#allocation3], 0  ;;  %s447_s18 = smov [#allocation2]   ;;  %s815_s0 = inlined_call_operand.vmem [shape: bf16[16,2048], index: 0, kind: input, shape index: {}]   ;;  %s816_s1 = inlined_call_operand.vmem [shape: f32[1,2048], index: 1, kind: input, shape index: {}]   ;;  %s817_s2 = inlined_call_operand.vmem [shape: f32[1,2048], index: 2, kind: input, shape index: {}]   ;;  %s818_s3 = inlined_call_operand.hbm [shape: f32[1,2048], index: 3, kind: input, shape index: {}]   ;;  %s819_s4 = inlined_call_operand.vmem [shape: f32[16,128], index: 4, kind: output, shape index: {}]  }
   0x1   :  { %s21_s17 = sshll.u32 %s818_s3, 4  ;;  %s23_s19 = sshll.u32 %s447_s18, 4  ;;  %s22_s17 = int_to_ptr.hbm [resolvable:$true] %s21_s17  ;;  %s24_s19 = int_to_ptr.vmem [resolvable:$true] %s23_s19 }
   0x2   :  { %26 = dma.hbm_to_vmem [thread:$0]  %s22_s17, 256, %s24_s19, [#allocation3]  }
   0x3   :  { %445 = dma.done.wait [#allocation3], 256  }
   0x4   :  { %446 = vsyncadd [#allocation3], 4294967040  ;;  %v31_v0 = vld [vmem:[%s815_s0] sm:$0xff]  ;;  %v32_v1 = vld [vmem:[%s815_s0 + $0x8] sm:$0xff] }
   0x5   :  { %v33_v2 = vld [vmem:[%s815_s0 + $0x10] sm:$0xff]  ;;  %v34_v3 = vld [vmem:[%s815_s0 + $0x18] sm:$0xff]  ;;  %v35_v4 = vld [vmem:[%s815_s0 + $0x20] sm:$0xff]  ;;  %v47_v7 = vunpack.c.l.bf16 %v31_v0  ;;  %v48_v8 = vunpack.c.h.bf16 %v31_v0  ;;  %v49_v9 = vunpack.c.l.bf16 %v32_v1  ;;  %v50_v12 = vunpack.c.h.bf16 %v32_v1 }
   0x6   :  { %v36_v5 = vld [vmem:[%s815_s0 + $0x28] sm:$0xff]  ;;  %v37_v6 = vld [vmem:[%s815_s0 + $0x30] sm:$0xff]  ;;  %v500_v10 = vld [vmem:[%s816_s1] sm:$0xff]  ;;  %v51_v13 = vunpack.c.l.bf16 %v33_v2  ;;  %v52_v14 = vunpack.c.h.bf16 %v33_v2  ;;  %v53_v15 = vunpack.c.l.bf16 %v34_v3  ;;  %v54_v16 = vunpack.c.h.bf16 %v34_v3 }
   0x7   :  { %v38_v11 = vld [vmem:[%s815_s0 + $0x38] sm:$0xff]  ;;  %v55_v17 = vunpack.c.l.bf16 %v35_v4  ;;  %v56_v18 = vunpack.c.h.bf16 %v35_v4  ;;  %v57_v19 = vunpack.c.l.bf16 %v36_v5  ;;  %v58_v20 = vunpack.c.h.bf16 %v36_v5  ;;  %v508_v22 = vld [vmem:[%s816_s1 + $0x8] sm:$0xff]  ;;  %v516_v29 = vld [vmem:[%s817_s2] sm:$0xff] }
   0x8   :  { %v59_v21 = vunpack.c.l.bf16 %v37_v6  ;;  %v83_v23 = vperm.slane %v500_v10, 0  ;;  %v84_v24 = vperm.slane %v500_v10, 1  ;;  %v60_v25 = vunpack.c.h.bf16 %v37_v6  ;;  %v568_v62 = vld [vmem:[%s817_s2 + $0x8] sm:$0xff] }
   0x9   :  { %v61_v26 = vunpack.c.l.bf16 %v38_v11  ;;  %v62_v27 = vunpack.c.h.bf16 %v38_v11  ;;  %v85_v28 = vperm.slane %v500_v10, 2  ;;  %v86_v30 = vperm.slane %v500_v10, 3 }
   0xa   :  { %v87_v31 = vperm.slane %v500_v10, 4  ;;  %v88_v32 = vperm.slane %v500_v10, 5  ;;  %v89_v33 = vperm.slane %v500_v10, 6  ;;  %v90_v34 = vperm.slane %v500_v10, 7 }
   0xb   :  { %v91_v35 = vperm.slane %v508_v22, 0  ;;  %v92_v36 = vperm.slane %v508_v22, 1  ;;  %v93_v37 = vperm.slane %v508_v22, 2  ;;  %v115_v38 = vmul.f32 %v83_v23, %v47_v7 }
   0xc   :  { %v116_v39 = vmul.f32 %v84_v24, %v48_v8  ;;  %v151_v40 = vperm.slane %v516_v29, 0  ;;  %v152_v41 = vperm.slane %v516_v29, 1  ;;  %v94_v42 = vperm.slane %v508_v22, 3 }
   0xd   :  { %v823_v43 = vperm.slane %v508_v22, 4  ;;  %v822_v44 = vperm.slane %v508_v22, 5  ;;  %v821_v45 = vperm.slane %v508_v22, 6  ;;  %v820_v46 = vperm.slane %v508_v22, 7 }
   0xe   :  { %v117_v47 = vmul.f32 %v85_v28, %v49_v9  ;;  %v118_v48 = vmul.f32 %v86_v30, %v50_v12  ;;  %v153_v49 = vperm.slane %v516_v29, 2  ;;  %v119_v50 = vmul.f32 %v87_v31, %v51_v13  ;;  %v585_v12 = vld [vmem:[#allocation2] sm:$0xff] }
   0xf   :  { %v120_v51 = vmul.f32 %v88_v32, %v52_v14  ;;  %v121_v52 = vmul.f32 %v89_v33, %v53_v15  ;;  %v122_v53 = vmul.f32 %v90_v34, %v54_v16  ;;  %v123_v54 = vmul.f32 %v91_v35, %v55_v17 }
  0x10   :  { %v154_v55 = vperm.slane %v516_v29, 3  ;;  %v183_v56 = vadd.f32 %v151_v40, %v115_v38  ;;  %v184_v57 = vadd.f32 %v152_v41, %v116_v39  ;;  %v124_v58 = vmul.f32 %v92_v36, %v56_v18 }
  0x11   :  { %v125_v59 = vmul.f32 %v93_v37, %v57_v19  ;;  %v126_v60 = vmul.f32 %v94_v42, %v58_v20  ;;  %v127_v61 = vmul.f32 %v823_v43, %v59_v21  ;;  %v128_v63 = vmul.f32 %v822_v44, %v60_v25 }
  0x12   :  { %v129_v0 = vmul.f32 %v821_v45, %v61_v26  ;;  %v155_v1 = vperm.slane %v516_v29, 4  ;;  %v185_v2 = vadd.f32 %v153_v49, %v117_v47  ;;  %v130_v3 = vmul.f32 %v820_v46, %v62_v27 }
  0x13   :  { %v156_v4 = vperm.slane %v516_v29, 5  ;;  %v157_v5 = vperm.slane %v516_v29, 6  ;;  %v158_v6 = vperm.slane %v516_v29, 7  ;;  %v159_v7 = vperm.slane %v568_v62, 0 }
  0x14   :  { %v186_v8 = vadd.f32 %v154_v55, %v118_v48  ;;  %v247_v9 = vmul.f32 0.2, %v183_v56  ;;  %v248_v11 = vmul.f32 0.2, %v184_v57  ;;  %v160_v13 = vperm.slane %v568_v62, 1 }
  0x15   :  { %v824_v14 = vperm.slane %v568_v62, 2  ;;  %vm215_vm0 = vcmp.ge.f32.partialorder %v183_v56, 0.0  ;;  %vm216_vm1 = vcmp.ge.f32.partialorder %v184_v57, 0.0  ;;  %v825_v15 = vperm.slane %v568_v62, 3 }
  0x16   :  { %v826_v16 = vperm.slane %v568_v62, 4  ;;  %v187_v17 = vadd.f32 %v155_v1, %v119_v50  ;;  %v249_v18 = vmul.f32 0.2, %v185_v2  ;;  %v829_v19 = vperm.slane %v568_v62, 5 }
  0x17   :  { %vm217_vm2 = vcmp.ge.f32.partialorder %v185_v2, 0.0  ;;  %v315_v20 = vperm.slane %v585_v12, 0  ;;  %v316_v21 = vperm.slane %v585_v12, 1  ;;  %v188_v25 = vadd.f32 %v156_v4, %v120_v51 }
  0x18   :  { %v250_v26 = vmul.f32 0.2, %v186_v8  ;;  %v279_v27 = vsel %vm215_vm0, %v183_v56, %v247_v9  ;;  %v280_v38 = vsel %vm216_vm1, %v184_v57, %v248_v11  ;;  %v828_v39 = vperm.slane %v568_v62, 6 }
  0x19   :  { %v827_v47 = vperm.slane %v568_v62, 7  ;;  %vm218_vm3 = vcmp.ge.f32.partialorder %v186_v8, 0.0  ;;  %v317_v48 = vperm.slane %v585_v12, 2  ;;  %v189_v50 = vadd.f32 %v157_v5, %v121_v52 }
  0x1a   :  { %v190_v46 = vadd.f32 %v158_v6, %v122_v53  ;;  %v251_v45 = vmul.f32 0.2, %v187_v17  ;;  %v281_v44 = vsel %vm217_vm2, %v185_v2, %v249_v18  ;;  %vm219_vm4 = vcmp.ge.f32.partialorder %v187_v17, 0.0 }
  0x1b   :  { %v318_v51 = vperm.slane %v585_v12, 3  ;;  %v347_v56 = vmul.f32 %v315_v20, %v279_v27  ;;  %v348_v57 = vmul.f32 %v316_v21, %v280_v38  ;;  %v191_v9 = vadd.f32 %v159_v7, %v123_v54 }
  0x1c   :  { %v192_v52 = vadd.f32 %v160_v13, %v124_v58  ;;  %v252_v11 = vmul.f32 0.2, %v188_v25  ;;  %v282_v43 = vsel %vm218_vm3, %v186_v8, %v250_v26  ;;  %v193_v53 = vadd.f32 %v824_v14, %v125_v59 }
  0x1d   :  { %vm220_vm5 = vcmp.ge.f32.partialorder %v188_v25, 0.0  ;;  %v319_v2 = vperm.slane %v585_v12, 4  ;;  %v349_v18 = vmul.f32 %v317_v48, %v281_v44  ;;  %v194_v27 = vadd.f32 %v825_v15, %v126_v60 }
  0x1e   :  { %v623_v54 = vadd.f32 %v826_v16, %v127_v61  ;;  %v253_v38 = vmul.f32 0.2, %v189_v50  ;;  %v283_v58 = vsel %vm219_vm4, %v187_v17, %v251_v45  ;;  %vm221_vm6 = vcmp.ge.f32.partialorder %v189_v50, 0.0 }
  0x1f   :  { %v832_v8 = vperm.slane %v585_v12, 5  ;;  %v350_v59 = vmul.f32 %v318_v51, %v282_v43  ;;  %v379_v26 = vadd.f32 %v348_v57, %v347_v56  ;;  %v196_v14 = vadd.f32 %v829_v19, %v128_v63  ;;  %v639_v63 = vld [vmem:[#allocation2 + $0x8] sm:$0xff] }
  0x20   :  { %v197_v44 = vadd.f32 %v828_v39, %v129_v0  ;;  %v254_v60 = vmul.f32 0.2, %v190_v46  ;;  %v284_v15 = vsel %vm220_vm5, %v188_v25, %v252_v11  ;;  %vm222_vm7 = vcmp.ge.f32.partialorder %v190_v46, 0.0 }
  0x21   :  { %v830_v61 = vperm.slane %v585_v12, 6  ;;  %v351_v45 = vmul.f32 %v319_v2, %v283_v58  ;;  %v380_v17 = vadd.f32 %v379_v26, %v349_v18  ;;  %v637_v16 = vadd.f32 %v827_v47, %v130_v3  ;;  %v39_v58 = vld [vmem:[%s815_s0 + $0x40] sm:$0xff] }
  0x22   :  { %vm223_vm8 = vcmp.ge.f32.partialorder %v191_v9, 0.0  ;;  %v255_v43 = vmul.f32 0.2, %v191_v9  ;;  %v285_v56 = vsel %vm221_vm6, %v189_v50, %v253_v38  ;;  %vm224_vm9 = vcmp.ge.f32.partialorder %v192_v52, 0.0 }
  0x23   :  { %v831_v0 = vperm.slane %v585_v12, 7  ;;  %v352_v25 = vmul.f32 %v832_v8, %v284_v15  ;;  %v381_v57 = vadd.f32 %v380_v17, %v350_v59  ;;  %vm225_vm10 = vcmp.ge.f32.partialorder %v193_v53, 0.0 }
  0x24   :  { %vm226_vm11 = vcmp.ge.f32.partialorder %v194_v27, 0.0  ;;  %v256_v11 = vmul.f32 0.2, %v192_v52  ;;  %v286_v18 = vsel %vm222_vm7, %v190_v46, %v254_v60  ;;  %vm227_vm12 = vcmp.ge.f32.partialorder %v623_v54, 0.0 }
  0x25   :  { %v323_v3 = vperm.slane %v639_v63, 0  ;;  %v353_v50 = vmul.f32 %v830_v61, %v285_v56  ;;  %v382_v38 = vadd.f32 %v381_v57, %v351_v45  ;;  %vm228_vm13 = vcmp.ge.f32.partialorder %v196_v14, 0.0  ;;  %v40_v45 = vld [vmem:[%s815_s0 + $0x48] sm:$0xff] }
  0x26   :  { %vm229_vm14 = vcmp.ge.f32.partialorder %v197_v44, 0.0  ;;  %v257_v15 = vmul.f32 0.2, %v193_v53  ;;  %v287_v59 = vsel %vm223_vm8, %v191_v9, %v255_v43  ;;  %vm230_vm15 = vcmp.ge.f32.partialorder %v637_v16, 0.0 }
  0x27   :  { %v833_v46 = vperm.slane %v639_v63, 1  ;;  %v354_v26 = vmul.f32 %v831_v0, %v286_v18  ;;  %v383_v60 = vadd.f32 %v382_v38, %v352_v25  ;;  %v258_v17 = vmul.f32 0.2, %v194_v27 }
  0x28   :  { %v288_v56 = vsel %vm224_vm9, %v192_v52, %v256_v11  ;;  %v63_v57 = vunpack.c.l.bf16 %v39_v58  ;;  %v64_v47 = vunpack.c.h.bf16 %v39_v58  ;;  %v259_v39 = vmul.f32 0.2, %v623_v54  ;;  %v41_v58 = vld [vmem:[%s815_s0 + $0x50] sm:$0xff] }
  0x29   :  { %v325_v9 = vperm.slane %v639_v63, 2  ;;  %v355_v43 = vmul.f32 %v323_v3, %v287_v59  ;;  %v384_v19 = vadd.f32 %v383_v60, %v353_v50  ;;  %v260_v61 = vmul.f32 0.2, %v196_v14 }
  0x2a   :  { %v261_v18 = vmul.f32 0.2, %v197_v44  ;;  %v289_v25 = vsel %vm225_vm10, %v193_v53, %v257_v15  ;;  %v65_v38 = vunpack.c.l.bf16 %v40_v45  ;;  %v262_v0 = vmul.f32 0.2, %v637_v16 }
  0x2b   :  { %v326_v8 = vperm.slane %v639_v63, 3  ;;  %v356_v52 = vmul.f32 %v833_v46, %v288_v56  ;;  %v385_v11 = vadd.f32 %v384_v19, %v354_v26  ;;  %v290_v59 = vsel %vm226_vm11, %v194_v27, %v258_v17  ;;  %v42_v17 = vld [vmem:[%s815_s0 + $0x58] sm:$0xff] }
  0x2c   :  { %v66_v50 = vunpack.c.h.bf16 %v40_v45  ;;  %v131_v60 = vmul.f32 %v83_v23, %v63_v57  ;;  %v132_v53 = vmul.f32 %v84_v24, %v64_v47  ;;  %v291_v15 = vsel %vm227_vm12, %v623_v54, %v259_v39 }
  0x2d   :  { %v327_v56 = vperm.slane %v639_v63, 4  ;;  %v357_v19 = vmul.f32 %v325_v9, %v289_v25  ;;  %v386_v26 = vadd.f32 %v385_v11, %v355_v43  ;;  %v292_v46 = vsel %vm228_vm13, %v196_v14, %v260_v61 }
  0x2e   :  { %v293_v27 = vsel %vm229_vm14, %v197_v44, %v261_v18  ;;  %v67_v45 = vunpack.c.l.bf16 %v41_v58  ;;  %v133_v23 = vmul.f32 %v85_v28, %v65_v38  ;;  %v328_v24 = vperm.slane %v639_v63, 5 }
  0x2f   :  { %v329_v47 = vperm.slane %v639_v63, 6  ;;  %v358_v39 = vmul.f32 %v326_v8, %v290_v59  ;;  %v387_v54 = vadd.f32 %v386_v26, %v356_v52  ;;  %v68_v57 = vunpack.c.h.bf16 %v41_v58  ;;  %v43_v58 = vld [vmem:[%s815_s0 + $0x60] sm:$0xff] }
  0x30   :  { %v134_v14 = vmul.f32 %v86_v30, %v66_v50  ;;  %v199_v44 = vadd.f32 %v151_v40, %v131_v60  ;;  %v200_v28 = vadd.f32 %v152_v41, %v132_v53  ;;  %v330_v61 = vperm.slane %v639_v63, 7  ;;  %v44_v60 = vld [vmem:[%s815_s0 + $0x68] sm:$0xff] }
  0x31   :  { %v359_v43 = vmul.f32 %v327_v56, %v291_v15  ;;  %v388_v18 = vadd.f32 %v387_v54, %v357_v19  ;;  %v294_v25 = vsel %vm230_vm15, %v637_v16, %v262_v0  ;;  %v69_v38 = vunpack.c.l.bf16 %v42_v17 }
  0x32   :  { %v135_v30 = vmul.f32 %v87_v31, %v67_v45  ;;  %v201_v40 = vadd.f32 %v153_v49, %v133_v23  ;;  %v360_v41 = vmul.f32 %v328_v24, %v292_v46  ;;  %v361_v52 = vmul.f32 %v329_v47, %v293_v27 }
  0x33   :  { %v389_v11 = vadd.f32 %v388_v18, %v358_v39  ;;  %v70_v59 = vunpack.c.h.bf16 %v42_v17  ;;  %v136_v16 = vmul.f32 %v88_v32, %v68_v57  ;;  %v202_v31 = vadd.f32 %v154_v55, %v134_v14 }
  0x34   :  { %v263_v0 = vmul.f32 0.2, %v199_v44  ;;  %v264_v49 = vmul.f32 0.2, %v200_v28  ;;  %v362_v46 = vmul.f32 %v330_v61, %v294_v25  ;;  %vm231_vm0 = vcmp.ge.f32.partialorder %v199_v44, 0.0 }
  0x35   :  { %v390_v50 = vadd.f32 %v389_v11, %v359_v43  ;;  %vm232_vm1 = vcmp.ge.f32.partialorder %v200_v28, 0.0  ;;  %v71_v53 = vunpack.c.l.bf16 %v43_v58  ;;  %v137_v15 = vmul.f32 %v89_v33, %v69_v38  ;;  %v45_v33 = vld [vmem:[%s815_s0 + $0x70] sm:$0xff] }
  0x36   :  { %v203_v32 = vadd.f32 %v155_v1, %v135_v30  ;;  %v265_v55 = vmul.f32 0.2, %v201_v40  ;;  %v72_v26 = vunpack.c.h.bf16 %v43_v58  ;;  %v138_v27 = vmul.f32 %v90_v34, %v70_v59 }
  0x37   :  { %v391_v19 = vadd.f32 %v390_v50, %v360_v41  ;;  %vm233_vm2 = vcmp.ge.f32.partialorder %v201_v40, 0.0  ;;  %v204_v45 = vadd.f32 %v156_v4, %v136_v16  ;;  %v266_v23 = vmul.f32 0.2, %v202_v31 }
  0x38   :  { %v295_v39 = vsel %vm231_vm0, %v199_v44, %v263_v0  ;;  %v296_v54 = vsel %vm232_vm1, %v200_v28, %v264_v49  ;;  %v73_v57 = vunpack.c.l.bf16 %v44_v60  ;;  %v74_v14 = vunpack.c.h.bf16 %v44_v60 }
  0x39   :  { %v392_v17 = vadd.f32 %v391_v19, %v361_v52  ;;  %vm234_vm3 = vcmp.ge.f32.partialorder %v202_v31, 0.0  ;;  %v139_v1 = vmul.f32 %v91_v35, %v71_v53  ;;  %v205_v10 = vadd.f32 %v157_v5, %v137_v15 }
  0x3a   :  { %v267_v34 = vmul.f32 0.2, %v203_v32  ;;  %v297_v43 = vsel %vm233_vm2, %v201_v40, %v265_v55  ;;  %vm235_vm4 = vcmp.ge.f32.partialorder %v203_v32, 0.0  ;;  %v363_v44 = vmul.f32 %v315_v20, %v295_v39  ;;  %v46_v20 = vld [vmem:[%s815_s0 + $0x78] sm:$0xff] }
  0x3b   :  { %v393_v4 = vadd.f32 %v392_v17, %v362_v46  ;;  %v364_v28 = vmul.f32 %v316_v21, %v296_v54  ;;  %v140_v18 = vmul.f32 %v92_v36, %v72_v26  ;;  %v206_v25 = vadd.f32 %v158_v6, %v138_v27 }
  0x3c   :  { %v268_v35 = vmul.f32 0.2, %v204_v45  ;;  %v298_v38 = vsel %vm234_vm3, %v202_v31, %v266_v23  ;;  %v75_v5 = vunpack.c.l.bf16 %v45_v33  ;;  %vm236_vm5 = vcmp.ge.f32.partialorder %v204_v45, 0.0 }
  0x3d   :  { %394 = vadd.xlane.f32.xlu0 %v393_v4  ;;  %v365_v30 = vmul.f32 %v317_v48, %v297_v43  ;;  %v141_v21 = vmul.f32 %v93_v37, %v73_v57  ;;  %v207_v36 = vadd.f32 %v159_v7, %v139_v1  ;;  %v269_v29 = vmul.f32 0.2, %v205_v10 }
  0x3e   :  { %v299_v6 = vsel %vm235_vm4, %v203_v32, %v267_v34  ;;  %v76_v40 = vunpack.c.h.bf16 %v45_v33  ;;  %vm237_vm6 = vcmp.ge.f32.partialorder %v205_v10, 0.0  ;;  %v366_v41 = vmul.f32 %v318_v51, %v298_v38 }
  0x3f   :  { %v396_v52 = vadd.f32 %v364_v28, %v363_v44  ;;  %v142_v48 = vmul.f32 %v94_v42, %v74_v14  ;;  %v208_v11 = vadd.f32 %v160_v13, %v140_v18  ;;  %v270_v58 = vmul.f32 0.2, %v206_v25 }
  0x40   :  { %v300_v59 = vsel %vm236_vm5, %v204_v45, %v268_v35  ;;  %v77_v37 = vunpack.c.l.bf16 %v46_v20  ;;  %vm238_vm7 = vcmp.ge.f32.partialorder %v206_v25, 0.0  ;;  %v367_v7 = vmul.f32 %v319_v2, %v299_v6 }
  0x41   :  { %v397_v16 = vadd.f32 %v396_v52, %v365_v30  ;;  %v834_v31 = vperm.slane %v508_v22, 4  ;;  %v835_v51 = vperm.slane %v568_v62, 2  ;;  %v271_v46 = vmul.f32 0.2, %v207_v36 }
  0x42   :  { %v301_v50 = vsel %vm237_vm6, %v205_v10, %v269_v29  ;;  %v78_v42 = vunpack.c.h.bf16 %v46_v20  ;;  %vm239_vm8 = vcmp.ge.f32.partialorder %v207_v36, 0.0  ;;  %v836_v13 = vperm.slane %v585_v12, 5 }
  0x43   :  { %v143_v0 = vmul.f32 %v834_v31, %v75_v5  ;;  %v209_v49 = vadd.f32 %v835_v51, %v141_v21  ;;  %v398_v53 = vadd.f32 %v397_v16, %v366_v41  ;;  %v837_v15 = vperm.slane %v508_v22, 5 }
  0x44   :  { %v368_v60 = vmul.f32 %v836_v13, %v300_v59  ;;  %v838_v2 = vperm.slane %v568_v62, 3  ;;  %v272_v19 = vmul.f32 0.2, %v208_v11  ;;  %v302_v26 = vsel %vm238_vm7, %v206_v25, %v270_v58 }
  0x45   :  { %v144_v32 = vmul.f32 %v837_v15, %v76_v40  ;;  %vm240_vm9 = vcmp.ge.f32.partialorder %v208_v11, 0.0  ;;  %v839_v27 = vperm.slane %v585_v12, 6  ;;  %v399_v23 = vadd.f32 %v398_v53, %v367_v7 }
  0x46   :  { %v210_v55 = vadd.f32 %v838_v2, %v142_v48  ;;  %v840_v39 = vperm.slane %v508_v22, 6  ;;  %v841_v17 = vperm.slane %v568_v62, 4  ;;  %v273_v14 = vmul.f32 0.2, %v209_v49 }
  0x47   :  { %v369_v45 = vmul.f32 %v839_v27, %v301_v50  ;;  %v303_v33 = vsel %vm239_vm8, %v207_v36, %v271_v46  ;;  %vm241_vm10 = vcmp.ge.f32.partialorder %v209_v49, 0.0  ;;  %v842_v1 = vperm.slane %v585_v12, 7 }
  0x48   :  { %v145_v54 = vmul.f32 %v840_v39, %v77_v37  ;;  %v211_v57 = vadd.f32 %v841_v17, %v143_v0  ;;  %v400_v34 = vadd.f32 %v399_v23, %v368_v60  ;;  %v843_v43 = vperm.slane %v508_v22, 7 }
  0x49   :  { %v370_v10 = vmul.f32 %v842_v1, %v302_v26  ;;  %v844_v44 = vperm.slane %v568_v62, 5  ;;  %v274_v18 = vmul.f32 0.2, %v210_v55  ;;  %v304_v25 = vsel %vm240_vm9, %v208_v11, %v272_v19 }
  0x4a   :  { %v146_v4 = vmul.f32 %v843_v43, %v78_v42  ;;  %vm242_vm11 = vcmp.ge.f32.partialorder %v210_v55, 0.0  ;;  %v371_v35 = vmul.f32 %v323_v3, %v303_v33  ;;  %v401_v38 = vadd.f32 %v400_v34, %v369_v45 }
  0x4b   :  { %v212_v28 = vadd.f32 %v844_v44, %v144_v32  ;;  %v845_v5 = vperm.slane %v568_v62, 6  ;;  %v275_v20 = vmul.f32 0.2, %v211_v57  ;;  %v305_v12 = vsel %vm241_vm10, %v209_v49, %v273_v14 }
  0x4c   :  { %vm243_vm12 = vcmp.ge.f32.partialorder %v211_v57, 0.0  ;;  %v846_v21 = vperm.slane %v639_v63, 1  ;;  %v402_v36 = vadd.f32 %v401_v38, %v370_v10  ;;  %v847_v29 = vperm.slane %v568_v62, 7 }
  0x4d   :  { %v213_v30 = vadd.f32 %v845_v5, %v145_v54  ;;  %v276_v40 = vmul.f32 0.2, %v212_v28  ;;  %v306_v41 = vsel %vm242_vm11, %v210_v55, %v274_v18  ;;  %vm244_vm13 = vcmp.ge.f32.partialorder %v212_v28, 0.0 }
  0x4e   :  { %v372_v22 = vmul.f32 %v846_v21, %v304_v25  ;;  %v214_v6 = vadd.f32 %v847_v29, %v146_v4  ;;  %v373_v3 = vmul.f32 %v325_v9, %v305_v12  ;;  %v403_v52 = vadd.f32 %v402_v36, %v371_v35 }
  0x4f   :  { %v277_v48 = vmul.f32 0.2, %v213_v30  ;;  %v307_v11 = vsel %vm243_vm12, %v211_v57, %v275_v20  ;;  %vm245_vm14 = vcmp.ge.f32.partialorder %v213_v30, 0.0  ;;  %v374_v58 = vmul.f32 %v326_v8, %v306_v41 }
  0x50   :  { %v404_v59 = vadd.f32 %v403_v52, %v372_v22  ;;  %v278_v37 = vmul.f32 0.2, %v214_v6  ;;  %v308_v7 = vsel %vm244_vm13, %v212_v28, %v276_v40  ;;  %vm246_vm15 = vcmp.ge.f32.partialorder %v214_v6, 0.0 }
  0x51   :  { %v375_v62 = vmul.f32 %v327_v56, %v307_v11  ;;  %v309_v31 = vsel %vm245_vm14, %v213_v30, %v277_v48  ;;  %v376_v0 = vmul.f32 %v328_v24, %v308_v7 }
  0x52   :  { %v405_v16 = vadd.f32 %v404_v59, %v373_v3  ;;  %v310_v51 = vsel %vm246_vm15, %v214_v6, %v278_v37  ;;  %v377_v49 = vmul.f32 %v329_v47, %v309_v31 }
  0x53   :  { %v378_v8 = vmul.f32 %v330_v61, %v310_v51 }
  0x54   :  { %v406_v9 = vadd.f32 %v405_v16, %v374_v58 }
  0x56   :  { %v407_v46 = vadd.f32 %v406_v9, %v375_v62 }
  0x58   :  { %v408_v50 = vadd.f32 %v407_v46, %v376_v0 }
  0x5a   :  { %v409_v42 = vadd.f32 %v408_v50, %v377_v49 }
  0x5c   :  { %v410_v13 = vadd.f32 %v409_v42, %v378_v8 }
  0x5e   :  { %411 = vadd.xlane.f32.xlu0 %v410_v13 }
  0xb0   :  { %v395_v60 = vpop.xlane.xlu0 %394 }
  0xb1   :  { %413 = vst [vmem:[%s819_s4] sm:$0xff] %v395_v60 }
  0xd1   :  { %v412_v56 = vpop.xlane.xlu0 %411 }
  0xd2   :  { %414 = vst [vmem:[%s819_s4 + $0x8] sm:$0xff] %v412_v56 }
  0xd3   :  { %419 = vsyncpa [#allocation3], 1 }

// kernel: _lambda_.22
= control target key start
LH: loop header
LB: loop body
LE: loop exit
PB: predicated region body
PF: predicated region fallthrough
CT: control target
= control target key end

     0   :  { %s5044_s0 = inlined_call_operand.vmem [shape: bf16[16,9216], index: 0, kind: input, shape index: {}]   ;;  %s5045_s1 = inlined_call_operand.hbm [shape: bf16[9216,2048], index: 1, kind: input, shape index: {}]   ;;  %s5046_s2 = inlined_call_operand.vmem [shape: bf16[16,2048], index: 2, kind: output, shape index: {0}]   ;;  %s5047_s3 = inlined_call_operand.vmem [shape: f32[1,2,2048], index: 3, kind: output, shape index: {1}]  }
   0x1   :  { %5052 = sst [smem:[#allocation15_spill]] %s5044_s0 }
   0x2   :  { %9 = vsyncpa [#allocation5], 0 }
   0x3   :  { %11 = vsyncpa [#allocation5 + $0x1], 0  ;;  %s4265_s12 = smov 0   ;;  %s4267_s13 = smov 0  }
   0x4   :  { %s4269_s14 = smov 0   ;;  %s4271_s15 = smov 0  }
   0x5   :  { %s4273_s16 = smov 0   ;;  %s4275_s17 = smov 0  }
   0x6   :  { %s4277_s18 = smov 0   ;;  %s4279_s19 = smov 0  }
   0x7   :  { %s4281_s20 = smov 0   ;;  %s4283_s21 = smov 0  }
   0x8   :  { %s4285_s22 = smov 0   ;;  %s4287_s23 = smov 0  }
   0x9 LB: > { %5053 = sst [smem:[#allocation8_spill]] %s4199_s13  ;;  %s2663_s24 = sadd.s32 4294967295, %s4239_s23   ;;  %s4239_s23 = sphi %s4287_s23, %s17_s23   ;;  %s4235_s22 = sphi %s4285_s22, %s5078_s22   ;;  %s4231_s21 = sphi %s4283_s21, %s5077_s21   ;;  %s4227_s20 = sphi %s4281_s20, %s5076_s20   ;;  %s4223_s19 = sphi %s4279_s19, %s5075_s19   ;;  %s4219_s18 = sphi %s4277_s18, %s5069_s18   ;;  %s4215_s17 = sphi %s4275_s17, %s5068_s17   ;;  %s4211_s16 = sphi %s4273_s16, %s5074_s16   ;;  %s4207_s15 = sphi %s4271_s15, %s5073_s15   ;;  %s4203_s14 = sphi %s4269_s14, %s5072_s14   ;;  %s4199_s13 = sphi %s4267_s13, %s5066_s13   ;;  %s4195_s12 = sphi %s4265_s12, %s5065_s12  }
   0xa   : > { %5054 = sst [smem:[#allocation9_spill]] %s4219_s18  ;;  %s29_s25 = sadd.s32 1, %s4231_s21 }
   0xb   : > { %p30_p0 = scmp.ge.s32.totalorder %s29_s25, 9  ;;  %s32_s26 = sadd.s32 1, %s4235_s22 }
   0xc   : > { %s45_s27 = sadd.s32 1, %s4219_s18  ;;  %p52_p1 = scmp.ne.s32.totalorder %s4219_s18, %s4215_s17 }
   0xd   : > { %s5080_s25 = smov (%p30_p0, %s29_s25), 0  ;;  %s5082_s26 = smov (!%p30_p0, %s32_s26), %s4235_s22 }
   0xe   : > { %5055 = sst [smem:[#allocation10_spill]] %s5080_s25  ;;  %s41_s28 = ssub.s32 %s4231_s21, %s5080_s25 }
   0xf   : > { %p53_p2 = scmp.eq.s32.totalorder %s4239_s23, 0  ;;  %p34_p3 = scmp.ge.s32.totalorder %s5082_s26, 4 }
  0x10   : > { %p43_p4 = scmp.eq.s32.totalorder %s41_s28, 0  ;;  %s73_s30 = sadd.s32 1, %s4211_s16 }
  0x11   : > { %p4337_p5 = por %p53_p2, %p52_p1  ;;  %s5084_s26 = smov (%p34_p3, %s5082_s26), 0 }
  0x12   : > { %5057 = sst [smem:[#allocation11_spill]] %s5084_s26  ;;  %s69_s5 = ssub.s32 %s4235_s22, %s5084_s26 }
  0x13   : > { %s4345_s4 = scalar_select %p43_p4, %s4219_s18, %s45_s27  }
  0x14   : > { %p80_p6 = scmp.ne.s32.totalorder %s4211_s16, %s4207_s15  ;;  %s70_s6 = sor.u32 %s69_s5, %s41_s28 }
  0x15   : > { %5058 = sst [smem:[#allocation12_spill]] %s4345_s4  ;;  %p86_p7 = scmp.ne.s32.totalorder %s4207_s15, %s4203_s14 }
  0x16   : > { %p71_p8 = scmp.eq.s32.totalorder %s70_s6, 0  ;;  %p4353_p9 = por %p80_p6, %p53_p2 }
  0x17   : > { %p87_p10 = scmp.eq.s32.totalorder %s2663_s24, 0  ;;  %p99_p11 = scmp.eq.s32.totalorder %s69_s5, 0 }
  0x18   : > { %s4360_s8 = scalar_select %p71_p8, %s4211_s16, %s73_s30  }
  0x19   : > { %p4362_p12 = por %p87_p10, %p86_p7  ;;  %s101_s10 = sadd.s32 1, %s4199_s13 }
  0x1a   : > { %5060 = sst [smem:[#allocation13_spill]] %s4360_s8  ;;  %p111_p13 = scmp.ne.s32.totalorder %s4199_s13, %s4195_s12 }
  0x1b   : > { %s4368_s11 = scalar_select %p99_p11, %s4199_s13, %s101_s10  }
  0x1c   : > { %p112_p0 = scmp.eq.s32.totalorder %s2663_s24, 35  ;;  %p2666_p2 = scmp.ge.s32.totalorder %s4239_s23, 36 }
  0x1d   : > { %5062 = sst [smem:[#allocation14_spill]] %s4368_s11 }
  0x1e   : > { %p4374_p1 = por %p112_p0, %p111_p13  ;;  %162 = sbr.rel (%p2666_p2) target bundleno = 61 (0x3d), region = 16 }
  0x23   : > { %165 = sbr.rel (!%p4337_p5) target bundleno = 53 (0x35), region = 20  ;;  %s167_s27 = sand.u32 (%p4337_p5), 1, %s4219_s18  }
  0x24   : > { %s3744_s28 = sshll.u32 (%p4337_p5), %s4231_s21, 5  ;;  %s2667_s30 = sshll.u32 (%p4337_p5), %s167_s27, 6 }
  0x25   : > { %s5064_s0 = sld [smem:[#allocation15_spill]] (%p4337_p5)  ;;  %s169_s24 = scalar_lea.vmem (%p4337_p5), [#allocation3], %s2667_s30 }
  0x2b   : > { %s175_s10 = scalar_lea.vmem %s5064_s0, %s3744_s28 }
  0x2c   : > { %v188_v0 = vld [vmem:[%s175_s10] sm:$0xff]  ;;  %v190_v1 = vld [vmem:[%s175_s10 + $0x8] sm:$0xff]  ;;  %v192_v2 = vld [vmem:[%s175_s10 + $0x10] sm:$0xff] }
  0x2d   : > { %189 = vst [vmem:[%s169_s24] sm:$0xff] %v188_v0  ;;  %v194_v3 = vld [vmem:[%s175_s10 + $0x18] sm:$0xff]  ;;  %v196_v4 = vld [vmem:[%s175_s10 + $0x120] sm:$0xff]  ;;  %v198_v5 = vld [vmem:[%s175_s10 + $0x128] sm:$0xff] }
  0x2e   : > { %191 = vst [vmem:[%s169_s24 + $0x8] sm:$0xff] %v190_v1  ;;  %v200_v6 = vld [vmem:[%s175_s10 + $0x130] sm:$0xff]  ;;  %v202_v7 = vld [vmem:[%s175_s10 + $0x138] sm:$0xff] }
  0x2f   : > { %193 = vst [vmem:[%s169_s24 + $0x10] sm:$0xff] %v192_v2 }
  0x30   : > { %195 = vst [vmem:[%s169_s24 + $0x18] sm:$0xff] %v194_v3 }
  0x31   : > { %197 = vst [vmem:[%s169_s24 + $0x20] sm:$0xff] %v196_v4 }
  0x32   : > { %199 = vst [vmem:[%s169_s24 + $0x28] sm:$0xff] %v198_v5 }
  0x33   : > { %201 = vst [vmem:[%s169_s24 + $0x30] sm:$0xff] %v200_v6 }
  0x34   : > { %203 = vst [vmem:[%s169_s24 + $0x38] sm:$0xff] %v202_v7 }
  0x35 PF: > { %s210_s29 = sand.u32 1, %s4211_s16   ;;  %s2672_s27 = sshll.u32 %s4235_s22, 2 }
  0x36   : > { %s2670_s28 = sshll.u32 %s210_s29, 11  ;;  %s3745_s30 = sshll.u32 %s4231_s21, 11 }
  0x37   : > { %s220_s5 = sadd.s32 %s3745_s30, %s2672_s27  ;;  %s214_s6 = scalar_lea.vmem [#allocation4], %s2670_s28 }
  0x38   : > { %s225_s0 = sshll.u32 %s214_s6, 4  ;;  %s2674_s26 = sshll.u32 %s220_s5, 2  ;;  %s226_s0 = int_to_ptr.vmem [resolvable:$true] %s225_s0 }
  0x39   : > { %s222_s10 = scalar_lea.hbm %s5045_s1, %s2674_s26  ;;  %s211_s24 = scalar_lea.sflag [#allocation5], %s210_s29 }
  0x3a   : > { %s223_s18 = sshll.u32 %s222_s10, 4  ;;  %s4241_s8 = smov 1024   ;;  %s224_s18 = int_to_ptr.hbm [resolvable:$true] %s223_s18 }
  0x3b   : > { %s4242_s11 = smov 256   ;;  %s4243_s13 = smov 16  }
  0x3c   : > { %4011 = dma.hbm_to_vmem [thread:$0]  (%p4353_p9), %s224_s18, 32768, %s226_s0, %s211_s24, %s4241_s8, %s4242_s11, %s4243_s13  }
  0x3d PF: > { %p2675_p3 = scmp.ge.s32.totalorder %s4239_s23, 1  ;;  %p233_p4 = scmp.lt.s32.totalorder %s4239_s23, 37 }
  0x3f   : > { %p234_p5 = pnand %p2675_p3, %p233_p4 }
  0x40   : > { %s240_s25 = sand.u32 (!%p234_p5), 1, %s4215_s17   ;;  %s246_s26 = sand.u32 (!%p234_p5), 1, %s4207_s15  }
  0x41   : > { %237 = sbr.rel (%p234_p5) target bundleno = 533 (0x215), region = 47  ;;  %s2676_s4 = sshll.u32 (!%p234_p5), %s240_s25, 6 }
  0x42   : > { %s2677_s27 = sshll.u32 (!%p234_p5), %s246_s26, 11  ;;  %s4398_s29 = scalar_lea.vmem (!%p234_p5), [#allocation3], %s2676_s4 }
  0x43   : > { %s247_s28 = scalar_lea.sflag (!%p234_p5), [#allocation5], %s246_s26  ;;  %s4400_s30 = scalar_lea.vmem (!%p234_p5), [#allocation4], %s2677_s27 }
  0x46   : > { %4190 = dma.done.wait (%p4362_p12), %s247_s28, 32768  }
  0x47   : > { %4192 = vsyncadd (%p4362_p12), %s247_s28, 4294934528  ;;  %s272_s0 = sand.u32 1, %s4195_s12   ;;  %s2679_s13 = sshll.u32 %s4227_s20, 2 }
  0x48   : > { %s2678_s18 = sshll.u32 %s272_s0, 5  ;;  %p295_p6 = scmp.lt.s32.totalorder %s2679_s13, 15 }
  0x49   : > { %s4413_s5 = scalar_lea.vmem [#allocation6], %s2678_s18  ;;  %p2681_p7 = scmp.ne.s32.totalorder %s4223_s19, 0 }
  0x4a   : > { %s5086_s13 = smov (!%p295_p6, %s2679_s13), 15 }
  0x4b   : > { %s2680_s17 = sshll.u32 %s5086_s13, 1  ;;  %305 = sbr.rel (%p2681_p7) target bundleno = 89 (0x59), region = 59 }
  0x4c   : > { %s4411_s11 = scalar_lea.vmem %s5047_s3, %s2680_s17 }
  0x50   : > { %v4244_v8 = vmov 0.0  }
  0x51   : > { %306 = vst [vmem:[#allocation2 + $0x30] sm:$0xff] %v4244_v8 }
  0x52   : > { %307 = vst [vmem:[#allocation2] sm:$0xff] %v4244_v8 }
  0x53   : > { %308 = vst [vmem:[#allocation2 + $0x18] sm:$0xff] %v4244_v8 }
  0x54   : > { %309 = vst [vmem:[#allocation2 + $0x10] sm:$0xff] %v4244_v8 }
  0x55   : > { %310 = vst [vmem:[#allocation2 + $0x8] sm:$0xff] %v4244_v8 }
  0x56   : > { %311 = vst [vmem:[#allocation2 + $0x20] sm:$0xff] %v4244_v8 }
  0x57   : > { %312 = vst [vmem:[#allocation2 + $0x28] sm:$0xff] %v4244_v8 }
  0x58   : > { %313 = vst [vmem:[#allocation2 + $0x38] sm:$0xff] %v4244_v8 }
  0x59 PF: > { %v2828_v9 = vld [vmem:[%s4400_s30 + $0xe0] sm:$0xf]  ;;  %v3784_v10 = vld [vmem:[%s4400_s30 + $0xec] sm:$0xf0]  ;;  %p3738_p8 = scmp.ne.s32.totalorder %s4223_s19, 8 }
  0x5a   : > { %v2956_v11 = vld [vmem:[%s4400_s30 + $0x1e0] sm:$0xf]  ;;  %v2829_v12 = vor.u32 %v3784_v10, %v2828_v9  ;;  %v3816_v13 = vld [vmem:[%s4400_s30 + $0x1ec] sm:$0xf0] }
  0x5b   : > { %v3084_v14 = vld [vmem:[%s4400_s30 + $0x2e0] sm:$0xf]  ;;  %v3848_v15 = vld [vmem:[%s4400_s30 + $0x2ec] sm:$0xf0]  ;;  %v2957_v16 = vor.u32 %v3816_v13, %v2956_v11 }
  0x5c   : > { %v3085_v17 = vor.u32 %v3848_v15, %v3084_v14  ;;  %v3212_v18 = vld [vmem:[%s4400_s30 + $0x3e0] sm:$0xf]  ;;  %v3880_v19 = vld [vmem:[%s4400_s30 + $0x3ec] sm:$0xf0]  ;;  %1906 = vmatpush.bf16.msra.mxu0 %v2829_v12 }
  0x5d   : > { %v2812_v20 = vld [vmem:[%s4400_s30 + $0xc0] sm:$0xf]  ;;  %v3213_v21 = vor.u32 %v3880_v19, %v3212_v18  ;;  %v3780_v22 = vld [vmem:[%s4400_s30 + $0xcc] sm:$0xf0]  ;;  %1920 = vmatpush.bf16.msra.mxu1 %v2957_v16 }
  0x5e   : > { %v2940_v23 = vld [vmem:[%s4400_s30 + $0x1c0] sm:$0xf]  ;;  %v3812_v24 = vld [vmem:[%s4400_s30 + $0x1cc] sm:$0xf0]  ;;  %1934 = vmatpush.bf16.msra.mxu2 %v3085_v17  ;;  %v2813_v25 = vor.u32 %v3780_v22, %v2812_v20 }
  0x5f   : > { %v2941_v26 = vor.u32 %v3812_v24, %v2940_v23  ;;  %v3068_v27 = vld [vmem:[%s4400_s30 + $0x2c0] sm:$0xf]  ;;  %v3844_v28 = vld [vmem:[%s4400_s30 + $0x2cc] sm:$0xf0]  ;;  %1948 = vmatpush.bf16.msra.mxu3 %v3213_v21 }
  0x60   : > { %v3196_v29 = vld [vmem:[%s4400_s30 + $0x3c0] sm:$0xf]  ;;  %v3069_v30 = vor.u32 %v3844_v28, %v3068_v27  ;;  %v3876_v31 = vld [vmem:[%s4400_s30 + $0x3cc] sm:$0xf0]  ;;  %1907 = vmatpush.bf16.msra.mxu0 %v2813_v25 }
  0x61   : > { %v2796_v32 = vld [vmem:[%s4400_s30 + $0xa0] sm:$0xf]  ;;  %v3776_v33 = vld [vmem:[%s4400_s30 + $0xac] sm:$0xf0]  ;;  %v3197_v34 = vor.u32 %v3876_v31, %v3196_v29  ;;  %1921 = vmatpush.bf16.msra.mxu1 %v2941_v26 }
  0x62   : > { %v2924_v35 = vld [vmem:[%s4400_s30 + $0x1a0] sm:$0xf]  ;;  %v3808_v36 = vld [vmem:[%s4400_s30 + $0x1ac] sm:$0xf0]  ;;  %v2797_v38 = vor.u32 %v3776_v33, %v2796_v32  ;;  %1935 = vmatpush.bf16.msra.mxu2 %v3069_v30 }
  0x63   : > { %v3052_v37 = vld [vmem:[%s4400_s30 + $0x2a0] sm:$0xf]  ;;  %v3840_v39 = vld [vmem:[%s4400_s30 + $0x2ac] sm:$0xf0]  ;;  %v2925_v42 = vor.u32 %v3808_v36, %v2924_v35  ;;  %1949 = vmatpush.bf16.msra.mxu3 %v3197_v34 }
  0x64   : > { %v3180_v40 = vld [vmem:[%s4400_s30 + $0x3a0] sm:$0xf]  ;;  %v3872_v41 = vld [vmem:[%s4400_s30 + $0x3ac] sm:$0xf0]  ;;  %v3053_v43 = vor.u32 %v3840_v39, %v3052_v37  ;;  %1908 = vmatpush.bf16.msra.mxu0 %v2797_v38 }
  0x65   : > { %v2780_v44 = vld [vmem:[%s4400_s30 + $0x80] sm:$0xf]  ;;  %v3772_v45 = vld [vmem:[%s4400_s30 + $0x8c] sm:$0xf0]  ;;  %v3181_v47 = vor.u32 %v3872_v41, %v3180_v40  ;;  %1922 = vmatpush.bf16.msra.mxu1 %v2925_v42 }
  0x66   : > { %v2908_v46 = vld [vmem:[%s4400_s30 + $0x180] sm:$0xf]  ;;  %v3804_v48 = vld [vmem:[%s4400_s30 + $0x18c] sm:$0xf0]  ;;  %v2781_v53 = vor.u32 %v3772_v45, %v2780_v44  ;;  %1936 = vmatpush.bf16.msra.mxu2 %v3053_v43 }
  0x67   : > { %v3036_v49 = vld [vmem:[%s4400_s30 + $0x280] sm:$0xf]  ;;  %v3836_v50 = vld [vmem:[%s4400_s30 + $0x28c] sm:$0xf0]  ;;  %v2909_v54 = vor.u32 %v3804_v48, %v2908_v46  ;;  %1950 = vmatpush.bf16.msra.mxu3 %v3181_v47 }
  0x68   : > { %v3164_v51 = vld [vmem:[%s4400_s30 + $0x380] sm:$0xf]  ;;  %v3868_v52 = vld [vmem:[%s4400_s30 + $0x38c] sm:$0xf0]  ;;  %v3037_v55 = vor.u32 %v3836_v50, %v3036_v49  ;;  %1909 = vmatpush.bf16.msra.mxu0 %v2781_v53 }
  0x69   : > { %v2764_v56 = vld [vmem:[%s4400_s30 + $0x60] sm:$0xf]  ;;  %v3768_v57 = vld [vmem:[%s4400_s30 + $0x6c] sm:$0xf0]  ;;  %v3165_v59 = vor.u32 %v3868_v52, %v3164_v51  ;;  %1923 = vmatpush.bf16.msra.mxu1 %v2909_v54 }
  0x6a   : > { %v2892_v58 = vld [vmem:[%s4400_s30 + $0x160] sm:$0xf]  ;;  %v3800_v60 = vld [vmem:[%s4400_s30 + $0x16c] sm:$0xf0]  ;;  %v2765_v1 = vor.u32 %v3768_v57, %v2764_v56  ;;  %1937 = vmatpush.bf16.msra.mxu2 %v3037_v55 }
  0x6b   : > { %v3020_v61 = vld [vmem:[%s4400_s30 + $0x260] sm:$0xf]  ;;  %v3832_v62 = vld [vmem:[%s4400_s30 + $0x26c] sm:$0xf0]  ;;  %v2893_v2 = vor.u32 %v3800_v60, %v2892_v58  ;;  %1951 = vmatpush.bf16.msra.mxu3 %v3165_v59 }
  0x6c   : > { %v3148_v63 = vld [vmem:[%s4400_s30 + $0x360] sm:$0xf]  ;;  %v3864_v0 = vld [vmem:[%s4400_s30 + $0x36c] sm:$0xf0]  ;;  %v3021_v3 = vor.u32 %v3832_v62, %v3020_v61  ;;  %1910 = vmatpush.bf16.msra.mxu0 %v2765_v1 }
  0x6d   : > { %v2748_v4 = vld [vmem:[%s4400_s30 + $0x40] sm:$0xf]  ;;  %v3764_v5 = vld [vmem:[%s4400_s30 + $0x4c] sm:$0xf0]  ;;  %v3149_v7 = vor.u32 %v3864_v0, %v3148_v63  ;;  %1924 = vmatpush.bf16.msra.mxu1 %v2893_v2  ;;  %v2692_v63 = vld [vmem:[%s4398_s29 + $0x8] sm:$0xf] }
  0x6e   : > { %v2876_v6 = vld [vmem:[%s4400_s30 + $0x140] sm:$0xf]  ;;  %v3796_v8 = vld [vmem:[%s4400_s30 + $0x14c] sm:$0xf0]  ;;  %v2749_v13 = vor.u32 %v3764_v5, %v2748_v4  ;;  %1938 = vmatpush.bf16.msra.mxu2 %v3021_v3  ;;  %v3751_v4 = vld [vmem:[%s4398_s29 + $0x24] sm:$0xf0] }
  0x6f   : > { %v3004_v9 = vld [vmem:[%s4400_s30 + $0x240] sm:$0xf]  ;;  %v3828_v10 = vld [vmem:[%s4400_s30 + $0x24c] sm:$0xf0]  ;;  %v2877_v14 = vor.u32 %v3796_v8, %v2876_v6  ;;  %1952 = vmatpush.bf16.msra.mxu3 %v3149_v7 }
  0x70   : > { %v3132_v11 = vld [vmem:[%s4400_s30 + $0x340] sm:$0xf]  ;;  %v3860_v12 = vld [vmem:[%s4400_s30 + $0x34c] sm:$0xf0]  ;;  %v3005_v15 = vor.u32 %v3828_v10, %v3004_v9  ;;  %1911 = vmatpush.bf16.msra.mxu0 %v2749_v13  ;;  %v4507_v10 = vor.u32 %v3751_v4, %v2692_v63 }
  0x71   : > { %v2732_v16 = vld [vmem:[%s4400_s30 + $0x20] sm:$0xf]  ;;  %v3760_v17 = vld [vmem:[%s4400_s30 + $0x2c] sm:$0xf0]  ;;  %v3133_v19 = vor.u32 %v3860_v12, %v3132_v11  ;;  %1925 = vmatpush.bf16.msra.mxu1 %v2877_v14 }
  0x72   : > { %v2860_v18 = vld [vmem:[%s4400_s30 + $0x120] sm:$0xf]  ;;  %v3792_v20 = vld [vmem:[%s4400_s30 + $0x12c] sm:$0xf0]  ;;  %v2733_v25 = vor.u32 %v3760_v17, %v2732_v16  ;;  %1939 = vmatpush.bf16.msra.mxu2 %v3005_v15  ;;  %v3746_v15 = vld [vmem:[%s4398_s29 + $0x4] sm:$0xf] }
  0x73   : > { %v2988_v21 = vld [vmem:[%s4400_s30 + $0x220] sm:$0xf]  ;;  %v3824_v22 = vld [vmem:[%s4400_s30 + $0x22c] sm:$0xf0]  ;;  %v2861_v28 = vor.u32 %v3792_v20, %v2860_v18  ;;  %1953 = vmatpush.bf16.msra.mxu3 %v3133_v19  ;;  %v2686_v16 = vld [vmem:[%s4398_s29 + $0x20] sm:$0xf0] }
  0x74   : > { %v3116_v23 = vld [vmem:[%s4400_s30 + $0x320] sm:$0xf]  ;;  %v3856_v24 = vld [vmem:[%s4400_s30 + $0x32c] sm:$0xf0]  ;;  %v2989_v29 = vor.u32 %v3824_v22, %v2988_v21  ;;  %1912 = vmatpush.bf16.msra.mxu0 %v2733_v25  ;;  %v3747_v17 = vld [vmem:[%s4398_s29 + $0xc] sm:$0xf]  ;;  %v4517_v19 = vor.u32 %v3746_v15, %v2686_v16 }
  0x75   : > { %v2716_v26 = vld [vmem:[%s4400_s30] sm:$0xf]  ;;  %v3756_v27 = vld [vmem:[%s4400_s30 + $0xc] sm:$0xf0]  ;;  %v3117_v33 = vor.u32 %v3856_v24, %v3116_v23  ;;  %1926 = vmatpush.bf16.msra.mxu1 %v2861_v28  ;;  %v2694_v20 = vld [vmem:[%s4398_s29 + $0x28] sm:$0xf0] }
  0x76   : > { %v2844_v30 = vld [vmem:[%s4400_s30 + $0x100] sm:$0xf]  ;;  %v3788_v31 = vld [vmem:[%s4400_s30 + $0x10c] sm:$0xf0]  ;;  %v2717_v40 = vor.u32 %v3756_v27, %v2716_v26  ;;  %1940 = vmatpush.bf16.msra.mxu2 %v2989_v29  ;;  %v4523_v26 = vor.u32 %v3747_v17, %v2694_v20 }
  0x77   : > { %v2972_v32 = vld [vmem:[%s4400_s30 + $0x200] sm:$0xf]  ;;  %v3820_v34 = vld [vmem:[%s4400_s30 + $0x20c] sm:$0xf0]  ;;  %v2845_v44 = vor.u32 %v3788_v31, %v2844_v30  ;;  %1954 = vmatpush.bf16.msra.mxu3 %v3117_v33 }
  0x78   : > { %v3100_v35 = vld [vmem:[%s4400_s30 + $0x300] sm:$0xf]  ;;  %v3852_v36 = vld [vmem:[%s4400_s30 + $0x30c] sm:$0xf0]  ;;  %v2973_v45 = vor.u32 %v3820_v34, %v2972_v32  ;;  %1913 = vmatpush.bf16.msra.mxu0 %v2717_v40 }
  0x79   : > { %v3340_v37 = vld [vmem:[%s4400_s30 + $0x4e0] sm:$0xf]  ;;  %v3912_v38 = vld [vmem:[%s4400_s30 + $0x4ec] sm:$0xf0]  ;;  %v3101_v48 = vor.u32 %v3852_v36, %v3100_v35  ;;  %1927 = vmatpush.bf16.msra.mxu1 %v2845_v44 }
  0x7a   : > { %v3468_v39 = vld [vmem:[%s4400_s30 + $0x5e0] sm:$0xf]  ;;  %v3944_v41 = vld [vmem:[%s4400_s30 + $0x5ec] sm:$0xf0]  ;;  %v3341_v49 = vor.u32 %v3912_v38, %v3340_v37  ;;  %1941 = vmatpush.bf16.msra.mxu2 %v2973_v45 }
  0x7b   : > { %v3596_v42 = vld [vmem:[%s4400_s30 + $0x6e0] sm:$0xf]  ;;  %v3976_v43 = vld [vmem:[%s4400_s30 + $0x6ec] sm:$0xf0]  ;;  %v3469_v52 = vor.u32 %v3944_v41, %v3468_v39  ;;  %1955 = vmatpush.bf16.msra.mxu3 %v3101_v48 }
  0x7c   : > { %v3724_v46 = vld [vmem:[%s4400_s30 + $0x7e0] sm:$0xf]  ;;  %v4008_v47 = vld [vmem:[%s4400_s30 + $0x7ec] sm:$0xf0]  ;;  %v3597_v53 = vor.u32 %v3976_v43, %v3596_v42  ;;  %1962 = vmatpush.bf16.msrb.mxu0 %v3341_v49  ;;  %1928 = vmatmul.bf16.vlgmr.msra.gmra.mxu1 %v4517_v19 }
  0x7d   : > { %v3324_v50 = vld [vmem:[%s4400_s30 + $0x4c0] sm:$0xf]  ;;  %v3908_v51 = vld [vmem:[%s4400_s30 + $0x4cc] sm:$0xf0]  ;;  %v3725_v57 = vor.u32 %v4008_v47, %v3724_v46  ;;  %1976 = vmatpush.bf16.msrb.mxu1 %v3469_v52  ;;  %1942 = vmatmul.bf16.vlgmr.msra.gmra.mxu2 %v4507_v10 }
  0x7e   : > { %v3452_v54 = vld [vmem:[%s4400_s30 + $0x5c0] sm:$0xf]  ;;  %v3940_v55 = vld [vmem:[%s4400_s30 + $0x5cc] sm:$0xf0]  ;;  %v3325_v0 = vor.u32 %v3908_v51, %v3324_v50  ;;  %1990 = vmatpush.bf16.msrb.mxu2 %v3597_v53  ;;  %1956 = vmatmul.bf16.vlgmr.msra.gmra.mxu3 %v4523_v26 }
  0x7f   : > { %v3580_v56 = vld [vmem:[%s4400_s30 + $0x6c0] sm:$0xf]  ;;  %v3972_v58 = vld [vmem:[%s4400_s30 + $0x6cc] sm:$0xf0]  ;;  %v3453_v5 = vor.u32 %v3940_v55, %v3452_v54  ;;  %2004 = vmatpush.bf16.msrb.mxu3 %v3725_v57 }
  0x80   : > { %v3708_v59 = vld [vmem:[%s4400_s30 + $0x7c0] sm:$0xf]  ;;  %v4004_v60 = vld [vmem:[%s4400_s30 + $0x7cc] sm:$0xf0]  ;;  %v3581_v6 = vor.u32 %v3972_v58, %v3580_v56  ;;  %1963 = vmatpush.bf16.msrb.mxu0 %v3325_v0 }
  0x81   : > { %v2684_v61 = vld [vmem:[%s4398_s29] sm:$0xf]  ;;  %v3904_v2 = vld [vmem:[%s4400_s30 + $0x4ac] sm:$0xf0]  ;;  %v3709_v11 = vor.u32 %v4004_v60, %v3708_v59  ;;  %1977 = vmatpush.bf16.msrb.mxu1 %v3453_v5 }
  0x82   : > { %v3750_v62 = vld [vmem:[%s4398_s29 + $0x1c] sm:$0xf0]  ;;  %v3936_v8 = vld [vmem:[%s4400_s30 + $0x5ac] sm:$0xf0]  ;;  %1991 = vmatpush.bf16.msrb.mxu2 %v3581_v6 }
  0x83   : > { %v3308_v1 = vld [vmem:[%s4400_s30 + $0x4a0] sm:$0xf]  ;;  %v4501_v3 = vor.u32 %v3750_v62, %v2684_v61  ;;  %v3968_v12 = vld [vmem:[%s4400_s30 + $0x6ac] sm:$0xf0]  ;;  %2005 = vmatpush.bf16.msrb.mxu3 %v3709_v11 }
  0x84   : > { %v3436_v7 = vld [vmem:[%s4400_s30 + $0x5a0] sm:$0xf]  ;;  %v4000_v14 = vld [vmem:[%s4400_s30 + $0x7ac] sm:$0xf0]  ;;  %v3309_v18 = vor.u32 %v3904_v2, %v3308_v1 }
  0x85   : > { %v3564_v9 = vld [vmem:[%s4400_s30 + $0x6a0] sm:$0xf]  ;;  %1914 = vmatmul.bf16.vlgmr.msra.gmra.mxu0 %v4501_v3  ;;  %v3437_v21 = vor.u32 %v3936_v8, %v3436_v7  ;;  %v3900_v24 = vld [vmem:[%s4400_s30 + $0x48c] sm:$0xf0] }
  0x86   : > { %v3692_v13 = vld [vmem:[%s4400_s30 + $0x7a0] sm:$0xf]  ;;  %v3565_v22 = vor.u32 %v3968_v12, %v3564_v9  ;;  %v3932_v28 = vld [vmem:[%s4400_s30 + $0x58c] sm:$0xf0]  ;;  %1964 = vmatpush.bf16.msrb.mxu0 %v3309_v18  ;;  %v3782_v18 = vld [vmem:[%s4400_s30 + $0xe4] sm:$0xf] }
  0x87   : > { %v3292_v23 = vld [vmem:[%s4400_s30 + $0x480] sm:$0xf]  ;;  %v3693_v27 = vor.u32 %v4000_v14, %v3692_v13  ;;  %v3964_v30 = vld [vmem:[%s4400_s30 + $0x68c] sm:$0xf0]  ;;  %1978 = vmatpush.bf16.msrb.mxu1 %v3437_v21  ;;  %v2830_v21 = vld [vmem:[%s4400_s30 + $0xf0] sm:$0xf0] }
  0x88   : > { %v3420_v25 = vld [vmem:[%s4400_s30 + $0x580] sm:$0xf]  ;;  %v3996_v32 = vld [vmem:[%s4400_s30 + $0x78c] sm:$0xf0]  ;;  %v3293_v33 = vor.u32 %v3900_v24, %v3292_v23  ;;  %1992 = vmatpush.bf16.msrb.mxu2 %v3565_v22  ;;  %v3814_v22 = vld [vmem:[%s4400_s30 + $0x1e4] sm:$0xf] }
  0x89   : > { %v3548_v29 = vld [vmem:[%s4400_s30 + $0x680] sm:$0xf]  ;;  %v3421_v34 = vor.u32 %v3932_v28, %v3420_v25  ;;  %v3896_v37 = vld [vmem:[%s4400_s30 + $0x46c] sm:$0xf0]  ;;  %2006 = vmatpush.bf16.msrb.mxu3 %v3693_v27  ;;  %v2958_v23 = vld [vmem:[%s4400_s30 + $0x1f0] sm:$0xf0] }
  0x8a   : > { %v3676_v31 = vld [vmem:[%s4400_s30 + $0x780] sm:$0xf]  ;;  %v3549_v35 = vor.u32 %v3964_v30, %v3548_v29  ;;  %v3928_v40 = vld [vmem:[%s4400_s30 + $0x56c] sm:$0xf0]  ;;  %1965 = vmatpush.bf16.msrb.mxu0 %v3293_v33  ;;  %v3846_v24 = vld [vmem:[%s4400_s30 + $0x2e4] sm:$0xf] }
  0x8b   : > { %v3276_v36 = vld [vmem:[%s4400_s30 + $0x460] sm:$0xf]  ;;  %v3677_v39 = vor.u32 %v3996_v32, %v3676_v31  ;;  %v3960_v42 = vld [vmem:[%s4400_s30 + $0x66c] sm:$0xf0]  ;;  %1979 = vmatpush.bf16.msrb.mxu1 %v3421_v34  ;;  %v3086_v25 = vld [vmem:[%s4400_s30 + $0x2f0] sm:$0xf0] }
  0x8c   : > { %v3404_v38 = vld [vmem:[%s4400_s30 + $0x560] sm:$0xf]  ;;  %v3992_v44 = vld [vmem:[%s4400_s30 + $0x76c] sm:$0xf0]  ;;  %v3277_v45 = vor.u32 %v3896_v37, %v3276_v36  ;;  %1993 = vmatpush.bf16.msrb.mxu2 %v3549_v35  ;;  %v3878_v27 = vld [vmem:[%s4400_s30 + $0x3e4] sm:$0xf] }
  0x8d   : > { %v3532_v41 = vld [vmem:[%s4400_s30 + $0x660] sm:$0xf]  ;;  %v3405_v46 = vor.u32 %v3928_v40, %v3404_v38  ;;  %v3892_v49 = vld [vmem:[%s4400_s30 + $0x44c] sm:$0xf0]  ;;  %2007 = vmatpush.bf16.msrb.mxu3 %v3677_v39  ;;  %v3214_v29 = vld [vmem:[%s4400_s30 + $0x3f0] sm:$0xf0]  ;;  %v2833_v38 = vor.u32 %v3782_v18, %v2830_v21 }
  0x8e   : > { %v3660_v43 = vld [vmem:[%s4400_s30 + $0x760] sm:$0xf]  ;;  %v3533_v47 = vor.u32 %v3960_v42, %v3532_v41  ;;  %v3924_v52 = vld [vmem:[%s4400_s30 + $0x54c] sm:$0xf0]  ;;  %1966 = vmatpush.bf16.msrb.mxu0 %v3277_v45  ;;  %v2708_v34 = vld [vmem:[%s4398_s29 + $0x18] sm:$0xf]  ;;  %v2961_v42 = vor.u32 %v3814_v22, %v2958_v23 }
  0x8f   : > { %v3260_v48 = vld [vmem:[%s4400_s30 + $0x440] sm:$0xf]  ;;  %v3661_v51 = vor.u32 %v3992_v44, %v3660_v43  ;;  %v3956_v54 = vld [vmem:[%s4400_s30 + $0x64c] sm:$0xf0]  ;;  %1980 = vmatpush.bf16.msrb.mxu1 %v3405_v46  ;;  %v3753_v35 = vld [vmem:[%s4398_s29 + $0x34] sm:$0xf0]  ;;  %v3089_v43 = vor.u32 %v3846_v24, %v3086_v25 }
  0x90   : > { %v3388_v50 = vld [vmem:[%s4400_s30 + $0x540] sm:$0xf]  ;;  %v3988_v56 = vld [vmem:[%s4400_s30 + $0x74c] sm:$0xf0]  ;;  %v3261_v57 = vor.u32 %v3892_v49, %v3260_v48  ;;  %1994 = vmatpush.bf16.msrb.mxu2 %v3533_v47  ;;  %v3748_v36 = vld [vmem:[%s4398_s29 + $0x14] sm:$0xf]  ;;  %v3217_v47 = vor.u32 %v3878_v27, %v3214_v29 }
  0x91   : > { %v3516_v53 = vld [vmem:[%s4400_s30 + $0x640] sm:$0xf]  ;;  %v3389_v59 = vor.u32 %v3924_v52, %v3388_v50  ;;  %v3888_v61 = vld [vmem:[%s4400_s30 + $0x42c] sm:$0xf0]  ;;  %2008 = vmatpush.bf16.msrb.mxu3 %v3661_v51  ;;  %v2702_v39 = vld [vmem:[%s4398_s29 + $0x30] sm:$0xf0]  ;;  %v4588_v52 = vor.u32 %v3753_v35, %v2708_v34 }
  0x92   : > { %v3644_v55 = vld [vmem:[%s4400_s30 + $0x740] sm:$0xf]  ;;  %v3517_v60 = vor.u32 %v3956_v54, %v3516_v53  ;;  %v3920_v63 = vld [vmem:[%s4400_s30 + $0x52c] sm:$0xf0]  ;;  %1967 = vmatpush.bf16.msrb.mxu0 %v3261_v57  ;;  %v3749_v40 = vld [vmem:[%s4398_s29 + $0x1c] sm:$0xf]  ;;  %v4590_v53 = vor.u32 %v3748_v36, %v2702_v39 }
  0x93   : > { %v3244_v58 = vld [vmem:[%s4400_s30 + $0x420] sm:$0xf]  ;;  %v3645_v0 = vor.u32 %v3988_v56, %v3644_v55  ;;  %v3952_v2 = vld [vmem:[%s4400_s30 + $0x62c] sm:$0xf0]  ;;  %1981 = vmatpush.bf16.msrb.mxu1 %v3389_v59  ;;  %v2710_v41 = vld [vmem:[%s4398_s29 + $0x38] sm:$0xf0] }
  0x94   : > { %v3372_v62 = vld [vmem:[%s4400_s30 + $0x520] sm:$0xf]  ;;  %v3984_v5 = vld [vmem:[%s4400_s30 + $0x72c] sm:$0xf0]  ;;  %v3245_v8 = vor.u32 %v3888_v61, %v3244_v58  ;;  %1995 = vmatpush.bf16.msrb.mxu2 %v3517_v60  ;;  %v3778_v44 = vld [vmem:[%s4400_s30 + $0xc4] sm:$0xf]  ;;  %v4594_v56 = vor.u32 %v3749_v40, %v2710_v41 }
  0x95   : > { %v3500_v1 = vld [vmem:[%s4400_s30 + $0x620] sm:$0xf]  ;;  %v3884_v7 = vld [vmem:[%s4400_s30 + $0x40c] sm:$0xf0]  ;;  %v3373_v14 = vor.u32 %v3920_v63, %v3372_v62  ;;  %2009 = vmatpush.bf16.msrb.mxu3 %v3645_v0  ;;  %v2814_v45 = vld [vmem:[%s4400_s30 + $0xd0] sm:$0xf0] }
  0x96   : > { %v3628_v4 = vld [vmem:[%s4400_s30 + $0x720] sm:$0xf]  ;;  %v3916_v11 = vld [vmem:[%s4400_s30 + $0x50c] sm:$0xf0]  ;;  %v3501_v15 = vor.u32 %v3952_v2, %v3500_v1  ;;  %1968 = vmatpush.bf16.msrb.mxu0 %v3245_v8  ;;  %v3810_v46 = vld [vmem:[%s4400_s30 + $0x1c4] sm:$0xf]  ;;  %v2817_v57 = vor.u32 %v3778_v44, %v2814_v45 }
  0x97   : > { %v3228_v6 = vld [vmem:[%s4400_s30 + $0x400] sm:$0xf]  ;;  %v3948_v13 = vld [vmem:[%s4400_s30 + $0x60c] sm:$0xf0]  ;;  %v3629_v20 = vor.u32 %v3984_v5, %v3628_v4  ;;  %1982 = vmatpush.bf16.msrb.mxu1 %v3373_v14  ;;  %v2942_v49 = vld [vmem:[%s4400_s30 + $0x1d0] sm:$0xf0] }
  0x98   : > { %v3356_v9 = vld [vmem:[%s4400_s30 + $0x500] sm:$0xf]  ;;  %v3980_v17 = vld [vmem:[%s4400_s30 + $0x70c] sm:$0xf0]  ;;  %v3229_v28 = vor.u32 %v3884_v7, %v3228_v6  ;;  %1996 = vmatpush.bf16.msrb.mxu2 %v3501_v15  ;;  %v3842_v50 = vld [vmem:[%s4400_s30 + $0x2c4] sm:$0xf]  ;;  %v2945_v58 = vor.u32 %v3810_v46, %v2942_v49 }
  0x99   : > { %v3484_v12 = vld [vmem:[%s4400_s30 + $0x600] sm:$0xf]  ;;  %v2700_v30 = vld [vmem:[%s4398_s29 + $0x10] sm:$0xf]  ;;  %v3357_v32 = vor.u32 %v3916_v11, %v3356_v9  ;;  %2010 = vmatpush.bf16.msrb.mxu3 %v3629_v20  ;;  %v3070_v51 = vld [vmem:[%s4400_s30 + $0x2d0] sm:$0xf0] }
  0x9a   : > { %v3612_v16 = vld [vmem:[%s4400_s30 + $0x700] sm:$0xf]  ;;  %v3752_v31 = vld [vmem:[%s4398_s29 + $0x2c] sm:$0xf0]  ;;  %v3485_v33 = vor.u32 %v3948_v13, %v3484_v12  ;;  %1969 = vmatpush.bf16.msrb.mxu0 %v3229_v28  ;;  %v3874_v54 = vld [vmem:[%s4400_s30 + $0x3c4] sm:$0xf]  ;;  %v3073_v59 = vor.u32 %v3842_v50, %v3070_v51 }
  0x9b   : > { %v3613_v37 = vor.u32 %v3980_v17, %v3612_v16  ;;  %v4583_v48 = vor.u32 %v3752_v31, %v2700_v30  ;;  %1983 = vmatpush.bf16.msrb.mxu1 %v3357_v32  ;;  %v3198_v55 = vld [vmem:[%s4400_s30 + $0x3d0] sm:$0xf0]  ;;  %v3774_v60 = vld [vmem:[%s4400_s30 + $0xa4] sm:$0xf] }
  0x9c   : > { %1997 = vmatpush.bf16.msrb.mxu2 %v3485_v33  ;;  %v2798_v61 = vld [vmem:[%s4400_s30 + $0xb0] sm:$0xf0]  ;;  %v3806_v62 = vld [vmem:[%s4400_s30 + $0x1a4] sm:$0xf]  ;;  %v3201_v63 = vor.u32 %v3874_v54, %v3198_v55 }
  0x9d   : > { %2011 = vmatpush.bf16.msrb.mxu3 %v3613_v37  ;;  %1970 = vmatmul.bf16.vlgmr.msrb.gmra.mxu0 %v4583_v48  ;;  %v2926_v0 = vld [vmem:[%s4400_s30 + $0x1b0] sm:$0xf0]  ;;  %v3838_v1 = vld [vmem:[%s4400_s30 + $0x2a4] sm:$0xf]  ;;  %v2801_v6 = vor.u32 %v3774_v60, %v2798_v61 }
  0x9e   : > { %2018 = vmatpush.bf16.msra.mxu0 %v2833_v38  ;;  %v3054_v2 = vld [vmem:[%s4400_s30 + $0x2b0] sm:$0xf0]  ;;  %1984 = vmatmul.bf16.vlgmr.msrb.gmra.mxu1 %v4590_v53  ;;  %v3870_v4 = vld [vmem:[%s4400_s30 + $0x3a4] sm:$0xf]  ;;  %v2929_v7 = vor.u32 %v3806_v62, %v2926_v0 }
  0x9f   : > { %2032 = vmatpush.bf16.msra.mxu1 %v2961_v42  ;;  %1998 = vmatmul.bf16.vlgmr.msrb.gmra.mxu2 %v4588_v52  ;;  %v3182_v5 = vld [vmem:[%s4400_s30 + $0x3b0] sm:$0xf0]  ;;  %v3057_v8 = vor.u32 %v3838_v1, %v3054_v2  ;;  %v3770_v9 = vld [vmem:[%s4400_s30 + $0x84] sm:$0xf] }
  0xa0   : > { %2046 = vmatpush.bf16.msra.mxu2 %v3089_v43  ;;  %2012 = vmatmul.bf16.vlgmr.msrb.gmra.mxu3 %v4594_v56  ;;  %v2782_v11 = vld [vmem:[%s4400_s30 + $0x90] sm:$0xf0]  ;;  %v3802_v12 = vld [vmem:[%s4400_s30 + $0x184] sm:$0xf]  ;;  %v3185_v13 = vor.u32 %v3870_v4, %v3182_v5 }
  0xa1   : > { %2060 = vmatpush.bf16.msra.mxu3 %v3217_v47  ;;  %v2910_v14 = vld [vmem:[%s4400_s30 + $0x190] sm:$0xf0]  ;;  %v3834_v15 = vld [vmem:[%s4400_s30 + $0x284] sm:$0xf]  ;;  %v2785_v20 = vor.u32 %v3770_v9, %v2782_v11 }
  0xa2   : > { %2019 = vmatpush.bf16.msra.mxu0 %v2817_v57  ;;  %v3038_v16 = vld [vmem:[%s4400_s30 + $0x290] sm:$0xf0]  ;;  %v3866_v17 = vld [vmem:[%s4400_s30 + $0x384] sm:$0xf]  ;;  %v2913_v21 = vor.u32 %v3802_v12, %v2910_v14 }
  0xa3   : > { %2033 = vmatpush.bf16.msra.mxu1 %v2945_v58  ;;  %v3166_v18 = vld [vmem:[%s4400_s30 + $0x390] sm:$0xf0]  ;;  %v3041_v22 = vor.u32 %v3834_v15, %v3038_v16  ;;  %v3766_v23 = vld [vmem:[%s4400_s30 + $0x64] sm:$0xf] }
  0xa4   : > { %2047 = vmatpush.bf16.msra.mxu2 %v3073_v59  ;;  %v2766_v24 = vld [vmem:[%s4400_s30 + $0x70] sm:$0xf0]  ;;  %v3798_v25 = vld [vmem:[%s4400_s30 + $0x164] sm:$0xf]  ;;  %v3169_v27 = vor.u32 %v3866_v17, %v3166_v18 }
  0xa5   : > { %2061 = vmatpush.bf16.msra.mxu3 %v3201_v63  ;;  %v2894_v28 = vld [vmem:[%s4400_s30 + $0x170] sm:$0xf0]  ;;  %v3830_v29 = vld [vmem:[%s4400_s30 + $0x264] sm:$0xf]  ;;  %v2769_v33 = vor.u32 %v3766_v23, %v2766_v24 }
  0xa6   : > { %2020 = vmatpush.bf16.msra.mxu0 %v2801_v6  ;;  %v3022_v30 = vld [vmem:[%s4400_s30 + $0x270] sm:$0xf0]  ;;  %v3862_v31 = vld [vmem:[%s4400_s30 + $0x364] sm:$0xf]  ;;  %v2897_v34 = vor.u32 %v3798_v25, %v2894_v28 }
  0xa7   : > { %2034 = vmatpush.bf16.msra.mxu1 %v2929_v7  ;;  %v3150_v32 = vld [vmem:[%s4400_s30 + $0x370] sm:$0xf0]  ;;  %v3025_v35 = vor.u32 %v3830_v29, %v3022_v30  ;;  %v3762_v36 = vld [vmem:[%s4400_s30 + $0x44] sm:$0xf] }
  0xa8   : > { %2048 = vmatpush.bf16.msra.mxu2 %v3057_v8  ;;  %v2750_v37 = vld [vmem:[%s4400_s30 + $0x50] sm:$0xf0]  ;;  %v3794_v38 = vld [vmem:[%s4400_s30 + $0x144] sm:$0xf]  ;;  %v3153_v39 = vor.u32 %v3862_v31, %v3150_v32 }
  0xa9   : > { %2062 = vmatpush.bf16.msra.mxu3 %v3185_v13  ;;  %v2878_v40 = vld [vmem:[%s4400_s30 + $0x150] sm:$0xf0]  ;;  %v3826_v41 = vld [vmem:[%s4400_s30 + $0x244] sm:$0xf]  ;;  %v2753_v45 = vor.u32 %v3762_v36, %v2750_v37 }
  0xaa   : > { %2021 = vmatpush.bf16.msra.mxu0 %v2785_v20  ;;  %v3006_v42 = vld [vmem:[%s4400_s30 + $0x250] sm:$0xf0]  ;;  %v3858_v43 = vld [vmem:[%s4400_s30 + $0x344] sm:$0xf]  ;;  %v2881_v46 = vor.u32 %v3794_v38, %v2878_v40 }
  0xab   : > { %2035 = vmatpush.bf16.msra.mxu1 %v2913_v21  ;;  %v3134_v44 = vld [vmem:[%s4400_s30 + $0x350] sm:$0xf0]  ;;  %v3009_v47 = vor.u32 %v3826_v41, %v3006_v42  ;;  %v3758_v49 = vld [vmem:[%s4400_s30 + $0x24] sm:$0xf] }
  0xac   : > { %2049 = vmatpush.bf16.msra.mxu2 %v3041_v22  ;;  %v2734_v50 = vld [vmem:[%s4400_s30 + $0x30] sm:$0xf0]  ;;  %v3790_v51 = vld [vmem:[%s4400_s30 + $0x124] sm:$0xf]  ;;  %v3137_v54 = vor.u32 %v3858_v43, %v3134_v44 }
  0xad   : > { %2063 = vmatpush.bf16.msra.mxu3 %v3169_v27  ;;  %v2862_v55 = vld [vmem:[%s4400_s30 + $0x130] sm:$0xf0]  ;;  %v3822_v57 = vld [vmem:[%s4400_s30 + $0x224] sm:$0xf]  ;;  %v2737_v61 = vor.u32 %v3758_v49, %v2734_v50 }
  0xae   : > { %2022 = vmatpush.bf16.msra.mxu0 %v2769_v33  ;;  %v2990_v58 = vld [vmem:[%s4400_s30 + $0x230] sm:$0xf0]  ;;  %v3854_v59 = vld [vmem:[%s4400_s30 + $0x324] sm:$0xf]  ;;  %v2865_v0 = vor.u32 %v3790_v51, %v2862_v55 }
  0xaf   : > { %2036 = vmatpush.bf16.msra.mxu1 %v2897_v34  ;;  %v3118_v60 = vld [vmem:[%s4400_s30 + $0x330] sm:$0xf0]  ;;  %v3754_v62 = vld [vmem:[%s4400_s30 + $0x4] sm:$0xf]  ;;  %v2993_v1 = vor.u32 %v3822_v57, %v2990_v58 }
  0xb0   : > { %2050 = vmatpush.bf16.msra.mxu2 %v3025_v35  ;;  %v2718_v63 = vld [vmem:[%s4400_s30 + $0x10] sm:$0xf0]  ;;  %v3786_v2 = vld [vmem:[%s4400_s30 + $0x104] sm:$0xf]  ;;  %v3121_v6 = vor.u32 %v3854_v59, %v3118_v60 }
  0xb1   : > { %2064 = vmatpush.bf16.msra.mxu3 %v3153_v39  ;;  %v2846_v4 = vld [vmem:[%s4400_s30 + $0x110] sm:$0xf0]  ;;  %v3818_v5 = vld [vmem:[%s4400_s30 + $0x204] sm:$0xf]  ;;  %v2721_v14 = vor.u32 %v3754_v62, %v2718_v63 }
  0xb2   : > { %2023 = vmatpush.bf16.msra.mxu0 %v2753_v45  ;;  %v2974_v7 = vld [vmem:[%s4400_s30 + $0x210] sm:$0xf0]  ;;  %v3850_v8 = vld [vmem:[%s4400_s30 + $0x304] sm:$0xf]  ;;  %v2849_v18 = vor.u32 %v3786_v2, %v2846_v4 }
  0xb3   : > { %2037 = vmatpush.bf16.msra.mxu1 %v2881_v46  ;;  %v3102_v9 = vld [vmem:[%s4400_s30 + $0x310] sm:$0xf0]  ;;  %v3910_v11 = vld [vmem:[%s4400_s30 + $0x4e4] sm:$0xf]  ;;  %v2977_v20 = vor.u32 %v3818_v5, %v2974_v7 }
  0xb4   : > { %2051 = vmatpush.bf16.msra.mxu2 %v3009_v47  ;;  %v3342_v12 = vld [vmem:[%s4400_s30 + $0x4f0] sm:$0xf0]  ;;  %v3942_v13 = vld [vmem:[%s4400_s30 + $0x5e4] sm:$0xf]  ;;  %v3105_v23 = vor.u32 %v3850_v8, %v3102_v9 }
  0xb5   : > { %2065 = vmatpush.bf16.msra.mxu3 %v3137_v54  ;;  %v3470_v15 = vld [vmem:[%s4400_s30 + $0x5f0] sm:$0xf0]  ;;  %v3974_v16 = vld [vmem:[%s4400_s30 + $0x6e4] sm:$0xf]  ;;  %v3345_v24 = vor.u32 %v3910_v11, %v3342_v12 }
  0xb6   : > { %2024 = vmatpush.bf16.msra.mxu0 %v2737_v61  ;;  %v3598_v17 = vld [vmem:[%s4400_s30 + $0x6f0] sm:$0xf0]  ;;  %v4006_v21 = vld [vmem:[%s4400_s30 + $0x7e4] sm:$0xf]  ;;  %v3473_v25 = vor.u32 %v3942_v13, %v3470_v15 }
  0xb7   : > { %2038 = vmatpush.bf16.msra.mxu1 %v2865_v0  ;;  %v3726_v22 = vld [vmem:[%s4400_s30 + $0x7f0] sm:$0xf0]  ;;  %v3601_v27 = vor.u32 %v3974_v16, %v3598_v17  ;;  %v3906_v28 = vld [vmem:[%s4400_s30 + $0x4c4] sm:$0xf] }
  0xb8   : > { %2052 = vmatpush.bf16.msra.mxu2 %v2993_v1  ;;  %v3326_v29 = vld [vmem:[%s4400_s30 + $0x4d0] sm:$0xf0]  ;;  %v3938_v30 = vld [vmem:[%s4400_s30 + $0x5c4] sm:$0xf]  ;;  %v3729_v31 = vor.u32 %v4006_v21, %v3726_v22 }
  0xb9   : > { %2066 = vmatpush.bf16.msra.mxu3 %v3121_v6  ;;  %v3454_v32 = vld [vmem:[%s4400_s30 + $0x5d0] sm:$0xf0]  ;;  %v3970_v33 = vld [vmem:[%s4400_s30 + $0x6c4] sm:$0xf]  ;;  %v3329_v37 = vor.u32 %v3906_v28, %v3326_v29 }
  0xba   : > { %2025 = vmatpush.bf16.msra.mxu0 %v2721_v14  ;;  %v3582_v34 = vld [vmem:[%s4400_s30 + $0x6d0] sm:$0xf0]  ;;  %v4002_v35 = vld [vmem:[%s4400_s30 + $0x7c4] sm:$0xf]  ;;  %v3457_v38 = vor.u32 %v3938_v30, %v3454_v32 }
  0xbb   : > { %2039 = vmatpush.bf16.msra.mxu1 %v2849_v18  ;;  %v3710_v36 = vld [vmem:[%s4400_s30 + $0x7d0] sm:$0xf0]  ;;  %v3585_v39 = vor.u32 %v3970_v33, %v3582_v34  ;;  %v3902_v40 = vld [vmem:[%s4400_s30 + $0x4a4] sm:$0xf] }
  0xbc   : > { %2053 = vmatpush.bf16.msra.mxu2 %v2977_v20  ;;  %v3310_v41 = vld [vmem:[%s4400_s30 + $0x4b0] sm:$0xf0]  ;;  %v3934_v42 = vld [vmem:[%s4400_s30 + $0x5a4] sm:$0xf]  ;;  %v3713_v43 = vor.u32 %v4002_v35, %v3710_v36 }
  0xbd   : > { %2067 = vmatpush.bf16.msra.mxu3 %v3105_v23  ;;  %v3438_v44 = vld [vmem:[%s4400_s30 + $0x5b0] sm:$0xf0]  ;;  %v3966_v45 = vld [vmem:[%s4400_s30 + $0x6a4] sm:$0xf]  ;;  %2026 = vmatmul.bf16.vlgmr.msra.gmra.mxu0 %v4501_v3  ;;  %v3313_v50 = vor.u32 %v3902_v40, %v3310_v41 }
  0xbe   : > { %2074 = vmatpush.bf16.msrb.mxu0 %v3345_v24  ;;  %v3566_v46 = vld [vmem:[%s4400_s30 + $0x6b0] sm:$0xf0]  ;;  %v3998_v47 = vld [vmem:[%s4400_s30 + $0x7a4] sm:$0xf]  ;;  %2040 = vmatmul.bf16.vlgmr.msra.gmra.mxu1 %v4517_v19  ;;  %v3441_v51 = vor.u32 %v3934_v42, %v3438_v44 }
  0xbf   : > { %2088 = vmatpush.bf16.msrb.mxu1 %v3473_v25  ;;  %v3694_v49 = vld [vmem:[%s4400_s30 + $0x7b0] sm:$0xf0]  ;;  %2054 = vmatmul.bf16.vlgmr.msra.gmra.mxu2 %v4507_v10  ;;  %v3569_v54 = vor.u32 %v3966_v45, %v3566_v46  ;;  %v3898_v55 = vld [vmem:[%s4400_s30 + $0x484] sm:$0xf] }
  0xc0   : > { %2102 = vmatpush.bf16.msrb.mxu2 %v3601_v27  ;;  %2068 = vmatmul.bf16.vlgmr.msra.gmra.mxu3 %v4523_v26  ;;  %v3294_v57 = vld [vmem:[%s4400_s30 + $0x490] sm:$0xf0]  ;;  %v3930_v58 = vld [vmem:[%s4400_s30 + $0x584] sm:$0xf]  ;;  %v3697_v59 = vor.u32 %v3998_v47, %v3694_v49 }
  0xc1   : > { %2116 = vmatpush.bf16.msrb.mxu3 %v3729_v31  ;;  %v3422_v60 = vld [vmem:[%s4400_s30 + $0x590] sm:$0xf0]  ;;  %v3962_v61 = vld [vmem:[%s4400_s30 + $0x684] sm:$0xf]  ;;  %v3297_v1 = vor.u32 %v3898_v55, %v3294_v57  ;;  %v2836_v57 = vld [vmem:[%s4400_s30 + $0xe8] sm:$0xf] }
  0xc2   : > { %2075 = vmatpush.bf16.msrb.mxu0 %v3329_v37  ;;  %v3550_v62 = vld [vmem:[%s4400_s30 + $0x690] sm:$0xf0]  ;;  %v3994_v63 = vld [vmem:[%s4400_s30 + $0x784] sm:$0xf]  ;;  %v3425_v2 = vor.u32 %v3930_v58, %v3422_v60  ;;  %v3785_v58 = vld [vmem:[%s4400_s30 + $0xf4] sm:$0xf0] }
  0xc3   : > { %2089 = vmatpush.bf16.msrb.mxu1 %v3457_v38  ;;  %v3678_v0 = vld [vmem:[%s4400_s30 + $0x790] sm:$0xf0]  ;;  %v3553_v4 = vor.u32 %v3962_v61, %v3550_v62  ;;  %v3894_v5 = vld [vmem:[%s4400_s30 + $0x464] sm:$0xf]  ;;  %v3817_v61 = vld [vmem:[%s4400_s30 + $0x1f4] sm:$0xf0] }
  0xc4   : > { %2103 = vmatpush.bf16.msrb.mxu2 %v3585_v39  ;;  %v3278_v6 = vld [vmem:[%s4400_s30 + $0x470] sm:$0xf0]  ;;  %v3926_v7 = vld [vmem:[%s4400_s30 + $0x564] sm:$0xf]  ;;  %v3681_v8 = vor.u32 %v3994_v63, %v3678_v0  ;;  %v3092_v62 = vld [vmem:[%s4400_s30 + $0x2e8] sm:$0xf] }
  0xc5   : > { %2117 = vmatpush.bf16.msrb.mxu3 %v3713_v43  ;;  %v3406_v9 = vld [vmem:[%s4400_s30 + $0x570] sm:$0xf0]  ;;  %v3958_v11 = vld [vmem:[%s4400_s30 + $0x664] sm:$0xf]  ;;  %v3281_v15 = vor.u32 %v3894_v5, %v3278_v6  ;;  %v3849_v63 = vld [vmem:[%s4400_s30 + $0x2f4] sm:$0xf0]  ;;  %v2837_v6 = vor.u32 %v3785_v58, %v2836_v57 }
  0xc6   : > { %2076 = vmatpush.bf16.msrb.mxu0 %v3313_v50  ;;  %v3534_v12 = vld [vmem:[%s4400_s30 + $0x670] sm:$0xf0]  ;;  %v3990_v13 = vld [vmem:[%s4400_s30 + $0x764] sm:$0xf]  ;;  %v3409_v16 = vor.u32 %v3926_v7, %v3406_v9  ;;  %v2820_v9 = vld [vmem:[%s4400_s30 + $0xc8] sm:$0xf] }
  0xc7   : > { %2090 = vmatpush.bf16.msrb.mxu1 %v3441_v51  ;;  %v3662_v14 = vld [vmem:[%s4400_s30 + $0x770] sm:$0xf0]  ;;  %v3537_v17 = vor.u32 %v3958_v11, %v3534_v12  ;;  %v3890_v18 = vld [vmem:[%s4400_s30 + $0x444] sm:$0xf]  ;;  %v3781_v11 = vld [vmem:[%s4400_s30 + $0xd4] sm:$0xf0] }
  0xc8   : > { %2104 = vmatpush.bf16.msrb.mxu2 %v3569_v54  ;;  %v3262_v20 = vld [vmem:[%s4400_s30 + $0x450] sm:$0xf0]  ;;  %v3922_v21 = vld [vmem:[%s4400_s30 + $0x544] sm:$0xf]  ;;  %v3665_v22 = vor.u32 %v3990_v13, %v3662_v14  ;;  %v2948_v12 = vld [vmem:[%s4400_s30 + $0x1c8] sm:$0xf] }
  0xc9   : > { %2118 = vmatpush.bf16.msrb.mxu3 %v3697_v59  ;;  %v3390_v23 = vld [vmem:[%s4400_s30 + $0x550] sm:$0xf0]  ;;  %v3954_v24 = vld [vmem:[%s4400_s30 + $0x644] sm:$0xf]  ;;  %v3265_v29 = vor.u32 %v3890_v18, %v3262_v20  ;;  %v2964_v59 = vld [vmem:[%s4400_s30 + $0x1e8] sm:$0xf]  ;;  %v2821_v20 = vor.u32 %v3781_v11, %v2820_v9 }
  0xca   : > { %2077 = vmatpush.bf16.msrb.mxu0 %v3297_v1  ;;  %v3518_v25 = vld [vmem:[%s4400_s30 + $0x650] sm:$0xf0]  ;;  %v3986_v27 = vld [vmem:[%s4400_s30 + $0x744] sm:$0xf]  ;;  %v3393_v30 = vor.u32 %v3922_v21, %v3390_v23  ;;  %v2965_v7 = vor.u32 %v3817_v61, %v2964_v59  ;;  %v3813_v14 = vld [vmem:[%s4400_s30 + $0x1d4] sm:$0xf0] }
  0xcb   : > { %2091 = vmatpush.bf16.msrb.mxu1 %v3425_v2  ;;  %v3646_v28 = vld [vmem:[%s4400_s30 + $0x750] sm:$0xf0]  ;;  %v3521_v31 = vor.u32 %v3954_v24, %v3518_v25  ;;  %v3886_v32 = vld [vmem:[%s4400_s30 + $0x424] sm:$0xf]  ;;  %v3220_v2 = vld [vmem:[%s4400_s30 + $0x3e8] sm:$0xf]  ;;  %v2949_v21 = vor.u32 %v3813_v14, %v2948_v12 }
  0xcc   : > { %2105 = vmatpush.bf16.msrb.mxu2 %v3553_v4  ;;  %v3246_v33 = vld [vmem:[%s4400_s30 + $0x430] sm:$0xf0]  ;;  %v3918_v34 = vld [vmem:[%s4400_s30 + $0x524] sm:$0xf]  ;;  %v3649_v35 = vor.u32 %v3986_v27, %v3646_v28  ;;  %v3881_v4 = vld [vmem:[%s4400_s30 + $0x3f4] sm:$0xf0] }
  0xcd   : > { %2119 = vmatpush.bf16.msrb.mxu3 %v3681_v8  ;;  %v3374_v36 = vld [vmem:[%s4400_s30 + $0x530] sm:$0xf0]  ;;  %v3950_v37 = vld [vmem:[%s4400_s30 + $0x624] sm:$0xf]  ;;  %v3249_v41 = vor.u32 %v3886_v32, %v3246_v33  ;;  %v3093_v8 = vor.u32 %v3849_v63, %v3092_v62  ;;  %v3221_v13 = vor.u32 %v3881_v4, %v3220_v2  ;;  %v3877_v18 = vld [vmem:[%s4400_s30 + $0x3d4] sm:$0xf0] }
  0xce   : > { %2078 = vmatpush.bf16.msrb.mxu0 %v3281_v15  ;;  %v3502_v38 = vld [vmem:[%s4400_s30 + $0x630] sm:$0xf0]  ;;  %v3982_v39 = vld [vmem:[%s4400_s30 + $0x724] sm:$0xf]  ;;  %v3377_v44 = vor.u32 %v3918_v34, %v3374_v36  ;;  %v3076_v15 = vld [vmem:[%s4400_s30 + $0x2c8] sm:$0xf] }
  0xcf   : > { %2092 = vmatpush.bf16.msrb.mxu1 %v3409_v16  ;;  %v3630_v40 = vld [vmem:[%s4400_s30 + $0x730] sm:$0xf0]  ;;  %v3882_v42 = vld [vmem:[%s4400_s30 + $0x404] sm:$0xf]  ;;  %v3505_v45 = vor.u32 %v3950_v37, %v3502_v38  ;;  %v3845_v16 = vld [vmem:[%s4400_s30 + $0x2d4] sm:$0xf0] }
  0xd0   : > { %2106 = vmatpush.bf16.msrb.mxu2 %v3537_v17  ;;  %v3230_v43 = vld [vmem:[%s4400_s30 + $0x410] sm:$0xf0]  ;;  %v3914_v46 = vld [vmem:[%s4400_s30 + $0x504] sm:$0xf]  ;;  %v3633_v50 = vor.u32 %v3982_v39, %v3630_v40  ;;  %v3204_v17 = vld [vmem:[%s4400_s30 + $0x3c8] sm:$0xf] }
  0xd1   : > { %2120 = vmatpush.bf16.msrb.mxu3 %v3665_v22  ;;  %v3358_v47 = vld [vmem:[%s4400_s30 + $0x510] sm:$0xf0]  ;;  %v3946_v49 = vld [vmem:[%s4400_s30 + $0x604] sm:$0xf]  ;;  %v3233_v60 = vor.u32 %v3882_v42, %v3230_v43  ;;  %v3077_v22 = vor.u32 %v3845_v16, %v3076_v15  ;;  %v2804_v23 = vld [vmem:[%s4400_s30 + $0xa8] sm:$0xf]  ;;  %v3205_v27 = vor.u32 %v3877_v18, %v3204_v17 }
  0xd2   : > { %2079 = vmatpush.bf16.msrb.mxu0 %v3265_v29  ;;  %v3486_v51 = vld [vmem:[%s4400_s30 + $0x610] sm:$0xf0]  ;;  %v3978_v54 = vld [vmem:[%s4400_s30 + $0x704] sm:$0xf]  ;;  %v3361_v0 = vor.u32 %v3914_v46, %v3358_v47  ;;  %v3777_v24 = vld [vmem:[%s4400_s30 + $0xb4] sm:$0xf0] }
  0xd3   : > { %2093 = vmatpush.bf16.msrb.mxu1 %v3393_v30  ;;  %v3614_v55 = vld [vmem:[%s4400_s30 + $0x710] sm:$0xf0]  ;;  %v3489_v1 = vor.u32 %v3946_v49, %v3486_v51  ;;  %v2932_v25 = vld [vmem:[%s4400_s30 + $0x1a8] sm:$0xf]  ;;  %v3809_v28 = vld [vmem:[%s4400_s30 + $0x1b4] sm:$0xf0]  ;;  %v2805_v33 = vor.u32 %v3777_v24, %v2804_v23 }
  0xd4   : > { %2107 = vmatpush.bf16.msrb.mxu2 %v3521_v31  ;;  %v3617_v5 = vor.u32 %v3978_v54, %v3614_v55  ;;  %v3060_v29 = vld [vmem:[%s4400_s30 + $0x2a8] sm:$0xf]  ;;  %v3841_v30 = vld [vmem:[%s4400_s30 + $0x2b4] sm:$0xf0]  ;;  %v2933_v34 = vor.u32 %v3809_v28, %v2932_v25 }
  0xd5   : > { %2121 = vmatpush.bf16.msrb.mxu3 %v3649_v35  ;;  %v3188_v31 = vld [vmem:[%s4400_s30 + $0x3a8] sm:$0xf]  ;;  %v3873_v32 = vld [vmem:[%s4400_s30 + $0x3b4] sm:$0xf0]  ;;  %v3061_v35 = vor.u32 %v3841_v30, %v3060_v29 }
  0xd6   : > { %2080 = vmatpush.bf16.msrb.mxu0 %v3249_v41  ;;  %v2788_v36 = vld [vmem:[%s4400_s30 + $0x88] sm:$0xf]  ;;  %v3773_v37 = vld [vmem:[%s4400_s30 + $0x94] sm:$0xf0]  ;;  %v3189_v39 = vor.u32 %v3873_v32, %v3188_v31 }
  0xd7   : > { %2094 = vmatpush.bf16.msrb.mxu1 %v3377_v44  ;;  %v2916_v38 = vld [vmem:[%s4400_s30 + $0x188] sm:$0xf]  ;;  %v3805_v40 = vld [vmem:[%s4400_s30 + $0x194] sm:$0xf0] }
  0xd8   : > { %2108 = vmatpush.bf16.msrb.mxu2 %v3505_v45  ;;  %v3044_v41 = vld [vmem:[%s4400_s30 + $0x288] sm:$0xf]  ;;  %v3837_v42 = vld [vmem:[%s4400_s30 + $0x294] sm:$0xf0]  ;;  %v2789_v45 = vor.u32 %v3773_v37, %v2788_v36  ;;  %v2917_v46 = vor.u32 %v3805_v40, %v2916_v38 }
  0xd9   : > { %2122 = vmatpush.bf16.msrb.mxu3 %v3633_v50  ;;  %v3172_v43 = vld [vmem:[%s4400_s30 + $0x388] sm:$0xf]  ;;  %v3869_v44 = vld [vmem:[%s4400_s30 + $0x394] sm:$0xf0]  ;;  %v3045_v47 = vor.u32 %v3837_v42, %v3044_v41 }
  0xda   : > { %2081 = vmatpush.bf16.msrb.mxu0 %v3233_v60  ;;  %v2772_v49 = vld [vmem:[%s4400_s30 + $0x68] sm:$0xf]  ;;  %v3769_v50 = vld [vmem:[%s4400_s30 + $0x74] sm:$0xf0]  ;;  %v3173_v54 = vor.u32 %v3869_v44, %v3172_v43 }
  0xdb   : > { %2095 = vmatpush.bf16.msrb.mxu1 %v3361_v0  ;;  %v2900_v51 = vld [vmem:[%s4400_s30 + $0x168] sm:$0xf]  ;;  %v3801_v55 = vld [vmem:[%s4400_s30 + $0x174] sm:$0xf0]  ;;  %v2773_v61 = vor.u32 %v3769_v50, %v2772_v49 }
  0xdc   : > { %2109 = vmatpush.bf16.msrb.mxu2 %v3489_v1  ;;  %v3028_v57 = vld [vmem:[%s4400_s30 + $0x268] sm:$0xf]  ;;  %v3833_v58 = vld [vmem:[%s4400_s30 + $0x274] sm:$0xf0]  ;;  %v2901_v62 = vor.u32 %v3801_v55, %v2900_v51 }
  0xdd   : > { %2123 = vmatpush.bf16.msrb.mxu3 %v3617_v5  ;;  %2082 = vmatmul.bf16.vlgmr.msrb.gmra.mxu0 %v4583_v48  ;;  %v3156_v59 = vld [vmem:[%s4400_s30 + $0x368] sm:$0xf]  ;;  %v3865_v60 = vld [vmem:[%s4400_s30 + $0x374] sm:$0xf0]  ;;  %v3029_v63 = vor.u32 %v3833_v58, %v3028_v57 }
  0xde   : > { %2130 = vmatpush.bf16.msra.mxu0 %v2837_v6  ;;  %2096 = vmatmul.bf16.vlgmr.msrb.gmra.mxu1 %v4590_v53  ;;  %v2756_v0 = vld [vmem:[%s4400_s30 + $0x48] sm:$0xf]  ;;  %v3765_v1 = vld [vmem:[%s4400_s30 + $0x54] sm:$0xf0]  ;;  %v3157_v4 = vor.u32 %v3865_v60, %v3156_v59 }
  0xdf   : > { %2144 = vmatpush.bf16.msra.mxu1 %v2965_v7  ;;  %2110 = vmatmul.bf16.vlgmr.msrb.gmra.mxu2 %v4588_v52  ;;  %v2884_v2 = vld [vmem:[%s4400_s30 + $0x148] sm:$0xf]  ;;  %v3797_v5 = vld [vmem:[%s4400_s30 + $0x154] sm:$0xf0]  ;;  %v2757_v11 = vor.u32 %v3765_v1, %v2756_v0 }
  0xe0   : > { %2158 = vmatpush.bf16.msra.mxu2 %v3093_v8  ;;  %2124 = vmatmul.bf16.vlgmr.msrb.gmra.mxu3 %v4594_v56  ;;  %v3012_v6 = vld [vmem:[%s4400_s30 + $0x248] sm:$0xf]  ;;  %v3829_v7 = vld [vmem:[%s4400_s30 + $0x254] sm:$0xf0]  ;;  %v2885_v12 = vor.u32 %v3797_v5, %v2884_v2 }
  0xe1   : > { %2172 = vmatpush.bf16.msra.mxu3 %v3221_v13  ;;  %v3140_v8 = vld [vmem:[%s4400_s30 + $0x348] sm:$0xf]  ;;  %v3861_v9 = vld [vmem:[%s4400_s30 + $0x354] sm:$0xf0]  ;;  %v3013_v13 = vor.u32 %v3829_v7, %v3012_v6 }
  0xe2   : > { %2131 = vmatpush.bf16.msra.mxu0 %v2821_v20  ;;  %v2740_v14 = vld [vmem:[%s4400_s30 + $0x28] sm:$0xf]  ;;  %v3761_v15 = vld [vmem:[%s4400_s30 + $0x34] sm:$0xf0]  ;;  %v3141_v17 = vor.u32 %v3861_v9, %v3140_v8 }
  0xe3   : > { %2145 = vmatpush.bf16.msra.mxu1 %v2949_v21  ;;  %v2868_v16 = vld [vmem:[%s4400_s30 + $0x128] sm:$0xf]  ;;  %v3793_v18 = vld [vmem:[%s4400_s30 + $0x134] sm:$0xf0]  ;;  %v2741_v24 = vor.u32 %v3761_v15, %v2740_v14 }
  0xe4   : > { %2159 = vmatpush.bf16.msra.mxu2 %v3077_v22  ;;  %v2996_v20 = vld [vmem:[%s4400_s30 + $0x228] sm:$0xf]  ;;  %v3825_v21 = vld [vmem:[%s4400_s30 + $0x234] sm:$0xf0]  ;;  %v2869_v28 = vor.u32 %v3793_v18, %v2868_v16 }
  0xe5   : > { %2173 = vmatpush.bf16.msra.mxu3 %v3205_v27  ;;  %v3124_v22 = vld [vmem:[%s4400_s30 + $0x328] sm:$0xf]  ;;  %v3857_v23 = vld [vmem:[%s4400_s30 + $0x334] sm:$0xf0]  ;;  %v2997_v29 = vor.u32 %v3825_v21, %v2996_v20 }
  0xe6   : > { %2132 = vmatpush.bf16.msra.mxu0 %v2805_v33  ;;  %v2724_v25 = vld [vmem:[%s4400_s30 + $0x8] sm:$0xf]  ;;  %v3757_v27 = vld [vmem:[%s4400_s30 + $0x14] sm:$0xf0]  ;;  %v3125_v33 = vor.u32 %v3857_v23, %v3124_v22 }
  0xe7   : > { %2146 = vmatpush.bf16.msra.mxu1 %v2933_v34  ;;  %v2852_v30 = vld [vmem:[%s4400_s30 + $0x108] sm:$0xf]  ;;  %v3789_v31 = vld [vmem:[%s4400_s30 + $0x114] sm:$0xf0]  ;;  %v2725_v40 = vor.u32 %v3757_v27, %v2724_v25 }
  0xe8   : > { %2160 = vmatpush.bf16.msra.mxu2 %v3061_v35  ;;  %v2980_v32 = vld [vmem:[%s4400_s30 + $0x208] sm:$0xf]  ;;  %v3821_v34 = vld [vmem:[%s4400_s30 + $0x214] sm:$0xf0]  ;;  %v2853_v44 = vor.u32 %v3789_v31, %v2852_v30 }
  0xe9   : > { %2174 = vmatpush.bf16.msra.mxu3 %v3189_v39  ;;  %v3108_v35 = vld [vmem:[%s4400_s30 + $0x308] sm:$0xf]  ;;  %v3853_v36 = vld [vmem:[%s4400_s30 + $0x314] sm:$0xf0] }
  0xea   : > { %2133 = vmatpush.bf16.msra.mxu0 %v2789_v45  ;;  %v3348_v37 = vld [vmem:[%s4400_s30 + $0x4e8] sm:$0xf]  ;;  %v3913_v38 = vld [vmem:[%s4400_s30 + $0x4f4] sm:$0xf0]  ;;  %v2981_v45 = vor.u32 %v3821_v34, %v2980_v32  ;;  %v3109_v49 = vor.u32 %v3853_v36, %v3108_v35 }
  0xeb   : > { %2147 = vmatpush.bf16.msra.mxu1 %v2917_v46  ;;  %v3476_v39 = vld [vmem:[%s4400_s30 + $0x5e8] sm:$0xf]  ;;  %v3945_v41 = vld [vmem:[%s4400_s30 + $0x5f4] sm:$0xf0]  ;;  %v3349_v50 = vor.u32 %v3913_v38, %v3348_v37 }
  0xec   : > { %2161 = vmatpush.bf16.msra.mxu2 %v3045_v47  ;;  %v3604_v42 = vld [vmem:[%s4400_s30 + $0x6e8] sm:$0xf]  ;;  %v3977_v43 = vld [vmem:[%s4400_s30 + $0x6f4] sm:$0xf0]  ;;  %v3477_v51 = vor.u32 %v3945_v41, %v3476_v39 }
  0xed   : > { %2175 = vmatpush.bf16.msra.mxu3 %v3173_v54  ;;  %v3732_v46 = vld [vmem:[%s4400_s30 + $0x7e8] sm:$0xf]  ;;  %v4009_v47 = vld [vmem:[%s4400_s30 + $0x7f4] sm:$0xf0]  ;;  %v3605_v54 = vor.u32 %v3977_v43, %v3604_v42 }
  0xee   : > { %2134 = vmatpush.bf16.msra.mxu0 %v2773_v61  ;;  %v3332_v55 = vld [vmem:[%s4400_s30 + $0x4c8] sm:$0xf]  ;;  %v3909_v57 = vld [vmem:[%s4400_s30 + $0x4d4] sm:$0xf0]  ;;  %v3733_v59 = vor.u32 %v4009_v47, %v3732_v46 }
  0xef   : > { %2148 = vmatpush.bf16.msra.mxu1 %v2901_v62  ;;  %v3460_v58 = vld [vmem:[%s4400_s30 + $0x5c8] sm:$0xf]  ;;  %v3941_v60 = vld [vmem:[%s4400_s30 + $0x5d4] sm:$0xf0]  ;;  %v3333_v1 = vor.u32 %v3909_v57, %v3332_v55 }
  0xf0   : > { %2162 = vmatpush.bf16.msra.mxu2 %v3029_v63  ;;  %v3588_v61 = vld [vmem:[%s4400_s30 + $0x6c8] sm:$0xf]  ;;  %v3973_v62 = vld [vmem:[%s4400_s30 + $0x6d4] sm:$0xf0]  ;;  %v3461_v2 = vor.u32 %v3941_v60, %v3460_v58 }
  0xf1   : > { %2176 = vmatpush.bf16.msra.mxu3 %v3157_v4  ;;  %v3716_v63 = vld [vmem:[%s4400_s30 + $0x7c8] sm:$0xf]  ;;  %v4005_v0 = vld [vmem:[%s4400_s30 + $0x7d4] sm:$0xf0]  ;;  %v3589_v4 = vor.u32 %v3973_v62, %v3588_v61 }
  0xf2   : > { %2135 = vmatpush.bf16.msra.mxu0 %v2757_v11  ;;  %v3316_v5 = vld [vmem:[%s4400_s30 + $0x4a8] sm:$0xf]  ;;  %v3905_v6 = vld [vmem:[%s4400_s30 + $0x4b4] sm:$0xf0]  ;;  %v3717_v8 = vor.u32 %v4005_v0, %v3716_v63 }
  0xf3   : > { %2149 = vmatpush.bf16.msra.mxu1 %v2885_v12  ;;  %v3444_v7 = vld [vmem:[%s4400_s30 + $0x5a8] sm:$0xf]  ;;  %v3937_v9 = vld [vmem:[%s4400_s30 + $0x5b4] sm:$0xf0]  ;;  %v3317_v15 = vor.u32 %v3905_v6, %v3316_v5 }
  0xf4   : > { %2163 = vmatpush.bf16.msra.mxu2 %v3013_v13  ;;  %v3572_v11 = vld [vmem:[%s4400_s30 + $0x6a8] sm:$0xf]  ;;  %v3969_v12 = vld [vmem:[%s4400_s30 + $0x6b4] sm:$0xf0]  ;;  %v3445_v16 = vor.u32 %v3937_v9, %v3444_v7 }
  0xf5   : > { %2177 = vmatpush.bf16.msra.mxu3 %v3141_v17  ;;  %v3700_v13 = vld [vmem:[%s4400_s30 + $0x7a8] sm:$0xf]  ;;  %v4001_v14 = vld [vmem:[%s4400_s30 + $0x7b4] sm:$0xf0]  ;;  %v3573_v17 = vor.u32 %v3969_v12, %v3572_v11 }
  0xf6   : > { %2136 = vmatpush.bf16.msra.mxu0 %v2741_v24  ;;  %v3300_v18 = vld [vmem:[%s4400_s30 + $0x488] sm:$0xf]  ;;  %v3901_v20 = vld [vmem:[%s4400_s30 + $0x494] sm:$0xf0]  ;;  %v3701_v22 = vor.u32 %v4001_v14, %v3700_v13 }
  0xf7   : > { %2150 = vmatpush.bf16.msra.mxu1 %v2869_v28  ;;  %v3428_v21 = vld [vmem:[%s4400_s30 + $0x588] sm:$0xf]  ;;  %v3933_v23 = vld [vmem:[%s4400_s30 + $0x594] sm:$0xf0] }
  0xf8   : > { %2164 = vmatpush.bf16.msra.mxu2 %v2997_v29  ;;  %v3556_v24 = vld [vmem:[%s4400_s30 + $0x688] sm:$0xf]  ;;  %v3965_v25 = vld [vmem:[%s4400_s30 + $0x694] sm:$0xf0]  ;;  %v3301_v29 = vor.u32 %v3901_v20, %v3300_v18  ;;  %v3429_v30 = vor.u32 %v3933_v23, %v3428_v21  ;;  %v2838_v23 = vld [vmem:[%s4400_s30 + $0xf8] sm:$0xf0] }
  0xf9   : > { %2178 = vmatpush.bf16.msra.mxu3 %v3125_v33  ;;  %v3684_v27 = vld [vmem:[%s4400_s30 + $0x788] sm:$0xf]  ;;  %v3997_v28 = vld [vmem:[%s4400_s30 + $0x794] sm:$0xf0]  ;;  %v3557_v31 = vor.u32 %v3965_v25, %v3556_v24  ;;  %v1929_v5 = vpop.f32.mrf.mxu1  ;;  %v3815_v24 = vld [vmem:[%s4400_s30 + $0x1ec] sm:$0xf] }
  0xfa   : > { %2137 = vmatpush.bf16.msra.mxu0 %v2725_v40  ;;  %v3284_v32 = vld [vmem:[%s4400_s30 + $0x468] sm:$0xf]  ;;  %v3897_v33 = vld [vmem:[%s4400_s30 + $0x474] sm:$0xf0]  ;;  %v3685_v35 = vor.u32 %v3997_v28, %v3684_v27  ;;  %v2966_v27 = vld [vmem:[%s4400_s30 + $0x1f8] sm:$0xf0] }
  0xfb   : > { %2151 = vmatpush.bf16.msra.mxu1 %v2853_v44  ;;  %v3412_v34 = vld [vmem:[%s4400_s30 + $0x568] sm:$0xf]  ;;  %v3929_v36 = vld [vmem:[%s4400_s30 + $0x574] sm:$0xf0]  ;;  %v3285_v41 = vor.u32 %v3897_v33, %v3284_v32  ;;  %v3847_v28 = vld [vmem:[%s4400_s30 + $0x2ec] sm:$0xf] }
  0xfc   : > { %2165 = vmatpush.bf16.msra.mxu2 %v2981_v45  ;;  %v3540_v37 = vld [vmem:[%s4400_s30 + $0x668] sm:$0xf]  ;;  %v3961_v38 = vld [vmem:[%s4400_s30 + $0x674] sm:$0xf0]  ;;  %v3413_v42 = vor.u32 %v3929_v36, %v3412_v34  ;;  %v3879_v33 = vld [vmem:[%s4400_s30 + $0x3ec] sm:$0xf] }
  0xfd   : > { %2179 = vmatpush.bf16.msra.mxu3 %v3109_v49  ;;  %2138 = vmatmul.bf16.vlgmr.msra.gmra.mxu0 %v4501_v3  ;;  %v3668_v39 = vld [vmem:[%s4400_s30 + $0x768] sm:$0xf]  ;;  %v3993_v40 = vld [vmem:[%s4400_s30 + $0x774] sm:$0xf0]  ;;  %v3541_v43 = vor.u32 %v3961_v38, %v3540_v37  ;;  %v3222_v34 = vld [vmem:[%s4400_s30 + $0x3f8] sm:$0xf0] }
  0xfe   : > { %2186 = vmatpush.bf16.msrb.mxu0 %v3349_v50  ;;  %2152 = vmatmul.bf16.vlgmr.msra.gmra.mxu1 %v4517_v19  ;;  %v3268_v44 = vld [vmem:[%s4400_s30 + $0x448] sm:$0xf]  ;;  %v3893_v45 = vld [vmem:[%s4400_s30 + $0x454] sm:$0xf0]  ;;  %v3669_v47 = vor.u32 %v3993_v40, %v3668_v39  ;;  %v2969_v39 = vor.u32 %v3815_v24, %v2966_v27  ;;  %v3174_v24 = vld [vmem:[%s4400_s30 + $0x398] sm:$0xf0] }
  0xff   : > { %2200 = vmatpush.bf16.msrb.mxu1 %v3477_v51  ;;  %2166 = vmatmul.bf16.vlgmr.msra.gmra.mxu2 %v4507_v10  ;;  %v3396_v46 = vld [vmem:[%s4400_s30 + $0x548] sm:$0xf]  ;;  %v3925_v49 = vld [vmem:[%s4400_s30 + $0x554] sm:$0xf0]  ;;  %v3269_v57 = vor.u32 %v3893_v45, %v3268_v44  ;;  %v3811_v44 = vld [vmem:[%s4400_s30 + $0x1cc] sm:$0xf]  ;;  %v3225_v45 = vor.u32 %v3879_v33, %v3222_v34 }
 0x100   : > { %2214 = vmatpush.bf16.msrb.mxu2 %v3605_v54  ;;  %2180 = vmatmul.bf16.vlgmr.msra.gmra.mxu3 %v4523_v26  ;;  %v3524_v50 = vld [vmem:[%s4400_s30 + $0x648] sm:$0xf]  ;;  %v3957_v51 = vld [vmem:[%s4400_s30 + $0x654] sm:$0xf0]  ;;  %v3397_v58 = vor.u32 %v3925_v49, %v3396_v46  ;;  %v2950_v46 = vld [vmem:[%s4400_s30 + $0x1d8] sm:$0xf0] }
 0x101   : > { %2228 = vmatpush.bf16.msrb.mxu3 %v3733_v59  ;;  %v3652_v54 = vld [vmem:[%s4400_s30 + $0x748] sm:$0xf]  ;;  %v3989_v55 = vld [vmem:[%s4400_s30 + $0x754] sm:$0xf0]  ;;  %v3525_v59 = vor.u32 %v3957_v51, %v3524_v50  ;;  %v3078_v49 = vld [vmem:[%s4400_s30 + $0x2d8] sm:$0xf0]  ;;  %v1931_v50 = vpop.f32.mrf.mxu1 }
 0x102   : > { %2187 = vmatpush.bf16.msrb.mxu0 %v3333_v1  ;;  %v1915_v60 = vpop.f32.mrf.mxu0  ;;  %v3252_v61 = vld [vmem:[%s4400_s30 + $0x428] sm:$0xf]  ;;  %v3889_v62 = vld [vmem:[%s4400_s30 + $0x434] sm:$0xf0]  ;;  %v3653_v0 = vor.u32 %v3989_v55, %v3652_v54  ;;  %v3875_v51 = vld [vmem:[%s4400_s30 + $0x3cc] sm:$0xf] }
 0x103   : > { %2201 = vmatpush.bf16.msrb.mxu1 %v3461_v2  ;;  %v3380_v63 = vld [vmem:[%s4400_s30 + $0x528] sm:$0xf]  ;;  %v3921_v1 = vld [vmem:[%s4400_s30 + $0x534] sm:$0xf0]  ;;  %v1930_v36 = vadd.f32 %v1929_v5, %v1915_v60  ;;  %v3206_v54 = vld [vmem:[%s4400_s30 + $0x3d8] sm:$0xf0] }
 0x104   : > { %2215 = vmatpush.bf16.msrb.mxu2 %v3589_v4  ;;  %v3508_v2 = vld [vmem:[%s4400_s30 + $0x628] sm:$0xf]  ;;  %v3953_v4 = vld [vmem:[%s4400_s30 + $0x634] sm:$0xf0]  ;;  %v3381_v12 = vor.u32 %v3921_v1, %v3380_v63  ;;  %v3775_v60 = vld [vmem:[%s4400_s30 + $0xac] sm:$0xf]  ;;  %v3209_v63 = vor.u32 %v3875_v51, %v3206_v54 }
 0x105   : > { %2229 = vmatpush.bf16.msrb.mxu3 %v3717_v8  ;;  %v3636_v6 = vld [vmem:[%s4400_s30 + $0x728] sm:$0xf]  ;;  %v3985_v7 = vld [vmem:[%s4400_s30 + $0x734] sm:$0xf0]  ;;  %v3253_v8 = vor.u32 %v3889_v62, %v3252_v61  ;;  %v3509_v13 = vor.u32 %v3953_v4, %v3508_v2  ;;  %v2806_v61 = vld [vmem:[%s4400_s30 + $0xb8] sm:$0xf0] }
 0x106   : > { %2188 = vmatpush.bf16.msrb.mxu0 %v3317_v15  ;;  %v3236_v9 = vld [vmem:[%s4400_s30 + $0x408] sm:$0xf]  ;;  %v3885_v11 = vld [vmem:[%s4400_s30 + $0x414] sm:$0xf0]  ;;  %v3807_v62 = vld [vmem:[%s4400_s30 + $0x1ac] sm:$0xf] }
 0x107   : > { %2202 = vmatpush.bf16.msrb.mxu1 %v3445_v16  ;;  %v3364_v14 = vld [vmem:[%s4400_s30 + $0x508] sm:$0xf]  ;;  %v3917_v15 = vld [vmem:[%s4400_s30 + $0x514] sm:$0xf0]  ;;  %v3237_v25 = vor.u32 %v3885_v11, %v3236_v9  ;;  %v3839_v1 = vld [vmem:[%s4400_s30 + $0x2ac] sm:$0xf] }
 0x108   : > { %2216 = vmatpush.bf16.msrb.mxu2 %v3573_v17  ;;  %v3492_v16 = vld [vmem:[%s4400_s30 + $0x608] sm:$0xf]  ;;  %v3637_v17 = vor.u32 %v3985_v7, %v3636_v6  ;;  %v3949_v18 = vld [vmem:[%s4400_s30 + $0x614] sm:$0xf0]  ;;  %v3062_v2 = vld [vmem:[%s4400_s30 + $0x2b8] sm:$0xf0]  ;;  %v2809_v7 = vor.u32 %v3775_v60, %v2806_v61 }
 0x109   : > { %2230 = vmatpush.bf16.msrb.mxu3 %v3701_v22  ;;  %v3620_v20 = vld [vmem:[%s4400_s30 + $0x708] sm:$0xf]  ;;  %v3981_v21 = vld [vmem:[%s4400_s30 + $0x714] sm:$0xf0]  ;;  %v3783_v22 = vld [vmem:[%s4400_s30 + $0xec] sm:$0xf]  ;;  %v3493_v32 = vor.u32 %v3949_v18, %v3492_v16  ;;  %v3065_v11 = vor.u32 %v3839_v1, %v3062_v2 }
 0x10a   : > { %2189 = vmatpush.bf16.msrb.mxu0 %v3301_v29  ;;  %v3094_v29 = vld [vmem:[%s4400_s30 + $0x2f8] sm:$0xf0]  ;;  %v3621_v37 = vor.u32 %v3981_v21, %v3620_v20  ;;  %v2841_v38 = vor.u32 %v3783_v22, %v2838_v23  ;;  %v3871_v4 = vld [vmem:[%s4400_s30 + $0x3ac] sm:$0xf] }
 0x10b   : > { %2203 = vmatpush.bf16.msrb.mxu1 %v3429_v30  ;;  %v1943_v30 = vpop.f32.mrf.mxu2  ;;  %v3097_v40 = vor.u32 %v3847_v28, %v3094_v29  ;;  %v3190_v5 = vld [vmem:[%s4400_s30 + $0x3b8] sm:$0xf0]  ;;  %v3835_v18 = vld [vmem:[%s4400_s30 + $0x28c] sm:$0xf] }
 0x10c   : > { %2217 = vmatpush.bf16.msrb.mxu2 %v3557_v31  ;;  %v3365_v31 = vor.u32 %v3917_v15, %v3364_v14  ;;  %v1944_v55 = vadd.f32 %v1943_v30, %v1930_v36  ;;  %v2790_v14 = vld [vmem:[%s4400_s30 + $0x98] sm:$0xf0]  ;;  %v3803_v15 = vld [vmem:[%s4400_s30 + $0x18c] sm:$0xf]  ;;  %v3193_v16 = vor.u32 %v3871_v4, %v3190_v5 }
 0x10d   : > { %2231 = vmatpush.bf16.msrb.mxu3 %v3685_v35  ;;  %v1957_v35 = vpop.f32.mrf.mxu3  ;;  %v3046_v20 = vld [vmem:[%s4400_s30 + $0x298] sm:$0xf0]  ;;  %v3867_v23 = vld [vmem:[%s4400_s30 + $0x38c] sm:$0xf] }
 0x10e   : > { %2190 = vmatpush.bf16.msrb.mxu0 %v3285_v41  ;;  %v1917_v41 = vpop.f32.mrf.mxu0  ;;  %v1958_v6 = vadd.f32 %v1957_v35, %v1944_v55  ;;  %v3049_v30 = vor.u32 %v3835_v18, %v3046_v20  ;;  %v3799_v33 = vld [vmem:[%s4400_s30 + $0x16c] sm:$0xf]  ;;  %v3177_v34 = vor.u32 %v3867_v23, %v3174_v24  ;;  %v2902_v35 = vld [vmem:[%s4400_s30 + $0x178] sm:$0xf0] }
 0x10f   : > { %2204 = vmatpush.bf16.msrb.mxu1 %v3413_v42  ;;  %v3779_v42 = vld [vmem:[%s4400_s30 + $0xcc] sm:$0xf]  ;;  %v1932_v21 = vadd.f32 %v1931_v50, %v1917_v41  ;;  %v3158_v41 = vld [vmem:[%s4400_s30 + $0x378] sm:$0xf0] }
 0x110   : > { %2218 = vmatpush.bf16.msrb.mxu2 %v3541_v43  ;;  %v2822_v43 = vld [vmem:[%s4400_s30 + $0xd8] sm:$0xf0]  ;;  %v3831_v36 = vld [vmem:[%s4400_s30 + $0x26c] sm:$0xf] }
 0x111   : > { %2232 = vmatpush.bf16.msrb.mxu3 %v3669_v47  ;;  %v3843_v47 = vld [vmem:[%s4400_s30 + $0x2cc] sm:$0xf]  ;;  %v3014_v55 = vld [vmem:[%s4400_s30 + $0x258] sm:$0xf0] }
 0x112   : > { %2191 = vmatpush.bf16.msrb.mxu0 %v3269_v57  ;;  %v2825_v57 = vor.u32 %v3779_v42, %v2822_v43  ;;  %v3763_v43 = vld [vmem:[%s4400_s30 + $0x4c] sm:$0xf] }
 0x113   : > { %2205 = vmatpush.bf16.msrb.mxu1 %v3397_v58  ;;  %v2953_v58 = vor.u32 %v3811_v44, %v2950_v46  ;;  %v2905_v44 = vor.u32 %v3799_v33, %v2902_v35  ;;  %v2758_v46 = vld [vmem:[%s4400_s30 + $0x58] sm:$0xf0]  ;;  %v3827_v54 = vld [vmem:[%s4400_s30 + $0x24c] sm:$0xf] }
 0x114   : > { %2219 = vmatpush.bf16.msrb.mxu2 %v3525_v59  ;;  %v3081_v59 = vor.u32 %v3843_v47, %v3078_v49  ;;  %v3795_v47 = vld [vmem:[%s4400_s30 + $0x14c] sm:$0xf]  ;;  %v2886_v49 = vld [vmem:[%s4400_s30 + $0x158] sm:$0xf0]  ;;  %v3017_v5 = vor.u32 %v3827_v54, %v3014_v55 }
 0x115   : > { %2233 = vmatpush.bf16.msrb.mxu3 %v3653_v0  ;;  %v2934_v0 = vld [vmem:[%s4400_s30 + $0x1b8] sm:$0xf0]  ;;  %v3859_v61 = vld [vmem:[%s4400_s30 + $0x34c] sm:$0xf]  ;;  %v2889_v1 = vor.u32 %v3795_v47, %v2886_v49 }
 0x116   : > { %2192 = vmatpush.bf16.msrb.mxu0 %v3253_v8  ;;  %v1945_v8 = vpop.f32.mrf.mxu2  ;;  %v2937_v9 = vor.u32 %v3807_v62, %v2934_v0  ;;  %v3142_v62 = vld [vmem:[%s4400_s30 + $0x358] sm:$0xf0]  ;;  %v2761_v0 = vor.u32 %v3763_v43, %v2758_v46  ;;  %v3755_v20 = vld [vmem:[%s4400_s30 + $0xc] sm:$0xf] }
 0x117   : > { %2206 = vmatpush.bf16.msrb.mxu1 %v3381_v12  ;;  %v1959_v12 = vpop.f32.mrf.mxu3  ;;  %v3851_v33 = vld [vmem:[%s4400_s30 + $0x30c] sm:$0xf]  ;;  %v3606_v43 = vld [vmem:[%s4400_s30 + $0x6f8] sm:$0xf0] }
 0x118   : > { %2220 = vmatpush.bf16.msrb.mxu2 %v3509_v13  ;;  %v3771_v13 = vld [vmem:[%s4400_s30 + $0x8c] sm:$0xf]  ;;  %v3734_v49 = vld [vmem:[%s4400_s30 + $0x7f8] sm:$0xf0] }
 0x119   : > { %2234 = vmatpush.bf16.msrb.mxu3 %v3637_v17  ;;  %v2918_v17 = vld [vmem:[%s4400_s30 + $0x198] sm:$0xf0]  ;;  %v2793_v27 = vor.u32 %v3771_v13, %v2790_v14  ;;  %v3823_v13 = vld [vmem:[%s4400_s30 + $0x22c] sm:$0xf] }
 0x11a   : > { %2193 = vmatpush.bf16.msrb.mxu0 %v3237_v25  ;;  %v1971_v22 = vpop.f32.mrf.mxu0  ;;  %v2921_v29 = vor.u32 %v3803_v15, %v2918_v17  ;;  %v2998_v14 = vld [vmem:[%s4400_s30 + $0x238] sm:$0xf0]  ;;  %v4007_v47 = vld [vmem:[%s4400_s30 + $0x7ec] sm:$0xf] }
 0x11b   : > { %2207 = vmatpush.bf16.msrb.mxu1 %v3365_v31  ;;  %v1972_v25 = vadd.f32 %v1971_v22, %v1958_v6  ;;  %v1985_v28 = vpop.f32.mrf.mxu1  ;;  %v3767_v31 = vld [vmem:[%s4400_s30 + $0x6c] sm:$0xf]  ;;  %v3126_v17 = vld [vmem:[%s4400_s30 + $0x338] sm:$0xf0] }
 0x11c   : > { %2221 = vmatpush.bf16.msrb.mxu2 %v3493_v32  ;;  %v2774_v32 = vld [vmem:[%s4400_s30 + $0x78] sm:$0xf0]  ;;  %v3759_v6 = vld [vmem:[%s4400_s30 + $0x2c] sm:$0xf] }
 0x11d   : > { %2235 = vmatpush.bf16.msrb.mxu3 %v3621_v37  ;;  %2194 = vmatmul.bf16.vlgmr.msrb.gmra.mxu0 %v4583_v48  ;;  %v3030_v37 = vld [vmem:[%s4400_s30 + $0x278] sm:$0xf0]  ;;  %v2777_v42 = vor.u32 %v3767_v31, %v2774_v32  ;;  %v3787_v22 = vld [vmem:[%s4400_s30 + $0x10c] sm:$0xf] }
 0x11e   : > { %2242 = vmatpush.bf16.msra.mxu0 %v2841_v38  ;;  %2208 = vmatmul.bf16.vlgmr.msrb.gmra.mxu1 %v4590_v53  ;;  %v1946_v38 = vadd.f32 %v1945_v8, %v1932_v21  ;;  %v3791_v8 = vld [vmem:[%s4400_s30 + $0x12c] sm:$0xf]  ;;  %v2726_v21 = vld [vmem:[%s4400_s30 + $0x18] sm:$0xf0] }
 0x11f   : > { %2256 = vmatpush.bf16.msra.mxu1 %v2969_v39  ;;  %2222 = vmatmul.bf16.vlgmr.msrb.gmra.mxu2 %v4588_v52  ;;  %v1986_v39 = vadd.f32 %v1985_v28, %v1972_v25  ;;  %v3001_v25 = vor.u32 %v3823_v13, %v2998_v14  ;;  %v3819_v28 = vld [vmem:[%s4400_s30 + $0x20c] sm:$0xf]  ;;  %v2982_v32 = vld [vmem:[%s4400_s30 + $0x218] sm:$0xf0] }
 0x120   : > { %2270 = vmatpush.bf16.msra.mxu2 %v3097_v40  ;;  %2236 = vmatmul.bf16.vlgmr.msrb.gmra.mxu3 %v4594_v56  ;;  %v3863_v40 = vld [vmem:[%s4400_s30 + $0x36c] sm:$0xf]  ;;  %v2985_v46 = vor.u32 %v3819_v28, %v2982_v32  ;;  %v3574_v14 = vld [vmem:[%s4400_s30 + $0x6b8] sm:$0xf0] }
 0x121   : > { %2284 = vmatpush.bf16.msra.mxu3 %v3225_v45  ;;  %v3033_v45 = vor.u32 %v3831_v36, %v3030_v37  ;;  %v3161_v50 = vor.u32 %v3863_v40, %v3158_v41  ;;  %v318_v31 = vld [vmem:[#allocation2 + $0x8] sm:$0xff]  ;;  %v2729_v40 = vor.u32 %v3755_v20, %v2726_v21  ;;  %v3478_v41 = vld [vmem:[%s4400_s30 + $0x5f8] sm:$0xf0] }
 0x122   : > { %2243 = vmatpush.bf16.msra.mxu0 %v2825_v57  ;;  %v1999_v51 = vpop.f32.mrf.mxu2  ;;  %v1960_v57 = vadd.f32 %v1959_v12, %v1946_v38  ;;  %v2870_v12 = vld [vmem:[%s4400_s30 + $0x138] sm:$0xf0]  ;;  %v3911_v37 = vld [vmem:[%s4400_s30 + $0x4ec] sm:$0xf] }
 0x123   : > { %2257 = vmatpush.bf16.msra.mxu1 %v2953_v58  ;;  %v2000_v58 = vadd.f32 %v1999_v51, %v1986_v39  ;;  %v2013_v60 = vpop.f32.mrf.mxu3  ;;  %v2873_v24 = vor.u32 %v3791_v8, %v2870_v12  ;;  %v3350_v38 = vld [vmem:[%s4400_s30 + $0x4f8] sm:$0xf0]  ;;  %v3943_v39 = vld [vmem:[%s4400_s30 + $0x5ec] sm:$0xf] }
 0x124   : > { %2271 = vmatpush.bf16.msra.mxu2 %v3081_v59  ;;  %v1973_v59 = vpop.f32.mrf.mxu0  ;;  %v3353_v51 = vor.u32 %v3911_v37, %v3350_v38  ;;  %v3481_v55 = vor.u32 %v3943_v39, %v3478_v41  ;;  %v3318_v8 = vld [vmem:[%s4400_s30 + $0x4b8] sm:$0xf0]  ;;  %v3967_v13 = vld [vmem:[%s4400_s30 + $0x6ac] sm:$0xf] }
 0x125   : > { %2285 = vmatpush.bf16.msra.mxu3 %v3209_v63  ;;  %v314_v63 = vld [vmem:[#allocation2 + $0x30] sm:$0xff]  ;;  %v1974_v2 = vadd.f32 %v1973_v59, %v1960_v57  ;;  %v2014_v4 = vadd.f32 %v2013_v60, %v2000_v58  ;;  %v3907_v58 = vld [vmem:[%s4400_s30 + $0x4cc] sm:$0xf]  ;;  %v3334_v59 = vld [vmem:[%s4400_s30 + $0x4d8] sm:$0xf0] }
 0x126   : > { %2244 = vmatpush.bf16.msra.mxu0 %v2809_v7  ;;  %v2742_v7 = vld [vmem:[%s4400_s30 + $0x38] sm:$0xf0]  ;;  %v3939_v60 = vld [vmem:[%s4400_s30 + $0x5cc] sm:$0xf] }
 0x127   : > { %2258 = vmatpush.bf16.msra.mxu1 %v2937_v9  ;;  %v3145_v9 = vor.u32 %v3859_v61, %v3142_v62  ;;  %v2354_v15 = vadd.f32 %v2014_v4, %v314_v63  ;;  %v2745_v18 = vor.u32 %v3759_v6, %v2742_v7  ;;  %v3737_v61 = vor.u32 %v4007_v47, %v3734_v49  ;;  %v3462_v62 = vld [vmem:[%s4400_s30 + $0x5d8] sm:$0xf0]  ;;  %v3971_v63 = vld [vmem:[%s4400_s30 + $0x6cc] sm:$0xf] }
 0x128   : > { %2272 = vmatpush.bf16.msra.mxu2 %v3065_v11  ;;  %v1987_v11 = vpop.f32.mrf.mxu1  ;;  %v3337_v4 = vor.u32 %v3907_v58, %v3334_v59  ;;  %v3903_v7 = vld [vmem:[%s4400_s30 + $0x4ac] sm:$0xf]  ;;  %v3446_v12 = vld [vmem:[%s4400_s30 + $0x5b8] sm:$0xf0] }
 0x129   : > { %2286 = vmatpush.bf16.msra.mxu3 %v3193_v16  ;;  %v3855_v16 = vld [vmem:[%s4400_s30 + $0x32c] sm:$0xf]  ;;  %2362 = vst [vmem:[#allocation2 + $0x30] sm:$0xff] %v2354_v15  ;;  %v1988_v23 = vadd.f32 %v1987_v11, %v1974_v2  ;;  %v3718_v2 = vld [vmem:[%s4400_s30 + $0x7d8] sm:$0xf0] }
 0x12a   : > { %2245 = vmatpush.bf16.msra.mxu0 %v2793_v27  ;;  %v2854_v27 = vld [vmem:[%s4400_s30 + $0x118] sm:$0xf0]  ;;  %v3999_v15 = vld [vmem:[%s4400_s30 + $0x7ac] sm:$0xf] }
 0x12b   : > { %2259 = vmatpush.bf16.msra.mxu1 %v2921_v29  ;;  %v3129_v29 = vor.u32 %v3855_v16, %v3126_v17  ;;  %v2015_v36 = vpop.f32.mrf.mxu3  ;;  %v3702_v16 = vld [vmem:[%s4400_s30 + $0x7b8] sm:$0xf0]  ;;  %v3321_v17 = vor.u32 %v3903_v7, %v3318_v8  ;;  %v3899_v20 = vld [vmem:[%s4400_s30 + $0x48c] sm:$0xf] }
 0x12c   : > { %2273 = vmatpush.bf16.msra.mxu2 %v3049_v30  ;;  %v2001_v30 = vpop.f32.mrf.mxu2  ;;  %v3931_v21 = vld [vmem:[%s4400_s30 + $0x58c] sm:$0xf]  ;;  %v3670_v38 = vld [vmem:[%s4400_s30 + $0x778] sm:$0xf0] }
 0x12d   : > { %2287 = vmatpush.bf16.msra.mxu3 %v3177_v34  ;;  %v3110_v34 = vld [vmem:[%s4400_s30 + $0x318] sm:$0xf0]  ;;  %v2002_v35 = vadd.f32 %v2001_v30, %v1988_v23  ;;  %v3895_v30 = vld [vmem:[%s4400_s30 + $0x46c] sm:$0xf] }
 0x12e   : > { %2246 = vmatpush.bf16.msra.mxu0 %v2777_v42  ;;  %v3975_v42 = vld [vmem:[%s4400_s30 + $0x6ec] sm:$0xf]  ;;  %v3430_v23 = vld [vmem:[%s4400_s30 + $0x598] sm:$0xf0] }
 0x12f   : > { %2260 = vmatpush.bf16.msra.mxu1 %v2905_v44  ;;  %v2016_v44 = vadd.f32 %v2015_v36, %v2002_v35  ;;  %v3609_v57 = vor.u32 %v3975_v42, %v3606_v43  ;;  %v3433_v28 = vor.u32 %v3931_v21, %v3430_v23  ;;  %v3927_v32 = vld [vmem:[%s4400_s30 + $0x56c] sm:$0xf]  ;;  %v3542_v36 = vld [vmem:[%s4400_s30 + $0x678] sm:$0xf0] }
 0x130   : > { %2274 = vmatpush.bf16.msra.mxu2 %v3033_v45  ;;  %v2857_v45 = vor.u32 %v3787_v22, %v2854_v27  ;;  %v3705_v22 = vor.u32 %v3999_v15, %v3702_v16  ;;  %v3959_v35 = vld [vmem:[%s4400_s30 + $0x66c] sm:$0xf]  ;;  %v3270_v43 = vld [vmem:[%s4400_s30 + $0x458] sm:$0xf0] }
 0x131   : > { %2288 = vmatpush.bf16.msra.mxu3 %v3161_v50  ;;  %v3113_v50 = vor.u32 %v3851_v33, %v3110_v34  ;;  %v2358_v54 = vadd.f32 %v2016_v44, %v318_v31  ;;  %v3286_v31 = vld [vmem:[%s4400_s30 + $0x478] sm:$0xf0]  ;;  %v3991_v37 = vld [vmem:[%s4400_s30 + $0x76c] sm:$0xf]  ;;  %v3545_v41 = vor.u32 %v3959_v35, %v3542_v36 }
 0x132   : > { %2247 = vmatpush.bf16.msra.mxu0 %v2761_v0  ;;  %v3590_v0 = vld [vmem:[%s4400_s30 + $0x6d8] sm:$0xf0]  ;;  %v3289_v39 = vor.u32 %v3895_v30, %v3286_v31  ;;  %v3891_v42 = vld [vmem:[%s4400_s30 + $0x44c] sm:$0xf] }
 0x133   : > { %2261 = vmatpush.bf16.msra.mxu1 %v2889_v1  ;;  %2366 = vst [vmem:[#allocation2 + $0x8] sm:$0xff] %v2358_v54  ;;  %v4003_v1 = vld [vmem:[%s4400_s30 + $0x7cc] sm:$0xf]  ;;  %v3593_v6 = vor.u32 %v3971_v63, %v3590_v0  ;;  %v3414_v34 = vld [vmem:[%s4400_s30 + $0x578] sm:$0xf0]  ;;  %v3273_v54 = vor.u32 %v3891_v42, %v3270_v43 }
 0x134   : > { %2275 = vmatpush.bf16.msra.mxu2 %v3017_v5  ;;  %v3465_v5 = vor.u32 %v3939_v60, %v3462_v62  ;;  %v3721_v11 = vor.u32 %v4003_v1, %v3718_v2  ;;  %v3923_v44 = vld [vmem:[%s4400_s30 + $0x54c] sm:$0xf]  ;;  %v3526_v49 = vld [vmem:[%s4400_s30 + $0x658] sm:$0xf0] }
 0x135   : > { %2289 = vmatpush.bf16.msra.mxu3 %v3145_v9  ;;  %v3935_v9 = vld [vmem:[%s4400_s30 + $0x5ac] sm:$0xf]  ;;  %v3254_v60 = vld [vmem:[%s4400_s30 + $0x438] sm:$0xf0] }
 0x136   : > { %2248 = vmatpush.bf16.msra.mxu0 %v2745_v18  ;;  %v3577_v18 = vor.u32 %v3967_v13, %v3574_v14  ;;  %v3955_v47 = vld [vmem:[%s4400_s30 + $0x64c] sm:$0xf]  ;;  %v3382_v63 = vld [vmem:[%s4400_s30 + $0x538] sm:$0xf0] }
 0x137   : > { %2262 = vmatpush.bf16.msra.mxu1 %v2873_v24  ;;  %v3558_v24 = vld [vmem:[%s4400_s30 + $0x698] sm:$0xf0]  ;;  %v3887_v59 = vld [vmem:[%s4400_s30 + $0x42c] sm:$0xf] }
 0x138   : > { %2276 = vmatpush.bf16.msra.mxu2 %v3001_v25  ;;  %v3995_v25 = vld [vmem:[%s4400_s30 + $0x78c] sm:$0xf]  ;;  %v3510_v1 = vld [vmem:[%s4400_s30 + $0x638] sm:$0xf0] }
 0x139   : > { %2290 = vmatpush.bf16.msra.mxu3 %v3129_v29  ;;  %v3951_v0 = vld [vmem:[%s4400_s30 + $0x62c] sm:$0xf]  ;;  %v3366_v14 = vld [vmem:[%s4400_s30 + $0x518] sm:$0xf0] }
 0x13a   : > { %2249 = vmatpush.bf16.msra.mxu0 %v2729_v40  ;;  %v3417_v40 = vor.u32 %v3927_v32, %v3414_v34  ;;  %v2027_v58 = vpop.f32.mrf.mxu0  ;;  %v3513_v8 = vor.u32 %v3951_v0, %v3510_v1  ;;  %v3947_v15 = vld [vmem:[%s4400_s30 + $0x60c] sm:$0xf]  ;;  %v3494_v16 = vld [vmem:[%s4400_s30 + $0x618] sm:$0xf0] }
 0x13b   : > { %2263 = vmatpush.bf16.msra.mxu1 %v2857_v45  ;;  %v3673_v45 = vor.u32 %v3991_v37, %v3670_v38  ;;  %v2041_v2 = vpop.f32.mrf.mxu1  ;;  %v3497_v21 = vor.u32 %v3947_v15, %v3494_v16 }
 0x13c   : > { %2277 = vmatpush.bf16.msra.mxu2 %v2985_v46  ;;  %v3398_v46 = vld [vmem:[%s4400_s30 + $0x558] sm:$0xf0]  ;;  %v2042_v23 = vadd.f32 %v2041_v2, %v2027_v58 }
 0x13d   : > { %2291 = vmatpush.bf16.msra.mxu3 %v3113_v50  ;;  %2250 = vmatmul.bf16.vlgmr.msra.gmra.mxu0 %v4501_v3  ;;  %v3963_v3 = vld [vmem:[%s4400_s30 + $0x68c] sm:$0xf] }
 0x13e   : > { %2298 = vmatpush.bf16.msrb.mxu0 %v3353_v51  ;;  %2264 = vmatmul.bf16.vlgmr.msra.gmra.mxu1 %v4517_v19  ;;  %v3686_v19 = vld [vmem:[%s4400_s30 + $0x798] sm:$0xf0]  ;;  %v3561_v29 = vor.u32 %v3963_v3, %v3558_v24  ;;  %v3987_v50 = vld [vmem:[%s4400_s30 + $0x74c] sm:$0xf] }
 0x13f   : > { %2312 = vmatpush.bf16.msrb.mxu1 %v3481_v55  ;;  %2278 = vmatmul.bf16.vlgmr.msra.gmra.mxu2 %v4507_v10  ;;  %v3449_v10 = vor.u32 %v3935_v9, %v3446_v12  ;;  %v3689_v33 = vor.u32 %v3995_v25, %v3686_v19  ;;  %v3654_v51 = vld [vmem:[%s4400_s30 + $0x758] sm:$0xf0]  ;;  %v3401_v55 = vor.u32 %v3923_v44, %v3398_v46  ;;  %v3883_v9 = vld [vmem:[%s4400_s30 + $0x40c] sm:$0xf]  ;;  %v319_v46 = vld [vmem:[#allocation2 + $0x20] sm:$0xff] }
 0x140   : > { %2326 = vmatpush.bf16.msrb.mxu2 %v3609_v57  ;;  %2292 = vmatmul.bf16.vlgmr.msra.gmra.mxu3 %v4523_v26  ;;  %v3302_v26 = vld [vmem:[%s4400_s30 + $0x498] sm:$0xf0]  ;;  %v3529_v57 = vor.u32 %v3955_v47, %v3526_v49  ;;  %v3657_v62 = vor.u32 %v3987_v50, %v3654_v51  ;;  %v3915_v12 = vld [vmem:[%s4400_s30 + $0x50c] sm:$0xf] }
 0x141   : > { %2340 = vmatpush.bf16.msrb.mxu3 %v3737_v61  ;;  %v3305_v27 = vor.u32 %v3899_v20, %v3302_v26  ;;  %v3919_v61 = vld [vmem:[%s4400_s30 + $0x52c] sm:$0xf]  ;;  %v3369_v26 = vor.u32 %v3915_v12, %v3366_v14 }
 0x142   : > { %2299 = vmatpush.bf16.msrb.mxu0 %v3337_v4  ;;  %v3983_v4 = vld [vmem:[%s4400_s30 + $0x72c] sm:$0xf]  ;;  %v3385_v7 = vor.u32 %v3919_v61, %v3382_v63  ;;  %v2055_v20 = vpop.f32.mrf.mxu2  ;;  %v2029_v24 = vpop.f32.mrf.mxu0 }
 0x143   : > { %2313 = vmatpush.bf16.msrb.mxu1 %v3465_v5  ;;  %v3638_v5 = vld [vmem:[%s4400_s30 + $0x738] sm:$0xf0]  ;;  %v2043_v25 = vpop.f32.mrf.mxu1  ;;  %v2056_v19 = vadd.f32 %v2055_v20, %v2042_v23 }
 0x144   : > { %2327 = vmatpush.bf16.msrb.mxu2 %v3593_v6  ;;  %v3257_v6 = vor.u32 %v3887_v59, %v3254_v60  ;;  %v3641_v13 = vor.u32 %v3983_v4, %v3638_v5  ;;  %v2044_v30 = vadd.f32 %v2043_v25, %v2029_v24 }
 0x145   : > { %2341 = vmatpush.bf16.msrb.mxu3 %v3721_v11  ;;  %v3238_v11 = vld [vmem:[%s4400_s30 + $0x418] sm:$0xf0] }
 0x146   : > { %2300 = vmatpush.bf16.msrb.mxu0 %v3321_v17  ;;  %v3979_v17 = vld [vmem:[%s4400_s30 + $0x70c] sm:$0xf] }
 0x147   : > { %2314 = vmatpush.bf16.msrb.mxu1 %v3449_v10  ;;  %v3622_v10 = vld [vmem:[%s4400_s30 + $0x718] sm:$0xf0] }
 0x148   : > { %2328 = vmatpush.bf16.msrb.mxu2 %v3577_v18  ;;  %v3241_v18 = vor.u32 %v3883_v9, %v3238_v11  ;;  %v3625_v3 = vor.u32 %v3979_v17, %v3622_v10 }
 0x149   : > { %2342 = vmatpush.bf16.msrb.mxu3 %v3705_v22  ;;  %v2069_v22 = vpop.f32.mrf.mxu3 }
 0x14a   : > { %2301 = vmatpush.bf16.msrb.mxu0 %v3305_v27  ;;  %v2070_v27 = vadd.f32 %v2069_v22, %v2056_v19 }
 0x14b   : > { %2315 = vmatpush.bf16.msrb.mxu1 %v3433_v28  ;;  %v2057_v28 = vpop.f32.mrf.mxu2 }
 0x14c   : > { %2329 = vmatpush.bf16.msrb.mxu2 %v3561_v29  ;;  %v2058_v34 = vadd.f32 %v2057_v28, %v2044_v30 }
 0x14d   : > { %2343 = vmatpush.bf16.msrb.mxu3 %v3689_v33 }
 0x14e   : > { %2302 = vmatpush.bf16.msrb.mxu0 %v3289_v39 }
 0x14f   : > { %2316 = vmatpush.bf16.msrb.mxu1 %v3417_v40  ;;  %v315_v40 = vld [vmem:[#allocation2] sm:$0xff] }
 0x150   : > { %2330 = vmatpush.bf16.msrb.mxu2 %v3545_v41 }
 0x151   : > { %2344 = vmatpush.bf16.msrb.mxu3 %v3673_v45  ;;  %v2071_v29 = vpop.f32.mrf.mxu3 }
 0x152   : > { %2303 = vmatpush.bf16.msrb.mxu0 %v3273_v54  ;;  %v2072_v37 = vadd.f32 %v2071_v29, %v2058_v34 }
 0x153   : > { %2317 = vmatpush.bf16.msrb.mxu1 %v3401_v55 }
 0x154   : > { %2331 = vmatpush.bf16.msrb.mxu2 %v3529_v57 }
 0x155   : > { %2345 = vmatpush.bf16.msrb.mxu3 %v3657_v62 }
 0x156   : > { %2304 = vmatpush.bf16.msrb.mxu0 %v3257_v6 }
 0x157   : > { %2318 = vmatpush.bf16.msrb.mxu1 %v3385_v7 }
 0x158   : > { %2332 = vmatpush.bf16.msrb.mxu2 %v3513_v8 }
 0x159   : > { %2346 = vmatpush.bf16.msrb.mxu3 %v3641_v13  ;;  %v316_v13 = vld [vmem:[#allocation2 + $0x18] sm:$0xff] }
 0x15a   : > { %2305 = vmatpush.bf16.msrb.mxu0 %v3241_v18  ;;  %v2083_v31 = vpop.f32.mrf.mxu0 }
 0x15b   : > { %2319 = vmatpush.bf16.msrb.mxu1 %v3369_v26  ;;  %v2084_v32 = vadd.f32 %v2083_v31, %v2070_v27  ;;  %v2097_v33 = vpop.f32.mrf.mxu1 }
 0x15c   : > { %2333 = vmatpush.bf16.msrb.mxu2 %v3497_v21  ;;  %v320_v21 = vld [vmem:[#allocation2 + $0x28] sm:$0xff] }
 0x15d   : > { %2347 = vmatpush.bf16.msrb.mxu3 %v3625_v3  ;;  %2306 = vmatmul.bf16.vlgmr.msrb.gmra.mxu0 %v4583_v48  ;;  %v2098_v35 = vadd.f32 %v2097_v33, %v2084_v32 }
 0x15e   : > { %2320 = vmatmul.bf16.vlgmr.msrb.gmra.mxu1 %v4590_v53 }
 0x15f   : > { %2334 = vmatmul.bf16.vlgmr.msrb.gmra.mxu2 %v4588_v52 }
 0x160   : > { %2348 = vmatmul.bf16.vlgmr.msrb.gmra.mxu3 %v4594_v56 }
 0x162   : > { %v2111_v36 = vpop.f32.mrf.mxu2  ;;  %v2085_v39 = vpop.f32.mrf.mxu0 }
 0x163   : > { %v2112_v38 = vadd.f32 %v2111_v36, %v2098_v35  ;;  %v2125_v48 = vpop.f32.mrf.mxu3  ;;  %v2086_v53 = vadd.f32 %v2085_v39, %v2072_v37  ;;  %v2099_v52 = vpop.f32.mrf.mxu1 }
 0x165   : > { %v2126_v41 = vadd.f32 %v2125_v48, %v2112_v38  ;;  %v2100_v56 = vadd.f32 %v2099_v52, %v2086_v53 }
 0x167   : > { %v2355_v42 = vadd.f32 %v2126_v41, %v315_v40 }
 0x169   : > { %2363 = vst [vmem:[#allocation2] sm:$0xff] %v2355_v42  ;;  %v317_v42 = vld [vmem:[#allocation2 + $0x10] sm:$0xff] }
 0x16a   : > { %v2113_v43 = vpop.f32.mrf.mxu2 }
 0x16b   : > { %v2114_v44 = vadd.f32 %v2113_v43, %v2100_v56  ;;  %v2127_v45 = vpop.f32.mrf.mxu3 }
 0x16d   : > { %v2128_v47 = vadd.f32 %v2127_v45, %v2114_v44 }
 0x16f   : > { %v2359_v49 = vadd.f32 %v2128_v47, %v319_v46 }
 0x171   : > { %2367 = vst [vmem:[#allocation2 + $0x20] sm:$0xff] %v2359_v49 }
 0x17a   : > { %v2139_v50 = vpop.f32.mrf.mxu0 }
 0x17b   : > { %v2153_v51 = vpop.f32.mrf.mxu1 }
 0x17c   : > { %v2154_v57 = vadd.f32 %v2153_v51, %v2139_v50  ;;  %v321_v50 = vld [vmem:[#allocation2 + $0x38] sm:$0xff] }
 0x182   : > { %v2167_v54 = vpop.f32.mrf.mxu2  ;;  %v2141_v58 = vpop.f32.mrf.mxu0 }
 0x183   : > { %v2181_v55 = vpop.f32.mrf.mxu3  ;;  %v2155_v59 = vpop.f32.mrf.mxu1  ;;  %v2168_v60 = vadd.f32 %v2167_v54, %v2154_v57 }
 0x184   : > { %v2156_v0 = vadd.f32 %v2155_v59, %v2141_v58 }
 0x185   : > { %v2182_v61 = vadd.f32 %v2181_v55, %v2168_v60 }
 0x18a   : > { %v2169_v62 = vpop.f32.mrf.mxu2 }
 0x18b   : > { %v2183_v63 = vpop.f32.mrf.mxu3  ;;  %v2170_v5 = vadd.f32 %v2169_v62, %v2156_v0 }
 0x18d   : > { %v2184_v8 = vadd.f32 %v2183_v63, %v2170_v5 }
 0x19a   : > { %v2195_v1 = vpop.f32.mrf.mxu0 }
 0x19b   : > { %v2196_v2 = vadd.f32 %v2195_v1, %v2182_v61  ;;  %v2209_v4 = vpop.f32.mrf.mxu1 }
 0x19d   : > { %v2210_v6 = vadd.f32 %v2209_v4, %v2196_v2 }
 0x1a2   : > { %v2223_v7 = vpop.f32.mrf.mxu2  ;;  %v2197_v11 = vpop.f32.mrf.mxu0 }
 0x1a3   : > { %v2224_v9 = vadd.f32 %v2223_v7, %v2210_v6  ;;  %v2237_v12 = vpop.f32.mrf.mxu3  ;;  %v2198_v14 = vadd.f32 %v2197_v11, %v2184_v8  ;;  %v2211_v16 = vpop.f32.mrf.mxu1 }
 0x1a5   : > { %v2238_v15 = vadd.f32 %v2237_v12, %v2224_v9  ;;  %v2212_v10 = vadd.f32 %v2211_v16, %v2198_v14 }
 0x1a7   : > { %v2356_v17 = vadd.f32 %v2238_v15, %v316_v13 }
 0x1a9   : > { %2364 = vst [vmem:[#allocation2 + $0x18] sm:$0xff] %v2356_v17 }
 0x1aa   : > { %v2225_v18 = vpop.f32.mrf.mxu2 }
 0x1ab   : > { %v2226_v20 = vadd.f32 %v2225_v18, %v2212_v10  ;;  %v2239_v26 = vpop.f32.mrf.mxu3 }
 0x1ad   : > { %v2240_v22 = vadd.f32 %v2239_v26, %v2226_v20 }
 0x1af   : > { %v2360_v23 = vadd.f32 %v2240_v22, %v320_v21 }
 0x1b1   : > { %2368 = vst [vmem:[#allocation2 + $0x28] sm:$0xff] %v2360_v23 }
 0x1ba   : > { %v2251_v3 = vpop.f32.mrf.mxu0 }
 0x1bb   : > { %v2265_v24 = vpop.f32.mrf.mxu1 }
 0x1bc   : > { %v2266_v27 = vadd.f32 %v2265_v24, %v2251_v3 }
 0x1c2   : > { %v2279_v25 = vpop.f32.mrf.mxu2  ;;  %v2253_v28 = vpop.f32.mrf.mxu0 }
 0x1c3   : > { %v2293_v19 = vpop.f32.mrf.mxu3  ;;  %v2267_v29 = vpop.f32.mrf.mxu1  ;;  %v2280_v30 = vadd.f32 %v2279_v25, %v2266_v27 }
 0x1c4   : > { %v2268_v33 = vadd.f32 %v2267_v29, %v2253_v28 }
 0x1c5   : > { %v2294_v32 = vadd.f32 %v2293_v19, %v2280_v30 }
 0x1ca   : > { %v2281_v31 = vpop.f32.mrf.mxu2 }
 0x1cb   : > { %v2295_v34 = vpop.f32.mrf.mxu3  ;;  %v2282_v38 = vadd.f32 %v2281_v31, %v2268_v33 }
 0x1cd   : > { %v2296_v40 = vadd.f32 %v2295_v34, %v2282_v38 }
 0x1da   : > { %v2307_v35 = vpop.f32.mrf.mxu0 }
 0x1db   : > { %v2308_v36 = vadd.f32 %v2307_v35, %v2294_v32  ;;  %v2321_v37 = vpop.f32.mrf.mxu1 }
 0x1dd   : > { %v2322_v39 = vadd.f32 %v2321_v37, %v2308_v36 }
 0x1e2   : > { %v2335_v48 = vpop.f32.mrf.mxu2  ;;  %v2309_v52 = vpop.f32.mrf.mxu0 }
 0x1e3   : > { %v2336_v53 = vadd.f32 %v2335_v48, %v2322_v39  ;;  %v2349_v41 = vpop.f32.mrf.mxu3  ;;  %v2310_v43 = vadd.f32 %v2309_v52, %v2296_v40  ;;  %v2323_v45 = vpop.f32.mrf.mxu1 }
 0x1e5   : > { %v2350_v56 = vadd.f32 %v2349_v41, %v2336_v53  ;;  %v2324_v46 = vadd.f32 %v2323_v45, %v2310_v43 }
 0x1e7   : > { %v2357_v44 = vadd.f32 %v2350_v56, %v317_v42 }
 0x1e9   : > { %2365 = vst [vmem:[#allocation2 + $0x10] sm:$0xff] %v2357_v44 }
 0x1ea   : > { %v2337_v47 = vpop.f32.mrf.mxu2 }
 0x1eb   : > { %v2338_v49 = vadd.f32 %v2337_v47, %v2324_v46  ;;  %v2351_v51 = vpop.f32.mrf.mxu3 }
 0x1ed   : > { %v2352_v54 = vadd.f32 %v2351_v51, %v2338_v49  ;;  %2373 = sbr.rel (%p3738_p8) target bundleno = 527 (0x20f), region = 63 }
 0x1ef   : > { %v2361_v55 = vadd.f32 %v2352_v54, %v321_v50 }
 0x1f1   : > { %2369 = vst [vmem:[#allocation2 + $0x38] sm:$0xff] %v2361_v55 }
 0x1f2   : > { %v2374_v57 = vld [vmem:[#allocation2 + $0x30] sm:$0xff]  ;;  %v2375_v58 = vld [vmem:[#allocation2] sm:$0xff]  ;;  %v2376_v59 = vld [vmem:[#allocation2 + $0x18] sm:$0xff]  ;;  %vm2454_vm0 = vcmask 1040384   ;;  %vm2466_vm1 = vcmask 1041408   ;;  %vm2468_vm2 = vcmask 1045508  }
 0x1f3   : > { %v2382_v60 = vpack.c.bf16 %v2375_v58, %v2374_v57  ;;  %v2418_v61 = vmul.f32 %v2374_v57, %v2374_v57  ;;  %v2419_v62 = vmul.f32 %v2375_v58, %v2375_v58  ;;  %v2377_v63 = vld [vmem:[#allocation2 + $0x10] sm:$0xff]  ;;  %v2420_v0 = vmul.f32 %v2376_v59, %v2376_v59  ;;  %v2378_v1 = vld [vmem:[#allocation2 + $0x8] sm:$0xff]  ;;  %v2379_v2 = vld [vmem:[#allocation2 + $0x20] sm:$0xff] }
 0x1f4   : > { %v2383_v4 = vpack.c.bf16 %v2377_v63, %v2376_v59  ;;  %v2421_v5 = vmul.f32 %v2377_v63, %v2377_v63  ;;  %v2384_v6 = vpack.c.bf16 %v2379_v2, %v2378_v1  ;;  %v2390_v7 = vadd.f32 %v2378_v1, %v2374_v57  ;;  %v2380_v8 = vld [vmem:[#allocation2 + $0x28] sm:$0xff] }
 0x1f5   : > { %2386 = vst [vmem:[%s4413_s5] sm:$0xff] %v2382_v60  ;;  %v2397_v11 = vadd.f32 %v2379_v2, %v2375_v58  ;;  %v2422_v12 = vmul.f32 %v2378_v1, %v2378_v1  ;;  %v2423_v13 = vmul.f32 %v2379_v2, %v2379_v2  ;;  %v2404_v16 = vadd.f32 %v2380_v8, %v2376_v59 }
 0x1f6   : > { %2387 = vst [vmem:[%s4413_s5 + $0x8] sm:$0xff] %v2383_v4  ;;  %v2391_v15 = vrot.slane %v2390_v7, 4  ;;  %v2424_v10 = vmul.f32 %v2380_v8, %v2380_v8  ;;  %vm2470_vm3 = vcmask 1043456  }
 0x1f7   : > { %2388 = vst [vmem:[%s4413_s5 + $0x10] sm:$0xff] %v2384_v6  ;;  %v2398_v18 = vrot.slane %v2397_v11, 4  ;;  %v2426_v20 = vadd.f32 %v2422_v12, %v2418_v61  ;;  %v2433_v26 = vadd.f32 %v2423_v13, %v2419_v62  ;;  %v2405_v23 = vrot.slane %v2404_v16, 4 }
 0x1f8   : > { %v2381_v9 = vld [vmem:[#allocation2 + $0x38] sm:$0xff]  ;;  %v2392_v22 = vadd.f32 %v2391_v15, %v2390_v7  ;;  %v2440_v24 = vadd.f32 %v2424_v10, %v2420_v0 }
 0x1f9   : > { %v2385_v14 = vpack.c.bf16 %v2381_v9, %v2380_v8  ;;  %v2411_v17 = vadd.f32 %v2381_v9, %v2377_v63  ;;  %v2425_v21 = vmul.f32 %v2381_v9, %v2381_v9  ;;  %v2399_v25 = vadd.f32 %v2398_v18, %v2397_v11 }
 0x1fa   : > { %v2427_v19 = vrot.slane %v2426_v20, 4  ;;  %v2434_v27 = vrot.slane %v2433_v26, 4  ;;  %v2393_v29 = vrot.slane %v2392_v22, 2  ;;  %v2406_v30 = vadd.f32 %v2405_v23, %v2404_v16 }
 0x1fb   : > { %2389 = vst [vmem:[%s4413_s5 + $0x18] sm:$0xff] %v2385_v14  ;;  %v2412_v3 = vrot.slane %v2411_v17, 4  ;;  %v2447_v28 = vadd.f32 %v2425_v21, %v2421_v5  ;;  %v2441_v32 = vrot.slane %v2440_v24, 4  ;;  %v2400_v33 = vrot.slane %v2399_v25, 2 }
 0x1fc   : > { %v2428_v34 = vadd.f32 %v2427_v19, %v2426_v20  ;;  %v2435_v35 = vadd.f32 %v2434_v27, %v2433_v26  ;;  %v2394_v37 = vadd.f32 %v2393_v29, %v2392_v22  ;;  %v2407_v38 = vrot.slane %v2406_v30, 2 }
 0x1fd   : > { %v2413_v31 = vadd.f32 %v2412_v3, %v2411_v17  ;;  %v2448_v36 = vrot.slane %v2447_v28, 4  ;;  %v2442_v48 = vadd.f32 %v2441_v32, %v2440_v24  ;;  %v2401_v40 = vadd.f32 %v2400_v33, %v2399_v25 }
 0x1fe   : > { %v2429_v53 = vrot.slane %v2428_v34, 2  ;;  %v2436_v41 = vrot.slane %v2435_v35, 2  ;;  %v2395_v42 = vrot.slane %v2394_v37, 1  ;;  %v2408_v56 = vadd.f32 %v2407_v38, %v2406_v30 }
 0x1ff   : > { %v2414_v39 = vrot.slane %v2413_v31, 2  ;;  %v2449_v52 = vadd.f32 %v2448_v36, %v2447_v28  ;;  %v2443_v44 = vrot.slane %v2442_v48, 2  ;;  %v2402_v45 = vrot.slane %v2401_v40, 1 }
 0x200   : > { %v2430_v46 = vadd.f32 %v2429_v53, %v2428_v34  ;;  %v2437_v47 = vadd.f32 %v2436_v41, %v2435_v35  ;;  %v2409_v50 = vrot.slane %v2408_v56, 1  ;;  %v2396_v55 = vadd.f32 %v2395_v42, %v2394_v37 }
 0x201   : > { %v2415_v43 = vadd.f32 %v2414_v39, %v2413_v31  ;;  %v2450_v49 = vrot.slane %v2449_v52, 2  ;;  %v2444_v54 = vadd.f32 %v2443_v44, %v2442_v48  ;;  %v2403_v57 = vadd.f32 %v2402_v45, %v2401_v40 }
 0x202   : > { %v2438_v58 = vrot.slane %v2437_v47, 1  ;;  %v2431_v60 = vrot.slane %v2430_v46, 1  ;;  %v2410_v61 = vadd.f32 %v2409_v50, %v2408_v56 }
 0x203   : > { %v2416_v51 = vrot.slane %v2415_v43, 1  ;;  %v2451_v59 = vadd.f32 %v2450_v49, %v2449_v52  ;;  %v2445_v62 = vrot.slane %v2444_v54, 1 }
 0x204   : > { %v2432_v1 = vadd.f32 %v2431_v60, %v2430_v46  ;;  %v2439_v2 = vadd.f32 %v2438_v58, %v2437_v47 }
 0x205   : > { %v2417_v63 = vadd.f32 %v2416_v51, %v2415_v43  ;;  %v2452_v0 = vrot.slane %v2451_v59, 1  ;;  %v2446_v4 = vadd.f32 %v2445_v62, %v2444_v54 }
 0x206   : > { %v2455_v6 = vsel %vm2454_vm0, %v2396_v55, %v2432_v1  ;;  %v2456_v7 = vsel %vm2454_vm0, %v2403_v57, %v2439_v2 }
 0x207   : > { %v2453_v5 = vadd.f32 %v2452_v0, %v2451_v59  ;;  %v2457_v8 = vsel %vm2454_vm0, %v2410_v61, %v2446_v4  ;;  %v2463_v9 = vrot.slane %v2456_v7, 6 }
 0x208   : > { %v2464_v12 = vrot.slane %v2457_v8, 4 }
 0x209   : > { %v2458_v11 = vsel %vm2454_vm0, %v2417_v63, %v2453_v5  ;;  %v2467_v14 = vsel %vm2466_vm1, %v2455_v6, %v2463_v9 }
 0x20a   : > { %v2465_v13 = vrot.slane %v2458_v11, 2 }
 0x20c   : > { %v2469_v15 = vsel %vm2468_vm2, %v2464_v12, %v2465_v13 }
 0x20d   : > { %v2471_v16 = vsel %vm2470_vm3, %v2467_v14, %v2469_v15 }
 0x20e   : > { %2473 = vst [vmem:[%s4411_s11] sm:$0xff] %v2471_v16 }
 0x20f PF: > { %2489 = sbr.rel (!%p4374_p1) target bundleno = 533 (0x215), region = 67  ;;  %s4010_s12 = sshll.u32 (%p4374_p1), %s4227_s20, 4  ;;  %v2508_v17 = vld [vmem:[%s4413_s5] sm:$0xff] (%p4374_p1)  ;;  %v2510_v10 = vld [vmem:[%s4413_s5 + $0x8] sm:$0xff] (%p4374_p1)  ;;  %v2512_v18 = vld [vmem:[%s4413_s5 + $0x10] sm:$0xff] (%p4374_p1) }
 0x210   : > { %s2495_s6 = scalar_lea.vmem (%p4374_p1), %s5046_s2, %s4010_s12  ;;  %v2514_v20 = vld [vmem:[%s4413_s5 + $0x18] sm:$0xff] (%p4374_p1) }
 0x211   : > { %2509 = vst [vmem:[%s2495_s6] sm:$0xff] (%p4374_p1), %v2508_v17 }
 0x212   : > { %2511 = vst [vmem:[%s2495_s6 + $0x8] sm:$0xff] (%p4374_p1), %v2510_v10 }
 0x213   : > { %2513 = vst [vmem:[%s2495_s6 + $0x40] sm:$0xff] (%p4374_p1), %v2512_v18 }
 0x214   : > { %2515 = vst [vmem:[%s2495_s6 + $0x48] sm:$0xff] %v2514_v20 }
 0x215 PF: > { %s17_s23 = sadd.s32 1, %s4239_s23   ;;  %s5065_s12 = sld [smem:[#allocation8_spill]] }
 0x216   : > { %p14_p9 = scmp.ge.s32.totalorder %s17_s23, 38   ;;  %s5066_s13 = sld [smem:[#allocation14_spill]] }
 0x217   : > { %s5067_s20 = sld [smem:[#allocation13_spill]]  ;;  %s5072_s14 = smov %s4207_s15 }
 0x218   : > { %s5068_s17 = sld [smem:[#allocation9_spill]]  ;;  %s5073_s15 = smov %s4211_s16 }
 0x219   : > { %s5069_s18 = sld [smem:[#allocation12_spill]]  ;;  %s5075_s19 = smov %s4231_s21 }
 0x21a   : > { %s5070_s10 = sld [smem:[#allocation10_spill]] }
 0x21b   : > { %s5071_s24 = sld [smem:[#allocation11_spill]] }
 0x21d   : > { %s5074_s16 = smov %s5067_s20  ;;  %s5076_s20 = smov %s4235_s22 }
 0x21e   :  { %16 = sbr.rel (!%p14_p9) target bundleno = 9 (0x9), region = 142 }
 0x220   : > { %s5077_s21 = smov %s5070_s10 }
 0x221   : > { %s5078_s22 = smov %s5071_s24 }
 0x223   :  { %2547 = vsyncpa [#allocation5], 1 }
 0x224   :  { %2549 = vsyncpa [#allocation5 + $0x1], 1 }

</bundles_post_ra>
